<compile_context>
chip_gen: v6e
topology: v6e:2x2x1
jax: 0.10.0
libtpu: 0.0.40
codegen_flags: <defaults>
</compile_context>

<pallas_src>
import numpy as np
import jax
import jax.numpy as jnp
from jax import lax
from jax.experimental import pallas as pl
from jax.experimental.pallas import tpu as pltpu

_EPS = 1e-5
_MIN_ROWS = 8            # keep every sublane / row dim >= 8
_MIN_LANES = 128         # lane-dense I/O (unmasked vld / vst)
_WDT = jnp.bfloat16      # storage dtype for selectors + banded weights
# (output-row parity r, input-row offset a with hi = m - a, kernel row kh)
_DECONV_TAPS = ((0, 0, 1), (0, 1, 3), (1, 0, 2), (1, -1, 0))


def _rows(h):
    return max(_MIN_ROWS, h)


# ---------------------------------------------------------------------------
# One-time host-side parameter prep: fold BN+bias scale into the banded weight
# matrices, concatenate the kernel-row taps along the contraction axis.
# All selectors / weights are built PER SAMPLE (B=1) -> batch goes in the grid.
# ---------------------------------------------------------------------------
def _fold_bn(bias, bn):
    bias = np.asarray(bias, np.float32)
    if bn is None:
        return np.ones_like(bias), bias
    gamma, beta, mean, var = [np.asarray(a, np.float32) for a in bn]
    scale = gamma / np.sqrt(var + _EPS)
    shift = beta + (bias - mean) * scale
    return scale.astype(np.float32), shift.astype(np.float32)


def _prep_conv(w, bias, bn, H, W, lin_pad=None):
    """Conv2d(k=3,s=2,p=1) -> (S[3,Rout,Rin], Mcat[3*LinP,Lout], shift[1,Lout])."""
    w = np.asarray(w, np.float32)                  # (Cout, Cin, 3, 3)
    Cout, Cin = w.shape[:2]
    Ho, Wo = H // 2, W // 2
    Rin, Rout = _rows(H), _rows(Ho)
    Lin, Lout = W * Cin, Wo * Cout
    LinP = lin_pad if lin_pad is not None else Lin
    scale, shift = _fold_bn(bias, bn)

    S = np.zeros((3, Rout, Rin), np.float32)
    M = np.zeros((3, LinP, Lout), np.float32)
    for kh in range(3):
        for i in range(Ho):
            h = 2 * i + kh - 1
            if 0 <= h < H:
                S[kh, i, h] = 1.0
        for j in range(Wo):
            for kw in range(3):
                wc = 2 * j + kw - 1
                if 0 <= wc < W:
                    M[kh, wc * Cin:(wc + 1) * Cin, j * Cout:(j + 1) * Cout] = \
                        w[:, :, kh, kw].T * scale[None, :]     # fold BN scale
    sh = np.tile(shift, Wo)[None, :].astype(np.float32)
    return S, M.reshape(3 * LinP, Lout), sh


def _prep_deconv(w, bias, bn, H, W, lout_pad=None):
    """ConvTranspose2d(k=4,s=2,p=1) -> (R[4,Rout,Rin], Ncat[4*Lin,LoutP], shift)."""
    w = np.asarray(w, np.float32)                  # (Cin, Cout, 4, 4)
    Cin, Cout = w.shape[:2]
    Ho, Wo = 2 * H, 2 * W
    Rin, Rout = _rows(H), _rows(Ho)
    Lin, Lout = W * Cin, Wo * Cout
    LoutP = lout_pad if lout_pad is not None else Lout
    scale, shift = _fold_bn(bias, bn)

    R = np.zeros((4, Rout, Rin), np.float32)
    N = np.zeros((4, Lin, LoutP), np.float32)
    for t, (r, a, kh) in enumerate(_DECONV_TAPS):
        for i in range(r, Ho, 2):
            hi = (i - r) // 2 - a
            if 0 <= hi < H:
                R[t, i, hi] = 1.0
        for wi in range(W):
            for j in range(Wo):
                kw = j - 2 * wi + 1
                if 0 <= kw < 4:
                    N[t, wi * Cin:(wi + 1) * Cin, j * Cout:(j + 1) * Cout] = \
                        w[:, :, kh, kw] * scale[None, :]        # fold BN scale
    sh = np.zeros((1, LoutP), np.float32)
    sh[0, :Lout] = np.tile(shift, Wo)
    return R, N.reshape(4 * Lin, LoutP), sh


def prepare_network(params, in_channels, H, W):
    """Flat operand list [S/R (bf16), Mcat/Ncat (bf16), shift (f32)] x 10 + meta."""
    enc, dec = params
    flat, meta = [], []
    h, wsp, cin = H, W, in_channels
    n_layers = len(enc) + len(dec)
    idx = 0
    for (wt, b, bn) in enc:
        lin_pad = max(_MIN_LANES, wsp * cin) if idx == 0 else None
        S, Mc, sh = _prep_conv(wt, b, bn, h, wsp, lin_pad=lin_pad)
        flat += [jnp.asarray(S, _WDT), jnp.asarray(Mc, _WDT), jnp.asarray(sh)]
        meta.append((3, "relu"))
        h, wsp, cin = h // 2, wsp // 2, int(wt.shape[0])
        idx += 1
    for (wt, b, bn) in dec:
        cout = int(wt.shape[1])
        is_last = (idx == n_layers - 1)
        lout_pad = max(_MIN_LANES, 2 * wsp * cout) if is_last else None
        R, Nc, sh = _prep_deconv(wt, b, bn, h, wsp, lout_pad=lout_pad)
        flat += [jnp.asarray(R, _WDT), jnp.asarray(Nc, _WDT), jnp.asarray(sh)]
        meta.append((4, "sigmoid" if is_last else "relu"))
        h, wsp, cin = 2 * h, 2 * wsp, cout
        idx += 1
    return flat, tuple(meta), (h, wsp, cin)


# ---------------------------------------------------------------------------
# The single fused Pallas kernel: per layer, gather the kernel-row taps with
# tiny 0/1 selector matmuls, then ONE large-K bf16 MXU matmul + shift + act.
# ---------------------------------------------------------------------------
def _make_cae_kernel(layer_meta):
    def kernel(*refs):
        x_ref, out_ref, prm = refs[0], refs[-1], refs[1:-1]
        x = x_ref[...]                               # f32 between layers
        p = 0
        for ntaps, act in layer_meta:
            sel_ref, mat_ref, sh_ref = prm[p], prm[p + 1], prm[p + 2]
            p += 3
            xb = x.astype(jnp.bfloat16)
            rows = jnp.concatenate(
                [jnp.dot(sel_ref[t], xb, preferred_element_type=jnp.float32)
                 for t in range(ntaps)], axis=1).astype(jnp.bfloat16)
            y = jnp.dot(rows, mat_ref[...], preferred_element_type=jnp.float32)
            y = y + sh_ref[...]                      # BN scale folded into mat
            if act == "relu":
                y = jnp.maximum(y, 0.0)
            else:                                    # sigmoid on the EUP
                y = pl.reciprocal(1.0 + jnp.exp(-y), approx=True)
            x = y
        out_ref[...] = x
    return kernel


def _bcast_spec(arr):
    nd = arr.ndim
    return pl.BlockSpec(arr.shape, lambda b: (0,) * nd)


def cae_forward(x_nchw, flat_params, layer_meta, out_dims):
    B, C, H, W = x_nchw.shape
    Ho, Wo, Co = out_dims
    lin, lout = W * C, Wo * Co
    lin_p, lout_p = max(_MIN_LANES, lin), max(_MIN_LANES, lout)
    rin_p, rout_p = _rows(H), _rows(Ho)

    # channels-last per-sample 2D layout, zero-padded to lane-dense width
    x3d = jnp.transpose(x_nchw, (0, 2, 3, 1)).reshape(B, H, lin)
    x3d = jnp.pad(x3d, ((0, 0), (0, rin_p - H), (0, lin_p - lin)))

    in_specs = [pl.BlockSpec((None, rin_p, lin_p), lambda b: (b, 0, 0))]
    in_specs += [_bcast_spec(a) for a in flat_params]
    out_spec = pl.BlockSpec((None, rout_p, lout_p), lambda b: (b, 0, 0))

    out3d = pl.pallas_call(
        _make_cae_kernel(layer_meta),
        out_shape=jax.ShapeDtypeStruct((B, rout_p, lout_p), jnp.float32),
        grid_spec=pltpu.PrefetchScalarGridSpec(
            num_scalar_prefetch=0, grid=(B,),
            in_specs=in_specs, out_specs=out_spec),
        compiler_params=pltpu.CompilerParams(
            dimension_semantics=("parallel",),       # 1 image / TensorCore on v7x
            vmem_limit_bytes=32 * 1024 * 1024),
    )(x3d, *flat_params)

    out = out3d[:, :Ho, :lout].reshape(B, Ho, Wo, Co)
    return jnp.transpose(out, (0, 3, 1, 2))          # NHWC -> NCHW


# ---------------------------------------------------------------------------
# Deterministic parameter init (shapes from CAE_pytorch.__init__)
# ---------------------------------------------------------------------------
def init_params(key, in_channels=1):
    nf = [16, 32, 64, 128, 256]
    keys = jax.random.split(key, 64)
    ki = iter(range(64))

    def nxt():
        return keys[next(ki)]

    def bn_init(c):
        gamma = 1.0 + 0.1 * jax.random.normal(nxt(), (c,), jnp.float32)
        beta = 0.05 * jax.random.normal(nxt(), (c,), jnp.float32)
        mean = 0.05 * jax.random.normal(nxt(), (c,), jnp.float32)
        var = 0.5 + jax.random.uniform(nxt(), (c,), jnp.float32)
        return gamma, beta, mean, var

    enc = []
    cin = in_channels
    for c in nf:
        w = 0.05 * jax.random.normal(nxt(), (c, cin, 3, 3), jnp.float32)
        b = 0.01 * jax.random.normal(nxt(), (c,), jnp.float32)
        enc.append((w, b, bn_init(c)))
        cin = c

    dec = []
    dec_out = [nf[3], nf[2], nf[1], nf[0], 1]
    cin = nf[4]
    for idx, c in enumerate(dec_out):
        w = 0.05 * jax.random.normal(nxt(), (cin, c, 4, 4), jnp.float32)
        b = 0.01 * jax.random.normal(nxt(), (c,), jnp.float32)
        bn = bn_init(c) if idx < 4 else None
        dec.append((w, b, bn))
        cin = c

    return enc, dec


# ---------------------------------------------------------------------------
# Plain-JAX reference (lax convs) used only to validate the Pallas kernel
# ---------------------------------------------------------------------------
def reference_forward(x_nchw, params):
    enc, dec = params
    x = jnp.transpose(x_nchw, (0, 2, 3, 1))

    def bn_apply(y, bn):
        if bn is None:
            return y
        gamma, beta, mean, var = bn
        return gamma * (y - mean) / jnp.sqrt(var + _EPS) + beta

    for (w, b, bn) in enc:
        k = jnp.transpose(w, (2, 3, 1, 0))                       # HWIO
        y = lax.conv_general_dilated(x, k, (2, 2), ((1, 1), (1, 1)),
                                     dimension_numbers=("NHWC", "HWIO", "NHWC"),
                                     precision=lax.Precision.HIGHEST)
        x = jnp.maximum(bn_apply(y + b, bn), 0.0)
    for i, (w, b, bn) in enumerate(dec):
        k = jnp.transpose(w[:, :, ::-1, ::-1], (2, 3, 0, 1))     # flip + HWIO
        y = lax.conv_general_dilated(x, k, (1, 1), ((2, 2), (2, 2)),
                                     lhs_dilation=(2, 2),
                                     dimension_numbers=("NHWC", "HWIO", "NHWC"),
                                     precision=lax.Precision.HIGHEST)
        y = bn_apply(y + b, bn)
        x = jnp.maximum(y, 0.0) if i < len(dec) - 1 else jax.nn.sigmoid(y)
    return jnp.transpose(x, (0, 3, 1, 2))


if __name__ == "__main__":
    key = jax.random.PRNGKey(0)
    pkey, xkey = jax.random.split(key)
    params = init_params(pkey, in_channels=1)

    # 32x32 input: 5 stride-2 convs -> 1x1x256 rep -> 5 transposed convs -> 32x32
    B, C, H, W = 2, 1, 32, 32
    x = jax.random.uniform(xkey, (B, C, H, W), jnp.float32)

    flat_params, layer_meta, out_dims = prepare_network(params, C, H, W)

    fwd = jax.jit(lambda inp, prms: cae_forward(inp, prms, layer_meta, out_dims))
    out = jax.block_until_ready(fwd(x, flat_params))

    assert out.shape == (B, 1, H, W), out.shape
    assert out.dtype == jnp.float32
    assert bool(jnp.all(jnp.isfinite(out)))
    # approx-reciprocal sigmoid may overshoot 1.0 by ~1e-3
    assert bool(jnp.all((out >= 0.0) & (out <= 1.0 + 1e-3)))

    # Validate against a plain-JAX f32 conv reference (tolerance sized for the
    # in-kernel bf16 operands / f32 accumulation across 10 layers).
    ref = jax.block_until_ready(jax.jit(reference_forward)(x, params))
    assert bool(jnp.allclose(out, ref, atol=3e-2, rtol=3e-2)), \
        float(jnp.max(jnp.abs(out - ref)))

    print("KERNEL_OK")
</pallas_src>

<mosaic_0001>
module attributes {stable_mosaic.version = 11 : i64} {
  func.func @kernel(%arg0: i32, %arg1: memref<1x32x128xf32, #tpu.memory_space<vmem>>, %arg2: memref<3x16x32xbf16, #tpu.memory_space<vmem>>, %arg3: memref<384x256xbf16, #tpu.memory_space<vmem>>, %arg4: memref<1x256xf32, #tpu.memory_space<vmem>>, %arg5: memref<3x8x16xbf16, #tpu.memory_space<vmem>>, %arg6: memref<768x256xbf16, #tpu.memory_space<vmem>>, %arg7: memref<1x256xf32, #tpu.memory_space<vmem>>, %arg8: memref<3x8x8xbf16, #tpu.memory_space<vmem>>, %arg9: memref<768x256xbf16, #tpu.memory_space<vmem>>, %arg10: memref<1x256xf32, #tpu.memory_space<vmem>>, %arg11: memref<3x8x8xbf16, #tpu.memory_space<vmem>>, %arg12: memref<768x256xbf16, #tpu.memory_space<vmem>>, %arg13: memref<1x256xf32, #tpu.memory_space<vmem>>, %arg14: memref<3x8x8xbf16, #tpu.memory_space<vmem>>, %arg15: memref<768x256xbf16, #tpu.memory_space<vmem>>, %arg16: memref<1x256xf32, #tpu.memory_space<vmem>>, %arg17: memref<4x8x8xbf16, #tpu.memory_space<vmem>>, %arg18: memref<1024x256xbf16, #tpu.memory_space<vmem>>, %arg19: memref<1x256xf32, #tpu.memory_space<vmem>>, %arg20: memref<4x8x8xbf16, #tpu.memory_space<vmem>>, %arg21: memref<1024x256xbf16, #tpu.memory_space<vmem>>, %arg22: memref<1x256xf32, #tpu.memory_space<vmem>>, %arg23: memref<4x8x8xbf16, #tpu.memory_space<vmem>>, %arg24: memref<1024x256xbf16, #tpu.memory_space<vmem>>, %arg25: memref<1x256xf32, #tpu.memory_space<vmem>>, %arg26: memref<4x16x8xbf16, #tpu.memory_space<vmem>>, %arg27: memref<1024x256xbf16, #tpu.memory_space<vmem>>, %arg28: memref<1x256xf32, #tpu.memory_space<vmem>>, %arg29: memref<4x32x16xbf16, #tpu.memory_space<vmem>>, %arg30: memref<1024x128xbf16, #tpu.memory_space<vmem>>, %arg31: memref<1x128xf32, #tpu.memory_space<vmem>>, %arg32: memref<1x32x128xf32, #tpu.memory_space<vmem>>) attributes {dimension_semantics = [#tpu.dimension_semantics<parallel>], iteration_bounds = array<i64: 2>, scalar_prefetch = 0 : i64, scratch_operands = 0 : i64, tpu.core_type = #tpu.core_type<tc>, window_params = [{transform_indices = @transform_0, window_bounds = array<i64: 1, 32, 128>}, {pipeline_mode = #tpu.pipeline_mode<synchronous>, transform_indices = @transform_1, window_bounds = array<i64: 3, 16, 32>}, {pipeline_mode = #tpu.pipeline_mode<synchronous>, transform_indices = @transform_2, window_bounds = array<i64: 384, 256>}, {pipeline_mode = #tpu.pipeline_mode<synchronous>, transform_indices = @transform_3, window_bounds = array<i64: 1, 256>}, {pipeline_mode = #tpu.pipeline_mode<synchronous>, transform_indices = @transform_4, window_bounds = array<i64: 3, 8, 16>}, {pipeline_mode = #tpu.pipeline_mode<synchronous>, transform_indices = @transform_5, window_bounds = array<i64: 768, 256>}, {pipeline_mode = #tpu.pipeline_mode<synchronous>, transform_indices = @transform_6, window_bounds = array<i64: 1, 256>}, {pipeline_mode = #tpu.pipeline_mode<synchronous>, transform_indices = @transform_7, window_bounds = array<i64: 3, 8, 8>}, {pipeline_mode = #tpu.pipeline_mode<synchronous>, transform_indices = @transform_8, window_bounds = array<i64: 768, 256>}, {pipeline_mode = #tpu.pipeline_mode<synchronous>, transform_indices = @transform_9, window_bounds = array<i64: 1, 256>}, {pipeline_mode = #tpu.pipeline_mode<synchronous>, transform_indices = @transform_10, window_bounds = array<i64: 3, 8, 8>}, {pipeline_mode = #tpu.pipeline_mode<synchronous>, transform_indices = @transform_11, window_bounds = array<i64: 768, 256>}, {pipeline_mode = #tpu.pipeline_mode<synchronous>, transform_indices = @transform_12, window_bounds = array<i64: 1, 256>}, {pipeline_mode = #tpu.pipeline_mode<synchronous>, transform_indices = @transform_13, window_bounds = array<i64: 3, 8, 8>}, {pipeline_mode = #tpu.pipeline_mode<synchronous>, transform_indices = @transform_14, window_bounds = array<i64: 768, 256>}, {pipeline_mode = #tpu.pipeline_mode<synchronous>, transform_indices = @transform_15, window_bounds = array<i64: 1, 256>}, {pipeline_mode = #tpu.pipeline_mode<synchronous>, transform_indices = @transform_16, window_bounds = array<i64: 4, 8, 8>}, {pipeline_mode = #tpu.pipeline_mode<synchronous>, transform_indices = @transform_17, window_bounds = array<i64: 1024, 256>}, {pipeline_mode = #tpu.pipeline_mode<synchronous>, transform_indices = @transform_18, window_bounds = array<i64: 1, 256>}, {pipeline_mode = #tpu.pipeline_mode<synchronous>, transform_indices = @transform_19, window_bounds = array<i64: 4, 8, 8>}, {pipeline_mode = #tpu.pipeline_mode<synchronous>, transform_indices = @transform_20, window_bounds = array<i64: 1024, 256>}, {pipeline_mode = #tpu.pipeline_mode<synchronous>, transform_indices = @transform_21, window_bounds = array<i64: 1, 256>}, {pipeline_mode = #tpu.pipeline_mode<synchronous>, transform_indices = @transform_22, window_bounds = array<i64: 4, 8, 8>}, {pipeline_mode = #tpu.pipeline_mode<synchronous>, transform_indices = @transform_23, window_bounds = array<i64: 1024, 256>}, {pipeline_mode = #tpu.pipeline_mode<synchronous>, transform_indices = @transform_24, window_bounds = array<i64: 1, 256>}, {pipeline_mode = #tpu.pipeline_mode<synchronous>, transform_indices = @transform_25, window_bounds = array<i64: 4, 16, 8>}, {pipeline_mode = #tpu.pipeline_mode<synchronous>, transform_indices = @transform_26, window_bounds = array<i64: 1024, 256>}, {pipeline_mode = #tpu.pipeline_mode<synchronous>, transform_indices = @transform_27, window_bounds = array<i64: 1, 256>}, {pipeline_mode = #tpu.pipeline_mode<synchronous>, transform_indices = @transform_28, window_bounds = array<i64: 4, 32, 16>}, {pipeline_mode = #tpu.pipeline_mode<synchronous>, transform_indices = @transform_29, window_bounds = array<i64: 1024, 128>}, {pipeline_mode = #tpu.pipeline_mode<synchronous>, transform_indices = @transform_30, window_bounds = array<i64: 1, 128>}, {transform_indices = @transform_31, window_bounds = array<i64: 1, 32, 128>}]} {
    %c0 = arith.constant 0 : index
    %c0_0 = arith.constant 0 : index
    %c0_1 = arith.constant 0 : index
    %0 = vector.load %arg1[%c0, %c0_0, %c0_1] : memref<1x32x128xf32, #tpu.memory_space<vmem>>, vector<1x32x128xf32>
    %1 = vector.shape_cast %0 : vector<1x32x128xf32> to vector<32x128xf32>
    %2 = arith.truncf %1 : vector<32x128xf32> to vector<32x128xbf16>
    %c0_2 = arith.constant 0 : index
    %c0_3 = arith.constant 0 : index
    %c0_4 = arith.constant 0 : index
    %3 = vector.load %arg2[%c0_2, %c0_3, %c0_4] : memref<3x16x32xbf16, #tpu.memory_space<vmem>>, vector<1x16x32xbf16>
    %4 = vector.shape_cast %3 : vector<1x16x32xbf16> to vector<16x32xbf16>
    %cst = arith.constant dense<0.000000e+00> : vector<16x128xf32>
    %5 = tpu.matmul %4, %2, %cst {dimension_numbers = #tpu.dot_dimension_numbers<[1], [0], [0], [1], [0, 0, 1, 1], [], []>} : vector<16x32xbf16>, vector<32x128xbf16>, vector<16x128xf32> -> vector<16x128xf32>
    %c1 = arith.constant 1 : index
    %c0_5 = arith.constant 0 : index
    %c0_6 = arith.constant 0 : index
    %6 = vector.load %arg2[%c1, %c0_5, %c0_6] : memref<3x16x32xbf16, #tpu.memory_space<vmem>>, vector<1x16x32xbf16>
    %7 = vector.shape_cast %6 : vector<1x16x32xbf16> to vector<16x32xbf16>
    %cst_7 = arith.constant dense<0.000000e+00> : vector<16x128xf32>
    %8 = tpu.matmul %7, %2, %cst_7 {dimension_numbers = #tpu.dot_dimension_numbers<[1], [0], [0], [1], [0, 0, 1, 1], [], []>} : vector<16x32xbf16>, vector<32x128xbf16>, vector<16x128xf32> -> vector<16x128xf32>
    %c2 = arith.constant 2 : index
    %c0_8 = arith.constant 0 : index
    %c0_9 = arith.constant 0 : index
    %9 = vector.load %arg2[%c2, %c0_8, %c0_9] : memref<3x16x32xbf16, #tpu.memory_space<vmem>>, vector<1x16x32xbf16>
    %10 = vector.shape_cast %9 : vector<1x16x32xbf16> to vector<16x32xbf16>
    %cst_10 = arith.constant dense<0.000000e+00> : vector<16x128xf32>
    %11 = tpu.matmul %10, %2, %cst_10 {dimension_numbers = #tpu.dot_dimension_numbers<[1], [0], [0], [1], [0, 0, 1, 1], [], []>} : vector<16x32xbf16>, vector<32x128xbf16>, vector<16x128xf32> -> vector<16x128xf32>
    %12 = tpu.concatenate %5, %8, %11 in 1 : vector<16x128xf32>, vector<16x128xf32>, vector<16x128xf32> -> vector<16x384xf32>
    %13 = arith.truncf %12 : vector<16x384xf32> to vector<16x384xbf16>
    %c0_11 = arith.constant 0 : index
    %c0_12 = arith.constant 0 : index
    %14 = vector.load %arg3[%c0_11, %c0_12] : memref<384x256xbf16, #tpu.memory_space<vmem>>, vector<384x256xbf16>
    %cst_13 = arith.constant dense<0.000000e+00> : vector<16x256xf32>
    %15 = tpu.matmul %13, %14, %cst_13 {dimension_numbers = #tpu.dot_dimension_numbers<[1], [0], [0], [1], [0, 0, 1, 1], [], []>} : vector<16x384xbf16>, vector<384x256xbf16>, vector<16x256xf32> -> vector<16x256xf32>
    %c0_14 = arith.constant 0 : index
    %c0_15 = arith.constant 0 : index
    %16 = vector.load %arg4[%c0_14, %c0_15] : memref<1x256xf32, #tpu.memory_space<vmem>>, vector<1x256xf32>
    %17 = vector.broadcast %16 : vector<1x256xf32> to vector<16x256xf32>
    %18 = arith.addf %15, %17 : vector<16x256xf32>
    %cst_16 = arith.constant 0.000000e+00 : f32
    %19 = vector.broadcast %cst_16 : f32 to vector<16x256xf32>
    %20 = arith.maximumf %18, %19 : vector<16x256xf32>
    %21 = arith.truncf %20 : vector<16x256xf32> to vector<16x256xbf16>
    %c0_17 = arith.constant 0 : index
    %c0_18 = arith.constant 0 : index
    %c0_19 = arith.constant 0 : index
    %22 = vector.load %arg5[%c0_17, %c0_18, %c0_19] : memref<3x8x16xbf16, #tpu.memory_space<vmem>>, vector<1x8x16xbf16>
    %23 = vector.shape_cast %22 : vector<1x8x16xbf16> to vector<8x16xbf16>
    %cst_20 = arith.constant dense<0.000000e+00> : vector<8x256xf32>
    %24 = tpu.matmul %23, %21, %cst_20 {dimension_numbers = #tpu.dot_dimension_numbers<[1], [0], [0], [1], [0, 0, 1, 1], [], []>} : vector<8x16xbf16>, vector<16x256xbf16>, vector<8x256xf32> -> vector<8x256xf32>
    %c1_21 = arith.constant 1 : index
    %c0_22 = arith.constant 0 : index
    %c0_23 = arith.constant 0 : index
    %25 = vector.load %arg5[%c1_21, %c0_22, %c0_23] : memref<3x8x16xbf16, #tpu.memory_space<vmem>>, vector<1x8x16xbf16>
    %26 = vector.shape_cast %25 : vector<1x8x16xbf16> to vector<8x16xbf16>
    %cst_24 = arith.constant dense<0.000000e+00> : vector<8x256xf32>
    %27 = tpu.matmul %26, %21, %cst_24 {dimension_numbers = #tpu.dot_dimension_numbers<[1], [0], [0], [1], [0, 0, 1, 1], [], []>} : vector<8x16xbf16>, vector<16x256xbf16>, vector<8x256xf32> -> vector<8x256xf32>
    %c2_25 = arith.constant 2 : index
    %c0_26 = arith.constant 0 : index
    %c0_27 = arith.constant 0 : index
    %28 = vector.load %arg5[%c2_25, %c0_26, %c0_27] : memref<3x8x16xbf16, #tpu.memory_space<vmem>>, vector<1x8x16xbf16>
    %29 = vector.shape_cast %28 : vector<1x8x16xbf16> to vector<8x16xbf16>
    %cst_28 = arith.constant dense<0.000000e+00> : vector<8x256xf32>
    %30 = tpu.matmul %29, %21, %cst_28 {dimension_numbers = #tpu.dot_dimension_numbers<[1], [0], [0], [1], [0, 0, 1, 1], [], []>} : vector<8x16xbf16>, vector<16x256xbf16>, vector<8x256xf32> -> vector<8x256xf32>
    %31 = tpu.concatenate %24, %27, %30 in 1 : vector<8x256xf32>, vector<8x256xf32>, vector<8x256xf32> -> vector<8x768xf32>
    %32 = arith.truncf %31 : vector<8x768xf32> to vector<8x768xbf16>
    %c0_29 = arith.constant 0 : index
    %c0_30 = arith.constant 0 : index
    %33 = vector.load %arg6[%c0_29, %c0_30] : memref<768x256xbf16, #tpu.memory_space<vmem>>, vector<768x256xbf16>
    %cst_31 = arith.constant dense<0.000000e+00> : vector<8x256xf32>
    %34 = tpu.matmul %32, %33, %cst_31 {dimension_numbers = #tpu.dot_dimension_numbers<[1], [0], [0], [1], [0, 0, 1, 1], [], []>} : vector<8x768xbf16>, vector<768x256xbf16>, vector<8x256xf32> -> vector<8x256xf32>
    %c0_32 = arith.constant 0 : index
    %c0_33 = arith.constant 0 : index
    %35 = vector.load %arg7[%c0_32, %c0_33] : memref<1x256xf32, #tpu.memory_space<vmem>>, vector<1x256xf32>
    %36 = vector.broadcast %35 : vector<1x256xf32> to vector<8x256xf32>
    %37 = arith.addf %34, %36 : vector<8x256xf32>
    %cst_34 = arith.constant 0.000000e+00 : f32
    %38 = vector.broadcast %cst_34 : f32 to vector<8x256xf32>
    %39 = arith.maximumf %37, %38 : vector<8x256xf32>
    %40 = arith.truncf %39 : vector<8x256xf32> to vector<8x256xbf16>
    %c0_35 = arith.constant 0 : index
    %c0_36 = arith.constant 0 : index
    %c0_37 = arith.constant 0 : index
    %41 = vector.load %arg8[%c0_35, %c0_36, %c0_37] : memref<3x8x8xbf16, #tpu.memory_space<vmem>>, vector<1x8x8xbf16>
    %42 = vector.shape_cast %41 : vector<1x8x8xbf16> to vector<8x8xbf16>
    %cst_38 = arith.constant dense<0.000000e+00> : vector<8x256xf32>
    %43 = tpu.matmul %42, %40, %cst_38 {dimension_numbers = #tpu.dot_dimension_numbers<[1], [0], [0], [1], [0, 0, 1, 1], [], []>} : vector<8x8xbf16>, vector<8x256xbf16>, vector<8x256xf32> -> vector<8x256xf32>
    %c1_39 = arith.constant 1 : index
    %c0_40 = arith.constant 0 : index
    %c0_41 = arith.constant 0 : index
    %44 = vector.load %arg8[%c1_39, %c0_40, %c0_41] : memref<3x8x8xbf16, #tpu.memory_space<vmem>>, vector<1x8x8xbf16>
    %45 = vector.shape_cast %44 : vector<1x8x8xbf16> to vector<8x8xbf16>
    %cst_42 = arith.constant dense<0.000000e+00> : vector<8x256xf32>
    %46 = tpu.matmul %45, %40, %cst_42 {dimension_numbers = #tpu.dot_dimension_numbers<[1], [0], [0], [1], [0, 0, 1, 1], [], []>} : vector<8x8xbf16>, vector<8x256xbf16>, vector<8x256xf32> -> vector<8x256xf32>
    %c2_43 = arith.constant 2 : index
    %c0_44 = arith.constant 0 : index
    %c0_45 = arith.constant 0 : index
    %47 = vector.load %arg8[%c2_43, %c0_44, %c0_45] : memref<3x8x8xbf16, #tpu.memory_space<vmem>>, vector<1x8x8xbf16>
    %48 = vector.shape_cast %47 : vector<1x8x8xbf16> to vector<8x8xbf16>
    %cst_46 = arith.constant dense<0.000000e+00> : vector<8x256xf32>
    %49 = tpu.matmul %48, %40, %cst_46 {dimension_numbers = #tpu.dot_dimension_numbers<[1], [0], [0], [1], [0, 0, 1, 1], [], []>} : vector<8x8xbf16>, vector<8x256xbf16>, vector<8x256xf32> -> vector<8x256xf32>
    %50 = tpu.concatenate %43, %46, %49 in 1 : vector<8x256xf32>, vector<8x256xf32>, vector<8x256xf32> -> vector<8x768xf32>
    %51 = arith.truncf %50 : vector<8x768xf32> to vector<8x768xbf16>
    %c0_47 = arith.constant 0 : index
    %c0_48 = arith.constant 0 : index
    %52 = vector.load %arg9[%c0_47, %c0_48] : memref<768x256xbf16, #tpu.memory_space<vmem>>, vector<768x256xbf16>
    %cst_49 = arith.constant dense<0.000000e+00> : vector<8x256xf32>
    %53 = tpu.matmul %51, %52, %cst_49 {dimension_numbers = #tpu.dot_dimension_numbers<[1], [0], [0], [1], [0, 0, 1, 1], [], []>} : vector<8x768xbf16>, vector<768x256xbf16>, vector<8x256xf32> -> vector<8x256xf32>
    %c0_50 = arith.constant 0 : index
    %c0_51 = arith.constant 0 : index
    %54 = vector.load %arg10[%c0_50, %c0_51] : memref<1x256xf32, #tpu.memory_space<vmem>>, vector<1x256xf32>
    %55 = vector.broadcast %54 : vector<1x256xf32> to vector<8x256xf32>
    %56 = arith.addf %53, %55 : vector<8x256xf32>
    %cst_52 = arith.constant 0.000000e+00 : f32
    %57 = vector.broadcast %cst_52 : f32 to vector<8x256xf32>
    %58 = arith.maximumf %56, %57 : vector<8x256xf32>
    %59 = arith.truncf %58 : vector<8x256xf32> to vector<8x256xbf16>
    %c0_53 = arith.constant 0 : index
    %c0_54 = arith.constant 0 : index
    %c0_55 = arith.constant 0 : index
    %60 = vector.load %arg11[%c0_53, %c0_54, %c0_55] : memref<3x8x8xbf16, #tpu.memory_space<vmem>>, vector<1x8x8xbf16>
    %61 = vector.shape_cast %60 : vector<1x8x8xbf16> to vector<8x8xbf16>
    %cst_56 = arith.constant dense<0.000000e+00> : vector<8x256xf32>
    %62 = tpu.matmul %61, %59, %cst_56 {dimension_numbers = #tpu.dot_dimension_numbers<[1], [0], [0], [1], [0, 0, 1, 1], [], []>} : vector<8x8xbf16>, vector<8x256xbf16>, vector<8x256xf32> -> vector<8x256xf32>
    %c1_57 = arith.constant 1 : index
    %c0_58 = arith.constant 0 : index
    %c0_59 = arith.constant 0 : index
    %63 = vector.load %arg11[%c1_57, %c0_58, %c0_59] : memref<3x8x8xbf16, #tpu.memory_space<vmem>>, vector<1x8x8xbf16>
    %64 = vector.shape_cast %63 : vector<1x8x8xbf16> to vector<8x8xbf16>
    %cst_60 = arith.constant dense<0.000000e+00> : vector<8x256xf32>
    %65 = tpu.matmul %64, %59, %cst_60 {dimension_numbers = #tpu.dot_dimension_numbers<[1], [0], [0], [1], [0, 0, 1, 1], [], []>} : vector<8x8xbf16>, vector<8x256xbf16>, vector<8x256xf32> -> vector<8x256xf32>
    %c2_61 = arith.constant 2 : index
    %c0_62 = arith.constant 0 : index
    %c0_63 = arith.constant 0 : index
    %66 = vector.load %arg11[%c2_61, %c0_62, %c0_63] : memref<3x8x8xbf16, #tpu.memory_space<vmem>>, vector<1x8x8xbf16>
    %67 = vector.shape_cast %66 : vector<1x8x8xbf16> to vector<8x8xbf16>
    %cst_64 = arith.constant dense<0.000000e+00> : vector<8x256xf32>
    %68 = tpu.matmul %67, %59, %cst_64 {dimension_numbers = #tpu.dot_dimension_numbers<[1], [0], [0], [1], [0, 0, 1, 1], [], []>} : vector<8x8xbf16>, vector<8x256xbf16>, vector<8x256xf32> -> vector<8x256xf32>
    %69 = tpu.concatenate %62, %65, %68 in 1 : vector<8x256xf32>, vector<8x256xf32>, vector<8x256xf32> -> vector<8x768xf32>
    %70 = arith.truncf %69 : vector<8x768xf32> to vector<8x768xbf16>
    %c0_65 = arith.constant 0 : index
    %c0_66 = arith.constant 0 : index
    %71 = vector.load %arg12[%c0_65, %c0_66] : memref<768x256xbf16, #tpu.memory_space<vmem>>, vector<768x256xbf16>
    %cst_67 = arith.constant dense<0.000000e+00> : vector<8x256xf32>
    %72 = tpu.matmul %70, %71, %cst_67 {dimension_numbers = #tpu.dot_dimension_numbers<[1], [0], [0], [1], [0, 0, 1, 1], [], []>} : vector<8x768xbf16>, vector<768x256xbf16>, vector<8x256xf32> -> vector<8x256xf32>
    %c0_68 = arith.constant 0 : index
    %c0_69 = arith.constant 0 : index
    %73 = vector.load %arg13[%c0_68, %c0_69] : memref<1x256xf32, #tpu.memory_space<vmem>>, vector<1x256xf32>
    %74 = vector.broadcast %73 : vector<1x256xf32> to vector<8x256xf32>
    %75 = arith.addf %72, %74 : vector<8x256xf32>
    %cst_70 = arith.constant 0.000000e+00 : f32
    %76 = vector.broadcast %cst_70 : f32 to vector<8x256xf32>
    %77 = arith.maximumf %75, %76 : vector<8x256xf32>
    %78 = arith.truncf %77 : vector<8x256xf32> to vector<8x256xbf16>
    %c0_71 = arith.constant 0 : index
    %c0_72 = arith.constant 0 : index
    %c0_73 = arith.constant 0 : index
    %79 = vector.load %arg14[%c0_71, %c0_72, %c0_73] : memref<3x8x8xbf16, #tpu.memory_space<vmem>>, vector<1x8x8xbf16>
    %80 = vector.shape_cast %79 : vector<1x8x8xbf16> to vector<8x8xbf16>
    %cst_74 = arith.constant dense<0.000000e+00> : vector<8x256xf32>
    %81 = tpu.matmul %80, %78, %cst_74 {dimension_numbers = #tpu.dot_dimension_numbers<[1], [0], [0], [1], [0, 0, 1, 1], [], []>} : vector<8x8xbf16>, vector<8x256xbf16>, vector<8x256xf32> -> vector<8x256xf32>
    %c1_75 = arith.constant 1 : index
    %c0_76 = arith.constant 0 : index
    %c0_77 = arith.constant 0 : index
    %82 = vector.load %arg14[%c1_75, %c0_76, %c0_77] : memref<3x8x8xbf16, #tpu.memory_space<vmem>>, vector<1x8x8xbf16>
    %83 = vector.shape_cast %82 : vector<1x8x8xbf16> to vector<8x8xbf16>
    %cst_78 = arith.constant dense<0.000000e+00> : vector<8x256xf32>
    %84 = tpu.matmul %83, %78, %cst_78 {dimension_numbers = #tpu.dot_dimension_numbers<[1], [0], [0], [1], [0, 0, 1, 1], [], []>} : vector<8x8xbf16>, vector<8x256xbf16>, vector<8x256xf32> -> vector<8x256xf32>
    %c2_79 = arith.constant 2 : index
    %c0_80 = arith.constant 0 : index
    %c0_81 = arith.constant 0 : index
    %85 = vector.load %arg14[%c2_79, %c0_80, %c0_81] : memref<3x8x8xbf16, #tpu.memory_space<vmem>>, vector<1x8x8xbf16>
    %86 = vector.shape_cast %85 : vector<1x8x8xbf16> to vector<8x8xbf16>
    %cst_82 = arith.constant dense<0.000000e+00> : vector<8x256xf32>
    %87 = tpu.matmul %86, %78, %cst_82 {dimension_numbers = #tpu.dot_dimension_numbers<[1], [0], [0], [1], [0, 0, 1, 1], [], []>} : vector<8x8xbf16>, vector<8x256xbf16>, vector<8x256xf32> -> vector<8x256xf32>
    %88 = tpu.concatenate %81, %84, %87 in 1 : vector<8x256xf32>, vector<8x256xf32>, vector<8x256xf32> -> vector<8x768xf32>
    %89 = arith.truncf %88 : vector<8x768xf32> to vector<8x768xbf16>
    %c0_83 = arith.constant 0 : index
    %c0_84 = arith.constant 0 : index
    %90 = vector.load %arg15[%c0_83, %c0_84] : memref<768x256xbf16, #tpu.memory_space<vmem>>, vector<768x256xbf16>
    %cst_85 = arith.constant dense<0.000000e+00> : vector<8x256xf32>
    %91 = tpu.matmul %89, %90, %cst_85 {dimension_numbers = #tpu.dot_dimension_numbers<[1], [0], [0], [1], [0, 0, 1, 1], [], []>} : vector<8x768xbf16>, vector<768x256xbf16>, vector<8x256xf32> -> vector<8x256xf32>
    %c0_86 = arith.constant 0 : index
    %c0_87 = arith.constant 0 : index
    %92 = vector.load %arg16[%c0_86, %c0_87] : memref<1x256xf32, #tpu.memory_space<vmem>>, vector<1x256xf32>
    %93 = vector.broadcast %92 : vector<1x256xf32> to vector<8x256xf32>
    %94 = arith.addf %91, %93 : vector<8x256xf32>
    %cst_88 = arith.constant 0.000000e+00 : f32
    %95 = vector.broadcast %cst_88 : f32 to vector<8x256xf32>
    %96 = arith.maximumf %94, %95 : vector<8x256xf32>
    %97 = arith.truncf %96 : vector<8x256xf32> to vector<8x256xbf16>
    %c0_89 = arith.constant 0 : index
    %c0_90 = arith.constant 0 : index
    %c0_91 = arith.constant 0 : index
    %98 = vector.load %arg17[%c0_89, %c0_90, %c0_91] : memref<4x8x8xbf16, #tpu.memory_space<vmem>>, vector<1x8x8xbf16>
    %99 = vector.shape_cast %98 : vector<1x8x8xbf16> to vector<8x8xbf16>
    %cst_92 = arith.constant dense<0.000000e+00> : vector<8x256xf32>
    %100 = tpu.matmul %99, %97, %cst_92 {dimension_numbers = #tpu.dot_dimension_numbers<[1], [0], [0], [1], [0, 0, 1, 1], [], []>} : vector<8x8xbf16>, vector<8x256xbf16>, vector<8x256xf32> -> vector<8x256xf32>
    %c1_93 = arith.constant 1 : index
    %c0_94 = arith.constant 0 : index
    %c0_95 = arith.constant 0 : index
    %101 = vector.load %arg17[%c1_93, %c0_94, %c0_95] : memref<4x8x8xbf16, #tpu.memory_space<vmem>>, vector<1x8x8xbf16>
    %102 = vector.shape_cast %101 : vector<1x8x8xbf16> to vector<8x8xbf16>
    %cst_96 = arith.constant dense<0.000000e+00> : vector<8x256xf32>
    %103 = tpu.matmul %102, %97, %cst_96 {dimension_numbers = #tpu.dot_dimension_numbers<[1], [0], [0], [1], [0, 0, 1, 1], [], []>} : vector<8x8xbf16>, vector<8x256xbf16>, vector<8x256xf32> -> vector<8x256xf32>
    %c2_97 = arith.constant 2 : index
    %c0_98 = arith.constant 0 : index
    %c0_99 = arith.constant 0 : index
    %104 = vector.load %arg17[%c2_97, %c0_98, %c0_99] : memref<4x8x8xbf16, #tpu.memory_space<vmem>>, vector<1x8x8xbf16>
    %105 = vector.shape_cast %104 : vector<1x8x8xbf16> to vector<8x8xbf16>
    %cst_100 = arith.constant dense<0.000000e+00> : vector<8x256xf32>
    %106 = tpu.matmul %105, %97, %cst_100 {dimension_numbers = #tpu.dot_dimension_numbers<[1], [0], [0], [1], [0, 0, 1, 1], [], []>} : vector<8x8xbf16>, vector<8x256xbf16>, vector<8x256xf32> -> vector<8x256xf32>
    %c3 = arith.constant 3 : index
    %c0_101 = arith.constant 0 : index
    %c0_102 = arith.constant 0 : index
    %107 = vector.load %arg17[%c3, %c0_101, %c0_102] : memref<4x8x8xbf16, #tpu.memory_space<vmem>>, vector<1x8x8xbf16>
    %108 = vector.shape_cast %107 : vector<1x8x8xbf16> to vector<8x8xbf16>
    %cst_103 = arith.constant dense<0.000000e+00> : vector<8x256xf32>
    %109 = tpu.matmul %108, %97, %cst_103 {dimension_numbers = #tpu.dot_dimension_numbers<[1], [0], [0], [1], [0, 0, 1, 1], [], []>} : vector<8x8xbf16>, vector<8x256xbf16>, vector<8x256xf32> -> vector<8x256xf32>
    %110 = tpu.concatenate %100, %103, %106, %109 in 1 : vector<8x256xf32>, vector<8x256xf32>, vector<8x256xf32>, vector<8x256xf32> -> vector<8x1024xf32>
    %111 = arith.truncf %110 : vector<8x1024xf32> to vector<8x1024xbf16>
    %c0_104 = arith.constant 0 : index
    %c0_105 = arith.constant 0 : index
    %112 = vector.load %arg18[%c0_104, %c0_105] : memref<1024x256xbf16, #tpu.memory_space<vmem>>, vector<1024x256xbf16>
    %cst_106 = arith.constant dense<0.000000e+00> : vector<8x256xf32>
    %113 = tpu.matmul %111, %112, %cst_106 {dimension_numbers = #tpu.dot_dimension_numbers<[1], [0], [0], [1], [0, 0, 1, 1], [], []>} : vector<8x1024xbf16>, vector<1024x256xbf16>, vector<8x256xf32> -> vector<8x256xf32>
    %c0_107 = arith.constant 0 : index
    %c0_108 = arith.constant 0 : index
    %114 = vector.load %arg19[%c0_107, %c0_108] : memref<1x256xf32, #tpu.memory_space<vmem>>, vector<1x256xf32>
    %115 = vector.broadcast %114 : vector<1x256xf32> to vector<8x256xf32>
    %116 = arith.addf %113, %115 : vector<8x256xf32>
    %cst_109 = arith.constant 0.000000e+00 : f32
    %117 = vector.broadcast %cst_109 : f32 to vector<8x256xf32>
    %118 = arith.maximumf %116, %117 : vector<8x256xf32>
    %119 = arith.truncf %118 : vector<8x256xf32> to vector<8x256xbf16>
    %c0_110 = arith.constant 0 : index
    %c0_111 = arith.constant 0 : index
    %c0_112 = arith.constant 0 : index
    %120 = vector.load %arg20[%c0_110, %c0_111, %c0_112] : memref<4x8x8xbf16, #tpu.memory_space<vmem>>, vector<1x8x8xbf16>
    %121 = vector.shape_cast %120 : vector<1x8x8xbf16> to vector<8x8xbf16>
    %cst_113 = arith.constant dense<0.000000e+00> : vector<8x256xf32>
    %122 = tpu.matmul %121, %119, %cst_113 {dimension_numbers = #tpu.dot_dimension_numbers<[1], [0], [0], [1], [0, 0, 1, 1], [], []>} : vector<8x8xbf16>, vector<8x256xbf16>, vector<8x256xf32> -> vector<8x256xf32>
    %c1_114 = arith.constant 1 : index
    %c0_115 = arith.constant 0 : index
    %c0_116 = arith.constant 0 : index
    %123 = vector.load %arg20[%c1_114, %c0_115, %c0_116] : memref<4x8x8xbf16, #tpu.memory_space<vmem>>, vector<1x8x8xbf16>
    %124 = vector.shape_cast %123 : vector<1x8x8xbf16> to vector<8x8xbf16>
    %cst_117 = arith.constant dense<0.000000e+00> : vector<8x256xf32>
    %125 = tpu.matmul %124, %119, %cst_117 {dimension_numbers = #tpu.dot_dimension_numbers<[1], [0], [0], [1], [0, 0, 1, 1], [], []>} : vector<8x8xbf16>, vector<8x256xbf16>, vector<8x256xf32> -> vector<8x256xf32>
    %c2_118 = arith.constant 2 : index
    %c0_119 = arith.constant 0 : index
    %c0_120 = arith.constant 0 : index
    %126 = vector.load %arg20[%c2_118, %c0_119, %c0_120] : memref<4x8x8xbf16, #tpu.memory_space<vmem>>, vector<1x8x8xbf16>
    %127 = vector.shape_cast %126 : vector<1x8x8xbf16> to vector<8x8xbf16>
    %cst_121 = arith.constant dense<0.000000e+00> : vector<8x256xf32>
    %128 = tpu.matmul %127, %119, %cst_121 {dimension_numbers = #tpu.dot_dimension_numbers<[1], [0], [0], [1], [0, 0, 1, 1], [], []>} : vector<8x8xbf16>, vector<8x256xbf16>, vector<8x256xf32> -> vector<8x256xf32>
    %c3_122 = arith.constant 3 : index
    %c0_123 = arith.constant 0 : index
    %c0_124 = arith.constant 0 : index
    %129 = vector.load %arg20[%c3_122, %c0_123, %c0_124] : memref<4x8x8xbf16, #tpu.memory_space<vmem>>, vector<1x8x8xbf16>
    %130 = vector.shape_cast %129 : vector<1x8x8xbf16> to vector<8x8xbf16>
    %cst_125 = arith.constant dense<0.000000e+00> : vector<8x256xf32>
    %131 = tpu.matmul %130, %119, %cst_125 {dimension_numbers = #tpu.dot_dimension_numbers<[1], [0], [0], [1], [0, 0, 1, 1], [], []>} : vector<8x8xbf16>, vector<8x256xbf16>, vector<8x256xf32> -> vector<8x256xf32>
    %132 = tpu.concatenate %122, %125, %128, %131 in 1 : vector<8x256xf32>, vector<8x256xf32>, vector<8x256xf32>, vector<8x256xf32> -> vector<8x1024xf32>
    %133 = arith.truncf %132 : vector<8x1024xf32> to vector<8x1024xbf16>
    %c0_126 = arith.constant 0 : index
    %c0_127 = arith.constant 0 : index
    %134 = vector.load %arg21[%c0_126, %c0_127] : memref<1024x256xbf16, #tpu.memory_space<vmem>>, vector<1024x256xbf16>
    %cst_128 = arith.constant dense<0.000000e+00> : vector<8x256xf32>
    %135 = tpu.matmul %133, %134, %cst_128 {dimension_numbers = #tpu.dot_dimension_numbers<[1], [0], [0], [1], [0, 0, 1, 1], [], []>} : vector<8x1024xbf16>, vector<1024x256xbf16>, vector<8x256xf32> -> vector<8x256xf32>
    %c0_129 = arith.constant 0 : index
    %c0_130 = arith.constant 0 : index
    %136 = vector.load %arg22[%c0_129, %c0_130] : memref<1x256xf32, #tpu.memory_space<vmem>>, vector<1x256xf32>
    %137 = vector.broadcast %136 : vector<1x256xf32> to vector<8x256xf32>
    %138 = arith.addf %135, %137 : vector<8x256xf32>
    %cst_131 = arith.constant 0.000000e+00 : f32
    %139 = vector.broadcast %cst_131 : f32 to vector<8x256xf32>
    %140 = arith.maximumf %138, %139 : vector<8x256xf32>
    %141 = arith.truncf %140 : vector<8x256xf32> to vector<8x256xbf16>
    %c0_132 = arith.constant 0 : index
    %c0_133 = arith.constant 0 : index
    %c0_134 = arith.constant 0 : index
    %142 = vector.load %arg23[%c0_132, %c0_133, %c0_134] : memref<4x8x8xbf16, #tpu.memory_space<vmem>>, vector<1x8x8xbf16>
    %143 = vector.shape_cast %142 : vector<1x8x8xbf16> to vector<8x8xbf16>
    %cst_135 = arith.constant dense<0.000000e+00> : vector<8x256xf32>
    %144 = tpu.matmul %143, %141, %cst_135 {dimension_numbers = #tpu.dot_dimension_numbers<[1], [0], [0], [1], [0, 0, 1, 1], [], []>} : vector<8x8xbf16>, vector<8x256xbf16>, vector<8x256xf32> -> vector<8x256xf32>
    %c1_136 = arith.constant 1 : index
    %c0_137 = arith.constant 0 : index
    %c0_138 = arith.constant 0 : index
    %145 = vector.load %arg23[%c1_136, %c0_137, %c0_138] : memref<4x8x8xbf16, #tpu.memory_space<vmem>>, vector<1x8x8xbf16>
    %146 = vector.shape_cast %145 : vector<1x8x8xbf16> to vector<8x8xbf16>
    %cst_139 = arith.constant dense<0.000000e+00> : vector<8x256xf32>
    %147 = tpu.matmul %146, %141, %cst_139 {dimension_numbers = #tpu.dot_dimension_numbers<[1], [0], [0], [1], [0, 0, 1, 1], [], []>} : vector<8x8xbf16>, vector<8x256xbf16>, vector<8x256xf32> -> vector<8x256xf32>
    %c2_140 = arith.constant 2 : index
    %c0_141 = arith.constant 0 : index
    %c0_142 = arith.constant 0 : index
    %148 = vector.load %arg23[%c2_140, %c0_141, %c0_142] : memref<4x8x8xbf16, #tpu.memory_space<vmem>>, vector<1x8x8xbf16>
    %149 = vector.shape_cast %148 : vector<1x8x8xbf16> to vector<8x8xbf16>
    %cst_143 = arith.constant dense<0.000000e+00> : vector<8x256xf32>
    %150 = tpu.matmul %149, %141, %cst_143 {dimension_numbers = #tpu.dot_dimension_numbers<[1], [0], [0], [1], [0, 0, 1, 1], [], []>} : vector<8x8xbf16>, vector<8x256xbf16>, vector<8x256xf32> -> vector<8x256xf32>
    %c3_144 = arith.constant 3 : index
    %c0_145 = arith.constant 0 : index
    %c0_146 = arith.constant 0 : index
    %151 = vector.load %arg23[%c3_144, %c0_145, %c0_146] : memref<4x8x8xbf16, #tpu.memory_space<vmem>>, vector<1x8x8xbf16>
    %152 = vector.shape_cast %151 : vector<1x8x8xbf16> to vector<8x8xbf16>
    %cst_147 = arith.constant dense<0.000000e+00> : vector<8x256xf32>
    %153 = tpu.matmul %152, %141, %cst_147 {dimension_numbers = #tpu.dot_dimension_numbers<[1], [0], [0], [1], [0, 0, 1, 1], [], []>} : vector<8x8xbf16>, vector<8x256xbf16>, vector<8x256xf32> -> vector<8x256xf32>
    %154 = tpu.concatenate %144, %147, %150, %153 in 1 : vector<8x256xf32>, vector<8x256xf32>, vector<8x256xf32>, vector<8x256xf32> -> vector<8x1024xf32>
    %155 = arith.truncf %154 : vector<8x1024xf32> to vector<8x1024xbf16>
    %c0_148 = arith.constant 0 : index
    %c0_149 = arith.constant 0 : index
    %156 = vector.load %arg24[%c0_148, %c0_149] : memref<1024x256xbf16, #tpu.memory_space<vmem>>, vector<1024x256xbf16>
    %cst_150 = arith.constant dense<0.000000e+00> : vector<8x256xf32>
    %157 = tpu.matmul %155, %156, %cst_150 {dimension_numbers = #tpu.dot_dimension_numbers<[1], [0], [0], [1], [0, 0, 1, 1], [], []>} : vector<8x1024xbf16>, vector<1024x256xbf16>, vector<8x256xf32> -> vector<8x256xf32>
    %c0_151 = arith.constant 0 : index
    %c0_152 = arith.constant 0 : index
    %158 = vector.load %arg25[%c0_151, %c0_152] : memref<1x256xf32, #tpu.memory_space<vmem>>, vector<1x256xf32>
    %159 = vector.broadcast %158 : vector<1x256xf32> to vector<8x256xf32>
    %160 = arith.addf %157, %159 : vector<8x256xf32>
    %cst_153 = arith.constant 0.000000e+00 : f32
    %161 = vector.broadcast %cst_153 : f32 to vector<8x256xf32>
    %162 = arith.maximumf %160, %161 : vector<8x256xf32>
    %163 = arith.truncf %162 : vector<8x256xf32> to vector<8x256xbf16>
    %c0_154 = arith.constant 0 : index
    %c0_155 = arith.constant 0 : index
    %c0_156 = arith.constant 0 : index
    %164 = vector.load %arg26[%c0_154, %c0_155, %c0_156] : memref<4x16x8xbf16, #tpu.memory_space<vmem>>, vector<1x16x8xbf16>
    %165 = vector.shape_cast %164 : vector<1x16x8xbf16> to vector<16x8xbf16>
    %cst_157 = arith.constant dense<0.000000e+00> : vector<16x256xf32>
    %166 = tpu.matmul %165, %163, %cst_157 {dimension_numbers = #tpu.dot_dimension_numbers<[1], [0], [0], [1], [0, 0, 1, 1], [], []>} : vector<16x8xbf16>, vector<8x256xbf16>, vector<16x256xf32> -> vector<16x256xf32>
    %c1_158 = arith.constant 1 : index
    %c0_159 = arith.constant 0 : index
    %c0_160 = arith.constant 0 : index
    %167 = vector.load %arg26[%c1_158, %c0_159, %c0_160] : memref<4x16x8xbf16, #tpu.memory_space<vmem>>, vector<1x16x8xbf16>
    %168 = vector.shape_cast %167 : vector<1x16x8xbf16> to vector<16x8xbf16>
    %cst_161 = arith.constant dense<0.000000e+00> : vector<16x256xf32>
    %169 = tpu.matmul %168, %163, %cst_161 {dimension_numbers = #tpu.dot_dimension_numbers<[1], [0], [0], [1], [0, 0, 1, 1], [], []>} : vector<16x8xbf16>, vector<8x256xbf16>, vector<16x256xf32> -> vector<16x256xf32>
    %c2_162 = arith.constant 2 : index
    %c0_163 = arith.constant 0 : index
    %c0_164 = arith.constant 0 : index
    %170 = vector.load %arg26[%c2_162, %c0_163, %c0_164] : memref<4x16x8xbf16, #tpu.memory_space<vmem>>, vector<1x16x8xbf16>
    %171 = vector.shape_cast %170 : vector<1x16x8xbf16> to vector<16x8xbf16>
    %cst_165 = arith.constant dense<0.000000e+00> : vector<16x256xf32>
    %172 = tpu.matmul %171, %163, %cst_165 {dimension_numbers = #tpu.dot_dimension_numbers<[1], [0], [0], [1], [0, 0, 1, 1], [], []>} : vector<16x8xbf16>, vector<8x256xbf16>, vector<16x256xf32> -> vector<16x256xf32>
    %c3_166 = arith.constant 3 : index
    %c0_167 = arith.constant 0 : index
    %c0_168 = arith.constant 0 : index
    %173 = vector.load %arg26[%c3_166, %c0_167, %c0_168] : memref<4x16x8xbf16, #tpu.memory_space<vmem>>, vector<1x16x8xbf16>
    %174 = vector.shape_cast %173 : vector<1x16x8xbf16> to vector<16x8xbf16>
    %cst_169 = arith.constant dense<0.000000e+00> : vector<16x256xf32>
    %175 = tpu.matmul %174, %163, %cst_169 {dimension_numbers = #tpu.dot_dimension_numbers<[1], [0], [0], [1], [0, 0, 1, 1], [], []>} : vector<16x8xbf16>, vector<8x256xbf16>, vector<16x256xf32> -> vector<16x256xf32>
    %176 = tpu.concatenate %166, %169, %172, %175 in 1 : vector<16x256xf32>, vector<16x256xf32>, vector<16x256xf32>, vector<16x256xf32> -> vector<16x1024xf32>
    %177 = arith.truncf %176 : vector<16x1024xf32> to vector<16x1024xbf16>
    %c0_170 = arith.constant 0 : index
    %c0_171 = arith.constant 0 : index
    %178 = vector.load %arg27[%c0_170, %c0_171] : memref<1024x256xbf16, #tpu.memory_space<vmem>>, vector<1024x256xbf16>
    %cst_172 = arith.constant dense<0.000000e+00> : vector<16x256xf32>
    %179 = tpu.matmul %177, %178, %cst_172 {dimension_numbers = #tpu.dot_dimension_numbers<[1], [0], [0], [1], [0, 0, 1, 1], [], []>} : vector<16x1024xbf16>, vector<1024x256xbf16>, vector<16x256xf32> -> vector<16x256xf32>
    %c0_173 = arith.constant 0 : index
    %c0_174 = arith.constant 0 : index
    %180 = vector.load %arg28[%c0_173, %c0_174] : memref<1x256xf32, #tpu.memory_space<vmem>>, vector<1x256xf32>
    %181 = vector.broadcast %180 : vector<1x256xf32> to vector<16x256xf32>
    %182 = arith.addf %179, %181 : vector<16x256xf32>
    %cst_175 = arith.constant 0.000000e+00 : f32
    %183 = vector.broadcast %cst_175 : f32 to vector<16x256xf32>
    %184 = arith.maximumf %182, %183 : vector<16x256xf32>
    %185 = arith.truncf %184 : vector<16x256xf32> to vector<16x256xbf16>
    %c0_176 = arith.constant 0 : index
    %c0_177 = arith.constant 0 : index
    %c0_178 = arith.constant 0 : index
    %186 = vector.load %arg29[%c0_176, %c0_177, %c0_178] : memref<4x32x16xbf16, #tpu.memory_space<vmem>>, vector<1x32x16xbf16>
    %187 = vector.shape_cast %186 : vector<1x32x16xbf16> to vector<32x16xbf16>
    %cst_179 = arith.constant dense<0.000000e+00> : vector<32x256xf32>
    %188 = tpu.matmul %187, %185, %cst_179 {dimension_numbers = #tpu.dot_dimension_numbers<[1], [0], [0], [1], [0, 0, 1, 1], [], []>} : vector<32x16xbf16>, vector<16x256xbf16>, vector<32x256xf32> -> vector<32x256xf32>
    %c1_180 = arith.constant 1 : index
    %c0_181 = arith.constant 0 : index
    %c0_182 = arith.constant 0 : index
    %189 = vector.load %arg29[%c1_180, %c0_181, %c0_182] : memref<4x32x16xbf16, #tpu.memory_space<vmem>>, vector<1x32x16xbf16>
    %190 = vector.shape_cast %189 : vector<1x32x16xbf16> to vector<32x16xbf16>
    %cst_183 = arith.constant dense<0.000000e+00> : vector<32x256xf32>
    %191 = tpu.matmul %190, %185, %cst_183 {dimension_numbers = #tpu.dot_dimension_numbers<[1], [0], [0], [1], [0, 0, 1, 1], [], []>} : vector<32x16xbf16>, vector<16x256xbf16>, vector<32x256xf32> -> vector<32x256xf32>
    %c2_184 = arith.constant 2 : index
    %c0_185 = arith.constant 0 : index
    %c0_186 = arith.constant 0 : index
    %192 = vector.load %arg29[%c2_184, %c0_185, %c0_186] : memref<4x32x16xbf16, #tpu.memory_space<vmem>>, vector<1x32x16xbf16>
    %193 = vector.shape_cast %192 : vector<1x32x16xbf16> to vector<32x16xbf16>
    %cst_187 = arith.constant dense<0.000000e+00> : vector<32x256xf32>
    %194 = tpu.matmul %193, %185, %cst_187 {dimension_numbers = #tpu.dot_dimension_numbers<[1], [0], [0], [1], [0, 0, 1, 1], [], []>} : vector<32x16xbf16>, vector<16x256xbf16>, vector<32x256xf32> -> vector<32x256xf32>
    %c3_188 = arith.constant 3 : index
    %c0_189 = arith.constant 0 : index
    %c0_190 = arith.constant 0 : index
    %195 = vector.load %arg29[%c3_188, %c0_189, %c0_190] : memref<4x32x16xbf16, #tpu.memory_space<vmem>>, vector<1x32x16xbf16>
    %196 = vector.shape_cast %195 : vector<1x32x16xbf16> to vector<32x16xbf16>
    %cst_191 = arith.constant dense<0.000000e+00> : vector<32x256xf32>
    %197 = tpu.matmul %196, %185, %cst_191 {dimension_numbers = #tpu.dot_dimension_numbers<[1], [0], [0], [1], [0, 0, 1, 1], [], []>} : vector<32x16xbf16>, vector<16x256xbf16>, vector<32x256xf32> -> vector<32x256xf32>
    %198 = tpu.concatenate %188, %191, %194, %197 in 1 : vector<32x256xf32>, vector<32x256xf32>, vector<32x256xf32>, vector<32x256xf32> -> vector<32x1024xf32>
    %199 = arith.truncf %198 : vector<32x1024xf32> to vector<32x1024xbf16>
    %c0_192 = arith.constant 0 : index
    %c0_193 = arith.constant 0 : index
    %200 = vector.load %arg30[%c0_192, %c0_193] : memref<1024x128xbf16, #tpu.memory_space<vmem>>, vector<1024x128xbf16>
    %cst_194 = arith.constant dense<0.000000e+00> : vector<32x128xf32>
    %201 = tpu.matmul %199, %200, %cst_194 {dimension_numbers = #tpu.dot_dimension_numbers<[1], [0], [0], [1], [0, 0, 1, 1], [], []>} : vector<32x1024xbf16>, vector<1024x128xbf16>, vector<32x128xf32> -> vector<32x128xf32>
    %c0_195 = arith.constant 0 : index
    %c0_196 = arith.constant 0 : index
    %202 = vector.load %arg31[%c0_195, %c0_196] : memref<1x128xf32, #tpu.memory_space<vmem>>, vector<1x128xf32>
    %203 = vector.broadcast %202 : vector<1x128xf32> to vector<32x128xf32>
    %204 = arith.addf %201, %203 : vector<32x128xf32>
    %cst_197 = arith.constant 0.000000e+00 : f32
    %205 = vector.broadcast %cst_197 : f32 to vector<32x128xf32>
    %206 = arith.subf %205, %204 : vector<32x128xf32>
    %207 = math.exp %206 : vector<32x128xf32>
    %cst_198 = arith.constant 1.000000e+00 : f32
    %208 = vector.broadcast %cst_198 : f32 to vector<32x128xf32>
    %209 = arith.addf %208, %207 : vector<32x128xf32>
    %210 = tpu.reciprocal %209 {approx = true} : vector<32x128xf32> -> vector<32x128xf32>
    %c0_199 = arith.constant 0 : index
    %c0_200 = arith.constant 0 : index
    %c0_201 = arith.constant 0 : index
    %211 = vector.load %arg32[%c0_199, %c0_200, %c0_201] : memref<1x32x128xf32, #tpu.memory_space<vmem>>, vector<1x32x128xf32>
    %212 = vector.shape_cast %211 : vector<1x32x128xf32> to vector<32x128xf32>
    %213 = vector.shape_cast %210 : vector<32x128xf32> to vector<1x32x128xf32>
    tpu.vector_store %arg32[%c0_199, %c0_200, %c0_201], %213 {strides = array<i32>} : memref<1x32x128xf32, #tpu.memory_space<vmem>>, vector<1x32x128xf32>,
    return
  }
  func.func @transform_0(%arg0: i32) -> (i32, i32, i32) {
    %c0_i32 = arith.constant 0 : i32
    %c0_i32_0 = arith.constant 0 : i32
    %c0_i32_1 = arith.constant 0 : i32
    return %arg0, %c0_i32, %c0_i32_0 : i32, i32, i32
  }
  func.func @transform_1(%arg0: i32) -> (i32, i32, i32) {
    %c0_i32 = arith.constant 0 : i32
    %c0_i32_0 = arith.constant 0 : i32
    %c0_i32_1 = arith.constant 0 : i32
    %c0_i32_2 = arith.constant 0 : i32
    return %c0_i32, %c0_i32_0, %c0_i32_1 : i32, i32, i32
  }
  func.func @transform_2(%arg0: i32) -> (i32, i32) {
    %c0_i32 = arith.constant 0 : i32
    %c0_i32_0 = arith.constant 0 : i32
    %c0_i32_1 = arith.constant 0 : i32
    return %c0_i32, %c0_i32_0 : i32, i32
  }
  func.func @transform_3(%arg0: i32) -> (i32, i32) {
    %c0_i32 = arith.constant 0 : i32
    %c0_i32_0 = arith.constant 0 : i32
    %c0_i32_1 = arith.constant 0 : i32
    return %c0_i32, %c0_i32_0 : i32, i32
  }
  func.func @transform_4(%arg0: i32) -> (i32, i32, i32) {
    %c0_i32 = arith.constant 0 : i32
    %c0_i32_0 = arith.constant 0 : i32
    %c0_i32_1 = arith.constant 0 : i32
    %c0_i32_2 = arith.constant 0 : i32
    return %c0_i32, %c0_i32_0, %c0_i32_1 : i32, i32, i32
  }
  func.func @transform_5(%arg0: i32) -> (i32, i32) {
    %c0_i32 = arith.constant 0 : i32
    %c0_i32_0 = arith.constant 0 : i32
    %c0_i32_1 = arith.constant 0 : i32
    return %c0_i32, %c0_i32_0 : i32, i32
  }
  func.func @transform_6(%arg0: i32) -> (i32, i32) {
    %c0_i32 = arith.constant 0 : i32
    %c0_i32_0 = arith.constant 0 : i32
    %c0_i32_1 = arith.constant 0 : i32
    return %c0_i32, %c0_i32_0 : i32, i32
  }
  func.func @transform_7(%arg0: i32) -> (i32, i32, i32) {
    %c0_i32 = arith.constant 0 : i32
    %c0_i32_0 = arith.constant 0 : i32
    %c0_i32_1 = arith.constant 0 : i32
    %c0_i32_2 = arith.constant 0 : i32
    return %c0_i32, %c0_i32_0, %c0_i32_1 : i32, i32, i32
  }
  func.func @transform_8(%arg0: i32) -> (i32, i32) {
    %c0_i32 = arith.constant 0 : i32
    %c0_i32_0 = arith.constant 0 : i32
    %c0_i32_1 = arith.constant 0 : i32
    return %c0_i32, %c0_i32_0 : i32, i32
  }
  func.func @transform_9(%arg0: i32) -> (i32, i32) {
    %c0_i32 = arith.constant 0 : i32
    %c0_i32_0 = arith.constant 0 : i32
    %c0_i32_1 = arith.constant 0 : i32
    return %c0_i32, %c0_i32_0 : i32, i32
  }
  func.func @transform_10(%arg0: i32) -> (i32, i32, i32) {
    %c0_i32 = arith.constant 0 : i32
    %c0_i32_0 = arith.constant 0 : i32
    %c0_i32_1 = arith.constant 0 : i32
    %c0_i32_2 = arith.constant 0 : i32
    return %c0_i32, %c0_i32_0, %c0_i32_1 : i32, i32, i32
  }
  func.func @transform_11(%arg0: i32) -> (i32, i32) {
    %c0_i32 = arith.constant 0 : i32
    %c0_i32_0 = arith.constant 0 : i32
    %c0_i32_1 = arith.constant 0 : i32
    return %c0_i32, %c0_i32_0 : i32, i32
  }
  func.func @transform_12(%arg0: i32) -> (i32, i32) {
    %c0_i32 = arith.constant 0 : i32
    %c0_i32_0 = arith.constant 0 : i32
    %c0_i32_1 = arith.constant 0 : i32
    return %c0_i32, %c0_i32_0 : i32, i32
  }
  func.func @transform_13(%arg0: i32) -> (i32, i32, i32) {
    %c0_i32 = arith.constant 0 : i32
    %c0_i32_0 = arith.constant 0 : i32
    %c0_i32_1 = arith.constant 0 : i32
    %c0_i32_2 = arith.constant 0 : i32
    return %c0_i32, %c0_i32_0, %c0_i32_1 : i32, i32, i32
  }
  func.func @transform_14(%arg0: i32) -> (i32, i32) {
    %c0_i32 = arith.constant 0 : i32
    %c0_i32_0 = arith.constant 0 : i32
    %c0_i32_1 = arith.constant 0 : i32
    return %c0_i32, %c0_i32_0 : i32, i32
  }
  func.func @transform_15(%arg0: i32) -> (i32, i32) {
    %c0_i32 = arith.constant 0 : i32
    %c0_i32_0 = arith.constant 0 : i32
    %c0_i32_1 = arith.constant 0 : i32
    return %c0_i32, %c0_i32_0 : i32, i32
  }
  func.func @transform_16(%arg0: i32) -> (i32, i32, i32) {
    %c0_i32 = arith.constant 0 : i32
    %c0_i32_0 = arith.constant 0 : i32
    %c0_i32_1 = arith.constant 0 : i32
    %c0_i32_2 = arith.constant 0 : i32
    return %c0_i32, %c0_i32_0, %c0_i32_1 : i32, i32, i32
  }
  func.func @transform_17(%arg0: i32) -> (i32, i32) {
    %c0_i32 = arith.constant 0 : i32
    %c0_i32_0 = arith.constant 0 : i32
    %c0_i32_1 = arith.constant 0 : i32
    return %c0_i32, %c0_i32_0 : i32, i32
  }
  func.func @transform_18(%arg0: i32) -> (i32, i32) {
    %c0_i32 = arith.constant 0 : i32
    %c0_i32_0 = arith.constant 0 : i32
    %c0_i32_1 = arith.constant 0 : i32
    return %c0_i32, %c0_i32_0 : i32, i32
  }
  func.func @transform_19(%arg0: i32) -> (i32, i32, i32) {
    %c0_i32 = arith.constant 0 : i32
    %c0_i32_0 = arith.constant 0 : i32
    %c0_i32_1 = arith.constant 0 : i32
    %c0_i32_2 = arith.constant 0 : i32
    return %c0_i32, %c0_i32_0, %c0_i32_1 : i32, i32, i32
  }
  func.func @transform_20(%arg0: i32) -> (i32, i32) {
    %c0_i32 = arith.constant 0 : i32
    %c0_i32_0 = arith.constant 0 : i32
    %c0_i32_1 = arith.constant 0 : i32
    return %c0_i32, %c0_i32_0 : i32, i32
  }
  func.func @transform_21(%arg0: i32) -> (i32, i32) {
    %c0_i32 = arith.constant 0 : i32
    %c0_i32_0 = arith.constant 0 : i32
    %c0_i32_1 = arith.constant 0 : i32
    return %c0_i32, %c0_i32_0 : i32, i32
  }
  func.func @transform_22(%arg0: i32) -> (i32, i32, i32) {
    %c0_i32 = arith.constant 0 : i32
    %c0_i32_0 = arith.constant 0 : i32
    %c0_i32_1 = arith.constant 0 : i32
    %c0_i32_2 = arith.constant 0 : i32
    return %c0_i32, %c0_i32_0, %c0_i32_1 : i32, i32, i32
  }
  func.func @transform_23(%arg0: i32) -> (i32, i32) {
    %c0_i32 = arith.constant 0 : i32
    %c0_i32_0 = arith.constant 0 : i32
    %c0_i32_1 = arith.constant 0 : i32
    return %c0_i32, %c0_i32_0 : i32, i32
  }
  func.func @transform_24(%arg0: i32) -> (i32, i32) {
    %c0_i32 = arith.constant 0 : i32
    %c0_i32_0 = arith.constant 0 : i32
    %c0_i32_1 = arith.constant 0 : i32
    return %c0_i32, %c0_i32_0 : i32, i32
  }
  func.func @transform_25(%arg0: i32) -> (i32, i32, i32) {
    %c0_i32 = arith.constant 0 : i32
    %c0_i32_0 = arith.constant 0 : i32
    %c0_i32_1 = arith.constant 0 : i32
    %c0_i32_2 = arith.constant 0 : i32
    return %c0_i32, %c0_i32_0, %c0_i32_1 : i32, i32, i32
  }
  func.func @transform_26(%arg0: i32) -> (i32, i32) {
    %c0_i32 = arith.constant 0 : i32
    %c0_i32_0 = arith.constant 0 : i32
    %c0_i32_1 = arith.constant 0 : i32
    return %c0_i32, %c0_i32_0 : i32, i32
  }
  func.func @transform_27(%arg0: i32) -> (i32, i32) {
    %c0_i32 = arith.constant 0 : i32
    %c0_i32_0 = arith.constant 0 : i32
    %c0_i32_1 = arith.constant 0 : i32
    return %c0_i32, %c0_i32_0 : i32, i32
  }
  func.func @transform_28(%arg0: i32) -> (i32, i32, i32) {
    %c0_i32 = arith.constant 0 : i32
    %c0_i32_0 = arith.constant 0 : i32
    %c0_i32_1 = arith.constant 0 : i32
    %c0_i32_2 = arith.constant 0 : i32
    return %c0_i32, %c0_i32_0, %c0_i32_1 : i32, i32, i32
  }
  func.func @transform_29(%arg0: i32) -> (i32, i32) {
    %c0_i32 = arith.constant 0 : i32
    %c0_i32_0 = arith.constant 0 : i32
    %c0_i32_1 = arith.constant 0 : i32
    return %c0_i32, %c0_i32_0 : i32, i32
  }
  func.func @transform_30(%arg0: i32) -> (i32, i32) {
    %c0_i32 = arith.constant 0 : i32
    %c0_i32_0 = arith.constant 0 : i32
    %c0_i32_1 = arith.constant 0 : i32
    return %c0_i32, %c0_i32_0 : i32, i32
  }
  func.func @transform_31(%arg0: i32) -> (i32, i32, i32) {
    %c0_i32 = arith.constant 0 : i32
    %c0_i32_0 = arith.constant 0 : i32
    %c0_i32_1 = arith.constant 0 : i32
    return %arg0, %c0_i32, %c0_i32_0 : i32, i32, i32
  }
}

</mosaic_0001>

<bundles_post_ra>
// kernel: _lambda_.1
= control target key start
LH: loop header
LB: loop body
LE: loop exit
PB: predicated region body
PF: predicated region fallthrough
CT: control target
= control target key end

     0   :  { %s14227_s6 = smov 1   ;;  %s14228_s10 = smov 2   ;;  %s14827_s0 = inlined_call_operand.smem [shape: u32[32], index: -1, kind: input, shape index: {}] }
   0x1   :  { %s14283_s5 = sld [smem:[%s14827_s0]]   ;;  %s14229_s14 = smov 3  }
   0x2   :  { %s14288_s9 = sld [smem:[%s14827_s0 + %s14227_s6]]   ;;  %s14230_s18 = smov 4  }
   0x3   :  { %s14293_s13 = sld [smem:[%s14827_s0 + %s14228_s10]]   ;;  %s14231_s22 = smov 5  }
   0x4   :  { %s14298_s17 = sld [smem:[%s14827_s0 + %s14229_s14]]   ;;  %s14232_s26 = smov 6  }
   0x5   :  { %s14303_s21 = sld [smem:[%s14827_s0 + %s14230_s18]]   ;;  %s14233_s30 = smov 7  }
   0x6   :  { %s14308_s25 = sld [smem:[%s14827_s0 + %s14231_s22]]   ;;  %s14234_s4 = smov 8  }
   0x7   :  { %s14313_s29 = sld [smem:[%s14827_s0 + %s14232_s26]]   ;;  %s14235_s10 = smov 9  }
   0x8   :  { %s14318_s3 = sld [smem:[%s14827_s0 + %s14233_s30]]   ;;  %s14236_s15 = smov 10  }
   0x9   :  { %s14323_s8 = sld [smem:[%s14827_s0 + %s14234_s4]]   ;;  %s14237_s20 = smov 11  }
   0xa   :  { %s14328_s14 = sld [smem:[%s14827_s0 + %s14235_s10]]   ;;  %s14238_s26 = smov 12  }
   0xb   :  { %s14333_s19 = sld [smem:[%s14827_s0 + %s14236_s15]]   ;;  %s14239_s1 = smov 13  }
   0xc   :  { %s14338_s24 = sld [smem:[%s14827_s0 + %s14237_s20]]   ;;  %s14240_s7 = smov 14  }
   0xd   :  { %s14343_s30 = sld [smem:[%s14827_s0 + %s14238_s26]]   ;;  %s14241_s15 = smov 15  }
   0xe   :  { %14836 = sst [smem:[#allocation24_spill]] %s14318_s3  ;;  %s14242_s22 = smov 16  }
   0xf   :  { %s14348_s6 = sld [smem:[%s14827_s0 + %s14239_s1]]   ;;  %s14243_s28 = smov 17  }
  0x10   :  { %14837 = sst [smem:[#allocation25_spill]] %s14328_s14 }
  0x11   :  { %14838 = sst [smem:[#allocation26_spill]] %s14333_s19 }
  0x12   :  { %s14353_s12 = sld [smem:[%s14827_s0 + %s14240_s7]]   ;;  %s14244_s7 = smov 18  }
  0x13   :  { %14839 = sst [smem:[#allocation27_spill]] %s14343_s30 }
  0x14   :  { %s14358_s20 = sld [smem:[%s14827_s0 + %s14241_s15]]   ;;  %s14245_s15 = smov 19  }
  0x15   :  { %14840 = sst [smem:[#allocation28_spill]] %s14348_s6 }
  0x16   :  { %s14363_s27 = sld [smem:[%s14827_s0 + %s14242_s22]]   ;;  %s14246_s22 = smov 20  }
  0x17   :  { %s14368_s4 = sld [smem:[%s14827_s0 + %s14243_s28]]   ;;  %s14247_s28 = smov 21  }
  0x18   :  { %s14373_s6 = sld [smem:[%s14827_s0 + %s14244_s7]]   ;;  %s14248_s7 = smov 22  }
  0x19   :  { %s14388_s30 = sld [smem:[%s14827_s0 + %s14247_s28]]   ;;  %s14251_s28 = smov 25  }
  0x1a   :  { %14841 = sst [smem:[#allocation29_spill]] %s14358_s20 }
  0x1b   :  { %s14378_s20 = sld [smem:[%s14827_s0 + %s14245_s15]]   ;;  %s14249_s15 = smov 23  }
  0x1c   :  { %14842 = sst [smem:[#allocation30_spill]] %s14363_s27 }
  0x1d   :  { %14843 = sst [smem:[#allocation31_spill]] %s14368_s4 }
  0x1e   :  { %14844 = sst [smem:[#allocation32_spill]] %s14373_s6 }
  0x1f   :  { %s14383_s27 = sld [smem:[%s14827_s0 + %s14246_s22]]   ;;  %s14250_s22 = smov 24  }
  0x20   :  { %14846 = sst [smem:[#allocation34_spill]] %s14388_s30 }
  0x21   :  { %14845 = sst [smem:[#allocation33_spill]] %s14378_s20 }
  0x22   :  { %s14393_s6 = sld [smem:[%s14827_s0 + %s14248_s7]]   ;;  %s14252_s7 = smov 26  }
  0x23   :  { %s14398_s20 = sld [smem:[%s14827_s0 + %s14249_s15]]   ;;  %s14253_s15 = smov 27  }
  0x24   :  { %s14403_s19 = sld [smem:[%s14827_s0 + %s14250_s22]]   ;;  %s14254_s22 = smov 28  }
  0x25   :  { %s14408_s30 = sld [smem:[%s14827_s0 + %s14251_s28]]   ;;  %s14255_s28 = smov 29  }
  0x26   :  { %s14418_s14 = sld [smem:[%s14827_s0 + %s14253_s15]]   ;;  %s14257_s15 = smov 31  }
  0x28   :  { %14847 = sst [smem:[#allocation35_spill]] %s14393_s6 }
  0x29   :  { %s14413_s6 = sld [smem:[%s14827_s0 + %s14252_s7]]   ;;  %s14256_s7 = smov 30  }
  0x2a   :  { %14848 = sst [smem:[#allocation36_spill]] %s14403_s19 }
  0x2b   :  { %14849 = sst [smem:[#allocation37_spill]] %s14408_s30 }
  0x2c   :  { %14850 = sst [smem:[#allocation38_spill]] %s14418_s14 }
  0x2d   :  { %s14423_s19 = sld [smem:[%s14827_s0 + %s14254_s22]]  }
  0x2e   :  { %s14428_s30 = sld [smem:[%s14827_s0 + %s14255_s28]]  }
  0x2f   :  { %s14433_s3 = sld [smem:[%s14827_s0 + %s14256_s7]]  }
  0x30   :  { %s14438_s14 = sld [smem:[%s14827_s0 + %s14257_s15]]  }
  0x31   :  { %68 = vsyncpa [#allocation3], 0 }
  0x32   :  { %69 = vsyncpa [#allocation5], 0 }
  0x33   :  { %70 = vsyncpa [#allocation8], 0 }
  0x34   :  { %71 = vsyncpa [#allocation11], 0 }
  0x35   :  { %72 = vsyncpa [#allocation14], 0 }
  0x36   :  { %73 = vsyncpa [#allocation17], 0  ;;  %s14440_s22 = smov 0  }
  0x37 LB: > { %s14446_s23 = sadd.s32 4294967295, %s14225_s22   ;;  %p10974_p0 = scmp.ge.s32.totalorder %s14225_s22, 1  ;;  %s14225_s22 = sphi %s14440_s22, %s79_s22  }
  0x38   : > { %p766_p1 = scmp.lt.s32.totalorder %s14225_s22, 3  ;;  %p14835_p2 = scmp.eq.s32.totalorder %s14446_s23, 0 }
  0x39   : > { %s14258_s26 = smov [#allocation4]   ;;  %s14259_s1 = smov [#allocation7]  }
  0x3a   : > { %p14451_p3 = pnand %p10974_p0, %p766_p1  ;;  %s800_s28 = sshll.u32 %s14258_s26, 4  ;;  %s801_s28 = int_to_ptr.vmem [resolvable:$true] %s800_s28 }
  0x3b   : > { %s838_s2 = sshll.u32 %s14259_s1, 4  ;;  %s14260_s10 = smov [#allocation10]   ;;  %s14457_s2 = int_to_ptr.vmem [resolvable:$true] %s838_s2 }
  0x3c   : > { %p12317_p4 = pneg %p14451_p3  ;;  %s876_s11 = sshll.u32 %s14260_s10, 4  ;;  %s14465_s11 = int_to_ptr.vmem [resolvable:$true] %s876_s11 }
  0x3d   : > { %s14261_s15 = smov [#allocation13]   ;;  %s13946_s26 = scalar_lea.vmem %s801_s28, 12288 }
  0x3e   : > { %p14461_p5 = pnand %p14835_p2, %p12317_p4  ;;  %s14467_s16 = sshll.u32 %s14261_s15, 4  ;;  %s915_s16 = int_to_ptr.vmem [resolvable:$true] %s14467_s16 }
  0x3f   : > { %p13947_p7 = scmp.ne.s32.totalorder %s801_s28, %s13946_s26  ;;  %p13954_p10 = scmp.lt.s32.totalorder %s801_s28, %s801_s28 }
  0x40   : > { %p14471_p6 = pneg %p14461_p5  ;;  %p13955_p11 = scmp.lt.s32.totalorder %s13946_s26, %s13946_s26 }
  0x42   : > { %p13949_p8 = pnand %p13947_p7, %p14471_p6  ;;  %p13956_p12 = por %p13955_p11, %p13954_p10 }
  0x44   : > { %p13950_p9 = pneg %p13949_p8 }
  0x46   : > { %p13957_p13 = pnand %p13956_p12, %p13950_p9 }
  0x48   : > { %13960 = shalt.err (!%p13957_p13)
}
  0x49   : > { %s14262_s1 = smov 128   ;;  %s14263_s10 = smov 8  }
  0x4a   : > { %12323 = dma.hbm_to_vmem [thread:$0]  (!%p14461_p5), %s14308_s25, 12288, %s801_s28, [#allocation5], %s14262_s1, %s14262_s1, %s14263_s10  }
  0x4b   : > { %s13972_s15 = scalar_lea.vmem %s14457_s2, 12288  ;;  %p13980_p7 = scmp.lt.s32.totalorder %s14457_s2, %s14457_s2 }
  0x4c   : > { %p13973_p0 = scmp.ne.s32.totalorder %s14457_s2, %s13972_s15  ;;  %p13981_p8 = scmp.lt.s32.totalorder %s13972_s15, %s13972_s15 }
  0x4e   : > { %p13975_p1 = pnand %p13973_p0, %p14471_p6  ;;  %p13982_p9 = por %p13981_p8, %p13980_p7 }
  0x50   : > { %p13976_p4 = pneg %p13975_p1 }
  0x52   : > { %p13983_p10 = pnand %p13982_p9, %p13976_p4 }
  0x54   : > { %13986 = shalt.err (!%p13983_p10)
}
  0x55   : > { %12329 = dma.hbm_to_vmem [thread:$0]  (!%p14461_p5), %s14338_s24, 12288, %s14457_s2, [#allocation8], %s14262_s1, %s14262_s1, %s14263_s10  }
  0x56   : > { %s13998_s28 = scalar_lea.vmem %s14465_s11, 16384  ;;  %p14006_p0 = scmp.lt.s32.totalorder %s14465_s11, %s14465_s11 }
  0x57   : > { %p13999_p11 = scmp.ne.s32.totalorder %s14465_s11, %s13998_s28  ;;  %p14007_p1 = scmp.lt.s32.totalorder %s13998_s28, %s13998_s28 }
  0x59   : > { %p14001_p12 = pnand %p13999_p11, %p14471_p6  ;;  %p14008_p4 = por %p14007_p1, %p14006_p0 }
  0x5b   : > { %p14002_p13 = pneg %p14001_p12 }
  0x5d   : > { %p14009_p7 = pnand %p14008_p4, %p14002_p13 }
  0x5f   : > { %14012 = shalt.err (!%p14009_p7)
}
  0x60   : > { %s14854_s4 = sld [smem:[#allocation31_spill]]  ;;  %s14024_s2 = scalar_lea.vmem %s915_s16, 16384 }
  0x61   : > { %p14025_p8 = scmp.ne.s32.totalorder %s915_s16, %s14024_s2  ;;  %p14032_p11 = scmp.lt.s32.totalorder %s915_s16, %s915_s16 }
  0x62   : > { %p14033_p12 = scmp.lt.s32.totalorder %s14024_s2, %s14024_s2 }
  0x63   : > { %p14027_p9 = pnand %p14025_p8, %p14471_p6 }
  0x64   : > { %p14034_p13 = por %p14033_p12, %p14032_p11 }
  0x65   : > { %p14028_p10 = pneg %p14027_p9 }
  0x66   : > { %12335 = dma.hbm_to_vmem [thread:$0]  (!%p14461_p5), %s14854_s4, 16384, %s14465_s11, [#allocation11], %s14262_s1, %s14262_s1, %s14263_s10  }
  0x67   : > { %p14035_p0 = pnand %p14034_p13, %p14028_p10 }
  0x69   : > { %14038 = shalt.err (!%p14035_p0)
}
  0x6a   : > { %12341 = dma.hbm_to_vmem [thread:$0]  (!%p14461_p5), %s14398_s20, 16384, %s915_s16, [#allocation14], %s14262_s1, %s14262_s1, %s14263_s10  }
  0x6b   : > { %s14264_s11 = smov [#allocation2]   ;;  %s14265_s15 = smov [#allocation6]  }
  0x6c   : > { %s781_s26 = sshll.u32 %s14264_s11, 4  ;;  %s819_s28 = sshll.u32 %s14265_s15, 4  ;;  %s782_s26 = int_to_ptr.vmem [resolvable:$true] %s781_s26  ;;  %s820_s28 = int_to_ptr.vmem [resolvable:$true] %s819_s28 }
  0x6d   : > { %s14050_s4 = scalar_lea.vmem %s782_s26, 6144  ;;  %p14058_p8 = scmp.lt.s32.totalorder %s782_s26, %s782_s26 }
  0x6e   : > { %p14051_p1 = scmp.ne.s32.totalorder %s782_s26, %s14050_s4  ;;  %p14059_p9 = scmp.lt.s32.totalorder %s14050_s4, %s14050_s4 }
  0x70   : > { %p14053_p4 = pnand %p14051_p1, %p14471_p6  ;;  %p14060_p10 = por %p14059_p9, %p14058_p8 }
  0x72   : > { %p14054_p7 = pneg %p14053_p4 }
  0x74   : > { %p14061_p11 = pnand %p14060_p10, %p14054_p7 }
  0x76   : > { %14064 = shalt.err (!%p14061_p11)
}
  0x77   : > { %12320 = dma.hbm_to_vmem [thread:$0]  (!%p14461_p5), %s14293_s13, 6144, %s782_s26, [#allocation3], %s14262_s1, %s14262_s1, %s14263_s10  }
  0x78   : > { %s14076_s16 = scalar_lea.vmem %s820_s28, 12288  ;;  %p14084_p1 = scmp.lt.s32.totalorder %s820_s28, %s820_s28 }
  0x79   : > { %p14077_p12 = scmp.ne.s32.totalorder %s820_s28, %s14076_s16  ;;  %p14085_p4 = scmp.lt.s32.totalorder %s14076_s16, %s14076_s16 }
  0x7b   : > { %p14079_p13 = pnand %p14077_p12, %p14471_p6  ;;  %p14086_p2 = por %p14085_p4, %p14084_p1 }
  0x7d   : > { %p14080_p0 = pneg %p14079_p13 }
  0x7f   : > { %p14087_p8 = pnand %p14086_p2, %p14080_p0 }
  0x81   : > { %14090 = shalt.err (!%p14087_p8)
}
  0x82   : > { %12326 = dma.hbm_to_vmem [thread:$0]  (!%p14461_p5), %s14323_s8, 12288, %s820_s28, [#allocation5], %s14262_s1, %s14262_s1, %s14263_s10  }
  0x83   : > { %s14266_s4 = smov [#allocation9]   ;;  %s14267_s11 = smov [#allocation12]  }
  0x84   : > { %s857_s2 = sshll.u32 %s14266_s4, 4  ;;  %s895_s26 = sshll.u32 %s14267_s11, 4  ;;  %s858_s2 = int_to_ptr.vmem [resolvable:$true] %s857_s2  ;;  %s896_s26 = int_to_ptr.vmem [resolvable:$true] %s895_s26 }
  0x85   : > { %s14102_s15 = scalar_lea.vmem %s858_s2, 12288  ;;  %p14110_p2 = scmp.lt.s32.totalorder %s858_s2, %s858_s2 }
  0x86   : > { %p14103_p7 = scmp.ne.s32.totalorder %s858_s2, %s14102_s15  ;;  %p14111_p11 = scmp.lt.s32.totalorder %s14102_s15, %s14102_s15 }
  0x88   : > { %p14105_p9 = pnand %p14103_p7, %p14471_p6  ;;  %p14112_p12 = por %p14111_p11, %p14110_p2 }
  0x8a   : > { %p14106_p10 = pneg %p14105_p9 }
  0x8c   : > { %p14113_p13 = pnand %p14112_p12, %p14106_p10 }
  0x8e   : > { %14116 = shalt.err (!%p14113_p13)
}
  0x8f   : > { %12332 = dma.hbm_to_vmem [thread:$0]  (!%p14461_p5), %s14353_s12, 12288, %s858_s2, [#allocation8], %s14262_s1, %s14262_s1, %s14263_s10  }
  0x90   : > { %s14128_s28 = scalar_lea.vmem %s896_s26, 16384  ;;  %p14136_p8 = scmp.lt.s32.totalorder %s896_s26, %s896_s26 }
  0x91   : > { %p14129_p0 = scmp.ne.s32.totalorder %s896_s26, %s14128_s28  ;;  %p14137_p7 = scmp.lt.s32.totalorder %s14128_s28, %s14128_s28 }
  0x93   : > { %p14131_p1 = pnand %p14129_p0, %p14471_p6  ;;  %p14138_p9 = por %p14137_p7, %p14136_p8 }
  0x95   : > { %p14132_p4 = pneg %p14131_p1 }
  0x97   : > { %p14139_p2 = pnand %p14138_p9, %p14132_p4 }
  0x99   : > { %14142 = shalt.err (!%p14139_p2)
}
  0x9a   : > { %12338 = dma.hbm_to_vmem [thread:$0]  (!%p14461_p5), %s14383_s27, 16384, %s896_s26, [#allocation11], %s14262_s1, %s14262_s1, %s14263_s10  }
  0x9b   : > { %s14268_s16 = smov [#allocation15]   ;;  %s14269_s2 = smov [#allocation16]  }
  0x9c   : > { %s933_s4 = sshll.u32 %s14268_s16, 4  ;;  %s952_s11 = sshll.u32 %s14269_s2, 4  ;;  %s934_s4 = int_to_ptr.vmem [resolvable:$true] %s933_s4  ;;  %s953_s11 = int_to_ptr.vmem [resolvable:$true] %s952_s11 }
  0x9d   : > { %s14154_s15 = scalar_lea.vmem %s934_s4, 16384  ;;  %p14162_p13 = scmp.lt.s32.totalorder %s934_s4, %s934_s4 }
  0x9e   : > { %p14155_p10 = scmp.ne.s32.totalorder %s934_s4, %s14154_s15  ;;  %p14163_p0 = scmp.lt.s32.totalorder %s14154_s15, %s14154_s15 }
  0xa0   : > { %p14157_p11 = pnand %p14155_p10, %p14471_p6  ;;  %p14164_p1 = por %p14163_p0, %p14162_p13 }
  0xa2   : > { %p14158_p12 = pneg %p14157_p11 }
  0xa4   : > { %p14165_p4 = pnand %p14164_p1, %p14158_p12 }
  0xa6   : > { %14168 = shalt.err (!%p14165_p4)
}
  0xa7   : > { %12344 = dma.hbm_to_vmem [thread:$0]  (!%p14461_p5), %s14413_s6, 16384, %s934_s4, [#allocation14], %s14262_s1, %s14262_s1, %s14263_s10  }
  0xa8   : > { %s14180_s26 = scalar_lea.vmem %s953_s11, 8192  ;;  %p14188_p2 = scmp.lt.s32.totalorder %s953_s11, %s953_s11 }
  0xa9   : > { %p14181_p8 = scmp.ne.s32.totalorder %s953_s11, %s14180_s26  ;;  %p14189_p10 = scmp.lt.s32.totalorder %s14180_s26, %s14180_s26 }
  0xab   : > { %p14183_p7 = pnand %p14181_p8, %p14471_p6  ;;  %p14190_p11 = por %p14189_p10, %p14188_p2 }
  0xad   : > { %p14184_p9 = pneg %p14183_p7 }
  0xaf   : > { %p14191_p13 = pnand %p14190_p11, %p14184_p9 }
  0xb1   : > { %14194 = shalt.err (!%p14191_p13)
}
  0xb2   : > { %s14270_s28 = smov 64   ;;  %s14271_s16 = smov 4  }
  0xb3   : > { %12347 = dma.hbm_to_vmem [thread:$0]  (!%p14461_p5), %s14428_s30, 8192, %s953_s11, [#allocation17], %s14270_s28, %s14270_s28, %s14271_s16  }
  0xb4   : > { %979 = sbr.rel (%p14451_p3) target bundleno = 4873 (0x1309), region = 144  ;;  %p14855_p12 = scmp.eq.s32.totalorder (!%p14451_p3), %s14446_s23, 0 }
  0xb9   : > { %14200 = dma.done.wait (%p14855_p12), [#allocation3], 6144   ;;  %p14856_p6 = pmov %p14855_p12 }
  0xbb   : > { %14202 = vsyncadd (%p14856_p6), [#allocation3], 4294961152  ;;  %p14857_p0 = pmov %p14856_p6 }
  0xbd   : > { %14204 = dma.done.wait (%p14857_p0), [#allocation5], 24576   ;;  %p14858_p1 = pmov %p14857_p0 }
  0xbe   : > { %p14859_p4 = pmov %p14857_p0 }
  0xbf   : > { %14206 = vsyncadd (%p14858_p1), [#allocation5], 4294942720 }
  0xc0   : > { %14208 = dma.done.wait (%p14859_p4), [#allocation8], 24576   ;;  %p14860_p5 = pmov %p14857_p0 }
  0xc1   : > { %p14861_p3 = pmov %p14857_p0 }
  0xc2   : > { %14210 = vsyncadd (%p14860_p5), [#allocation8], 4294942720 }
  0xc3   : > { %14212 = dma.done.wait (%p14861_p3), [#allocation11], 32768   ;;  %p14862_p8 = pmov %p14857_p0 }
  0xc4   : > { %p14863_p7 = pmov %p14857_p0 }
  0xc5   : > { %14214 = vsyncadd (%p14862_p8), [#allocation11], 4294934528 }
  0xc6   : > { %14216 = dma.done.wait (%p14863_p7), [#allocation14], 32768   ;;  %p14864_p9 = pmov %p14857_p0 }
  0xc7   : > { %p14865_p2 = pmov %p14857_p0 }
  0xc8   : > { %14218 = vsyncadd (%p14864_p9), [#allocation14], 4294934528 }
  0xc9   : > { %14220 = dma.done.wait (%p14865_p2), [#allocation17], 8192   ;;  %p14866_p10 = pmov %p14857_p0 }
  0xca   : > { %p1095_p11 = scmp.lt.s32.totalorder %s14446_s23, 1  ;;  %v14272_v0 = vmov 0.0   ;;  %vm14273_vm0 = vmmov 0   ;;  %v12429_v7 = vld [vmem:[#allocation2 + $0x74] ss:$8 sps:$4 sm:$0xff]   ;;  %v12424_v8 = vld [vmem:[%s14288_s9] sm:$0xff]  }
  0xcb   : > { %14222 = vsyncadd (%p14866_p10), [#allocation17], 4294959104  ;;  %12253 = vmatprep.subr.bf16.mxu0 %v14272_v0  ;;  %12261 = vmatprep.subr.bf16.mxu1 %v14272_v0  ;;  %v12425_v9 = vld [vmem:[%s14288_s9 + $0x8] sm:$0xff]   ;;  %vm1119_vm1 = vcmask 261120   ;;  %v12427_v10 = vld [vmem:[#allocation2 + $0x70] ss:$8 sps:$4 sm:$0xff]  }
  0xcc   : > { %s14882_s23 = smov (!%p1095_p11, %s14446_s23), 1  ;;  %12257 = vmatprep.mubr.msk.bf16.mxu0 %vm14273_vm0, %v14272_v0  ;;  %12265 = vmatprep.mubr.msk.bf16.mxu1 %vm14273_vm0, %v14272_v0  ;;  %v12432_v11 = vld [vmem:[#allocation2 + $0x64] ss:$8 sps:$4 sm:$0xff]   ;;  %v12430_v12 = vld [vmem:[#allocation2 + $0x60] ss:$8 sps:$4 sm:$0xff]   ;;  %v12426_v14 = vld [vmem:[%s14288_s9 + $0x10] sm:$0xff]  }
  0xcd   : > { %s12130_s0 = sshll.u32 %s14882_s23, 5  ;;  %v12435_v13 = vld [vmem:[#allocation2 + $0x54] ss:$8 sps:$4 sm:$0xff]   ;;  %v12433_v15 = vld [vmem:[#allocation2 + $0x50] ss:$8 sps:$4 sm:$0xff]   ;;  %v14274_v58 = vmov 0  }
  0xce   : > { %s1099_s7 = scalar_lea.vmem %s14283_s5, %s12130_s0  ;;  %v12438_v16 = vld [vmem:[#allocation2 + $0x44] ss:$8 sps:$4 sm:$0xff]   ;;  %v12457_v17 = vld [vmem:[#allocation2 + $0x170] ss:$8 sps:$4 sm:$0xff]   ;;  %v12459_v18 = vld [vmem:[#allocation2 + $0x174] ss:$8 sps:$4 sm:$0xff]  }
  0xcf   : > { %v1108_v1 = vld [vmem:[%s1099_s7 + $0x10] sm:$0xff]  ;;  %v1109_v2 = vld [vmem:[%s1099_s7 + $0x18] sm:$0xff]  ;;  %v1106_v3 = vld [vmem:[%s1099_s7] sm:$0xff]  ;;  %vm1664_vm2 = vcmask 130048   ;;  %s14867_s18 = sld [smem:[#allocation24_spill]]  ;;  %vm2527_vm3 = vcmask 1043456  }
  0xd0   : > { %v1111_v4 = vpack.c.bf16 %v1109_v2, %v1108_v1  ;;  %v1107_v5 = vld [vmem:[%s1099_s7 + $0x8] sm:$0xff]  ;;  %v12441_v20 = vld [vmem:[#allocation2 + $0x34] ss:$8 sps:$4 sm:$0xff]   ;;  %v12439_v23 = vld [vmem:[#allocation2 + $0x30] ss:$8 sps:$4 sm:$0xff]   ;;  %vm2523_vm4 = vcmask 64512  }
  0xd1   : > { %v1110_v6 = vpack.c.bf16 %v1107_v5, %v1106_v3  ;;  %v12436_v19 = vld [vmem:[#allocation2 + $0x40] ss:$8 sps:$4 sm:$0xff]   ;;  %v12465_v22 = vld [vmem:[#allocation2 + $0x164] ss:$8 sps:$4 sm:$0xff]   ;;  %v12471_v24 = vld [vmem:[#allocation2 + $0x154] ss:$8 sps:$4 sm:$0xff]  }
  0xd2   : > { %12254 = vmatpush3.bf16.msra.mxu0 %v1111_v4  ;;  %12262 = vmatpush3.bf16.msra.mxu1 %v1111_v4  ;;  %v12463_v21 = vld [vmem:[#allocation2 + $0x160] ss:$8 sps:$4 sm:$0xff]   ;;  %v12444_v25 = vld [vmem:[#allocation2 + $0x24] ss:$8 sps:$4 sm:$0xff]   ;;  %v12469_v26 = vld [vmem:[#allocation2 + $0x150] ss:$8 sps:$4 sm:$0xff]  }
  0xd3   : > { %12255 = vmatprep.subr.bf16.mxu0 %v14272_v0  ;;  %12263 = vmatprep.subr.bf16.mxu1 %v14272_v0  ;;  %v12477_v27 = vld [vmem:[#allocation2 + $0x144] ss:$8 sps:$4 sm:$0xff]   ;;  %v12442_v28 = vld [vmem:[#allocation2 + $0x20] ss:$8 sps:$4 sm:$0xff]   ;;  %v12447_v29 = vld [vmem:[#allocation2 + $0x14] ss:$8 sps:$4 sm:$0xff]  }
  0xd4   : > { %v12475_v30 = vld [vmem:[#allocation2 + $0x140] ss:$8 sps:$4 sm:$0xff]   ;;  %v12483_v31 = vld [vmem:[#allocation2 + $0x134] ss:$8 sps:$4 sm:$0xff]   ;;  %v12445_v32 = vld [vmem:[#allocation2 + $0x10] ss:$8 sps:$4 sm:$0xff]  }
  0xd5   : > { %v12450_v33 = vld [vmem:[#allocation2 + $0x4] ss:$8 sps:$4 sm:$0xff]   ;;  %v12481_v34 = vld [vmem:[#allocation2 + $0x130] ss:$8 sps:$4 sm:$0xff]   ;;  %v12448_v35 = vld [vmem:[#allocation2] ss:$8 sps:$4 sm:$0xff]  }
  0xd6   : > { %12256 = vmatpush3.bf16.msra.mxu0 %v1110_v6  ;;  %12264 = vmatpush3.bf16.msra.mxu1 %v1110_v6  ;;  %v12453_v36 = vld [vmem:[#allocation2 + $0xf4] ss:$8 sps:$4 sm:$0xff]   ;;  %v12451_v37 = vld [vmem:[#allocation2 + $0xf0] ss:$8 sps:$4 sm:$0xff]   ;;  %v12456_v38 = vld [vmem:[#allocation2 + $0xe4] ss:$8 sps:$4 sm:$0xff]  }
  0xd7   : > { %12269 = vmatprep.subr.bf16.mxu0 %v14272_v0  ;;  %1571 = vmatprep.subr.bf16.mxu1 %v12429_v7  ;;  %v12454_v39 = vld [vmem:[#allocation2 + $0xe0] ss:$8 sps:$4 sm:$0xff]   ;;  %v12462_v40 = vld [vmem:[#allocation2 + $0xd4] ss:$8 sps:$4 sm:$0xff]   ;;  %v12460_v41 = vld [vmem:[#allocation2 + $0xd0] ss:$8 sps:$4 sm:$0xff]  }
  0xd8   : > { %v12468_v42 = vld [vmem:[#allocation2 + $0xc4] ss:$8 sps:$4 sm:$0xff]   ;;  %v12466_v43 = vld [vmem:[#allocation2 + $0xc0] ss:$8 sps:$4 sm:$0xff]   ;;  %v12474_v44 = vld [vmem:[#allocation2 + $0xb4] ss:$8 sps:$4 sm:$0xff]  }
  0xd9   : > { %12258 = vmatmul.mubr.msk.bf16.vlgmr.msra.gmra.mxu0 %vm1119_vm1, %v12424_v8  ;;  %12266 = vmatmul.mubr.msk.bf16.vlgmr.msra.gmra.mxu1 %vm1119_vm1, %v12425_v9  ;;  %v12472_v45 = vld [vmem:[#allocation2 + $0xb0] ss:$8 sps:$4 sm:$0xff]   ;;  %v12480_v46 = vld [vmem:[#allocation2 + $0xa4] ss:$8 sps:$4 sm:$0xff]   ;;  %v12478_v47 = vld [vmem:[#allocation2 + $0xa0] ss:$8 sps:$4 sm:$0xff]  }
  0xda   : > { %12270 = vmatpush3.bf16.msra.mxu0 %v1111_v4  ;;  %12273 = vmatprep.mubr.msk.bf16.mxu0 %vm14273_vm0, %v14272_v0  ;;  %v12486_v48 = vld [vmem:[#allocation2 + $0x94] ss:$8 sps:$4 sm:$0xff]   ;;  %v12484_v49 = vld [vmem:[#allocation2 + $0x90] ss:$8 sps:$4 sm:$0xff]   ;;  %v12489_v50 = vld [vmem:[#allocation2 + $0x124] ss:$8 sps:$4 sm:$0xff]  }
  0xdb   : > { %12271 = vmatprep.subr.bf16.mxu0 %v14272_v0  ;;  %1572 = vmatpush1.bf16.msra.mxu1 %v12427_v10  ;;  %v12487_v51 = vld [vmem:[#allocation2 + $0x120] ss:$8 sps:$4 sm:$0xff]   ;;  %v12492_v52 = vld [vmem:[#allocation2 + $0x84] ss:$8 sps:$4 sm:$0xff]   ;;  %v12495_v54 = vld [vmem:[#allocation2 + $0x114] ss:$8 sps:$4 sm:$0xff]  }
  0xdc   : > { %1573 = vmatprep.subr.bf16.mxu1 %v12432_v11  ;;  %v12490_v53 = vld [vmem:[#allocation2 + $0x80] ss:$8 sps:$4 sm:$0xff]   ;;  %v12493_v55 = vld [vmem:[#allocation2 + $0x110] ss:$8 sps:$4 sm:$0xff]   ;;  %v12498_v56 = vld [vmem:[#allocation2 + $0x104] ss:$8 sps:$4 sm:$0xff]  }
  0xdd   : > { %v12496_v57 = vld [vmem:[#allocation2 + $0x100] ss:$8 sps:$4 sm:$0xff]   ;;  %v12508_v10 = vld [vmem:[#allocation4 + $0x170] ss:$8 sps:$4 sm:$0xff]   ;;  %v12510_v11 = vld [vmem:[#allocation4 + $0x174] ss:$8 sps:$4 sm:$0xff]  }
  0xde   : > { %12272 = vmatpush3.bf16.msra.mxu0 %v1110_v6  ;;  %s14868_s1 = sld [smem:[#allocation25_spill]] }
  0xdf   : > { %1574 = vmatpush1.bf16.msra.mxu1 %v12430_v12  ;;  %1614 = vmatprep.subr.bf16.mxu0 %v12459_v18  ;;  %v12514_v12 = vld [vmem:[#allocation4 + $0x160] ss:$8 sps:$4 sm:$0xff]   ;;  %v12532_v18 = vld [vmem:[#allocation4 + $0x130] ss:$8 sps:$4 sm:$0xff]   ;;  %s14869_s10 = sld [smem:[#allocation26_spill]] }
  0xe0   : > { %1575 = vmatprep.subr.bf16.mxu1 %v12435_v13  ;;  %v12516_v13 = vld [vmem:[#allocation4 + $0x164] ss:$8 sps:$4 sm:$0xff]   ;;  %s14870_s4 = sld [smem:[#allocation27_spill]] }
  0xe1   : > { %12274 = vmatmul.mubr.msk.bf16.vlgmr.msra.gmra.mxu0 %vm1119_vm1, %v12426_v14  ;;  %v12520_v14 = vld [vmem:[#allocation4 + $0x150] ss:$8 sps:$4 sm:$0xff]   ;;  %s14871_s2 = sld [smem:[#allocation28_spill]] }
  0xe2   : > { %1615 = vmatpush1.bf16.msra.mxu0 %v12457_v17  ;;  %1646 = vmatprep.mubr.bf16.mxu0 %v14274_v58  ;;  %v12528_v17 = vld [vmem:[#allocation4 + $0x144] ss:$8 sps:$4 sm:$0xff]   ;;  %s14872_s11 = sld [smem:[#allocation29_spill]] }
  0xe3   : > { %1576 = vmatpush1.bf16.msra.mxu1 %v12433_v15  ;;  %1616 = vmatprep.subr.bf16.mxu0 %v12465_v22  ;;  %v12522_v15 = vld [vmem:[#allocation4 + $0x154] ss:$8 sps:$4 sm:$0xff]   ;;  %v12544_v22 = vld [vmem:[#allocation4 + $0x110] ss:$8 sps:$4 sm:$0xff]   ;;  %s14873_s15 = sld [smem:[#allocation30_spill]] }
  0xe4   : > { %1577 = vmatprep.subr.bf16.mxu1 %v12438_v16  ;;  %v12526_v16 = vld [vmem:[#allocation4 + $0x140] ss:$8 sps:$4 sm:$0xff]   ;;  %s14874_s26 = sld [smem:[#allocation32_spill]] }
  0xe5   : > { %s14875_s28 = sld [smem:[#allocation33_spill]] }
  0xe6   : > { %1617 = vmatpush1.bf16.msra.mxu0 %v12463_v21  ;;  %v12540_v21 = vld [vmem:[#allocation4 + $0x124] ss:$8 sps:$4 sm:$0xff]   ;;  %s14876_s16 = sld [smem:[#allocation34_spill]] }
  0xe7   : > { %1578 = vmatpush1.bf16.msra.mxu1 %v12436_v19  ;;  %1618 = vmatprep.subr.bf16.mxu0 %v12471_v24  ;;  %v12534_v19 = vld [vmem:[#allocation4 + $0x134] ss:$8 sps:$4 sm:$0xff]   ;;  %v12550_v24 = vld [vmem:[#allocation4 + $0x100] ss:$8 sps:$4 sm:$0xff]   ;;  %s14877_s7 = sld [smem:[#allocation35_spill]] }
  0xe8   : > { %1579 = vmatprep.subr.bf16.mxu1 %v12441_v20  ;;  %v12538_v20 = vld [vmem:[#allocation4 + $0x120] ss:$8 sps:$4 sm:$0xff]  }
  0xea   : > { %1619 = vmatpush1.bf16.msra.mxu0 %v12469_v26  ;;  %v12556_v26 = vld [vmem:[#allocation4 + $0x1f0] ss:$8 sps:$4 sm:$0xff]  }
  0xeb   : > { %1580 = vmatpush1.bf16.msra.mxu1 %v12439_v23  ;;  %1620 = vmatprep.subr.bf16.mxu0 %v12477_v27  ;;  %v12546_v23 = vld [vmem:[#allocation4 + $0x114] ss:$8 sps:$4 sm:$0xff]  }
  0xec   : > { %1581 = vmatprep.subr.bf16.mxu1 %v12444_v25  ;;  %v12552_v25 = vld [vmem:[#allocation4 + $0x104] ss:$8 sps:$4 sm:$0xff]   ;;  %v12558_v27 = vld [vmem:[#allocation4 + $0x1f4] ss:$8 sps:$4 sm:$0xff]  }
  0xee   : > { %1621 = vmatpush1.bf16.msra.mxu0 %v12475_v30  ;;  %v1321_v30 = vlaneseq }
  0xef   : > { %1582 = vmatpush1.bf16.msra.mxu1 %v12442_v28  ;;  %1622 = vmatprep.subr.bf16.mxu0 %v12483_v31  ;;  %v12562_v28 = vld [vmem:[#allocation4 + $0x1e0] ss:$8 sps:$4 sm:$0xff]   ;;  %v12568_v31 = vld [vmem:[#allocation4 + $0x1d0] ss:$8 sps:$4 sm:$0xff]  }
  0xf0   : > { %1583 = vmatprep.subr.bf16.mxu1 %v12447_v29  ;;  %v12564_v29 = vld [vmem:[#allocation4 + $0x1e4] ss:$8 sps:$4 sm:$0xff]  }
  0xf2   : > { %1623 = vmatpush1.bf16.msra.mxu0 %v12481_v34  ;;  %v12574_v34 = vld [vmem:[#allocation4 + $0x1c0] ss:$8 sps:$4 sm:$0xff]  }
  0xf3   : > { %1584 = vmatpush1.bf16.msra.mxu1 %v12445_v32  ;;  %1624 = vmatprep.subr.bf16.mxu0 %v12489_v50  ;;  %v12570_v32 = vld [vmem:[#allocation4 + $0x1d4] ss:$8 sps:$4 sm:$0xff]  }
  0xf4   : > { %1585 = vmatprep.subr.bf16.mxu1 %v12450_v33  ;;  %v1322_v33 = vshrl.u32 %v1321_v30, 7  ;;  %v12565_v30 = vld [vmem:[#allocation4 + $0xb0] ss:$8 sps:$4 sm:$0xff]  }
  0xf6   : > { %1625 = vmatpush1.bf16.msra.mxu0 %v12487_v51 }
  0xf7   : > { %1586 = vmatpush1.bf16.msra.mxu1 %v12448_v35  ;;  %1626 = vmatprep.subr.bf16.mxu0 %v12495_v54  ;;  %v12576_v35 = vld [vmem:[#allocation4 + $0x1c4] ss:$8 sps:$4 sm:$0xff]  }
  0xf8   : > { %1587 = vmatprep.subr.bf16.mxu1 %v12453_v36  ;;  %v14608_v36 = vsub.s32 1, %v1322_v33 }
  0xfa   : > { %1627 = vmatpush1.bf16.msra.mxu0 %v12493_v55 }
  0xfb   : > { %1588 = vmatpush2.bf16.msra.mxu1 %v12451_v37  ;;  %1628 = vmatprep.subr.bf16.mxu0 %v12498_v56  ;;  %v12580_v37 = vld [vmem:[#allocation4 + $0x1b0] ss:$8 sps:$4 sm:$0xff]  }
  0xfc   : > { %1589 = vmatprep.subr.bf16.mxu1 %v12456_v38  ;;  %v12582_v38 = vld [vmem:[#allocation4 + $0x1b4] ss:$8 sps:$4 sm:$0xff]  }
  0xfe   : > { %1629 = vmatpush1.bf16.msra.mxu0 %v12496_v57 }
  0xff   : > { %1590 = vmatpush2.bf16.msra.mxu1 %v12454_v39 }
 0x100   : > { %1591 = vmatprep.subr.bf16.mxu1 %v12462_v40 }
 0x103   : > { %1592 = vmatpush2.bf16.msra.mxu1 %v12460_v41  ;;  %v14610_v41 = vsub.s32 0, %v1322_v33  ;;  %v12588_v33 = vld [vmem:[#allocation4 + $0x1a4] ss:$8 sps:$4 sm:$0xff]  }
 0x104   : > { %1593 = vmatprep.subr.bf16.mxu1 %v12468_v42  ;;  %v1319_v42 = vld [vmem:[%s14298_s17] sm:$0x3] }
 0x107   : > { %1594 = vmatpush2.bf16.msra.mxu1 %v12466_v43 }
 0x108   : > { %1595 = vmatprep.subr.bf16.mxu1 %v12474_v44  ;;  %v1328_v44 = vrot.slane %v1319_v42, %v14608_v36 }
 0x10b   : > { %1596 = vmatpush2.bf16.msra.mxu1 %v12472_v45  ;;  %v1324_v45 = vrot.slane %v1319_v42, %v14610_v41  ;;  %v12583_v42 = vld [vmem:[#allocation4 + $0x80] ss:$8 sps:$4 sm:$0xff]  }
 0x10c   : > { %1597 = vmatprep.subr.bf16.mxu1 %v12480_v46 }
 0x10f   : > { %1598 = vmatpush2.bf16.msra.mxu1 %v12478_v47 }
 0x110   : > { %1599 = vmatprep.subr.bf16.mxu1 %v12486_v48 }
 0x113   : > { %1600 = vmatpush2.bf16.msra.mxu1 %v12484_v49 }
 0x114   : > { %1601 = vmatprep.subr.bf16.mxu1 %v12492_v52 }
 0x117   : > { %1602 = vmatpush2.bf16.msra.mxu1 %v12490_v53 }
 0x118   : > { %2436 = vmatprep.subr.bf16.mxu1 %v12510_v11  ;;  %v12513_v11 = vld [vmem:[#allocation4 + $0x44] ss:$8 sps:$4 sm:$0xff]  }
 0x199   : > { %v1157_v59 = vpop.f32.mrf.mxu0  ;;  %v1209_v60 = vpop.f32.mrf.mxu1 }
 0x19b   : > { %v12259_v61 = vpop.f32.mrf.mxu0  ;;  %v12267_v62 = vpop.f32.mrf.mxu1 }
 0x19d   : > { %v1160_v63 = vpop.f32.mrf.mxu0  ;;  %v1212_v0 = vpop.f32.mrf.mxu1 }
 0x19e   : > { %v1268_v1 = vpack.c.bf16 %v1160_v63, %v1157_v59  ;;  %v1269_v2 = vpack.c.bf16 %v1212_v0, %v1209_v60 }
 0x19f   : > { %v12260_v3 = vpop.f32.mrf.mxu0  ;;  %v12268_v4 = vpop.f32.mrf.mxu1 }
 0x1a0   : > { %1603 = vmatprep.mubr.bf16.mxu1 %v1269_v2  ;;  %v1663_v2 = vld [vmem:[%s14303_s21] sm:$0xf]  ;;  %v11060_v3 = vld [vmem:[%s14303_s21 + $0x4] sm:$0xf]  ;;  %v12501_v4 = vld [vmem:[#allocation4 + $0x74] ss:$8 sps:$4 sm:$0xff]  }
 0x1a1   : > { %v1261_v5 = vpop.f32.mrf.mxu0  ;;  %1604 = vmatmul.mubr.bf16.vlgmr.msra.gmra.mxu1 %v1268_v1 }
 0x1a2   : > { %2437 = vmatpush1.bf16.msra.mxu1 %v12508_v10  ;;  %v12505_v10 = vld [vmem:[#allocation4 + $0x50] ss:$8 sps:$4 sm:$0xff]  }
 0x1a3   : > { %v12275_v6 = vpop.f32.mrf.mxu0  ;;  %2438 = vmatprep.subr.bf16.mxu1 %v12516_v13  ;;  %v12519_v13 = vld [vmem:[#allocation4 + $0x34] ss:$8 sps:$4 sm:$0xff]  }
 0x1a4   : > { %v12499_v6 = vld [vmem:[#allocation4 + $0x70] ss:$8 sps:$4 sm:$0xff]  }
 0x1a5   : > { %v1264_v7 = vpop.f32.mrf.mxu0 }
 0x1a6   : > { %v1270_v8 = vpack.c.bf16 %v1264_v7, %v1261_v5  ;;  %2439 = vmatpush1.bf16.msra.mxu1 %v12514_v12  ;;  %v11062_v5 = vld [vmem:[%s14303_s21 + $0x8] sm:$0xf]  ;;  %v12504_v7 = vld [vmem:[#allocation4 + $0x64] ss:$8 sps:$4 sm:$0xff]  }
 0x1a7   : > { %v12276_v9 = vpop.f32.mrf.mxu0  ;;  %2440 = vmatprep.subr.bf16.mxu1 %v12522_v15  ;;  %v12511_v12 = vld [vmem:[#allocation4 + $0x40] ss:$8 sps:$4 sm:$0xff]   ;;  %v12525_v15 = vld [vmem:[#allocation4 + $0x24] ss:$8 sps:$4 sm:$0xff]  }
 0x1a8   : > { %1647 = vmatmul.mubr.bf16.vlgmr.msra.gmra.mxu0 %v1270_v8  ;;  %v12502_v8 = vld [vmem:[#allocation4 + $0x60] ss:$8 sps:$4 sm:$0xff]   ;;  %v12507_v9 = vld [vmem:[#allocation4 + $0x54] ss:$8 sps:$4 sm:$0xff]  }
 0x1a9   : > { %1700 = vmatprep.mubr.bf16.mxu0 %v14274_v58 }
 0x1aa   : > { %2441 = vmatpush1.bf16.msra.mxu1 %v12520_v14  ;;  %v12517_v14 = vld [vmem:[#allocation4 + $0x30] ss:$8 sps:$4 sm:$0xff]  }
 0x1ab   : > { %2442 = vmatprep.subr.bf16.mxu1 %v12528_v17  ;;  %v12531_v17 = vld [vmem:[#allocation4 + $0x14] ss:$8 sps:$4 sm:$0xff]  }
 0x1ae   : > { %2443 = vmatpush1.bf16.msra.mxu1 %v12526_v16  ;;  %v12523_v16 = vld [vmem:[#allocation4 + $0x20] ss:$8 sps:$4 sm:$0xff]  }
 0x1af   : > { %2444 = vmatprep.subr.bf16.mxu1 %v12534_v19  ;;  %v12537_v19 = vld [vmem:[#allocation4 + $0x4] ss:$8 sps:$4 sm:$0xff]  }
 0x1b2   : > { %2445 = vmatpush1.bf16.msra.mxu1 %v12532_v18  ;;  %v12529_v18 = vld [vmem:[#allocation4 + $0x10] ss:$8 sps:$4 sm:$0xff]  }
 0x1b3   : > { %2446 = vmatprep.subr.bf16.mxu1 %v12540_v21  ;;  %v12543_v21 = vld [vmem:[#allocation4 + $0xf4] ss:$8 sps:$4 sm:$0xff]  }
 0x1b6   : > { %2447 = vmatpush1.bf16.msra.mxu1 %v12538_v20  ;;  %v12535_v20 = vld [vmem:[#allocation4] ss:$8 sps:$4 sm:$0xff]  }
 0x1b7   : > { %2448 = vmatprep.subr.bf16.mxu1 %v12546_v23  ;;  %v12549_v23 = vld [vmem:[#allocation4 + $0xe4] ss:$8 sps:$4 sm:$0xff]  }
 0x1ba   : > { %2449 = vmatpush1.bf16.msra.mxu1 %v12544_v22  ;;  %v12541_v22 = vld [vmem:[#allocation4 + $0xf0] ss:$8 sps:$4 sm:$0xff]  }
 0x1bb   : > { %2450 = vmatprep.subr.bf16.mxu1 %v12552_v25  ;;  %v12555_v25 = vld [vmem:[#allocation4 + $0xd4] ss:$8 sps:$4 sm:$0xff]  }
 0x1be   : > { %2451 = vmatpush1.bf16.msra.mxu1 %v12550_v24  ;;  %v12547_v24 = vld [vmem:[#allocation4 + $0xe0] ss:$8 sps:$4 sm:$0xff]  }
 0x1bf   : > { %2452 = vmatprep.subr.bf16.mxu1 %v12558_v27  ;;  %v12561_v27 = vld [vmem:[#allocation4 + $0xc4] ss:$8 sps:$4 sm:$0xff]  }
 0x1c2   : > { %2453 = vmatpush2.bf16.msra.mxu1 %v12556_v26  ;;  %v12553_v26 = vld [vmem:[#allocation4 + $0xd0] ss:$8 sps:$4 sm:$0xff]  }
 0x1c3   : > { %2454 = vmatprep.subr.bf16.mxu1 %v12564_v29  ;;  %v12567_v29 = vld [vmem:[#allocation4 + $0xb4] ss:$8 sps:$4 sm:$0xff]  }
 0x1c6   : > { %2455 = vmatpush2.bf16.msra.mxu1 %v12562_v28  ;;  %v12559_v28 = vld [vmem:[#allocation4 + $0xc0] ss:$8 sps:$4 sm:$0xff]  }
 0x1c7   : > { %2456 = vmatprep.subr.bf16.mxu1 %v12570_v32  ;;  %v12571_v32 = vld [vmem:[#allocation4 + $0xa0] ss:$8 sps:$4 sm:$0xff]  }
 0x1ca   : > { %2457 = vmatpush2.bf16.msra.mxu1 %v12568_v31  ;;  %v12573_v31 = vld [vmem:[#allocation4 + $0xa4] ss:$8 sps:$4 sm:$0xff]  }
 0x1cb   : > { %2458 = vmatprep.subr.bf16.mxu1 %v12576_v35  ;;  %v12586_v35 = vld [vmem:[#allocation4 + $0x1a0] ss:$8 sps:$4 sm:$0xff]  }
 0x1ce   : > { %2459 = vmatpush2.bf16.msra.mxu1 %v12574_v34  ;;  %v12579_v34 = vld [vmem:[#allocation4 + $0x94] ss:$8 sps:$4 sm:$0xff]  }
 0x1cf   : > { %2460 = vmatprep.subr.bf16.mxu1 %v12582_v38  ;;  %v12594_v38 = vld [vmem:[#allocation4 + $0x194] ss:$8 sps:$4 sm:$0xff]  }
 0x1d2   : > { %2461 = vmatpush2.bf16.msra.mxu1 %v12580_v37  ;;  %v12577_v37 = vld [vmem:[#allocation4 + $0x90] ss:$8 sps:$4 sm:$0xff]  }
 0x1d3   : > { %2462 = vmatprep.subr.bf16.mxu1 %v12588_v33  ;;  %v12654_v33 = vld [vmem:[#allocation6 + $0x174] ss:$8 sps:$4 sm:$0xff]  }
 0x1d6   : > { %2463 = vmatpush2.bf16.msra.mxu1 %v12586_v35  ;;  %v12660_v35 = vld [vmem:[#allocation6 + $0x164] ss:$8 sps:$4 sm:$0xff]  }
 0x1d7   : > { %2464 = vmatprep.subr.bf16.mxu1 %v12594_v38  ;;  %v12666_v38 = vld [vmem:[#allocation6 + $0x154] ss:$8 sps:$4 sm:$0xff]  }
 0x261   : > { %v1605_v39 = vpop.f32.mrf.mxu1 }
 0x262   : > { %v1606_v51 = vadd.f32 %v1605_v39, %v1324_v45  ;;  %v12585_v39 = vld [vmem:[#allocation4 + $0x84] ss:$8 sps:$4 sm:$0xff]  }
 0x263   : > { %v1607_v40 = vpop.f32.mrf.mxu1 }
 0x264   : > { %v1608_v49 = vadd.f32 %v1607_v40, %v1328_v44  ;;  %v12592_v40 = vld [vmem:[#allocation4 + $0x190] ss:$8 sps:$4 sm:$0xff]  }
 0x265   : > { %v1609_v43 = vpop.f32.mrf.mxu1  ;;  %2465 = vmatpush2.bf16.msra.mxu1 %v12592_v40  ;;  %v12672_v40 = vld [vmem:[#allocation6 + $0x144] ss:$8 sps:$4 sm:$0xff]  }
 0x266   : > { %v1610_v50 = vadd.f32 %v1609_v43, %v1324_v45  ;;  %v12600_v43 = vld [vmem:[#allocation4 + $0x184] ss:$8 sps:$4 sm:$0xff]   ;;  %v12598_v45 = vld [vmem:[#allocation4 + $0x180] ss:$8 sps:$4 sm:$0xff]  }
 0x267   : > { %v1611_v47 = vpop.f32.mrf.mxu1  ;;  %2466 = vmatprep.subr.bf16.mxu1 %v12600_v43  ;;  %v12678_v43 = vld [vmem:[#allocation6 + $0x134] ss:$8 sps:$4 sm:$0xff]  }
 0x268   : > { %v1648_v46 = vpop.f32.mrf.mxu0  ;;  %v1612_v53 = vadd.f32 %v1611_v47, %v1328_v44  ;;  %v12591_v44 = vld [vmem:[#allocation4 + $0x274] ss:$8 sps:$4 sm:$0xff]  }
 0x269   : > { %v1649_v56 = vadd.f32 %v1648_v46, %v1606_v51  ;;  %2467 = vmatpush2.bf16.msra.mxu1 %v12598_v45  ;;  %v12684_v45 = vld [vmem:[#allocation6 + $0x124] ss:$8 sps:$4 sm:$0xff]  }
 0x26a   : > { %v1650_v48 = vpop.f32.mrf.mxu0 }
 0x26b   : > { %v1651_v54 = vadd.f32 %v1650_v48, %v1608_v49  ;;  %v1657_v63 = vmax.f32 %v1649_v56, 0.0  ;;  %v12589_v49 = vld [vmem:[#allocation4 + $0x270] ss:$8 sps:$4 sm:$0xff]   ;;  %v12603_v56 = vld [vmem:[#allocation4 + $0x254] ss:$8 sps:$4 sm:$0xff]  }
 0x26c   : > { %v1652_v52 = vpop.f32.mrf.mxu0 }
 0x26d   : > { %v1653_v55 = vadd.f32 %v1652_v52, %v1610_v50  ;;  %v1658_v61 = vmax.f32 %v1651_v54, 0.0  ;;  %v12597_v52 = vld [vmem:[#allocation4 + $0x264] ss:$8 sps:$4 sm:$0xff]   ;;  %v12595_v54 = vld [vmem:[#allocation4 + $0x260] ss:$8 sps:$4 sm:$0xff]  }
 0x26e   : > { %v1654_v57 = vpop.f32.mrf.mxu0 }
 0x26f   : > { %v1655_v59 = vadd.f32 %v1654_v57, %v1612_v53  ;;  %v1659_v60 = vmax.f32 %v1653_v55, 0.0 }
 0x271   : > { %v1660_v62 = vmax.f32 %v1655_v59, 0.0  ;;  %v1661_v1 = vpack.c.bf16 %v1659_v60, %v1657_v63 }
 0x273   : > { %v1662_v0 = vpack.c.bf16 %v1660_v62, %v1658_v61  ;;  %v12601_v61 = vld [vmem:[#allocation4 + $0x250] ss:$8 sps:$4 sm:$0xff]   ;;  %v12606_v62 = vld [vmem:[#allocation4 + $0x244] ss:$8 sps:$4 sm:$0xff]  }
 0x275   : > { %1682 = vmatprep.subr.bf16.mxu0 %v1662_v0 }
 0x276   : > { %1683 = vmatpush1.bf16.msra.mxu0 %v1661_v1 }
 0x277   : > { %1728 = vmatprep.subr.bf16.mxu0 %v1662_v0 }
 0x279   : > { %11059 = vmatmul.mubr.msk.bf16.vlgmr.msra.gmra.mxu0 %vm1664_vm2, %v1663_v2  ;;  %v12609_v2 = vld [vmem:[#allocation4 + $0x234] ss:$8 sps:$4 sm:$0xff]  }
 0x27a   : > { %1729 = vmatpush1.bf16.msra.mxu0 %v1661_v1  ;;  %1746 = vmatprep.mubr.bf16.mxu0 %v14274_v58 }
 0x27b   : > { %1774 = vmatprep.subr.bf16.mxu0 %v1662_v0 }
 0x281   : > { %11061 = vmatmul.mubr.msk.bf16.vlgmr.msra.gmra.mxu0 %vm1664_vm2, %v11060_v3 }
 0x282   : > { %1775 = vmatpush1.bf16.msra.mxu0 %v1661_v1  ;;  %1792 = vmatprep.mubr.bf16.mxu0 %v14274_v58  ;;  %v12604_v1 = vld [vmem:[#allocation4 + $0x240] ss:$8 sps:$4 sm:$0xff]  }
 0x283   : > { %2395 = vmatprep.subr.bf16.mxu0 %v12501_v4 }
 0x289   : > { %11063 = vmatmul.mubr.msk.bf16.vlgmr.msra.gmra.mxu0 %vm1664_vm2, %v11062_v5  ;;  %v12607_v5 = vld [vmem:[#allocation4 + $0x230] ss:$8 sps:$4 sm:$0xff]  }
 0x28a   : > { %2396 = vmatpush1.bf16.msra.mxu0 %v12499_v6 }
 0x28b   : > { %2397 = vmatprep.subr.bf16.mxu0 %v12504_v7  ;;  %v12612_v7 = vld [vmem:[#allocation4 + $0x224] ss:$8 sps:$4 sm:$0xff]  }
 0x28e   : > { %2398 = vmatpush1.bf16.msra.mxu0 %v12502_v8 }
 0x28f   : > { %2399 = vmatprep.subr.bf16.mxu0 %v12507_v9 }
 0x292   : > { %2400 = vmatpush1.bf16.msra.mxu0 %v12505_v10  ;;  %v12610_v10 = vld [vmem:[#allocation4 + $0x220] ss:$8 sps:$4 sm:$0xff]  }
 0x293   : > { %2401 = vmatprep.subr.bf16.mxu0 %v12513_v11  ;;  %v12615_v11 = vld [vmem:[#allocation4 + $0x214] ss:$8 sps:$4 sm:$0xff]  }
 0x296   : > { %2402 = vmatpush1.bf16.msra.mxu0 %v12511_v12  ;;  %v12613_v12 = vld [vmem:[#allocation4 + $0x210] ss:$8 sps:$4 sm:$0xff]  }
 0x297   : > { %2403 = vmatprep.subr.bf16.mxu0 %v12519_v13  ;;  %v12618_v13 = vld [vmem:[#allocation4 + $0x204] ss:$8 sps:$4 sm:$0xff]  }
 0x29a   : > { %2404 = vmatpush1.bf16.msra.mxu0 %v12517_v14  ;;  %v12616_v14 = vld [vmem:[#allocation4 + $0x200] ss:$8 sps:$4 sm:$0xff]  }
 0x29b   : > { %2405 = vmatprep.subr.bf16.mxu0 %v12525_v15  ;;  %v12621_v15 = vld [vmem:[#allocation4 + $0x2f4] ss:$8 sps:$4 sm:$0xff]  }
 0x29e   : > { %2406 = vmatpush1.bf16.msra.mxu0 %v12523_v16  ;;  %v12619_v16 = vld [vmem:[#allocation4 + $0x2f0] ss:$8 sps:$4 sm:$0xff]  }
 0x29f   : > { %2407 = vmatprep.subr.bf16.mxu0 %v12531_v17  ;;  %v12624_v17 = vld [vmem:[#allocation4 + $0x2e4] ss:$8 sps:$4 sm:$0xff]  }
 0x2a2   : > { %2408 = vmatpush1.bf16.msra.mxu0 %v12529_v18  ;;  %v12622_v18 = vld [vmem:[#allocation4 + $0x2e0] ss:$8 sps:$4 sm:$0xff]  }
 0x2a3   : > { %2409 = vmatprep.subr.bf16.mxu0 %v12537_v19  ;;  %v12627_v19 = vld [vmem:[#allocation4 + $0x2d4] ss:$8 sps:$4 sm:$0xff]  }
 0x2a6   : > { %2410 = vmatpush1.bf16.msra.mxu0 %v12535_v20  ;;  %v12625_v20 = vld [vmem:[#allocation4 + $0x2d0] ss:$8 sps:$4 sm:$0xff]  }
 0x2a7   : > { %2411 = vmatprep.subr.bf16.mxu0 %v12543_v21  ;;  %v12630_v21 = vld [vmem:[#allocation4 + $0x2c4] ss:$8 sps:$4 sm:$0xff]  }
 0x2aa   : > { %2412 = vmatpush2.bf16.msra.mxu0 %v12541_v22  ;;  %v12628_v22 = vld [vmem:[#allocation4 + $0x2c0] ss:$8 sps:$4 sm:$0xff]  }
 0x2ab   : > { %2413 = vmatprep.subr.bf16.mxu0 %v12549_v23  ;;  %v12633_v23 = vld [vmem:[#allocation4 + $0x2b4] ss:$8 sps:$4 sm:$0xff]  }
 0x2ae   : > { %2414 = vmatpush2.bf16.msra.mxu0 %v12547_v24  ;;  %v12631_v24 = vld [vmem:[#allocation4 + $0x2b0] ss:$8 sps:$4 sm:$0xff]  }
 0x2af   : > { %2415 = vmatprep.subr.bf16.mxu0 %v12555_v25  ;;  %v12636_v25 = vld [vmem:[#allocation4 + $0x2a4] ss:$8 sps:$4 sm:$0xff]  }
 0x2b2   : > { %2416 = vmatpush2.bf16.msra.mxu0 %v12553_v26  ;;  %v12634_v26 = vld [vmem:[#allocation4 + $0x2a0] ss:$8 sps:$4 sm:$0xff]  }
 0x2b3   : > { %2417 = vmatprep.subr.bf16.mxu0 %v12561_v27  ;;  %v12639_v27 = vld [vmem:[#allocation4 + $0x294] ss:$8 sps:$4 sm:$0xff]  }
 0x2b6   : > { %2418 = vmatpush2.bf16.msra.mxu0 %v12559_v28  ;;  %v12637_v28 = vld [vmem:[#allocation4 + $0x290] ss:$8 sps:$4 sm:$0xff]  }
 0x2b7   : > { %2419 = vmatprep.subr.bf16.mxu0 %v12567_v29  ;;  %v12642_v29 = vld [vmem:[#allocation4 + $0x284] ss:$8 sps:$4 sm:$0xff]  }
 0x2ba   : > { %2420 = vmatpush2.bf16.msra.mxu0 %v12565_v30  ;;  %v12640_v30 = vld [vmem:[#allocation4 + $0x280] ss:$8 sps:$4 sm:$0xff]  }
 0x2bb   : > { %2421 = vmatprep.subr.bf16.mxu0 %v12573_v31 }
 0x2be   : > { %2422 = vmatpush2.bf16.msra.mxu0 %v12571_v32  ;;  %v12652_v32 = vld [vmem:[#allocation6 + $0x170] ss:$8 sps:$4 sm:$0xff]  }
 0x2bf   : > { %2423 = vmatprep.subr.bf16.mxu0 %v12579_v34  ;;  %v12658_v34 = vld [vmem:[#allocation6 + $0x160] ss:$8 sps:$4 sm:$0xff]  }
 0x2c2   : > { %2424 = vmatpush2.bf16.msra.mxu0 %v12577_v37  ;;  %v12664_v37 = vld [vmem:[#allocation6 + $0x150] ss:$8 sps:$4 sm:$0xff]  }
 0x2c3   : > { %2425 = vmatprep.subr.bf16.mxu0 %v12585_v39  ;;  %v12670_v39 = vld [vmem:[#allocation6 + $0x140] ss:$8 sps:$4 sm:$0xff]  }
 0x2c6   : > { %2426 = vmatpush2.bf16.msra.mxu0 %v12583_v42  ;;  %v12676_v42 = vld [vmem:[#allocation6 + $0x130] ss:$8 sps:$4 sm:$0xff]  }
 0x2c7   : > { %2477 = vmatprep.subr.bf16.mxu0 %v12591_v44  ;;  %v12682_v44 = vld [vmem:[#allocation6 + $0x120] ss:$8 sps:$4 sm:$0xff]  }
 0x339   : > { %v1702_v46 = vpop.f32.mrf.mxu0 }
 0x33a   : > { %v1801_v50 = vpack.c.bf16 %v1702_v46, %v1702_v46  ;;  %v12688_v46 = vld [vmem:[#allocation6 + $0x110] ss:$8 sps:$4 sm:$0xff]  }
 0x33b   : > { %v1704_v47 = vpop.f32.mrf.mxu0 }
 0x33c   : > { %v1802_v48 = vpack.c.bf16 %v1704_v47, %v1704_v47  ;;  %v12690_v47 = vld [vmem:[#allocation6 + $0x114] ss:$8 sps:$4 sm:$0xff]  }
 0x33d   : > { %v1706_v51 = vpop.f32.mrf.mxu0 }
 0x33e   : > { %2427 = vmatprep.mubr.bf16.mxu0 %v1802_v48  ;;  %v12696_v51 = vld [vmem:[#allocation6 + $0x104] ss:$8 sps:$4 sm:$0xff]  }
 0x33f   : > { %v1707_v53 = vpop.f32.mrf.mxu0  ;;  %2428 = vmatmul.mubr.bf16.vlgmr.msra.gmra.mxu0 %v1801_v50  ;;  %v12694_v50 = vld [vmem:[#allocation6 + $0x100] ss:$8 sps:$4 sm:$0xff]  }
 0x340   : > { %2478 = vmatpush1.bf16.msra.mxu0 %v12589_v49 }
 0x341   : > { %v1748_v55 = vpop.f32.mrf.mxu0  ;;  %2479 = vmatprep.subr.bf16.mxu0 %v12597_v52 }
 0x342   : > { %v1803_v57 = vpack.c.bf16 %v1748_v55, %v1748_v55  ;;  %v12702_v55 = vld [vmem:[#allocation6 + $0x1f4] ss:$8 sps:$4 sm:$0xff]  }
 0x343   : > { %v1750_v59 = vpop.f32.mrf.mxu0 }
 0x344   : > { %v1804_v60 = vpack.c.bf16 %v1750_v59, %v1750_v59  ;;  %2480 = vmatpush1.bf16.msra.mxu0 %v12595_v54  ;;  %v12700_v54 = vld [vmem:[#allocation6 + $0x1f0] ss:$8 sps:$4 sm:$0xff]   ;;  %v12706_v59 = vld [vmem:[#allocation6 + $0x1e0] ss:$8 sps:$4 sm:$0xff]  }
 0x345   : > { %2481 = vmatprep.subr.bf16.mxu0 %v12603_v56  ;;  %v1752_v63 = vpop.f32.mrf.mxu0 }
 0x346   : > { %2468 = vmatprep.mubr.bf16.mxu1 %v1804_v60  ;;  %v12708_v60 = vld [vmem:[#allocation6 + $0x1e4] ss:$8 sps:$4 sm:$0xff]   ;;  %v12712_v63 = vld [vmem:[#allocation6 + $0x1d0] ss:$8 sps:$4 sm:$0xff]  }
 0x347   : > { %2469 = vmatmul.mubr.bf16.vlgmr.msra.gmra.mxu1 %v1803_v57  ;;  %v1753_v0 = vpop.f32.mrf.mxu0 }
 0x348   : > { %2482 = vmatpush1.bf16.msra.mxu0 %v12601_v61  ;;  %2566 = vmatprep.mubr.bf16.mxu1 %v14274_v58  ;;  %v12714_v0 = vld [vmem:[#allocation6 + $0x1d4] ss:$8 sps:$4 sm:$0xff]  }
 0x349   : > { %2483 = vmatprep.subr.bf16.mxu0 %v12606_v62  ;;  %v1794_v3 = vpop.f32.mrf.mxu0 }
 0x34a   : > { %v1805_v31 = vpack.c.bf16 %v1794_v3, %v1794_v3  ;;  %v12724_v3 = vld [vmem:[#allocation6 + $0x1b0] ss:$8 sps:$4 sm:$0xff]  }
 0x34b   : > { %v1796_v4 = vpop.f32.mrf.mxu0 }
 0x34c   : > { %2484 = vmatpush1.bf16.msra.mxu0 %v12604_v1  ;;  %v1806_v6 = vpack.c.bf16 %v1796_v4, %v1796_v4  ;;  %v12718_v1 = vld [vmem:[#allocation6 + $0x1c0] ss:$8 sps:$4 sm:$0xff]   ;;  %v12726_v4 = vld [vmem:[#allocation6 + $0x1b4] ss:$8 sps:$4 sm:$0xff]  }
 0x34d   : > { %2485 = vmatprep.subr.bf16.mxu0 %v12609_v2  ;;  %v1798_v8 = vpop.f32.mrf.mxu0  ;;  %v12720_v2 = vld [vmem:[#allocation6 + $0x1c4] ss:$8 sps:$4 sm:$0xff]  }
 0x34e   : > { %2509 = vmatprep.mubr.bf16.mxu0 %v1806_v6 }
 0x34f   : > { %v1799_v9 = vpop.f32.mrf.mxu0 }
 0x350   : > { %2486 = vmatpush1.bf16.msra.mxu0 %v12607_v5  ;;  %v1903_v5 = vld [vmem:[%s14313_s29] sm:$0x3] }
 0x351   : > { %2487 = vmatprep.subr.bf16.mxu0 %v12612_v7  ;;  %v1908_v6 = vrot.slane %v1903_v5, %v14610_v41  ;;  %v1912_v7 = vrot.slane %v1903_v5, %v14608_v36 }
 0x354   : > { %2488 = vmatpush1.bf16.msra.mxu0 %v12610_v10 }
 0x355   : > { %2489 = vmatprep.subr.bf16.mxu0 %v12615_v11 }
 0x358   : > { %2490 = vmatpush1.bf16.msra.mxu0 %v12613_v12 }
 0x359   : > { %2491 = vmatprep.subr.bf16.mxu0 %v12618_v13 }
 0x35c   : > { %2492 = vmatpush1.bf16.msra.mxu0 %v12616_v14 }
 0x35d   : > { %2493 = vmatprep.subr.bf16.mxu0 %v12621_v15 }
 0x360   : > { %2494 = vmatpush2.bf16.msra.mxu0 %v12619_v16 }
 0x361   : > { %2495 = vmatprep.subr.bf16.mxu0 %v12624_v17 }
 0x364   : > { %2496 = vmatpush2.bf16.msra.mxu0 %v12622_v18 }
 0x365   : > { %2497 = vmatprep.subr.bf16.mxu0 %v12627_v19 }
 0x368   : > { %2498 = vmatpush2.bf16.msra.mxu0 %v12625_v20 }
 0x369   : > { %2499 = vmatprep.subr.bf16.mxu0 %v12630_v21 }
 0x36c   : > { %2500 = vmatpush2.bf16.msra.mxu0 %v12628_v22 }
 0x36d   : > { %2501 = vmatprep.subr.bf16.mxu0 %v12633_v23  ;;  %v2522_v23 = vld [vmem:[%s14867_s18] sm:$0xf] }
 0x370   : > { %2502 = vmatpush2.bf16.msra.mxu0 %v12631_v24  ;;  %v11162_v24 = vld [vmem:[%s14867_s18 + $0x4] sm:$0xf] }
 0x371   : > { %2503 = vmatprep.subr.bf16.mxu0 %v12636_v25  ;;  %v12645_v25 = vld [vmem:[#allocation6 + $0x74] ss:$8 sps:$4 sm:$0xff]  }
 0x374   : > { %2504 = vmatpush2.bf16.msra.mxu0 %v12634_v26  ;;  %v11165_v26 = vld [vmem:[%s14867_s18 + $0x8] sm:$0xf] }
 0x375   : > { %2505 = vmatprep.subr.bf16.mxu0 %v12639_v27  ;;  %v12643_v27 = vld [vmem:[#allocation6 + $0x70] ss:$8 sps:$4 sm:$0xff]  }
 0x378   : > { %2506 = vmatpush2.bf16.msra.mxu0 %v12637_v28  ;;  %v12648_v28 = vld [vmem:[#allocation6 + $0x64] ss:$8 sps:$4 sm:$0xff]  }
 0x379   : > { %2507 = vmatprep.subr.bf16.mxu0 %v12642_v29  ;;  %v12646_v29 = vld [vmem:[#allocation6 + $0x60] ss:$8 sps:$4 sm:$0xff]  }
 0x37c   : > { %2508 = vmatpush2.bf16.msra.mxu0 %v12640_v30  ;;  %v12651_v30 = vld [vmem:[#allocation6 + $0x54] ss:$8 sps:$4 sm:$0xff]  }
 0x37d   : > { %3302 = vmatprep.subr.bf16.mxu0 %v12654_v33  ;;  %v12655_v33 = vld [vmem:[#allocation6 + $0x40] ss:$8 sps:$4 sm:$0xff]  }
 0x37f   : > { %2510 = vmatmul.mubr.bf16.vlgmr.msra.gmra.mxu0 %v1805_v31  ;;  %v12649_v31 = vld [vmem:[#allocation6 + $0x50] ss:$8 sps:$4 sm:$0xff]  }
 0x380   : > { %3303 = vmatpush1.bf16.msra.mxu0 %v12652_v32  ;;  %v12657_v32 = vld [vmem:[#allocation6 + $0x44] ss:$8 sps:$4 sm:$0xff]  }
 0x381   : > { %3304 = vmatprep.subr.bf16.mxu0 %v12660_v35  ;;  %v12661_v35 = vld [vmem:[#allocation6 + $0x30] ss:$8 sps:$4 sm:$0xff]  }
 0x384   : > { %3305 = vmatpush1.bf16.msra.mxu0 %v12658_v34  ;;  %v12663_v34 = vld [vmem:[#allocation6 + $0x34] ss:$8 sps:$4 sm:$0xff]  }
 0x385   : > { %3306 = vmatprep.subr.bf16.mxu0 %v12666_v38  ;;  %v12667_v38 = vld [vmem:[#allocation6 + $0x20] ss:$8 sps:$4 sm:$0xff]  }
 0x388   : > { %3307 = vmatpush1.bf16.msra.mxu0 %v12664_v37  ;;  %v12669_v37 = vld [vmem:[#allocation6 + $0x24] ss:$8 sps:$4 sm:$0xff]  }
 0x389   : > { %3308 = vmatprep.subr.bf16.mxu0 %v12672_v40  ;;  %v12673_v40 = vld [vmem:[#allocation6 + $0x10] ss:$8 sps:$4 sm:$0xff]  }
 0x38c   : > { %3309 = vmatpush1.bf16.msra.mxu0 %v12670_v39  ;;  %v12675_v39 = vld [vmem:[#allocation6 + $0x14] ss:$8 sps:$4 sm:$0xff]  }
 0x38d   : > { %3310 = vmatprep.subr.bf16.mxu0 %v12678_v43  ;;  %v12679_v43 = vld [vmem:[#allocation6] ss:$8 sps:$4 sm:$0xff]  }
 0x390   : > { %3311 = vmatpush1.bf16.msra.mxu0 %v12676_v42  ;;  %v12681_v42 = vld [vmem:[#allocation6 + $0x4] ss:$8 sps:$4 sm:$0xff]  }
 0x391   : > { %3312 = vmatprep.subr.bf16.mxu0 %v12684_v45  ;;  %v12685_v45 = vld [vmem:[#allocation6 + $0xf0] ss:$8 sps:$4 sm:$0xff]  }
 0x394   : > { %3313 = vmatpush1.bf16.msra.mxu0 %v12682_v44  ;;  %v12687_v44 = vld [vmem:[#allocation6 + $0xf4] ss:$8 sps:$4 sm:$0xff]  }
 0x395   : > { %3314 = vmatprep.subr.bf16.mxu0 %v12690_v47  ;;  %v12691_v47 = vld [vmem:[#allocation6 + $0xe0] ss:$8 sps:$4 sm:$0xff]  }
 0x398   : > { %3315 = vmatpush1.bf16.msra.mxu0 %v12688_v46  ;;  %v12693_v46 = vld [vmem:[#allocation6 + $0xe4] ss:$8 sps:$4 sm:$0xff]  }
 0x399   : > { %3316 = vmatprep.subr.bf16.mxu0 %v12696_v51  ;;  %v12703_v51 = vld [vmem:[#allocation6 + $0xc0] ss:$8 sps:$4 sm:$0xff]  }
 0x39c   : > { %3317 = vmatpush1.bf16.msra.mxu0 %v12694_v50  ;;  %v12705_v50 = vld [vmem:[#allocation6 + $0xc4] ss:$8 sps:$4 sm:$0xff]  }
 0x39d   : > { %3318 = vmatprep.subr.bf16.mxu0 %v12702_v55  ;;  %v12715_v55 = vld [vmem:[#allocation6 + $0xa0] ss:$8 sps:$4 sm:$0xff]  }
 0x3a0   : > { %3319 = vmatpush2.bf16.msra.mxu0 %v12700_v54  ;;  %v12717_v54 = vld [vmem:[#allocation6 + $0xa4] ss:$8 sps:$4 sm:$0xff]  }
 0x3a1   : > { %3320 = vmatprep.subr.bf16.mxu0 %v12708_v60  ;;  %v12721_v60 = vld [vmem:[#allocation6 + $0x90] ss:$8 sps:$4 sm:$0xff]  }
 0x3a4   : > { %3321 = vmatpush2.bf16.msra.mxu0 %v12706_v59  ;;  %v12730_v59 = vld [vmem:[#allocation6 + $0x1a0] ss:$8 sps:$4 sm:$0xff]  }
 0x3a5   : > { %3322 = vmatprep.subr.bf16.mxu0 %v12714_v0  ;;  %v12727_v0 = vld [vmem:[#allocation6 + $0x80] ss:$8 sps:$4 sm:$0xff]  }
 0x3a8   : > { %3323 = vmatpush2.bf16.msra.mxu0 %v12712_v63  ;;  %v12736_v63 = vld [vmem:[#allocation6 + $0x190] ss:$8 sps:$4 sm:$0xff]  }
 0x3a9   : > { %3324 = vmatprep.subr.bf16.mxu0 %v12720_v2  ;;  %v12735_v2 = vld [vmem:[#allocation6 + $0x274] ss:$8 sps:$4 sm:$0xff]  }
 0x3ac   : > { %3325 = vmatpush2.bf16.msra.mxu0 %v12718_v1  ;;  %v12744_v1 = vld [vmem:[#allocation6 + $0x184] ss:$8 sps:$4 sm:$0xff]  }
 0x3ad   : > { %3326 = vmatprep.subr.bf16.mxu0 %v12726_v4 }
 0x3b0   : > { %3327 = vmatpush2.bf16.msra.mxu0 %v12724_v3  ;;  %v12742_v3 = vld [vmem:[#allocation6 + $0x180] ss:$8 sps:$4 sm:$0xff]  }
 0x3ff   : > { %v2429_v48 = vpop.f32.mrf.mxu0 }
 0x400   : > { %v2430_v8 = vadd.f32 %v2429_v48, %v1908_v6  ;;  %v12699_v48 = vld [vmem:[#allocation6 + $0xd4] ss:$8 sps:$4 sm:$0xff]  }
 0x401   : > { %v2431_v49 = vpop.f32.mrf.mxu0 }
 0x402   : > { %v2432_v9 = vadd.f32 %v2431_v49, %v1912_v7  ;;  %v12697_v49 = vld [vmem:[#allocation6 + $0xd0] ss:$8 sps:$4 sm:$0xff]  }
 0x403   : > { %v2433_v52 = vpop.f32.mrf.mxu0  ;;  %v12733_v7 = vld [vmem:[#allocation6 + $0x270] ss:$8 sps:$4 sm:$0xff]  }
 0x404   : > { %v12711_v52 = vld [vmem:[#allocation6 + $0xb4] ss:$8 sps:$4 sm:$0xff]  }
 0x405   : > { %v2434_v53 = vpop.f32.mrf.mxu0 }
 0x406   : > { %v12709_v53 = vld [vmem:[#allocation6 + $0xb0] ss:$8 sps:$4 sm:$0xff]  }
 0x407   : > { %v2470_v56 = vpop.f32.mrf.mxu1 }
 0x408   : > { %v2471_v10 = vadd.f32 %v2470_v56, %v2430_v8  ;;  %v12732_v56 = vld [vmem:[#allocation6 + $0x1a4] ss:$8 sps:$4 sm:$0xff]  }
 0x409   : > { %v2472_v57 = vpop.f32.mrf.mxu1  ;;  %3328 = vmatprep.subr.bf16.mxu0 %v12732_v56  ;;  %v12798_v56 = vld [vmem:[#allocation7 + $0x174] ss:$8 sps:$4 sm:$0xff]  }
 0x40a   : > { %v2473_v12 = vadd.f32 %v2472_v57, %v2432_v9  ;;  %v12723_v57 = vld [vmem:[#allocation6 + $0x94] ss:$8 sps:$4 sm:$0xff]   ;;  %3329 = vmatpush2.bf16.msra.mxu0 %v12730_v59  ;;  %v12804_v59 = vld [vmem:[#allocation7 + $0x164] ss:$8 sps:$4 sm:$0xff]  }
 0x40b   : > { %v2474_v61 = vpop.f32.mrf.mxu1 }
 0x40c   : > { %v12738_v61 = vld [vmem:[#allocation6 + $0x194] ss:$8 sps:$4 sm:$0xff]  }
 0x40d   : > { %v2475_v62 = vpop.f32.mrf.mxu1  ;;  %3330 = vmatprep.subr.bf16.mxu0 %v12738_v61  ;;  %v12810_v61 = vld [vmem:[#allocation7 + $0x154] ss:$8 sps:$4 sm:$0xff]  }
 0x40e   : > { %v12729_v62 = vld [vmem:[#allocation6 + $0x84] ss:$8 sps:$4 sm:$0xff]   ;;  %3331 = vmatpush2.bf16.msra.mxu0 %v12736_v63 }
 0x40f   : > { %3332 = vmatprep.subr.bf16.mxu0 %v12744_v1  ;;  %v12816_v63 = vld [vmem:[#allocation7 + $0x144] ss:$8 sps:$4 sm:$0xff]   ;;  %v12822_v1 = vld [vmem:[#allocation7 + $0x134] ss:$8 sps:$4 sm:$0xff]  }
 0x412   : > { %3333 = vmatpush2.bf16.msra.mxu0 %v12742_v3  ;;  %v12828_v3 = vld [vmem:[#allocation7 + $0x124] ss:$8 sps:$4 sm:$0xff]  }
 0x43f   : > { %v2511_v11 = vpop.f32.mrf.mxu0 }
 0x440   : > { %v2512_v13 = vadd.f32 %v2511_v11, %v2471_v10  ;;  %v12741_v10 = vld [vmem:[#allocation6 + $0x264] ss:$8 sps:$4 sm:$0xff]  }
 0x441   : > { %v2513_v14 = vpop.f32.mrf.mxu0 }
 0x442   : > { %v2518_v15 = vmax.f32 %v2512_v13, 0.0  ;;  %v2514_v16 = vadd.f32 %v2513_v14, %v2473_v12  ;;  %v12739_v12 = vld [vmem:[#allocation6 + $0x260] ss:$8 sps:$4 sm:$0xff]   ;;  %v12747_v14 = vld [vmem:[#allocation6 + $0x254] ss:$8 sps:$4 sm:$0xff]  }
 0x443   : > { %v2515_v17 = vpop.f32.mrf.mxu0 }
 0x444   : > { %v2520_v18 = vpack.c.bf16 %v2518_v15, %v2518_v15  ;;  %v2519_v19 = vmax.f32 %v2514_v16, 0.0 }
 0x445   : > { %v2516_v20 = vpop.f32.mrf.mxu0 }
 0x446   : > { %v2521_v21 = vpack.c.bf16 %v2519_v19, %v2519_v19  ;;  %v2529_v22 = vsel %vm2527_vm3, %v2520_v18, 0  ;;  %v12745_v18 = vld [vmem:[#allocation6 + $0x250] ss:$8 sps:$4 sm:$0xff]   ;;  %v12750_v19 = vld [vmem:[#allocation6 + $0x244] ss:$8 sps:$4 sm:$0xff]  }
 0x448   : > { %11160 = vmatprep.subr.msk.bf16.mxu1 %vm2527_vm3, %v2521_v21 }
 0x449   : > { %2549 = vmatpush1.bf16.msra.mxu1 %v2529_v22 }
 0x44a   : > { %11163 = vmatprep.subr.msk.bf16.mxu1 %vm2527_vm3, %v2521_v21 }
 0x44c   : > { %11161 = vmatmul.mubr.msk.bf16.vlgmr.msra.gmra.mxu1 %vm2523_vm4, %v2522_v23  ;;  %v12753_v23 = vld [vmem:[#allocation6 + $0x234] ss:$8 sps:$4 sm:$0xff]  }
 0x44d   : > { %2595 = vmatpush1.bf16.msra.mxu1 %v2529_v22  ;;  %2612 = vmatprep.mubr.bf16.mxu1 %v14274_v58 }
 0x44e   : > { %11166 = vmatprep.subr.msk.bf16.mxu1 %vm2527_vm3, %v2521_v21 }
 0x454   : > { %11164 = vmatmul.mubr.msk.bf16.vlgmr.msra.gmra.mxu1 %vm2523_vm4, %v11162_v24 }
 0x455   : > { %2641 = vmatpush1.bf16.msra.mxu1 %v2529_v22  ;;  %2658 = vmatprep.mubr.bf16.mxu1 %v14274_v58  ;;  %v12748_v22 = vld [vmem:[#allocation6 + $0x240] ss:$8 sps:$4 sm:$0xff]  }
 0x456   : > { %3261 = vmatprep.subr.bf16.mxu1 %v12645_v25 }
 0x45c   : > { %11167 = vmatmul.mubr.msk.bf16.vlgmr.msra.gmra.mxu1 %vm2523_vm4, %v11165_v26  ;;  %v12751_v26 = vld [vmem:[#allocation6 + $0x230] ss:$8 sps:$4 sm:$0xff]  }
 0x45d   : > { %3262 = vmatpush1.bf16.msra.mxu1 %v12643_v27 }
 0x45e   : > { %3263 = vmatprep.subr.bf16.mxu1 %v12648_v28  ;;  %v12756_v28 = vld [vmem:[#allocation6 + $0x224] ss:$8 sps:$4 sm:$0xff]  }
 0x461   : > { %3264 = vmatpush1.bf16.msra.mxu1 %v12646_v29 }
 0x462   : > { %3265 = vmatprep.subr.bf16.mxu1 %v12651_v30 }
 0x465   : > { %3266 = vmatpush1.bf16.msra.mxu1 %v12649_v31  ;;  %v12754_v31 = vld [vmem:[#allocation6 + $0x220] ss:$8 sps:$4 sm:$0xff]  }
 0x466   : > { %3267 = vmatprep.subr.bf16.mxu1 %v12657_v32  ;;  %v12759_v32 = vld [vmem:[#allocation6 + $0x214] ss:$8 sps:$4 sm:$0xff]  }
 0x469   : > { %3268 = vmatpush1.bf16.msra.mxu1 %v12655_v33  ;;  %v12757_v33 = vld [vmem:[#allocation6 + $0x210] ss:$8 sps:$4 sm:$0xff]  }
 0x46a   : > { %3269 = vmatprep.subr.bf16.mxu1 %v12663_v34  ;;  %v12762_v34 = vld [vmem:[#allocation6 + $0x204] ss:$8 sps:$4 sm:$0xff]  }
 0x46d   : > { %3270 = vmatpush1.bf16.msra.mxu1 %v12661_v35  ;;  %v12760_v35 = vld [vmem:[#allocation6 + $0x200] ss:$8 sps:$4 sm:$0xff]  }
 0x46e   : > { %3271 = vmatprep.subr.bf16.mxu1 %v12669_v37  ;;  %v12765_v37 = vld [vmem:[#allocation6 + $0x2f4] ss:$8 sps:$4 sm:$0xff]  }
 0x471   : > { %3272 = vmatpush1.bf16.msra.mxu1 %v12667_v38  ;;  %v12763_v38 = vld [vmem:[#allocation6 + $0x2f0] ss:$8 sps:$4 sm:$0xff]  }
 0x472   : > { %3273 = vmatprep.subr.bf16.mxu1 %v12675_v39  ;;  %v12768_v39 = vld [vmem:[#allocation6 + $0x2e4] ss:$8 sps:$4 sm:$0xff]  }
 0x475   : > { %3274 = vmatpush1.bf16.msra.mxu1 %v12673_v40  ;;  %v12766_v40 = vld [vmem:[#allocation6 + $0x2e0] ss:$8 sps:$4 sm:$0xff]  }
 0x476   : > { %3275 = vmatprep.subr.bf16.mxu1 %v12681_v42  ;;  %v12771_v42 = vld [vmem:[#allocation6 + $0x2d4] ss:$8 sps:$4 sm:$0xff]  }
 0x479   : > { %3276 = vmatpush1.bf16.msra.mxu1 %v12679_v43  ;;  %v12769_v43 = vld [vmem:[#allocation6 + $0x2d0] ss:$8 sps:$4 sm:$0xff]  }
 0x47a   : > { %3277 = vmatprep.subr.bf16.mxu1 %v12687_v44  ;;  %v12774_v44 = vld [vmem:[#allocation6 + $0x2c4] ss:$8 sps:$4 sm:$0xff]  }
 0x47d   : > { %3278 = vmatpush2.bf16.msra.mxu1 %v12685_v45  ;;  %v12772_v45 = vld [vmem:[#allocation6 + $0x2c0] ss:$8 sps:$4 sm:$0xff]  }
 0x47e   : > { %3279 = vmatprep.subr.bf16.mxu1 %v12693_v46  ;;  %v12777_v46 = vld [vmem:[#allocation6 + $0x2b4] ss:$8 sps:$4 sm:$0xff]  }
 0x481   : > { %3280 = vmatpush2.bf16.msra.mxu1 %v12691_v47  ;;  %v12775_v47 = vld [vmem:[#allocation6 + $0x2b0] ss:$8 sps:$4 sm:$0xff]  }
 0x482   : > { %3281 = vmatprep.subr.bf16.mxu1 %v12699_v48  ;;  %v12780_v48 = vld [vmem:[#allocation6 + $0x2a4] ss:$8 sps:$4 sm:$0xff]  }
 0x485   : > { %3282 = vmatpush2.bf16.msra.mxu1 %v12697_v49  ;;  %v12778_v49 = vld [vmem:[#allocation6 + $0x2a0] ss:$8 sps:$4 sm:$0xff]  }
 0x486   : > { %3283 = vmatprep.subr.bf16.mxu1 %v12705_v50  ;;  %v12783_v50 = vld [vmem:[#allocation6 + $0x294] ss:$8 sps:$4 sm:$0xff]  }
 0x489   : > { %3284 = vmatpush2.bf16.msra.mxu1 %v12703_v51  ;;  %v12781_v51 = vld [vmem:[#allocation6 + $0x290] ss:$8 sps:$4 sm:$0xff]  }
 0x48a   : > { %3285 = vmatprep.subr.bf16.mxu1 %v12711_v52  ;;  %v12786_v52 = vld [vmem:[#allocation6 + $0x284] ss:$8 sps:$4 sm:$0xff]  }
 0x48d   : > { %3286 = vmatpush2.bf16.msra.mxu1 %v12709_v53  ;;  %v12784_v53 = vld [vmem:[#allocation6 + $0x280] ss:$8 sps:$4 sm:$0xff]  }
 0x48e   : > { %3287 = vmatprep.subr.bf16.mxu1 %v12717_v54 }
 0x491   : > { %3288 = vmatpush2.bf16.msra.mxu1 %v12715_v55  ;;  %v12796_v55 = vld [vmem:[#allocation7 + $0x170] ss:$8 sps:$4 sm:$0xff]  }
 0x492   : > { %3289 = vmatprep.subr.bf16.mxu1 %v12723_v57  ;;  %v12802_v57 = vld [vmem:[#allocation7 + $0x160] ss:$8 sps:$4 sm:$0xff]  }
 0x495   : > { %3290 = vmatpush2.bf16.msra.mxu1 %v12721_v60  ;;  %v12808_v60 = vld [vmem:[#allocation7 + $0x150] ss:$8 sps:$4 sm:$0xff]  }
 0x496   : > { %3291 = vmatprep.subr.bf16.mxu1 %v12729_v62  ;;  %v12814_v62 = vld [vmem:[#allocation7 + $0x140] ss:$8 sps:$4 sm:$0xff]  }
 0x499   : > { %3292 = vmatpush2.bf16.msra.mxu1 %v12727_v0  ;;  %v12820_v0 = vld [vmem:[#allocation7 + $0x130] ss:$8 sps:$4 sm:$0xff]  }
 0x49a   : > { %3343 = vmatprep.subr.bf16.mxu1 %v12735_v2  ;;  %v12826_v2 = vld [vmem:[#allocation7 + $0x120] ss:$8 sps:$4 sm:$0xff]  }
 0x50c   : > { %v2568_v4 = vpop.f32.mrf.mxu1 }
 0x50d   : > { %v2667_v8 = vpack.c.bf16 %v2568_v4, %v2568_v4  ;;  %v12832_v4 = vld [vmem:[#allocation7 + $0x110] ss:$8 sps:$4 sm:$0xff]  }
 0x50e   : > { %v2570_v5 = vpop.f32.mrf.mxu1 }
 0x50f   : > { %v2668_v6 = vpack.c.bf16 %v2570_v5, %v2570_v5  ;;  %v12834_v5 = vld [vmem:[#allocation7 + $0x114] ss:$8 sps:$4 sm:$0xff]  }
 0x510   : > { %v2572_v9 = vpop.f32.mrf.mxu1 }
 0x511   : > { %3293 = vmatprep.mubr.bf16.mxu1 %v2668_v6  ;;  %v12840_v9 = vld [vmem:[#allocation7 + $0x104] ss:$8 sps:$4 sm:$0xff]  }
 0x512   : > { %v2573_v11 = vpop.f32.mrf.mxu1  ;;  %3294 = vmatmul.mubr.bf16.vlgmr.msra.gmra.mxu1 %v2667_v8  ;;  %v12838_v8 = vld [vmem:[#allocation7 + $0x100] ss:$8 sps:$4 sm:$0xff]  }
 0x513   : > { %3344 = vmatpush1.bf16.msra.mxu1 %v12733_v7 }
 0x514   : > { %v2614_v13 = vpop.f32.mrf.mxu1  ;;  %3345 = vmatprep.subr.bf16.mxu1 %v12741_v10 }
 0x515   : > { %v2669_v15 = vpack.c.bf16 %v2614_v13, %v2614_v13  ;;  %v12846_v13 = vld [vmem:[#allocation7 + $0x1f4] ss:$8 sps:$4 sm:$0xff]  }
 0x516   : > { %v2616_v16 = vpop.f32.mrf.mxu1 }
 0x517   : > { %v2670_v17 = vpack.c.bf16 %v2616_v16, %v2616_v16  ;;  %3346 = vmatpush1.bf16.msra.mxu1 %v12739_v12  ;;  %v12844_v12 = vld [vmem:[#allocation7 + $0x1f0] ss:$8 sps:$4 sm:$0xff]   ;;  %v12850_v16 = vld [vmem:[#allocation7 + $0x1e0] ss:$8 sps:$4 sm:$0xff]  }
 0x518   : > { %3347 = vmatprep.subr.bf16.mxu1 %v12747_v14  ;;  %v2618_v20 = vpop.f32.mrf.mxu1 }
 0x519   : > { %3334 = vmatprep.mubr.bf16.mxu0 %v2670_v17  ;;  %v12852_v17 = vld [vmem:[#allocation7 + $0x1e4] ss:$8 sps:$4 sm:$0xff]   ;;  %v12856_v20 = vld [vmem:[#allocation7 + $0x1d0] ss:$8 sps:$4 sm:$0xff]  }
 0x51a   : > { %3335 = vmatmul.mubr.bf16.vlgmr.msra.gmra.mxu0 %v2669_v15  ;;  %v2619_v21 = vpop.f32.mrf.mxu1 }
 0x51b   : > { %3348 = vmatpush1.bf16.msra.mxu1 %v12745_v18  ;;  %3430 = vmatprep.mubr.bf16.mxu0 %v14274_v58  ;;  %v12858_v21 = vld [vmem:[#allocation7 + $0x1d4] ss:$8 sps:$4 sm:$0xff]  }
 0x51c   : > { %3349 = vmatprep.subr.bf16.mxu1 %v12750_v19  ;;  %v2660_v24 = vpop.f32.mrf.mxu1 }
 0x51d   : > { %v2671_v54 = vpack.c.bf16 %v2660_v24, %v2660_v24  ;;  %v12868_v24 = vld [vmem:[#allocation7 + $0x1b0] ss:$8 sps:$4 sm:$0xff]  }
 0x51e   : > { %v2662_v25 = vpop.f32.mrf.mxu1 }
 0x51f   : > { %3350 = vmatpush1.bf16.msra.mxu1 %v12748_v22  ;;  %v2672_v27 = vpack.c.bf16 %v2662_v25, %v2662_v25  ;;  %v12862_v22 = vld [vmem:[#allocation7 + $0x1c0] ss:$8 sps:$4 sm:$0xff]   ;;  %v12870_v25 = vld [vmem:[#allocation7 + $0x1b4] ss:$8 sps:$4 sm:$0xff]  }
 0x520   : > { %3351 = vmatprep.subr.bf16.mxu1 %v12753_v23  ;;  %v2664_v29 = vpop.f32.mrf.mxu1  ;;  %v12864_v23 = vld [vmem:[#allocation7 + $0x1c4] ss:$8 sps:$4 sm:$0xff]  }
 0x521   : > { %3375 = vmatprep.mubr.bf16.mxu1 %v2672_v27 }
 0x522   : > { %v2665_v30 = vpop.f32.mrf.mxu1 }
 0x523   : > { %3352 = vmatpush1.bf16.msra.mxu1 %v12751_v26  ;;  %v2769_v26 = vld [vmem:[%s14868_s1] sm:$0x3]  ;;  %s14878_s1 = sld [smem:[#allocation36_spill]] }
 0x524   : > { %3353 = vmatprep.subr.bf16.mxu1 %v12756_v28  ;;  %v2774_v27 = vrot.slane %v2769_v26, %v14610_v41  ;;  %v2778_v28 = vrot.slane %v2769_v26, %v14608_v36 }
 0x527   : > { %3354 = vmatpush1.bf16.msra.mxu1 %v12754_v31 }
 0x528   : > { %3355 = vmatprep.subr.bf16.mxu1 %v12759_v32 }
 0x52b   : > { %3356 = vmatpush1.bf16.msra.mxu1 %v12757_v33 }
 0x52c   : > { %3357 = vmatprep.subr.bf16.mxu1 %v12762_v34 }
 0x52f   : > { %3358 = vmatpush1.bf16.msra.mxu1 %v12760_v35 }
 0x530   : > { %3359 = vmatprep.subr.bf16.mxu1 %v12765_v37 }
 0x533   : > { %3360 = vmatpush2.bf16.msra.mxu1 %v12763_v38 }
 0x534   : > { %3361 = vmatprep.subr.bf16.mxu1 %v12768_v39 }
 0x537   : > { %3362 = vmatpush2.bf16.msra.mxu1 %v12766_v40 }
 0x538   : > { %3363 = vmatprep.subr.bf16.mxu1 %v12771_v42 }
 0x53b   : > { %3364 = vmatpush2.bf16.msra.mxu1 %v12769_v43 }
 0x53c   : > { %3365 = vmatprep.subr.bf16.mxu1 %v12774_v44 }
 0x53f   : > { %3366 = vmatpush2.bf16.msra.mxu1 %v12772_v45 }
 0x540   : > { %3367 = vmatprep.subr.bf16.mxu1 %v12777_v46  ;;  %v3388_v46 = vld [vmem:[%s14869_s10] sm:$0xf] }
 0x543   : > { %3368 = vmatpush2.bf16.msra.mxu1 %v12775_v47  ;;  %v11266_v47 = vld [vmem:[%s14869_s10 + $0x4] sm:$0xf] }
 0x544   : > { %3369 = vmatprep.subr.bf16.mxu1 %v12780_v48  ;;  %v12789_v48 = vld [vmem:[#allocation7 + $0x74] ss:$8 sps:$4 sm:$0xff]  }
 0x547   : > { %3370 = vmatpush2.bf16.msra.mxu1 %v12778_v49  ;;  %v11269_v49 = vld [vmem:[%s14869_s10 + $0x8] sm:$0xf] }
 0x548   : > { %3371 = vmatprep.subr.bf16.mxu1 %v12783_v50  ;;  %v12787_v50 = vld [vmem:[#allocation7 + $0x70] ss:$8 sps:$4 sm:$0xff]  }
 0x54b   : > { %3372 = vmatpush2.bf16.msra.mxu1 %v12781_v51  ;;  %v12792_v51 = vld [vmem:[#allocation7 + $0x64] ss:$8 sps:$4 sm:$0xff]  }
 0x54c   : > { %3373 = vmatprep.subr.bf16.mxu1 %v12786_v52  ;;  %v12790_v52 = vld [vmem:[#allocation7 + $0x60] ss:$8 sps:$4 sm:$0xff]  }
 0x54f   : > { %3374 = vmatpush2.bf16.msra.mxu1 %v12784_v53  ;;  %v12795_v53 = vld [vmem:[#allocation7 + $0x54] ss:$8 sps:$4 sm:$0xff]  }
 0x550   : > { %4166 = vmatprep.subr.bf16.mxu1 %v12798_v56  ;;  %v12799_v56 = vld [vmem:[#allocation7 + $0x40] ss:$8 sps:$4 sm:$0xff]  }
 0x552   : > { %3376 = vmatmul.mubr.bf16.vlgmr.msra.gmra.mxu1 %v2671_v54  ;;  %v12793_v54 = vld [vmem:[#allocation7 + $0x50] ss:$8 sps:$4 sm:$0xff]  }
 0x553   : > { %4167 = vmatpush1.bf16.msra.mxu1 %v12796_v55  ;;  %v12801_v55 = vld [vmem:[#allocation7 + $0x44] ss:$8 sps:$4 sm:$0xff]  }
 0x554   : > { %4168 = vmatprep.subr.bf16.mxu1 %v12804_v59  ;;  %v12805_v59 = vld [vmem:[#allocation7 + $0x30] ss:$8 sps:$4 sm:$0xff]  }
 0x557   : > { %4169 = vmatpush1.bf16.msra.mxu1 %v12802_v57  ;;  %v12807_v57 = vld [vmem:[#allocation7 + $0x34] ss:$8 sps:$4 sm:$0xff]  }
 0x558   : > { %4170 = vmatprep.subr.bf16.mxu1 %v12810_v61  ;;  %v12811_v61 = vld [vmem:[#allocation7 + $0x20] ss:$8 sps:$4 sm:$0xff]  }
 0x55b   : > { %4171 = vmatpush1.bf16.msra.mxu1 %v12808_v60  ;;  %v12813_v60 = vld [vmem:[#allocation7 + $0x24] ss:$8 sps:$4 sm:$0xff]  }
 0x55c   : > { %4172 = vmatprep.subr.bf16.mxu1 %v12816_v63  ;;  %v12817_v63 = vld [vmem:[#allocation7 + $0x10] ss:$8 sps:$4 sm:$0xff]  }
 0x55f   : > { %4173 = vmatpush1.bf16.msra.mxu1 %v12814_v62  ;;  %v12819_v62 = vld [vmem:[#allocation7 + $0x14] ss:$8 sps:$4 sm:$0xff]  }
 0x560   : > { %4174 = vmatprep.subr.bf16.mxu1 %v12822_v1  ;;  %v12823_v1 = vld [vmem:[#allocation7] ss:$8 sps:$4 sm:$0xff]  }
 0x563   : > { %4175 = vmatpush1.bf16.msra.mxu1 %v12820_v0  ;;  %v12825_v0 = vld [vmem:[#allocation7 + $0x4] ss:$8 sps:$4 sm:$0xff]  }
 0x564   : > { %4176 = vmatprep.subr.bf16.mxu1 %v12828_v3  ;;  %v12829_v3 = vld [vmem:[#allocation7 + $0xf0] ss:$8 sps:$4 sm:$0xff]  }
 0x567   : > { %4177 = vmatpush1.bf16.msra.mxu1 %v12826_v2  ;;  %v12831_v2 = vld [vmem:[#allocation7 + $0xf4] ss:$8 sps:$4 sm:$0xff]  }
 0x568   : > { %4178 = vmatprep.subr.bf16.mxu1 %v12834_v5  ;;  %v12835_v5 = vld [vmem:[#allocation7 + $0xe0] ss:$8 sps:$4 sm:$0xff]  }
 0x56b   : > { %4179 = vmatpush1.bf16.msra.mxu1 %v12832_v4  ;;  %v12837_v4 = vld [vmem:[#allocation7 + $0xe4] ss:$8 sps:$4 sm:$0xff]  }
 0x56c   : > { %4180 = vmatprep.subr.bf16.mxu1 %v12840_v9  ;;  %v12847_v9 = vld [vmem:[#allocation7 + $0xc0] ss:$8 sps:$4 sm:$0xff]  }
 0x56f   : > { %4181 = vmatpush1.bf16.msra.mxu1 %v12838_v8  ;;  %v12849_v8 = vld [vmem:[#allocation7 + $0xc4] ss:$8 sps:$4 sm:$0xff]  }
 0x570   : > { %4182 = vmatprep.subr.bf16.mxu1 %v12846_v13  ;;  %v12859_v13 = vld [vmem:[#allocation7 + $0xa0] ss:$8 sps:$4 sm:$0xff]  }
 0x573   : > { %4183 = vmatpush2.bf16.msra.mxu1 %v12844_v12  ;;  %v12861_v12 = vld [vmem:[#allocation7 + $0xa4] ss:$8 sps:$4 sm:$0xff]  }
 0x574   : > { %4184 = vmatprep.subr.bf16.mxu1 %v12852_v17  ;;  %v12865_v17 = vld [vmem:[#allocation7 + $0x90] ss:$8 sps:$4 sm:$0xff]  }
 0x577   : > { %4185 = vmatpush2.bf16.msra.mxu1 %v12850_v16  ;;  %v12874_v16 = vld [vmem:[#allocation7 + $0x1a0] ss:$8 sps:$4 sm:$0xff]  }
 0x578   : > { %4186 = vmatprep.subr.bf16.mxu1 %v12858_v21  ;;  %v12871_v21 = vld [vmem:[#allocation7 + $0x80] ss:$8 sps:$4 sm:$0xff]  }
 0x57b   : > { %4187 = vmatpush2.bf16.msra.mxu1 %v12856_v20  ;;  %v12880_v20 = vld [vmem:[#allocation7 + $0x190] ss:$8 sps:$4 sm:$0xff]  }
 0x57c   : > { %4188 = vmatprep.subr.bf16.mxu1 %v12864_v23  ;;  %v12879_v23 = vld [vmem:[#allocation7 + $0x274] ss:$8 sps:$4 sm:$0xff]  }
 0x57f   : > { %4189 = vmatpush2.bf16.msra.mxu1 %v12862_v22  ;;  %v12888_v22 = vld [vmem:[#allocation7 + $0x184] ss:$8 sps:$4 sm:$0xff]  }
 0x580   : > { %4190 = vmatprep.subr.bf16.mxu1 %v12870_v25 }
 0x583   : > { %4191 = vmatpush2.bf16.msra.mxu1 %v12868_v24  ;;  %v12886_v24 = vld [vmem:[#allocation7 + $0x180] ss:$8 sps:$4 sm:$0xff]  }
 0x5d2   : > { %v3295_v6 = vpop.f32.mrf.mxu1 }
 0x5d3   : > { %v3296_v29 = vadd.f32 %v3295_v6, %v2774_v27  ;;  %v12843_v6 = vld [vmem:[#allocation7 + $0xd4] ss:$8 sps:$4 sm:$0xff]  }
 0x5d4   : > { %v3297_v7 = vpop.f32.mrf.mxu1 }
 0x5d5   : > { %v3298_v30 = vadd.f32 %v3297_v7, %v2778_v28  ;;  %v12841_v7 = vld [vmem:[#allocation7 + $0xd0] ss:$8 sps:$4 sm:$0xff]  }
 0x5d6   : > { %v3299_v10 = vpop.f32.mrf.mxu1  ;;  %v12877_v28 = vld [vmem:[#allocation7 + $0x270] ss:$8 sps:$4 sm:$0xff]  }
 0x5d7   : > { %v12855_v10 = vld [vmem:[#allocation7 + $0xb4] ss:$8 sps:$4 sm:$0xff]  }
 0x5d8   : > { %v3300_v11 = vpop.f32.mrf.mxu1 }
 0x5d9   : > { %v12853_v11 = vld [vmem:[#allocation7 + $0xb0] ss:$8 sps:$4 sm:$0xff]  }
 0x5da   : > { %v3336_v14 = vpop.f32.mrf.mxu0 }
 0x5db   : > { %v3337_v31 = vadd.f32 %v3336_v14, %v3296_v29  ;;  %v12876_v14 = vld [vmem:[#allocation7 + $0x1a4] ss:$8 sps:$4 sm:$0xff]  }
 0x5dc   : > { %v3338_v15 = vpop.f32.mrf.mxu0  ;;  %4192 = vmatprep.subr.bf16.mxu1 %v12876_v14  ;;  %v12942_v14 = vld [vmem:[#allocation9 + $0x174] ss:$8 sps:$4 sm:$0xff]  }
 0x5dd   : > { %v3339_v33 = vadd.f32 %v3338_v15, %v3298_v30  ;;  %v12867_v15 = vld [vmem:[#allocation7 + $0x94] ss:$8 sps:$4 sm:$0xff]   ;;  %4193 = vmatpush2.bf16.msra.mxu1 %v12874_v16  ;;  %v12948_v16 = vld [vmem:[#allocation9 + $0x164] ss:$8 sps:$4 sm:$0xff]  }
 0x5de   : > { %v3340_v18 = vpop.f32.mrf.mxu0 }
 0x5df   : > { %v12882_v18 = vld [vmem:[#allocation7 + $0x194] ss:$8 sps:$4 sm:$0xff]  }
 0x5e0   : > { %v3341_v19 = vpop.f32.mrf.mxu0  ;;  %4194 = vmatprep.subr.bf16.mxu1 %v12882_v18  ;;  %v12954_v18 = vld [vmem:[#allocation9 + $0x154] ss:$8 sps:$4 sm:$0xff]  }
 0x5e1   : > { %v12873_v19 = vld [vmem:[#allocation7 + $0x84] ss:$8 sps:$4 sm:$0xff]   ;;  %4195 = vmatpush2.bf16.msra.mxu1 %v12880_v20 }
 0x5e2   : > { %4196 = vmatprep.subr.bf16.mxu1 %v12888_v22  ;;  %v12960_v20 = vld [vmem:[#allocation9 + $0x144] ss:$8 sps:$4 sm:$0xff]   ;;  %v12966_v22 = vld [vmem:[#allocation9 + $0x134] ss:$8 sps:$4 sm:$0xff]  }
 0x5e5   : > { %4197 = vmatpush2.bf16.msra.mxu1 %v12886_v24  ;;  %v12972_v24 = vld [vmem:[#allocation9 + $0x124] ss:$8 sps:$4 sm:$0xff]  }
 0x612   : > { %v3377_v32 = vpop.f32.mrf.mxu1 }
 0x613   : > { %v3378_v34 = vadd.f32 %v3377_v32, %v3337_v31  ;;  %v12885_v31 = vld [vmem:[#allocation7 + $0x264] ss:$8 sps:$4 sm:$0xff]  }
 0x614   : > { %v3379_v35 = vpop.f32.mrf.mxu1 }
 0x615   : > { %v3384_v37 = vmax.f32 %v3378_v34, 0.0  ;;  %v3380_v38 = vadd.f32 %v3379_v35, %v3339_v33  ;;  %v12883_v33 = vld [vmem:[#allocation7 + $0x260] ss:$8 sps:$4 sm:$0xff]   ;;  %v12891_v35 = vld [vmem:[#allocation7 + $0x254] ss:$8 sps:$4 sm:$0xff]  }
 0x616   : > { %v3381_v39 = vpop.f32.mrf.mxu1 }
 0x617   : > { %v3386_v40 = vpack.c.bf16 %v3384_v37, %v3384_v37  ;;  %v3385_v42 = vmax.f32 %v3380_v38, 0.0 }
 0x618   : > { %v3382_v43 = vpop.f32.mrf.mxu1 }
 0x619   : > { %v3387_v44 = vpack.c.bf16 %v3385_v42, %v3385_v42  ;;  %v3393_v45 = vsel %vm2527_vm3, %v3386_v40, 0  ;;  %v12889_v40 = vld [vmem:[#allocation7 + $0x250] ss:$8 sps:$4 sm:$0xff]   ;;  %v12894_v42 = vld [vmem:[#allocation7 + $0x244] ss:$8 sps:$4 sm:$0xff]  }
 0x61b   : > { %11264 = vmatprep.subr.msk.bf16.mxu0 %vm2527_vm3, %v3387_v44 }
 0x61c   : > { %3413 = vmatpush1.bf16.msra.mxu0 %v3393_v45 }
 0x61d   : > { %11267 = vmatprep.subr.msk.bf16.mxu0 %vm2527_vm3, %v3387_v44 }
 0x61f   : > { %11265 = vmatmul.mubr.msk.bf16.vlgmr.msra.gmra.mxu0 %vm2523_vm4, %v3388_v46  ;;  %v12897_v46 = vld [vmem:[#allocation7 + $0x234] ss:$8 sps:$4 sm:$0xff]  }
 0x620   : > { %3459 = vmatpush1.bf16.msra.mxu0 %v3393_v45  ;;  %3476 = vmatprep.mubr.bf16.mxu0 %v14274_v58 }
 0x621   : > { %11270 = vmatprep.subr.msk.bf16.mxu0 %vm2527_vm3, %v3387_v44 }
 0x627   : > { %11268 = vmatmul.mubr.msk.bf16.vlgmr.msra.gmra.mxu0 %vm2523_vm4, %v11266_v47 }
 0x628   : > { %3505 = vmatpush1.bf16.msra.mxu0 %v3393_v45  ;;  %3522 = vmatprep.mubr.bf16.mxu0 %v14274_v58  ;;  %v12892_v45 = vld [vmem:[#allocation7 + $0x240] ss:$8 sps:$4 sm:$0xff]  }
 0x629   : > { %4125 = vmatprep.subr.bf16.mxu0 %v12789_v48 }
 0x62f   : > { %11271 = vmatmul.mubr.msk.bf16.vlgmr.msra.gmra.mxu0 %vm2523_vm4, %v11269_v49  ;;  %v12895_v49 = vld [vmem:[#allocation7 + $0x230] ss:$8 sps:$4 sm:$0xff]  }
 0x630   : > { %4126 = vmatpush1.bf16.msra.mxu0 %v12787_v50 }
 0x631   : > { %4127 = vmatprep.subr.bf16.mxu0 %v12792_v51  ;;  %v12900_v51 = vld [vmem:[#allocation7 + $0x224] ss:$8 sps:$4 sm:$0xff]  }
 0x634   : > { %4128 = vmatpush1.bf16.msra.mxu0 %v12790_v52 }
 0x635   : > { %4129 = vmatprep.subr.bf16.mxu0 %v12795_v53 }
 0x638   : > { %4130 = vmatpush1.bf16.msra.mxu0 %v12793_v54  ;;  %v12898_v54 = vld [vmem:[#allocation7 + $0x220] ss:$8 sps:$4 sm:$0xff]  }
 0x639   : > { %4131 = vmatprep.subr.bf16.mxu0 %v12801_v55  ;;  %v12903_v55 = vld [vmem:[#allocation7 + $0x214] ss:$8 sps:$4 sm:$0xff]  }
 0x63c   : > { %4132 = vmatpush1.bf16.msra.mxu0 %v12799_v56  ;;  %v12901_v56 = vld [vmem:[#allocation7 + $0x210] ss:$8 sps:$4 sm:$0xff]  }
 0x63d   : > { %4133 = vmatprep.subr.bf16.mxu0 %v12807_v57  ;;  %v12906_v57 = vld [vmem:[#allocation7 + $0x204] ss:$8 sps:$4 sm:$0xff]  }
 0x640   : > { %4134 = vmatpush1.bf16.msra.mxu0 %v12805_v59  ;;  %v12904_v59 = vld [vmem:[#allocation7 + $0x200] ss:$8 sps:$4 sm:$0xff]  }
 0x641   : > { %4135 = vmatprep.subr.bf16.mxu0 %v12813_v60  ;;  %v12909_v60 = vld [vmem:[#allocation7 + $0x2f4] ss:$8 sps:$4 sm:$0xff]  }
 0x644   : > { %4136 = vmatpush1.bf16.msra.mxu0 %v12811_v61  ;;  %v12907_v61 = vld [vmem:[#allocation7 + $0x2f0] ss:$8 sps:$4 sm:$0xff]  }
 0x645   : > { %4137 = vmatprep.subr.bf16.mxu0 %v12819_v62  ;;  %v12912_v62 = vld [vmem:[#allocation7 + $0x2e4] ss:$8 sps:$4 sm:$0xff]  }
 0x648   : > { %4138 = vmatpush1.bf16.msra.mxu0 %v12817_v63  ;;  %v12910_v63 = vld [vmem:[#allocation7 + $0x2e0] ss:$8 sps:$4 sm:$0xff]  }
 0x649   : > { %4139 = vmatprep.subr.bf16.mxu0 %v12825_v0  ;;  %v12915_v0 = vld [vmem:[#allocation7 + $0x2d4] ss:$8 sps:$4 sm:$0xff]  }
 0x64c   : > { %4140 = vmatpush1.bf16.msra.mxu0 %v12823_v1  ;;  %v12913_v1 = vld [vmem:[#allocation7 + $0x2d0] ss:$8 sps:$4 sm:$0xff]  }
 0x64d   : > { %4141 = vmatprep.subr.bf16.mxu0 %v12831_v2  ;;  %v12918_v2 = vld [vmem:[#allocation7 + $0x2c4] ss:$8 sps:$4 sm:$0xff]  }
 0x650   : > { %4142 = vmatpush2.bf16.msra.mxu0 %v12829_v3  ;;  %v12916_v3 = vld [vmem:[#allocation7 + $0x2c0] ss:$8 sps:$4 sm:$0xff]  }
 0x651   : > { %4143 = vmatprep.subr.bf16.mxu0 %v12837_v4  ;;  %v12921_v4 = vld [vmem:[#allocation7 + $0x2b4] ss:$8 sps:$4 sm:$0xff]  }
 0x654   : > { %4144 = vmatpush2.bf16.msra.mxu0 %v12835_v5  ;;  %v12919_v5 = vld [vmem:[#allocation7 + $0x2b0] ss:$8 sps:$4 sm:$0xff]  }
 0x655   : > { %4145 = vmatprep.subr.bf16.mxu0 %v12843_v6  ;;  %v12924_v6 = vld [vmem:[#allocation7 + $0x2a4] ss:$8 sps:$4 sm:$0xff]  }
 0x658   : > { %4146 = vmatpush2.bf16.msra.mxu0 %v12841_v7  ;;  %v12922_v7 = vld [vmem:[#allocation7 + $0x2a0] ss:$8 sps:$4 sm:$0xff]  }
 0x659   : > { %4147 = vmatprep.subr.bf16.mxu0 %v12849_v8  ;;  %v12927_v8 = vld [vmem:[#allocation7 + $0x294] ss:$8 sps:$4 sm:$0xff]  }
 0x65c   : > { %4148 = vmatpush2.bf16.msra.mxu0 %v12847_v9  ;;  %v12925_v9 = vld [vmem:[#allocation7 + $0x290] ss:$8 sps:$4 sm:$0xff]  }
 0x65d   : > { %4149 = vmatprep.subr.bf16.mxu0 %v12855_v10  ;;  %v12930_v10 = vld [vmem:[#allocation7 + $0x284] ss:$8 sps:$4 sm:$0xff]  }
 0x660   : > { %4150 = vmatpush2.bf16.msra.mxu0 %v12853_v11  ;;  %v12928_v11 = vld [vmem:[#allocation7 + $0x280] ss:$8 sps:$4 sm:$0xff]  }
 0x661   : > { %4151 = vmatprep.subr.bf16.mxu0 %v12861_v12 }
 0x664   : > { %4152 = vmatpush2.bf16.msra.mxu0 %v12859_v13  ;;  %v12940_v13 = vld [vmem:[#allocation9 + $0x170] ss:$8 sps:$4 sm:$0xff]  }
 0x665   : > { %4153 = vmatprep.subr.bf16.mxu0 %v12867_v15  ;;  %v12946_v15 = vld [vmem:[#allocation9 + $0x160] ss:$8 sps:$4 sm:$0xff]  }
 0x668   : > { %4154 = vmatpush2.bf16.msra.mxu0 %v12865_v17  ;;  %v12952_v17 = vld [vmem:[#allocation9 + $0x150] ss:$8 sps:$4 sm:$0xff]  }
 0x669   : > { %4155 = vmatprep.subr.bf16.mxu0 %v12873_v19  ;;  %v12958_v19 = vld [vmem:[#allocation9 + $0x140] ss:$8 sps:$4 sm:$0xff]  }
 0x66c   : > { %4156 = vmatpush2.bf16.msra.mxu0 %v12871_v21  ;;  %v12964_v21 = vld [vmem:[#allocation9 + $0x130] ss:$8 sps:$4 sm:$0xff]  }
 0x66d   : > { %4207 = vmatprep.subr.bf16.mxu0 %v12879_v23  ;;  %v12970_v23 = vld [vmem:[#allocation9 + $0x120] ss:$8 sps:$4 sm:$0xff]  }
 0x6df   : > { %v3432_v25 = vpop.f32.mrf.mxu0 }
 0x6e0   : > { %v3531_v29 = vpack.c.bf16 %v3432_v25, %v3432_v25  ;;  %v12976_v25 = vld [vmem:[#allocation9 + $0x110] ss:$8 sps:$4 sm:$0xff]  }
 0x6e1   : > { %v3434_v26 = vpop.f32.mrf.mxu0 }
 0x6e2   : > { %v3532_v27 = vpack.c.bf16 %v3434_v26, %v3434_v26  ;;  %v12978_v26 = vld [vmem:[#allocation9 + $0x114] ss:$8 sps:$4 sm:$0xff]  }
 0x6e3   : > { %v3436_v30 = vpop.f32.mrf.mxu0 }
 0x6e4   : > { %4157 = vmatprep.mubr.bf16.mxu0 %v3532_v27  ;;  %v12984_v30 = vld [vmem:[#allocation9 + $0x104] ss:$8 sps:$4 sm:$0xff]  }
 0x6e5   : > { %v3437_v32 = vpop.f32.mrf.mxu0  ;;  %4158 = vmatmul.mubr.bf16.vlgmr.msra.gmra.mxu0 %v3531_v29  ;;  %v12982_v29 = vld [vmem:[#allocation9 + $0x100] ss:$8 sps:$4 sm:$0xff]  }
 0x6e6   : > { %4208 = vmatpush1.bf16.msra.mxu0 %v12877_v28 }
 0x6e7   : > { %v3478_v34 = vpop.f32.mrf.mxu0  ;;  %4209 = vmatprep.subr.bf16.mxu0 %v12885_v31 }
 0x6e8   : > { %v3533_v37 = vpack.c.bf16 %v3478_v34, %v3478_v34  ;;  %v12990_v34 = vld [vmem:[#allocation9 + $0x1f4] ss:$8 sps:$4 sm:$0xff]  }
 0x6e9   : > { %v3480_v38 = vpop.f32.mrf.mxu0 }
 0x6ea   : > { %v3534_v39 = vpack.c.bf16 %v3480_v38, %v3480_v38  ;;  %4210 = vmatpush1.bf16.msra.mxu0 %v12883_v33  ;;  %v12988_v33 = vld [vmem:[#allocation9 + $0x1f0] ss:$8 sps:$4 sm:$0xff]   ;;  %v12994_v38 = vld [vmem:[#allocation9 + $0x1e0] ss:$8 sps:$4 sm:$0xff]  }
 0x6eb   : > { %4211 = vmatprep.subr.bf16.mxu0 %v12891_v35  ;;  %v3482_v43 = vpop.f32.mrf.mxu0 }
 0x6ec   : > { %4198 = vmatprep.mubr.bf16.mxu1 %v3534_v39  ;;  %v12996_v39 = vld [vmem:[#allocation9 + $0x1e4] ss:$8 sps:$4 sm:$0xff]   ;;  %v13000_v43 = vld [vmem:[#allocation9 + $0x1d0] ss:$8 sps:$4 sm:$0xff]  }
 0x6ed   : > { %4199 = vmatmul.mubr.bf16.vlgmr.msra.gmra.mxu1 %v3533_v37  ;;  %v3483_v44 = vpop.f32.mrf.mxu0 }
 0x6ee   : > { %4212 = vmatpush1.bf16.msra.mxu0 %v12889_v40  ;;  %4294 = vmatprep.mubr.bf16.mxu1 %v14274_v58  ;;  %v13002_v44 = vld [vmem:[#allocation9 + $0x1d4] ss:$8 sps:$4 sm:$0xff]  }
 0x6ef   : > { %4213 = vmatprep.subr.bf16.mxu0 %v12894_v42  ;;  %v3524_v47 = vpop.f32.mrf.mxu0 }
 0x6f0   : > { %v3535_v12 = vpack.c.bf16 %v3524_v47, %v3524_v47  ;;  %v13012_v47 = vld [vmem:[#allocation9 + $0x1b0] ss:$8 sps:$4 sm:$0xff]  }
 0x6f1   : > { %v3526_v48 = vpop.f32.mrf.mxu0 }
 0x6f2   : > { %4214 = vmatpush1.bf16.msra.mxu0 %v12892_v45  ;;  %v3536_v50 = vpack.c.bf16 %v3526_v48, %v3526_v48  ;;  %v13006_v45 = vld [vmem:[#allocation9 + $0x1c0] ss:$8 sps:$4 sm:$0xff]   ;;  %v13014_v48 = vld [vmem:[#allocation9 + $0x1b4] ss:$8 sps:$4 sm:$0xff]  }
 0x6f3   : > { %4215 = vmatprep.subr.bf16.mxu0 %v12897_v46  ;;  %v3528_v52 = vpop.f32.mrf.mxu0  ;;  %v13008_v46 = vld [vmem:[#allocation9 + $0x1c4] ss:$8 sps:$4 sm:$0xff]  }
 0x6f4   : > { %4239 = vmatprep.mubr.bf16.mxu0 %v3536_v50 }
 0x6f5   : > { %v3529_v53 = vpop.f32.mrf.mxu0 }
 0x6f6   : > { %4216 = vmatpush1.bf16.msra.mxu0 %v12895_v49  ;;  %v3633_v49 = vld [vmem:[%s14870_s4] sm:$0x3]  ;;  %s14879_s4 = sld [smem:[#allocation37_spill]] }
 0x6f7   : > { %4217 = vmatprep.subr.bf16.mxu0 %v12900_v51  ;;  %v3638_v50 = vrot.slane %v3633_v49, %v14610_v41  ;;  %v3642_v51 = vrot.slane %v3633_v49, %v14608_v36 }
 0x6fa   : > { %4218 = vmatpush1.bf16.msra.mxu0 %v12898_v54 }
 0x6fb   : > { %4219 = vmatprep.subr.bf16.mxu0 %v12903_v55 }
 0x6fe   : > { %4220 = vmatpush1.bf16.msra.mxu0 %v12901_v56 }
 0x6ff   : > { %4221 = vmatprep.subr.bf16.mxu0 %v12906_v57 }
 0x702   : > { %4222 = vmatpush1.bf16.msra.mxu0 %v12904_v59 }
 0x703   : > { %4223 = vmatprep.subr.bf16.mxu0 %v12909_v60 }
 0x706   : > { %4224 = vmatpush2.bf16.msra.mxu0 %v12907_v61 }
 0x707   : > { %4225 = vmatprep.subr.bf16.mxu0 %v12912_v62 }
 0x70a   : > { %4226 = vmatpush2.bf16.msra.mxu0 %v12910_v63 }
 0x70b   : > { %4227 = vmatprep.subr.bf16.mxu0 %v12915_v0 }
 0x70e   : > { %4228 = vmatpush2.bf16.msra.mxu0 %v12913_v1 }
 0x70f   : > { %4229 = vmatprep.subr.bf16.mxu0 %v12918_v2 }
 0x712   : > { %4230 = vmatpush2.bf16.msra.mxu0 %v12916_v3 }
 0x713   : > { %4231 = vmatprep.subr.bf16.mxu0 %v12921_v4  ;;  %v4252_v4 = vld [vmem:[%s14871_s2] sm:$0xf] }
 0x716   : > { %4232 = vmatpush2.bf16.msra.mxu0 %v12919_v5  ;;  %v11370_v5 = vld [vmem:[%s14871_s2 + $0x4] sm:$0xf] }
 0x717   : > { %4233 = vmatprep.subr.bf16.mxu0 %v12924_v6  ;;  %v12933_v6 = vld [vmem:[#allocation9 + $0x74] ss:$8 sps:$4 sm:$0xff]  }
 0x71a   : > { %4234 = vmatpush2.bf16.msra.mxu0 %v12922_v7  ;;  %v11373_v7 = vld [vmem:[%s14871_s2 + $0x8] sm:$0xf] }
 0x71b   : > { %4235 = vmatprep.subr.bf16.mxu0 %v12927_v8  ;;  %v12931_v8 = vld [vmem:[#allocation9 + $0x70] ss:$8 sps:$4 sm:$0xff]  }
 0x71e   : > { %4236 = vmatpush2.bf16.msra.mxu0 %v12925_v9  ;;  %v12936_v9 = vld [vmem:[#allocation9 + $0x64] ss:$8 sps:$4 sm:$0xff]  }
 0x71f   : > { %4237 = vmatprep.subr.bf16.mxu0 %v12930_v10  ;;  %v12934_v10 = vld [vmem:[#allocation9 + $0x60] ss:$8 sps:$4 sm:$0xff]  }
 0x722   : > { %4238 = vmatpush2.bf16.msra.mxu0 %v12928_v11  ;;  %v12939_v11 = vld [vmem:[#allocation9 + $0x54] ss:$8 sps:$4 sm:$0xff]  }
 0x723   : > { %5030 = vmatprep.subr.bf16.mxu0 %v12942_v14  ;;  %v12943_v14 = vld [vmem:[#allocation9 + $0x40] ss:$8 sps:$4 sm:$0xff]  }
 0x725   : > { %4240 = vmatmul.mubr.bf16.vlgmr.msra.gmra.mxu0 %v3535_v12  ;;  %v12937_v12 = vld [vmem:[#allocation9 + $0x50] ss:$8 sps:$4 sm:$0xff]  }
 0x726   : > { %5031 = vmatpush1.bf16.msra.mxu0 %v12940_v13  ;;  %v12945_v13 = vld [vmem:[#allocation9 + $0x44] ss:$8 sps:$4 sm:$0xff]  }
 0x727   : > { %5032 = vmatprep.subr.bf16.mxu0 %v12948_v16  ;;  %v12949_v16 = vld [vmem:[#allocation9 + $0x30] ss:$8 sps:$4 sm:$0xff]  }
 0x72a   : > { %5033 = vmatpush1.bf16.msra.mxu0 %v12946_v15  ;;  %v12951_v15 = vld [vmem:[#allocation9 + $0x34] ss:$8 sps:$4 sm:$0xff]  }
 0x72b   : > { %5034 = vmatprep.subr.bf16.mxu0 %v12954_v18  ;;  %v12955_v18 = vld [vmem:[#allocation9 + $0x20] ss:$8 sps:$4 sm:$0xff]  }
 0x72e   : > { %5035 = vmatpush1.bf16.msra.mxu0 %v12952_v17  ;;  %v12957_v17 = vld [vmem:[#allocation9 + $0x24] ss:$8 sps:$4 sm:$0xff]  }
 0x72f   : > { %5036 = vmatprep.subr.bf16.mxu0 %v12960_v20  ;;  %v12961_v20 = vld [vmem:[#allocation9 + $0x10] ss:$8 sps:$4 sm:$0xff]  }
 0x732   : > { %5037 = vmatpush1.bf16.msra.mxu0 %v12958_v19  ;;  %v12963_v19 = vld [vmem:[#allocation9 + $0x14] ss:$8 sps:$4 sm:$0xff]  }
 0x733   : > { %5038 = vmatprep.subr.bf16.mxu0 %v12966_v22  ;;  %v12967_v22 = vld [vmem:[#allocation9] ss:$8 sps:$4 sm:$0xff]  }
 0x736   : > { %5039 = vmatpush1.bf16.msra.mxu0 %v12964_v21  ;;  %v12969_v21 = vld [vmem:[#allocation9 + $0x4] ss:$8 sps:$4 sm:$0xff]  }
 0x737   : > { %5040 = vmatprep.subr.bf16.mxu0 %v12972_v24  ;;  %v12973_v24 = vld [vmem:[#allocation9 + $0xf0] ss:$8 sps:$4 sm:$0xff]  }
 0x73a   : > { %5041 = vmatpush1.bf16.msra.mxu0 %v12970_v23  ;;  %v12975_v23 = vld [vmem:[#allocation9 + $0xf4] ss:$8 sps:$4 sm:$0xff]  }
 0x73b   : > { %5042 = vmatprep.subr.bf16.mxu0 %v12978_v26  ;;  %v12979_v26 = vld [vmem:[#allocation9 + $0xe0] ss:$8 sps:$4 sm:$0xff]  }
 0x73e   : > { %5043 = vmatpush1.bf16.msra.mxu0 %v12976_v25  ;;  %v12981_v25 = vld [vmem:[#allocation9 + $0xe4] ss:$8 sps:$4 sm:$0xff]  }
 0x73f   : > { %5044 = vmatprep.subr.bf16.mxu0 %v12984_v30  ;;  %v12991_v30 = vld [vmem:[#allocation9 + $0xc0] ss:$8 sps:$4 sm:$0xff]  }
 0x742   : > { %5045 = vmatpush1.bf16.msra.mxu0 %v12982_v29  ;;  %v12993_v29 = vld [vmem:[#allocation9 + $0xc4] ss:$8 sps:$4 sm:$0xff]  }
 0x743   : > { %5046 = vmatprep.subr.bf16.mxu0 %v12990_v34  ;;  %v13003_v34 = vld [vmem:[#allocation9 + $0xa0] ss:$8 sps:$4 sm:$0xff]  }
 0x746   : > { %5047 = vmatpush2.bf16.msra.mxu0 %v12988_v33  ;;  %v13005_v33 = vld [vmem:[#allocation9 + $0xa4] ss:$8 sps:$4 sm:$0xff]  }
 0x747   : > { %5048 = vmatprep.subr.bf16.mxu0 %v12996_v39  ;;  %v13009_v39 = vld [vmem:[#allocation9 + $0x90] ss:$8 sps:$4 sm:$0xff]  }
 0x74a   : > { %5049 = vmatpush2.bf16.msra.mxu0 %v12994_v38  ;;  %v13018_v38 = vld [vmem:[#allocation9 + $0x1a0] ss:$8 sps:$4 sm:$0xff]  }
 0x74b   : > { %5050 = vmatprep.subr.bf16.mxu0 %v13002_v44  ;;  %v13015_v44 = vld [vmem:[#allocation9 + $0x80] ss:$8 sps:$4 sm:$0xff]  }
 0x74e   : > { %5051 = vmatpush2.bf16.msra.mxu0 %v13000_v43  ;;  %v13024_v43 = vld [vmem:[#allocation9 + $0x190] ss:$8 sps:$4 sm:$0xff]  }
 0x74f   : > { %5052 = vmatprep.subr.bf16.mxu0 %v13008_v46  ;;  %v13023_v46 = vld [vmem:[#allocation9 + $0x274] ss:$8 sps:$4 sm:$0xff]  }
 0x752   : > { %5053 = vmatpush2.bf16.msra.mxu0 %v13006_v45  ;;  %v13032_v45 = vld [vmem:[#allocation9 + $0x184] ss:$8 sps:$4 sm:$0xff]  }
 0x753   : > { %5054 = vmatprep.subr.bf16.mxu0 %v13014_v48 }
 0x756   : > { %5055 = vmatpush2.bf16.msra.mxu0 %v13012_v47  ;;  %v13030_v47 = vld [vmem:[#allocation9 + $0x180] ss:$8 sps:$4 sm:$0xff]  }
 0x7a5   : > { %v4159_v27 = vpop.f32.mrf.mxu0 }
 0x7a6   : > { %v4160_v52 = vadd.f32 %v4159_v27, %v3638_v50  ;;  %v12987_v27 = vld [vmem:[#allocation9 + $0xd4] ss:$8 sps:$4 sm:$0xff]  }
 0x7a7   : > { %v4161_v28 = vpop.f32.mrf.mxu0 }
 0x7a8   : > { %v4162_v53 = vadd.f32 %v4161_v28, %v3642_v51  ;;  %v12985_v28 = vld [vmem:[#allocation9 + $0xd0] ss:$8 sps:$4 sm:$0xff]  }
 0x7a9   : > { %v4163_v31 = vpop.f32.mrf.mxu0  ;;  %v13021_v51 = vld [vmem:[#allocation9 + $0x270] ss:$8 sps:$4 sm:$0xff]  }
 0x7aa   : > { %v12999_v31 = vld [vmem:[#allocation9 + $0xb4] ss:$8 sps:$4 sm:$0xff]  }
 0x7ab   : > { %v4164_v32 = vpop.f32.mrf.mxu0 }
 0x7ac   : > { %v12997_v32 = vld [vmem:[#allocation9 + $0xb0] ss:$8 sps:$4 sm:$0xff]  }
 0x7ad   : > { %v4200_v35 = vpop.f32.mrf.mxu1 }
 0x7ae   : > { %v4201_v54 = vadd.f32 %v4200_v35, %v4160_v52  ;;  %v13020_v35 = vld [vmem:[#allocation9 + $0x1a4] ss:$8 sps:$4 sm:$0xff]  }
 0x7af   : > { %v4202_v37 = vpop.f32.mrf.mxu1  ;;  %5056 = vmatprep.subr.bf16.mxu0 %v13020_v35  ;;  %v13077_v35 = vld [vmem:[#allocation10 + $0x74] ss:$8 sps:$4 sm:$0xff]  }
 0x7b0   : > { %v4203_v56 = vadd.f32 %v4202_v37, %v4162_v53  ;;  %v13011_v37 = vld [vmem:[#allocation9 + $0x94] ss:$8 sps:$4 sm:$0xff]   ;;  %5057 = vmatpush2.bf16.msra.mxu0 %v13018_v38  ;;  %v13078_v38 = vld [vmem:[#allocation10 + $0x60] ss:$8 sps:$4 sm:$0xff]  }
 0x7b1   : > { %v4204_v40 = vpop.f32.mrf.mxu1 }
 0x7b2   : > { %v13026_v40 = vld [vmem:[#allocation9 + $0x194] ss:$8 sps:$4 sm:$0xff]  }
 0x7b3   : > { %v4205_v42 = vpop.f32.mrf.mxu1  ;;  %5058 = vmatprep.subr.bf16.mxu0 %v13026_v40  ;;  %v13081_v40 = vld [vmem:[#allocation10 + $0x50] ss:$8 sps:$4 sm:$0xff]  }
 0x7b4   : > { %v13017_v42 = vld [vmem:[#allocation9 + $0x84] ss:$8 sps:$4 sm:$0xff]   ;;  %5059 = vmatpush2.bf16.msra.mxu0 %v13024_v43  ;;  %v13087_v43 = vld [vmem:[#allocation10 + $0x40] ss:$8 sps:$4 sm:$0xff]  }
 0x7b5   : > { %5060 = vmatprep.subr.bf16.mxu0 %v13032_v45  ;;  %v13093_v45 = vld [vmem:[#allocation10 + $0x30] ss:$8 sps:$4 sm:$0xff]  }
 0x7b8   : > { %5061 = vmatpush2.bf16.msra.mxu0 %v13030_v47  ;;  %v13099_v47 = vld [vmem:[#allocation10 + $0x20] ss:$8 sps:$4 sm:$0xff]  }
 0x7e5   : > { %v4241_v55 = vpop.f32.mrf.mxu0 }
 0x7e6   : > { %v4242_v57 = vadd.f32 %v4241_v55, %v4201_v54  ;;  %v13029_v54 = vld [vmem:[#allocation9 + $0x264] ss:$8 sps:$4 sm:$0xff]  }
 0x7e7   : > { %v4243_v59 = vpop.f32.mrf.mxu0 }
 0x7e8   : > { %v4248_v60 = vmax.f32 %v4242_v57, 0.0  ;;  %v4244_v61 = vadd.f32 %v4243_v59, %v4203_v56  ;;  %v13027_v56 = vld [vmem:[#allocation9 + $0x260] ss:$8 sps:$4 sm:$0xff]   ;;  %v13035_v59 = vld [vmem:[#allocation9 + $0x254] ss:$8 sps:$4 sm:$0xff]  }
 0x7e9   : > { %v4245_v62 = vpop.f32.mrf.mxu0 }
 0x7ea   : > { %v4250_v63 = vpack.c.bf16 %v4248_v60, %v4248_v60  ;;  %v4249_v0 = vmax.f32 %v4244_v61, 0.0 }
 0x7eb   : > { %v4246_v1 = vpop.f32.mrf.mxu0 }
 0x7ec   : > { %v4251_v2 = vpack.c.bf16 %v4249_v0, %v4249_v0  ;;  %v4257_v3 = vsel %vm2527_vm3, %v4250_v63, 0  ;;  %v13033_v63 = vld [vmem:[#allocation9 + $0x250] ss:$8 sps:$4 sm:$0xff]   ;;  %v13038_v0 = vld [vmem:[#allocation9 + $0x244] ss:$8 sps:$4 sm:$0xff]  }
 0x7ee   : > { %11368 = vmatprep.subr.msk.bf16.mxu1 %vm2527_vm3, %v4251_v2 }
 0x7ef   : > { %4277 = vmatpush1.bf16.msra.mxu1 %v4257_v3 }
 0x7f0   : > { %11371 = vmatprep.subr.msk.bf16.mxu1 %vm2527_vm3, %v4251_v2 }
 0x7f2   : > { %11369 = vmatmul.mubr.msk.bf16.vlgmr.msra.gmra.mxu1 %vm2523_vm4, %v4252_v4  ;;  %v13041_v4 = vld [vmem:[#allocation9 + $0x234] ss:$8 sps:$4 sm:$0xff]  }
 0x7f3   : > { %4323 = vmatpush1.bf16.msra.mxu1 %v4257_v3  ;;  %4340 = vmatprep.mubr.bf16.mxu1 %v14274_v58 }
 0x7f4   : > { %11374 = vmatprep.subr.msk.bf16.mxu1 %vm2527_vm3, %v4251_v2 }
 0x7fa   : > { %11372 = vmatmul.mubr.msk.bf16.vlgmr.msra.gmra.mxu1 %vm2523_vm4, %v11370_v5 }
 0x7fb   : > { %4369 = vmatpush1.bf16.msra.mxu1 %v4257_v3  ;;  %4386 = vmatprep.mubr.bf16.mxu1 %v14274_v58  ;;  %v13036_v3 = vld [vmem:[#allocation9 + $0x240] ss:$8 sps:$4 sm:$0xff]  }
 0x7fc   : > { %4989 = vmatprep.subr.bf16.mxu1 %v12933_v6 }
 0x802   : > { %11375 = vmatmul.mubr.msk.bf16.vlgmr.msra.gmra.mxu1 %vm2523_vm4, %v11373_v7  ;;  %v13039_v7 = vld [vmem:[#allocation9 + $0x230] ss:$8 sps:$4 sm:$0xff]  }
 0x803   : > { %4990 = vmatpush1.bf16.msra.mxu1 %v12931_v8 }
 0x804   : > { %4991 = vmatprep.subr.bf16.mxu1 %v12936_v9  ;;  %v13044_v9 = vld [vmem:[#allocation9 + $0x224] ss:$8 sps:$4 sm:$0xff]  }
 0x807   : > { %4992 = vmatpush1.bf16.msra.mxu1 %v12934_v10 }
 0x808   : > { %4993 = vmatprep.subr.bf16.mxu1 %v12939_v11 }
 0x80b   : > { %4994 = vmatpush1.bf16.msra.mxu1 %v12937_v12  ;;  %v13042_v12 = vld [vmem:[#allocation9 + $0x220] ss:$8 sps:$4 sm:$0xff]  }
 0x80c   : > { %4995 = vmatprep.subr.bf16.mxu1 %v12945_v13  ;;  %v13047_v13 = vld [vmem:[#allocation9 + $0x214] ss:$8 sps:$4 sm:$0xff]  }
 0x80f   : > { %4996 = vmatpush1.bf16.msra.mxu1 %v12943_v14  ;;  %v13045_v14 = vld [vmem:[#allocation9 + $0x210] ss:$8 sps:$4 sm:$0xff]  }
 0x810   : > { %4997 = vmatprep.subr.bf16.mxu1 %v12951_v15  ;;  %v13050_v15 = vld [vmem:[#allocation9 + $0x204] ss:$8 sps:$4 sm:$0xff]  }
 0x813   : > { %4998 = vmatpush1.bf16.msra.mxu1 %v12949_v16  ;;  %v13048_v16 = vld [vmem:[#allocation9 + $0x200] ss:$8 sps:$4 sm:$0xff]  }
 0x814   : > { %4999 = vmatprep.subr.bf16.mxu1 %v12957_v17  ;;  %v13053_v17 = vld [vmem:[#allocation9 + $0x2f4] ss:$8 sps:$4 sm:$0xff]  }
 0x817   : > { %5000 = vmatpush1.bf16.msra.mxu1 %v12955_v18  ;;  %v13051_v18 = vld [vmem:[#allocation9 + $0x2f0] ss:$8 sps:$4 sm:$0xff]  }
 0x818   : > { %5001 = vmatprep.subr.bf16.mxu1 %v12963_v19  ;;  %v13056_v19 = vld [vmem:[#allocation9 + $0x2e4] ss:$8 sps:$4 sm:$0xff]  }
 0x81b   : > { %5002 = vmatpush1.bf16.msra.mxu1 %v12961_v20  ;;  %v13054_v20 = vld [vmem:[#allocation9 + $0x2e0] ss:$8 sps:$4 sm:$0xff]  }
 0x81c   : > { %5003 = vmatprep.subr.bf16.mxu1 %v12969_v21  ;;  %v13059_v21 = vld [vmem:[#allocation9 + $0x2d4] ss:$8 sps:$4 sm:$0xff]  }
 0x81f   : > { %5004 = vmatpush1.bf16.msra.mxu1 %v12967_v22  ;;  %v13057_v22 = vld [vmem:[#allocation9 + $0x2d0] ss:$8 sps:$4 sm:$0xff]  }
 0x820   : > { %5005 = vmatprep.subr.bf16.mxu1 %v12975_v23  ;;  %v13062_v23 = vld [vmem:[#allocation9 + $0x2c4] ss:$8 sps:$4 sm:$0xff]  }
 0x823   : > { %5006 = vmatpush2.bf16.msra.mxu1 %v12973_v24  ;;  %v13060_v24 = vld [vmem:[#allocation9 + $0x2c0] ss:$8 sps:$4 sm:$0xff]  }
 0x824   : > { %5007 = vmatprep.subr.bf16.mxu1 %v12981_v25  ;;  %v13065_v25 = vld [vmem:[#allocation9 + $0x2b4] ss:$8 sps:$4 sm:$0xff]  }
 0x827   : > { %5008 = vmatpush2.bf16.msra.mxu1 %v12979_v26  ;;  %v13063_v26 = vld [vmem:[#allocation9 + $0x2b0] ss:$8 sps:$4 sm:$0xff]  }
 0x828   : > { %5009 = vmatprep.subr.bf16.mxu1 %v12987_v27  ;;  %v13068_v27 = vld [vmem:[#allocation9 + $0x2a4] ss:$8 sps:$4 sm:$0xff]  }
 0x82b   : > { %5010 = vmatpush2.bf16.msra.mxu1 %v12985_v28  ;;  %v13066_v28 = vld [vmem:[#allocation9 + $0x2a0] ss:$8 sps:$4 sm:$0xff]  }
 0x82c   : > { %5011 = vmatprep.subr.bf16.mxu1 %v12993_v29  ;;  %v13071_v29 = vld [vmem:[#allocation9 + $0x294] ss:$8 sps:$4 sm:$0xff]  }
 0x82f   : > { %5012 = vmatpush2.bf16.msra.mxu1 %v12991_v30  ;;  %v13069_v30 = vld [vmem:[#allocation9 + $0x290] ss:$8 sps:$4 sm:$0xff]  }
 0x830   : > { %5013 = vmatprep.subr.bf16.mxu1 %v12999_v31  ;;  %v13074_v31 = vld [vmem:[#allocation9 + $0x284] ss:$8 sps:$4 sm:$0xff]  }
 0x833   : > { %5014 = vmatpush2.bf16.msra.mxu1 %v12997_v32  ;;  %v13072_v32 = vld [vmem:[#allocation9 + $0x280] ss:$8 sps:$4 sm:$0xff]  }
 0x834   : > { %5015 = vmatprep.subr.bf16.mxu1 %v13005_v33 }
 0x837   : > { %5016 = vmatpush2.bf16.msra.mxu1 %v13003_v34  ;;  %v13075_v34 = vld [vmem:[#allocation10 + $0x70] ss:$8 sps:$4 sm:$0xff]  }
 0x838   : > { %5017 = vmatprep.subr.bf16.mxu1 %v13011_v37  ;;  %v13080_v37 = vld [vmem:[#allocation10 + $0x64] ss:$8 sps:$4 sm:$0xff]  }
 0x83b   : > { %5018 = vmatpush2.bf16.msra.mxu1 %v13009_v39  ;;  %v13083_v39 = vld [vmem:[#allocation10 + $0x54] ss:$8 sps:$4 sm:$0xff]  }
 0x83c   : > { %5019 = vmatprep.subr.bf16.mxu1 %v13017_v42  ;;  %v13089_v42 = vld [vmem:[#allocation10 + $0x44] ss:$8 sps:$4 sm:$0xff]  }
 0x83f   : > { %5020 = vmatpush2.bf16.msra.mxu1 %v13015_v44  ;;  %v13095_v44 = vld [vmem:[#allocation10 + $0x34] ss:$8 sps:$4 sm:$0xff]  }
 0x840   : > { %5071 = vmatprep.subr.bf16.mxu1 %v13023_v46  ;;  %v13101_v46 = vld [vmem:[#allocation10 + $0x24] ss:$8 sps:$4 sm:$0xff]  }
 0x8b2   : > { %v4296_v48 = vpop.f32.mrf.mxu1 }
 0x8b3   : > { %v4395_v52 = vpack.c.bf16 %v4296_v48, %v4296_v48  ;;  %v13107_v48 = vld [vmem:[#allocation10 + $0x14] ss:$8 sps:$4 sm:$0xff]  }
 0x8b4   : > { %v4298_v49 = vpop.f32.mrf.mxu1 }
 0x8b5   : > { %v4396_v50 = vpack.c.bf16 %v4298_v49, %v4298_v49  ;;  %v13105_v49 = vld [vmem:[#allocation10 + $0x10] ss:$8 sps:$4 sm:$0xff]  }
 0x8b6   : > { %v4300_v53 = vpop.f32.mrf.mxu1 }
 0x8b7   : > { %5021 = vmatprep.mubr.bf16.mxu1 %v4396_v50  ;;  %v13113_v50 = vld [vmem:[#allocation10 + $0x4] ss:$8 sps:$4 sm:$0xff]   ;;  %v13119_v53 = vld [vmem:[#allocation10 + $0xf4] ss:$8 sps:$4 sm:$0xff]  }
 0x8b8   : > { %v4301_v55 = vpop.f32.mrf.mxu1  ;;  %5022 = vmatmul.mubr.bf16.vlgmr.msra.gmra.mxu1 %v4395_v52  ;;  %v13111_v52 = vld [vmem:[#allocation10] ss:$8 sps:$4 sm:$0xff]  }
 0x8b9   : > { %5072 = vmatpush1.bf16.msra.mxu1 %v13021_v51 }
 0x8ba   : > { %v4342_v57 = vpop.f32.mrf.mxu1  ;;  %5073 = vmatprep.subr.bf16.mxu1 %v13029_v54 }
 0x8bb   : > { %v4397_v60 = vpack.c.bf16 %v4342_v57, %v4342_v57  ;;  %v13125_v57 = vld [vmem:[#allocation10 + $0xe4] ss:$8 sps:$4 sm:$0xff]  }
 0x8bc   : > { %v4344_v61 = vpop.f32.mrf.mxu1 }
 0x8bd   : > { %v4398_v62 = vpack.c.bf16 %v4344_v61, %v4344_v61  ;;  %5074 = vmatpush1.bf16.msra.mxu1 %v13027_v56  ;;  %v13117_v56 = vld [vmem:[#allocation10 + $0xf0] ss:$8 sps:$4 sm:$0xff]   ;;  %v13123_v61 = vld [vmem:[#allocation10 + $0xe0] ss:$8 sps:$4 sm:$0xff]  }
 0x8be   : > { %5075 = vmatprep.subr.bf16.mxu1 %v13035_v59  ;;  %v4346_v1 = vpop.f32.mrf.mxu1 }
 0x8bf   : > { %5062 = vmatprep.mubr.bf16.mxu0 %v4398_v62  ;;  %v13131_v62 = vld [vmem:[#allocation10 + $0xd4] ss:$8 sps:$4 sm:$0xff]   ;;  %v13129_v1 = vld [vmem:[#allocation10 + $0xd0] ss:$8 sps:$4 sm:$0xff]  }
 0x8c0   : > { %5063 = vmatmul.mubr.bf16.vlgmr.msra.gmra.mxu0 %v4397_v60  ;;  %v4347_v2 = vpop.f32.mrf.mxu1 }
 0x8c1   : > { %5076 = vmatpush1.bf16.msra.mxu1 %v13033_v63  ;;  %5158 = vmatprep.mubr.bf16.mxu0 %v14274_v58  ;;  %v13137_v2 = vld [vmem:[#allocation10 + $0xc4] ss:$8 sps:$4 sm:$0xff]  }
 0x8c2   : > { %5077 = vmatprep.subr.bf16.mxu1 %v13038_v0  ;;  %v4388_v5 = vpop.f32.mrf.mxu1 }
 0x8c3   : > { %v4399_v33 = vpack.c.bf16 %v4388_v5, %v4388_v5  ;;  %v13143_v5 = vld [vmem:[#allocation10 + $0xb4] ss:$8 sps:$4 sm:$0xff]  }
 0x8c4   : > { %v4390_v6 = vpop.f32.mrf.mxu1 }
 0x8c5   : > { %5078 = vmatpush1.bf16.msra.mxu1 %v13036_v3  ;;  %v4400_v8 = vpack.c.bf16 %v4390_v6, %v4390_v6  ;;  %v13141_v6 = vld [vmem:[#allocation10 + $0xb0] ss:$8 sps:$4 sm:$0xff]  }
 0x8c6   : > { %5079 = vmatprep.subr.bf16.mxu1 %v13041_v4  ;;  %v4392_v10 = vpop.f32.mrf.mxu1  ;;  %v13135_v4 = vld [vmem:[#allocation10 + $0xc0] ss:$8 sps:$4 sm:$0xff]  }
 0x8c7   : > { %5103 = vmatprep.mubr.bf16.mxu1 %v4400_v8  ;;  %v13147_v8 = vld [vmem:[#allocation10 + $0xa0] ss:$8 sps:$4 sm:$0xff]   ;;  %v13153_v10 = vld [vmem:[#allocation10 + $0x90] ss:$8 sps:$4 sm:$0xff]  }
 0x8c8   : > { %v4393_v11 = vpop.f32.mrf.mxu1 }
 0x8c9   : > { %5080 = vmatpush1.bf16.msra.mxu1 %v13039_v7  ;;  %v13149_v7 = vld [vmem:[#allocation10 + $0xa4] ss:$8 sps:$4 sm:$0xff]   ;;  %v4497_v11 = vld [vmem:[%s14872_s11] sm:$0x3]  ;;  %s14880_s11 = sld [smem:[#allocation38_spill]] }
 0x8ca   : > { %5081 = vmatprep.subr.bf16.mxu1 %v13044_v9  ;;  %v13155_v9 = vld [vmem:[#allocation10 + $0x94] ss:$8 sps:$4 sm:$0xff]  }
 0x8cd   : > { %5082 = vmatpush1.bf16.msra.mxu1 %v13042_v12  ;;  %v4502_v12 = vrot.slane %v4497_v11, %v14610_v41 }
 0x8ce   : > { %5083 = vmatprep.subr.bf16.mxu1 %v13047_v13  ;;  %v4506_v13 = vrot.slane %v4497_v11, %v14608_v36  ;;  %v13168_v11 = vld [vmem:[#allocation10 + $0x270] ss:$8 sps:$4 sm:$0xff]  }
 0x8d1   : > { %5084 = vmatpush1.bf16.msra.mxu1 %v13045_v14 }
 0x8d2   : > { %5085 = vmatprep.subr.bf16.mxu1 %v13050_v15 }
 0x8d5   : > { %5086 = vmatpush1.bf16.msra.mxu1 %v13048_v16 }
 0x8d6   : > { %5087 = vmatprep.subr.bf16.mxu1 %v13053_v17 }
 0x8d9   : > { %5088 = vmatpush2.bf16.msra.mxu1 %v13051_v18 }
 0x8da   : > { %5089 = vmatprep.subr.bf16.mxu1 %v13056_v19 }
 0x8dd   : > { %5090 = vmatpush2.bf16.msra.mxu1 %v13054_v20 }
 0x8de   : > { %5091 = vmatprep.subr.bf16.mxu1 %v13059_v21 }
 0x8e1   : > { %5092 = vmatpush2.bf16.msra.mxu1 %v13057_v22 }
 0x8e2   : > { %5093 = vmatprep.subr.bf16.mxu1 %v13062_v23 }
 0x8e5   : > { %5094 = vmatpush2.bf16.msra.mxu1 %v13060_v24 }
 0x8e6   : > { %5095 = vmatprep.subr.bf16.mxu1 %v13065_v25 }
 0x8e9   : > { %5096 = vmatpush2.bf16.msra.mxu1 %v13063_v26 }
 0x8ea   : > { %5097 = vmatprep.subr.bf16.mxu1 %v13068_v27 }
 0x8ed   : > { %5098 = vmatpush2.bf16.msra.mxu1 %v13066_v28 }
 0x8ee   : > { %5099 = vmatprep.subr.bf16.mxu1 %v13071_v29  ;;  %v5116_v29 = vld [vmem:[%s14873_s15] sm:$0xf] }
 0x8f1   : > { %5100 = vmatpush2.bf16.msra.mxu1 %v13069_v30  ;;  %v11474_v30 = vld [vmem:[%s14873_s15 + $0x4] sm:$0xf] }
 0x8f2   : > { %5101 = vmatprep.subr.bf16.mxu1 %v13074_v31  ;;  %v11477_v31 = vld [vmem:[%s14873_s15 + $0x8] sm:$0xf] }
 0x8f5   : > { %5102 = vmatpush2.bf16.msra.mxu1 %v13072_v32  ;;  %v13086_v32 = vld [vmem:[#allocation10 + $0x174] ss:$8 sps:$4 sm:$0xff]  }
 0x8f6   : > { %6093 = vmatprep.subr.bf16.mxu1 %v13077_v35  ;;  %v13092_v35 = vld [vmem:[#allocation10 + $0x164] ss:$8 sps:$4 sm:$0xff]  }
 0x8f8   : > { %5104 = vmatmul.mubr.bf16.vlgmr.msra.gmra.mxu1 %v4399_v33  ;;  %v11480_v33 = vld [vmem:[%s14873_s15 + $0xc] sm:$0xf] }
 0x8f9   : > { %6094 = vmatpush1.bf16.msra.mxu1 %v13075_v34  ;;  %v13084_v34 = vld [vmem:[#allocation10 + $0x170] ss:$8 sps:$4 sm:$0xff]  }
 0x8fa   : > { %6095 = vmatprep.subr.bf16.mxu1 %v13080_v37  ;;  %v13090_v37 = vld [vmem:[#allocation10 + $0x160] ss:$8 sps:$4 sm:$0xff]  }
 0x8fd   : > { %6096 = vmatpush1.bf16.msra.mxu1 %v13078_v38  ;;  %v13098_v38 = vld [vmem:[#allocation10 + $0x154] ss:$8 sps:$4 sm:$0xff]  }
 0x8fe   : > { %6097 = vmatprep.subr.bf16.mxu1 %v13083_v39  ;;  %v13096_v39 = vld [vmem:[#allocation10 + $0x150] ss:$8 sps:$4 sm:$0xff]  }
 0x901   : > { %6098 = vmatpush1.bf16.msra.mxu1 %v13081_v40  ;;  %v13104_v40 = vld [vmem:[#allocation10 + $0x144] ss:$8 sps:$4 sm:$0xff]  }
 0x902   : > { %6099 = vmatprep.subr.bf16.mxu1 %v13089_v42  ;;  %v13102_v42 = vld [vmem:[#allocation10 + $0x140] ss:$8 sps:$4 sm:$0xff]  }
 0x905   : > { %6100 = vmatpush1.bf16.msra.mxu1 %v13087_v43  ;;  %v13110_v43 = vld [vmem:[#allocation10 + $0x134] ss:$8 sps:$4 sm:$0xff]  }
 0x906   : > { %6101 = vmatprep.subr.bf16.mxu1 %v13095_v44  ;;  %v13108_v44 = vld [vmem:[#allocation10 + $0x130] ss:$8 sps:$4 sm:$0xff]  }
 0x909   : > { %6102 = vmatpush1.bf16.msra.mxu1 %v13093_v45  ;;  %v13116_v45 = vld [vmem:[#allocation10 + $0x124] ss:$8 sps:$4 sm:$0xff]  }
 0x90a   : > { %6103 = vmatprep.subr.bf16.mxu1 %v13101_v46  ;;  %v13114_v46 = vld [vmem:[#allocation10 + $0x120] ss:$8 sps:$4 sm:$0xff]  }
 0x90d   : > { %6104 = vmatpush1.bf16.msra.mxu1 %v13099_v47  ;;  %v13122_v47 = vld [vmem:[#allocation10 + $0x114] ss:$8 sps:$4 sm:$0xff]  }
 0x90e   : > { %6105 = vmatprep.subr.bf16.mxu1 %v13107_v48  ;;  %v13120_v48 = vld [vmem:[#allocation10 + $0x110] ss:$8 sps:$4 sm:$0xff]  }
 0x911   : > { %6106 = vmatpush1.bf16.msra.mxu1 %v13105_v49  ;;  %v13128_v49 = vld [vmem:[#allocation10 + $0x104] ss:$8 sps:$4 sm:$0xff]  }
 0x912   : > { %6107 = vmatprep.subr.bf16.mxu1 %v13113_v50  ;;  %v13126_v50 = vld [vmem:[#allocation10 + $0x100] ss:$8 sps:$4 sm:$0xff]  }
 0x915   : > { %6108 = vmatpush1.bf16.msra.mxu1 %v13111_v52  ;;  %v13132_v52 = vld [vmem:[#allocation10 + $0x1f0] ss:$8 sps:$4 sm:$0xff]  }
 0x916   : > { %6109 = vmatprep.subr.bf16.mxu1 %v13119_v53  ;;  %v13140_v53 = vld [vmem:[#allocation10 + $0x1e4] ss:$8 sps:$4 sm:$0xff]  }
 0x919   : > { %6110 = vmatpush2.bf16.msra.mxu1 %v13117_v56  ;;  %v13144_v56 = vld [vmem:[#allocation10 + $0x1d0] ss:$8 sps:$4 sm:$0xff]  }
 0x91a   : > { %6111 = vmatprep.subr.bf16.mxu1 %v13125_v57  ;;  %v13152_v57 = vld [vmem:[#allocation10 + $0x1c4] ss:$8 sps:$4 sm:$0xff]  }
 0x91d   : > { %6112 = vmatpush2.bf16.msra.mxu1 %v13123_v61  ;;  %v13159_v61 = vld [vmem:[#allocation10 + $0x80] ss:$8 sps:$4 sm:$0xff]  }
 0x91e   : > { %6113 = vmatprep.subr.bf16.mxu1 %v13131_v62  ;;  %v13158_v62 = vld [vmem:[#allocation10 + $0x1b4] ss:$8 sps:$4 sm:$0xff]  }
 0x921   : > { %6114 = vmatpush2.bf16.msra.mxu1 %v13129_v1  ;;  %v13164_v1 = vld [vmem:[#allocation10 + $0x1a4] ss:$8 sps:$4 sm:$0xff]  }
 0x922   : > { %6115 = vmatprep.subr.bf16.mxu1 %v13137_v2  ;;  %v13162_v2 = vld [vmem:[#allocation10 + $0x1a0] ss:$8 sps:$4 sm:$0xff]  }
 0x925   : > { %6116 = vmatpush2.bf16.msra.mxu1 %v13135_v4  ;;  %v13165_v4 = vld [vmem:[#allocation10 + $0x190] ss:$8 sps:$4 sm:$0xff]  }
 0x926   : > { %6117 = vmatprep.subr.bf16.mxu1 %v13143_v5  ;;  %v13173_v5 = vld [vmem:[#allocation10 + $0x184] ss:$8 sps:$4 sm:$0xff]  }
 0x929   : > { %6118 = vmatpush2.bf16.msra.mxu1 %v13141_v6  ;;  %v13171_v6 = vld [vmem:[#allocation10 + $0x180] ss:$8 sps:$4 sm:$0xff]  }
 0x92a   : > { %6119 = vmatprep.subr.bf16.mxu1 %v13149_v7  ;;  %v13182_v7 = vld [vmem:[#allocation10 + $0x374] ss:$8 sps:$4 sm:$0xff]  }
 0x92d   : > { %6120 = vmatpush2.bf16.msra.mxu1 %v13147_v8 }
 0x92e   : > { %6121 = vmatprep.subr.bf16.mxu1 %v13155_v9 }
 0x931   : > { %6122 = vmatpush2.bf16.msra.mxu1 %v13153_v10 }
 0x978   : > { %v5023_v51 = vpop.f32.mrf.mxu1 }
 0x979   : > { %v5024_v14 = vadd.f32 %v5023_v51, %v4502_v12  ;;  %v13134_v51 = vld [vmem:[#allocation10 + $0x1f4] ss:$8 sps:$4 sm:$0xff]  }
 0x97a   : > { %v5025_v54 = vpop.f32.mrf.mxu1 }
 0x97b   : > { %v5026_v15 = vadd.f32 %v5025_v54, %v4506_v13  ;;  %v13138_v54 = vld [vmem:[#allocation10 + $0x1e0] ss:$8 sps:$4 sm:$0xff]  }
 0x97c   : > { %v5027_v55 = vpop.f32.mrf.mxu1 }
 0x97d   : > { %v13146_v55 = vld [vmem:[#allocation10 + $0x1d4] ss:$8 sps:$4 sm:$0xff]  }
 0x97e   : > { %v5028_v59 = vpop.f32.mrf.mxu1 }
 0x97f   : > { %v13161_v59 = vld [vmem:[#allocation10 + $0x84] ss:$8 sps:$4 sm:$0xff]  }
 0x980   : > { %v5064_v60 = vpop.f32.mrf.mxu0  ;;  %6123 = vmatprep.subr.bf16.mxu1 %v13161_v59  ;;  %v13215_v59 = vld [vmem:[#allocation10 + $0x2f4] ss:$8 sps:$4 sm:$0xff]  }
 0x981   : > { %v5065_v16 = vadd.f32 %v5064_v60, %v5024_v14  ;;  %v13150_v60 = vld [vmem:[#allocation10 + $0x1c0] ss:$8 sps:$4 sm:$0xff]   ;;  %6124 = vmatpush2.bf16.msra.mxu1 %v13159_v61  ;;  %v13176_v14 = vld [vmem:[#allocation10 + $0x264] ss:$8 sps:$4 sm:$0xff]   ;;  %v13213_v61 = vld [vmem:[#allocation10 + $0x2f0] ss:$8 sps:$4 sm:$0xff]  }
 0x982   : > { %v5066_v63 = vpop.f32.mrf.mxu0 }
 0x983   : > { %v5067_v18 = vadd.f32 %v5066_v63, %v5026_v15  ;;  %v13170_v63 = vld [vmem:[#allocation10 + $0x274] ss:$8 sps:$4 sm:$0xff]  }
 0x984   : > { %v5068_v0 = vpop.f32.mrf.mxu0  ;;  %6175 = vmatprep.subr.bf16.mxu1 %v13170_v63  ;;  %v13221_v63 = vld [vmem:[#allocation10 + $0x2e4] ss:$8 sps:$4 sm:$0xff]  }
 0x985   : > { %v13156_v0 = vld [vmem:[#allocation10 + $0x1b0] ss:$8 sps:$4 sm:$0xff]  }
 0x986   : > { %v5069_v3 = vpop.f32.mrf.mxu0 }
 0x987   : > { %v13167_v3 = vld [vmem:[#allocation10 + $0x194] ss:$8 sps:$4 sm:$0xff]  }
 0x9b8   : > { %v5105_v17 = vpop.f32.mrf.mxu1 }
 0x9b9   : > { %v5106_v19 = vadd.f32 %v5105_v17, %v5065_v16  ;;  %v13174_v16 = vld [vmem:[#allocation10 + $0x260] ss:$8 sps:$4 sm:$0xff]  }
 0x9ba   : > { %v5107_v20 = vpop.f32.mrf.mxu1 }
 0x9bb   : > { %v5112_v21 = vmax.f32 %v5106_v19, 0.0  ;;  %v5108_v22 = vadd.f32 %v5107_v20, %v5067_v18  ;;  %v13179_v18 = vld [vmem:[#allocation10 + $0x254] ss:$8 sps:$4 sm:$0xff]  }
 0x9bc   : > { %v5109_v23 = vpop.f32.mrf.mxu1 }
 0x9bd   : > { %v5114_v24 = vpack.c.bf16 %v5112_v21, %v5112_v21  ;;  %v5113_v25 = vmax.f32 %v5108_v22, 0.0  ;;  %v13177_v21 = vld [vmem:[#allocation10 + $0x250] ss:$8 sps:$4 sm:$0xff]  }
 0x9be   : > { %v5110_v26 = vpop.f32.mrf.mxu1  ;;  %v13180_v22 = vld [vmem:[#allocation10 + $0x370] ss:$8 sps:$4 sm:$0xff]  }
 0x9bf   : > { %v5115_v27 = vpack.c.bf16 %v5113_v25, %v5113_v25  ;;  %v5121_v28 = vsel %vm2527_vm3, %v5114_v24, 0  ;;  %v13185_v25 = vld [vmem:[#allocation10 + $0x244] ss:$8 sps:$4 sm:$0xff]  }
 0x9c0   : > { %v13188_v26 = vld [vmem:[#allocation10 + $0x364] ss:$8 sps:$4 sm:$0xff]  }
 0x9c1   : > { %11472 = vmatprep.subr.msk.bf16.mxu0 %vm2527_vm3, %v5115_v27 }
 0x9c2   : > { %5141 = vmatpush1.bf16.msra.mxu0 %v5121_v28 }
 0x9c3   : > { %11475 = vmatprep.subr.msk.bf16.mxu0 %vm2527_vm3, %v5115_v27 }
 0x9c5   : > { %11473 = vmatmul.mubr.msk.bf16.vlgmr.msra.gmra.mxu0 %vm2523_vm4, %v5116_v29  ;;  %v13186_v29 = vld [vmem:[#allocation10 + $0x360] ss:$8 sps:$4 sm:$0xff]  }
 0x9c6   : > { %5187 = vmatpush1.bf16.msra.mxu0 %v5121_v28  ;;  %5204 = vmatprep.mubr.bf16.mxu0 %v14274_v58 }
 0x9c7   : > { %11478 = vmatprep.subr.msk.bf16.mxu0 %vm2527_vm3, %v5115_v27 }
 0x9cd   : > { %11476 = vmatmul.mubr.msk.bf16.vlgmr.msra.gmra.mxu0 %vm2523_vm4, %v11474_v30  ;;  %v13191_v30 = vld [vmem:[#allocation10 + $0x234] ss:$8 sps:$4 sm:$0xff]  }
 0x9ce   : > { %5233 = vmatpush1.bf16.msra.mxu0 %v5121_v28  ;;  %5250 = vmatprep.mubr.bf16.mxu0 %v14274_v58 }
 0x9cf   : > { %11481 = vmatprep.subr.msk.bf16.mxu0 %vm2527_vm3, %v5115_v27 }
 0x9d5   : > { %11479 = vmatmul.mubr.msk.bf16.vlgmr.msra.gmra.mxu0 %vm2523_vm4, %v11477_v31  ;;  %v13194_v31 = vld [vmem:[#allocation10 + $0x354] ss:$8 sps:$4 sm:$0xff]  }
 0x9d6   : > { %5279 = vmatpush1.bf16.msra.mxu0 %v5121_v28  ;;  %5296 = vmatprep.mubr.bf16.mxu0 %v14274_v58  ;;  %v13183_v28 = vld [vmem:[#allocation10 + $0x240] ss:$8 sps:$4 sm:$0xff]  }
 0x9d7   : > { %6134 = vmatprep.subr.bf16.mxu0 %v13086_v32 }
 0x9dd   : > { %11482 = vmatmul.mubr.msk.bf16.vlgmr.msra.gmra.mxu0 %vm2523_vm4, %v11480_v33 }
 0x9de   : > { %6135 = vmatpush1.bf16.msra.mxu0 %v13084_v34  ;;  %v13189_v34 = vld [vmem:[#allocation10 + $0x230] ss:$8 sps:$4 sm:$0xff]  }
 0x9df   : > { %6136 = vmatprep.subr.bf16.mxu0 %v13092_v35  ;;  %v13192_v35 = vld [vmem:[#allocation10 + $0x350] ss:$8 sps:$4 sm:$0xff]  }
 0x9e2   : > { %6137 = vmatpush1.bf16.msra.mxu0 %v13090_v37 }
 0x9e3   : > { %6138 = vmatprep.subr.bf16.mxu0 %v13098_v38  ;;  %v13197_v38 = vld [vmem:[#allocation10 + $0x224] ss:$8 sps:$4 sm:$0xff]  }
 0x9e6   : > { %6139 = vmatpush1.bf16.msra.mxu0 %v13096_v39  ;;  %v13200_v39 = vld [vmem:[#allocation10 + $0x344] ss:$8 sps:$4 sm:$0xff]  }
 0x9e7   : > { %6140 = vmatprep.subr.bf16.mxu0 %v13104_v40 }
 0x9ea   : > { %6141 = vmatpush1.bf16.msra.mxu0 %v13102_v42 }
 0x9eb   : > { %6142 = vmatprep.subr.bf16.mxu0 %v13110_v43  ;;  %v13195_v43 = vld [vmem:[#allocation10 + $0x220] ss:$8 sps:$4 sm:$0xff]  }
 0x9ee   : > { %6143 = vmatpush1.bf16.msra.mxu0 %v13108_v44  ;;  %v13198_v44 = vld [vmem:[#allocation10 + $0x340] ss:$8 sps:$4 sm:$0xff]  }
 0x9ef   : > { %6144 = vmatprep.subr.bf16.mxu0 %v13116_v45  ;;  %v13203_v45 = vld [vmem:[#allocation10 + $0x214] ss:$8 sps:$4 sm:$0xff]  }
 0x9f2   : > { %6145 = vmatpush1.bf16.msra.mxu0 %v13114_v46  ;;  %v13206_v46 = vld [vmem:[#allocation10 + $0x334] ss:$8 sps:$4 sm:$0xff]  }
 0x9f3   : > { %6146 = vmatprep.subr.bf16.mxu0 %v13122_v47 }
 0x9f6   : > { %6147 = vmatpush1.bf16.msra.mxu0 %v13120_v48 }
 0x9f7   : > { %6148 = vmatprep.subr.bf16.mxu0 %v13128_v49  ;;  %v13201_v49 = vld [vmem:[#allocation10 + $0x210] ss:$8 sps:$4 sm:$0xff]  }
 0x9fa   : > { %6149 = vmatpush1.bf16.msra.mxu0 %v13126_v50  ;;  %v13204_v50 = vld [vmem:[#allocation10 + $0x330] ss:$8 sps:$4 sm:$0xff]  }
 0x9fb   : > { %6150 = vmatprep.subr.bf16.mxu0 %v13134_v51 }
 0x9fe   : > { %6151 = vmatpush2.bf16.msra.mxu0 %v13132_v52  ;;  %v13209_v52 = vld [vmem:[#allocation10 + $0x204] ss:$8 sps:$4 sm:$0xff]  }
 0x9ff   : > { %6152 = vmatprep.subr.bf16.mxu0 %v13140_v53  ;;  %v13212_v53 = vld [vmem:[#allocation10 + $0x324] ss:$8 sps:$4 sm:$0xff]  }
 0xa02   : > { %6153 = vmatpush2.bf16.msra.mxu0 %v13138_v54 }
 0xa03   : > { %6154 = vmatprep.subr.bf16.mxu0 %v13146_v55 }
 0xa06   : > { %6155 = vmatpush2.bf16.msra.mxu0 %v13144_v56  ;;  %v13207_v56 = vld [vmem:[#allocation10 + $0x200] ss:$8 sps:$4 sm:$0xff]  }
 0xa07   : > { %6156 = vmatprep.subr.bf16.mxu0 %v13152_v57  ;;  %v13210_v57 = vld [vmem:[#allocation10 + $0x320] ss:$8 sps:$4 sm:$0xff]  }
 0xa0a   : > { %6157 = vmatpush2.bf16.msra.mxu0 %v13150_v60  ;;  %v13218_v60 = vld [vmem:[#allocation10 + $0x314] ss:$8 sps:$4 sm:$0xff]  }
 0xa0b   : > { %6158 = vmatprep.subr.bf16.mxu0 %v13158_v62  ;;  %v13216_v62 = vld [vmem:[#allocation10 + $0x310] ss:$8 sps:$4 sm:$0xff]  }
 0xa0e   : > { %6159 = vmatpush2.bf16.msra.mxu0 %v13156_v0  ;;  %v13224_v0 = vld [vmem:[#allocation10 + $0x304] ss:$8 sps:$4 sm:$0xff]  }
 0xa0f   : > { %6160 = vmatprep.subr.bf16.mxu0 %v13164_v1  ;;  %v13219_v1 = vld [vmem:[#allocation10 + $0x2e0] ss:$8 sps:$4 sm:$0xff]  }
 0xa12   : > { %6161 = vmatpush2.bf16.msra.mxu0 %v13162_v2  ;;  %v13222_v2 = vld [vmem:[#allocation10 + $0x300] ss:$8 sps:$4 sm:$0xff]  }
 0xa13   : > { %6162 = vmatprep.subr.bf16.mxu0 %v13167_v3  ;;  %v13227_v3 = vld [vmem:[#allocation10 + $0x2d4] ss:$8 sps:$4 sm:$0xff]  }
 0xa16   : > { %6163 = vmatpush2.bf16.msra.mxu0 %v13165_v4  ;;  %v13230_v4 = vld [vmem:[#allocation10 + $0x3f4] ss:$8 sps:$4 sm:$0xff]  }
 0xa17   : > { %6164 = vmatprep.subr.bf16.mxu0 %v13173_v5  ;;  %v13225_v5 = vld [vmem:[#allocation10 + $0x2d0] ss:$8 sps:$4 sm:$0xff]  }
 0xa1a   : > { %6165 = vmatpush2.bf16.msra.mxu0 %v13171_v6  ;;  %v13228_v6 = vld [vmem:[#allocation10 + $0x3f0] ss:$8 sps:$4 sm:$0xff]  }
 0xa1b   : > { %6216 = vmatprep.subr.bf16.mxu0 %v13182_v7  ;;  %v13233_v7 = vld [vmem:[#allocation10 + $0x2c4] ss:$8 sps:$4 sm:$0xff]  }
 0xa85   : > { %v5160_v8 = vpop.f32.mrf.mxu0 }
 0xa86   : > { %v5305_v12 = vpack.c.bf16 %v5160_v8, %v5160_v8  ;;  %v13236_v8 = vld [vmem:[#allocation10 + $0x3e4] ss:$8 sps:$4 sm:$0xff]  }
 0xa87   : > { %v5162_v9 = vpop.f32.mrf.mxu0 }
 0xa88   : > { %v5306_v10 = vpack.c.bf16 %v5162_v9, %v5162_v9  ;;  %v13231_v9 = vld [vmem:[#allocation10 + $0x2c0] ss:$8 sps:$4 sm:$0xff]  }
 0xa89   : > { %v5164_v13 = vpop.f32.mrf.mxu0 }
 0xa8a   : > { %6125 = vmatprep.mubr.bf16.mxu1 %v5306_v10  ;;  %v13234_v10 = vld [vmem:[#allocation10 + $0x3e0] ss:$8 sps:$4 sm:$0xff]   ;;  %v13237_v13 = vld [vmem:[#allocation10 + $0x2b0] ss:$8 sps:$4 sm:$0xff]  }
 0xa8b   : > { %v5165_v15 = vpop.f32.mrf.mxu0  ;;  %6126 = vmatmul.mubr.bf16.vlgmr.msra.gmra.mxu1 %v5305_v12  ;;  %v13242_v12 = vld [vmem:[#allocation10 + $0x3d4] ss:$8 sps:$4 sm:$0xff]  }
 0xa8c   : > { %6176 = vmatpush1.bf16.msra.mxu1 %v13168_v11  ;;  %v13239_v11 = vld [vmem:[#allocation10 + $0x2b4] ss:$8 sps:$4 sm:$0xff]   ;;  %v13245_v15 = vld [vmem:[#allocation10 + $0x2a4] ss:$8 sps:$4 sm:$0xff]  }
 0xa8d   : > { %v5206_v17 = vpop.f32.mrf.mxu0  ;;  %6177 = vmatprep.subr.bf16.mxu1 %v13176_v14  ;;  %v13240_v14 = vld [vmem:[#allocation10 + $0x3d0] ss:$8 sps:$4 sm:$0xff]  }
 0xa8e   : > { %v5307_v23 = vpack.c.bf16 %v5206_v17, %v5206_v17  ;;  %v13243_v17 = vld [vmem:[#allocation10 + $0x2a0] ss:$8 sps:$4 sm:$0xff]  }
 0xa8f   : > { %v5208_v19 = vpop.f32.mrf.mxu0 }
 0xa90   : > { %v5308_v20 = vpack.c.bf16 %v5208_v19, %v5208_v19  ;;  %6178 = vmatpush1.bf16.msra.mxu1 %v13174_v16  ;;  %v13248_v16 = vld [vmem:[#allocation10 + $0x3c4] ss:$8 sps:$4 sm:$0xff]   ;;  %v13251_v19 = vld [vmem:[#allocation10 + $0x294] ss:$8 sps:$4 sm:$0xff]  }
 0xa91   : > { %v5210_v24 = vpop.f32.mrf.mxu0  ;;  %6179 = vmatprep.subr.bf16.mxu1 %v13179_v18  ;;  %v13246_v18 = vld [vmem:[#allocation10 + $0x3c0] ss:$8 sps:$4 sm:$0xff]  }
 0xa92   : > { %6166 = vmatprep.mubr.bf16.mxu0 %v5308_v20  ;;  %v13254_v20 = vld [vmem:[#allocation10 + $0x3b4] ss:$8 sps:$4 sm:$0xff]   ;;  %v13260_v24 = vld [vmem:[#allocation10 + $0x3a4] ss:$8 sps:$4 sm:$0xff]  }
 0xa93   : > { %v5211_v27 = vpop.f32.mrf.mxu0  ;;  %6167 = vmatmul.mubr.bf16.vlgmr.msra.gmra.mxu0 %v5307_v23  ;;  %v13257_v23 = vld [vmem:[#allocation10 + $0x284] ss:$8 sps:$4 sm:$0xff]  }
 0xa94   : > { %6180 = vmatpush1.bf16.msra.mxu1 %v13177_v21  ;;  %6217 = vmatpush1.bf16.msra.mxu0 %v13180_v22  ;;  %v13249_v21 = vld [vmem:[#allocation10 + $0x290] ss:$8 sps:$4 sm:$0xff]   ;;  %v13263_v27 = vld [vmem:[#allocation10 + $0x394] ss:$8 sps:$4 sm:$0xff]  }
 0xa95   : > { %6181 = vmatprep.subr.bf16.mxu1 %v13185_v25  ;;  %6218 = vmatprep.subr.bf16.mxu0 %v13188_v26  ;;  %v14691_v32 = vpop.f32.mrf.mxu0  ;;  %v13252_v22 = vld [vmem:[#allocation10 + $0x3b0] ss:$8 sps:$4 sm:$0xff]   ;;  %v13255_v25 = vld [vmem:[#allocation10 + $0x280] ss:$8 sps:$4 sm:$0xff]  }
 0xa96   : > { %v13258_v26 = vld [vmem:[#allocation10 + $0x3a0] ss:$8 sps:$4 sm:$0xff]  }
 0xa97   : > { %v5254_v33 = vpop.f32.mrf.mxu0 }
 0xa98   : > { %6182 = vmatpush1.bf16.msra.mxu1 %v13183_v28  ;;  %6219 = vmatpush1.bf16.msra.mxu0 %v13186_v29  ;;  %v5310_v37 = vpack.c.bf16 %v5254_v33, %v5254_v33  ;;  %v13261_v28 = vld [vmem:[#allocation10 + $0x390] ss:$8 sps:$4 sm:$0xff]   ;;  %v5309_v29 = vpack.c.bf16 %v14691_v32, %v14691_v32 }
 0xa99   : > { %6183 = vmatprep.subr.bf16.mxu1 %v13191_v30  ;;  %6220 = vmatprep.subr.bf16.mxu0 %v13194_v31  ;;  %v5256_v40 = vpop.f32.mrf.mxu0  ;;  %v13266_v30 = vld [vmem:[#allocation10 + $0x384] ss:$8 sps:$4 sm:$0xff]   ;;  %v13264_v31 = vld [vmem:[#allocation10 + $0x380] ss:$8 sps:$4 sm:$0xff]  }
 0xa9a   : > { %6207 = vmatprep.mubr.bf16.mxu1 %v5310_v37 }
 0xa9b   : > { %v5257_v42 = vpop.f32.mrf.mxu0 }
 0xa9c   : > { %6184 = vmatpush1.bf16.msra.mxu1 %v13189_v34  ;;  %6221 = vmatpush1.bf16.msra.mxu0 %v13192_v35 }
 0xa9d   : > { %6185 = vmatprep.subr.bf16.mxu1 %v13197_v38  ;;  %6222 = vmatprep.subr.bf16.mxu0 %v13200_v39  ;;  %v14693_v47 = vpop.f32.mrf.mxu0 }
 0xa9e   : > { %v5311_v33 = vpack.c.bf16 %v14693_v47, %v14693_v47 }
 0xa9f   : > { %v5300_v48 = vpop.f32.mrf.mxu0 }
 0xaa0   : > { %6186 = vmatpush1.bf16.msra.mxu1 %v13195_v43  ;;  %6223 = vmatpush1.bf16.msra.mxu0 %v13198_v44  ;;  %v5312_v51 = vpack.c.bf16 %v5300_v48, %v5300_v48  ;;  %v5441_v43 = vld [vmem:[%s14874_s26] sm:$0x3]  ;;  %s1104_s26 = scalar_lea.vmem %s14438_s14, %s12130_s0 }
 0xaa1   : > { %6187 = vmatprep.subr.bf16.mxu1 %v13203_v45  ;;  %6224 = vmatprep.subr.bf16.mxu0 %v13206_v46  ;;  %v5302_v54 = vpop.f32.mrf.mxu0  ;;  %v5446_v44 = vrot.slane %v5441_v43, %v14610_v41  ;;  %v5450_v46 = vrot.slane %v5441_v43, %v14608_v36  ;;  %v13320_v43 = vld [vmem:[#allocation12 + $0x1f4] ss:$8 sps:$4 sm:$0xff]  }
 0xaa2   : > { %6248 = vmatprep.mubr.bf16.mxu0 %v5312_v51 }
 0xaa3   : > { %v5303_v55 = vpop.f32.mrf.mxu0 }
 0xaa4   : > { %6188 = vmatpush1.bf16.msra.mxu1 %v13201_v49  ;;  %6225 = vmatpush1.bf16.msra.mxu0 %v13204_v50 }
 0xaa5   : > { %6189 = vmatprep.subr.bf16.mxu1 %v13209_v52  ;;  %6226 = vmatprep.subr.bf16.mxu0 %v13212_v53 }
 0xaa8   : > { %6190 = vmatpush1.bf16.msra.mxu1 %v13207_v56  ;;  %6227 = vmatpush1.bf16.msra.mxu0 %v13210_v57 }
 0xaa9   : > { %6191 = vmatprep.subr.bf16.mxu1 %v13215_v59  ;;  %6228 = vmatprep.subr.bf16.mxu0 %v13218_v60 }
 0xaac   : > { %6192 = vmatpush2.bf16.msra.mxu1 %v13213_v61  ;;  %6229 = vmatpush1.bf16.msra.mxu0 %v13216_v62 }
 0xaad   : > { %6193 = vmatprep.subr.bf16.mxu1 %v13221_v63  ;;  %6230 = vmatprep.subr.bf16.mxu0 %v13224_v0 }
 0xab0   : > { %6194 = vmatpush2.bf16.msra.mxu1 %v13219_v1  ;;  %6231 = vmatpush1.bf16.msra.mxu0 %v13222_v2 }
 0xab1   : > { %6195 = vmatprep.subr.bf16.mxu1 %v13227_v3  ;;  %6232 = vmatprep.subr.bf16.mxu0 %v13230_v4  ;;  %v6261_v4 = vld [vmem:[%s14875_s28] sm:$0xf] }
 0xab4   : > { %6196 = vmatpush2.bf16.msra.mxu1 %v13225_v5  ;;  %6233 = vmatpush2.bf16.msra.mxu0 %v13228_v6  ;;  %v11613_v5 = vld [vmem:[%s14875_s28 + $0x4] sm:$0xf]  ;;  %v13269_v6 = vld [vmem:[#allocation12 + $0x74] ss:$8 sps:$4 sm:$0xff]  }
 0xab5   : > { %6197 = vmatprep.subr.bf16.mxu1 %v13233_v7  ;;  %6234 = vmatprep.subr.bf16.mxu0 %v13236_v8  ;;  %v13272_v7 = vld [vmem:[#allocation12 + $0x174] ss:$8 sps:$4 sm:$0xff]   ;;  %v11616_v8 = vld [vmem:[%s14875_s28 + $0x8] sm:$0xf] }
 0xab8   : > { %6198 = vmatpush2.bf16.msra.mxu1 %v13231_v9  ;;  %6235 = vmatpush2.bf16.msra.mxu0 %v13234_v10  ;;  %v11619_v9 = vld [vmem:[%s14875_s28 + $0xc] sm:$0xf]  ;;  %v13267_v10 = vld [vmem:[#allocation12 + $0x70] ss:$8 sps:$4 sm:$0xff]  }
 0xab9   : > { %6199 = vmatprep.subr.bf16.mxu1 %v13239_v11  ;;  %6236 = vmatprep.subr.bf16.mxu0 %v13242_v12  ;;  %v13270_v11 = vld [vmem:[#allocation12 + $0x170] ss:$8 sps:$4 sm:$0xff]   ;;  %v13275_v12 = vld [vmem:[#allocation12 + $0x64] ss:$8 sps:$4 sm:$0xff]  }
 0xabc   : > { %6200 = vmatpush2.bf16.msra.mxu1 %v13237_v13  ;;  %6237 = vmatpush2.bf16.msra.mxu0 %v13240_v14  ;;  %v13278_v13 = vld [vmem:[#allocation12 + $0x164] ss:$8 sps:$4 sm:$0xff]   ;;  %v13273_v14 = vld [vmem:[#allocation12 + $0x60] ss:$8 sps:$4 sm:$0xff]  }
 0xabd   : > { %6201 = vmatprep.subr.bf16.mxu1 %v13245_v15  ;;  %6238 = vmatprep.subr.bf16.mxu0 %v13248_v16  ;;  %v13276_v15 = vld [vmem:[#allocation12 + $0x160] ss:$8 sps:$4 sm:$0xff]   ;;  %v13281_v16 = vld [vmem:[#allocation12 + $0x54] ss:$8 sps:$4 sm:$0xff]  }
 0xac0   : > { %6202 = vmatpush2.bf16.msra.mxu1 %v13243_v17  ;;  %6239 = vmatpush2.bf16.msra.mxu0 %v13246_v18  ;;  %v13284_v17 = vld [vmem:[#allocation12 + $0x154] ss:$8 sps:$4 sm:$0xff]   ;;  %v13279_v18 = vld [vmem:[#allocation12 + $0x50] ss:$8 sps:$4 sm:$0xff]  }
 0xac1   : > { %6203 = vmatprep.subr.bf16.mxu1 %v13251_v19  ;;  %6240 = vmatprep.subr.bf16.mxu0 %v13254_v20  ;;  %v13282_v19 = vld [vmem:[#allocation12 + $0x150] ss:$8 sps:$4 sm:$0xff]   ;;  %v13287_v20 = vld [vmem:[#allocation12 + $0x44] ss:$8 sps:$4 sm:$0xff]  }
 0xac4   : > { %6204 = vmatpush2.bf16.msra.mxu1 %v13249_v21  ;;  %6241 = vmatpush2.bf16.msra.mxu0 %v13252_v22  ;;  %v13290_v21 = vld [vmem:[#allocation12 + $0x144] ss:$8 sps:$4 sm:$0xff]   ;;  %v13285_v22 = vld [vmem:[#allocation12 + $0x40] ss:$8 sps:$4 sm:$0xff]  }
 0xac5   : > { %6205 = vmatprep.subr.bf16.mxu1 %v13257_v23  ;;  %6242 = vmatprep.subr.bf16.mxu0 %v13260_v24  ;;  %v13288_v23 = vld [vmem:[#allocation12 + $0x140] ss:$8 sps:$4 sm:$0xff]   ;;  %v13293_v24 = vld [vmem:[#allocation12 + $0x34] ss:$8 sps:$4 sm:$0xff]  }
 0xac8   : > { %6206 = vmatpush2.bf16.msra.mxu1 %v13255_v25  ;;  %6243 = vmatpush2.bf16.msra.mxu0 %v13258_v26  ;;  %v13296_v25 = vld [vmem:[#allocation12 + $0x134] ss:$8 sps:$4 sm:$0xff]   ;;  %v13291_v26 = vld [vmem:[#allocation12 + $0x30] ss:$8 sps:$4 sm:$0xff]  }
 0xac9   : > { %6244 = vmatprep.subr.bf16.mxu0 %v13263_v27  ;;  %v13294_v27 = vld [vmem:[#allocation12 + $0x130] ss:$8 sps:$4 sm:$0xff]  }
 0xacb   : > { %6208 = vmatmul.mubr.bf16.vlgmr.msra.gmra.mxu1 %v5309_v29  ;;  %v13302_v29 = vld [vmem:[#allocation12 + $0x124] ss:$8 sps:$4 sm:$0xff]  }
 0xacc   : > { %6245 = vmatpush2.bf16.msra.mxu0 %v13261_v28  ;;  %6303 = vmatprep.mubr.bf16.mxu1 %v14274_v58  ;;  %v13299_v28 = vld [vmem:[#allocation12 + $0x24] ss:$8 sps:$4 sm:$0xff]  }
 0xacd   : > { %6246 = vmatprep.subr.bf16.mxu0 %v13266_v30  ;;  %v13297_v30 = vld [vmem:[#allocation12 + $0x20] ss:$8 sps:$4 sm:$0xff]  }
 0xad0   : > { %6247 = vmatpush2.bf16.msra.mxu0 %v13264_v31  ;;  %v13300_v31 = vld [vmem:[#allocation12 + $0x120] ss:$8 sps:$4 sm:$0xff]  }
 0xad3   : > { %6249 = vmatmul.mubr.bf16.vlgmr.msra.gmra.mxu0 %v5311_v33  ;;  %v13305_v33 = vld [vmem:[#allocation12 + $0x14] ss:$8 sps:$4 sm:$0xff]  }
 0xad4   : > { %6349 = vmatprep.mubr.bf16.mxu0 %v14274_v58 }
 0xb4b   : > { %v6127_v34 = vpop.f32.mrf.mxu1 }
 0xb4c   : > { %v6128_v49 = vadd.f32 %v6127_v34, %v5446_v44  ;;  %v13308_v34 = vld [vmem:[#allocation12 + $0x114] ss:$8 sps:$4 sm:$0xff]   ;;  %v13315_v44 = vld [vmem:[#allocation12 + $0xf0] ss:$8 sps:$4 sm:$0xff]  }
 0xb4d   : > { %v6129_v35 = vpop.f32.mrf.mxu1 }
 0xb4e   : > { %v6130_v50 = vadd.f32 %v6129_v35, %v5450_v46  ;;  %v13303_v35 = vld [vmem:[#allocation12 + $0x10] ss:$8 sps:$4 sm:$0xff]   ;;  %v13323_v46 = vld [vmem:[#allocation12 + $0xe4] ss:$8 sps:$4 sm:$0xff]  }
 0xb4f   : > { %v6131_v37 = vpop.f32.mrf.mxu1 }
 0xb50   : > { %v13306_v37 = vld [vmem:[#allocation12 + $0x110] ss:$8 sps:$4 sm:$0xff]  }
 0xb51   : > { %v6132_v32 = vpop.f32.mrf.mxu1 }
 0xb52   : > { %v13311_v32 = vld [vmem:[#allocation12 + $0x4] ss:$8 sps:$4 sm:$0xff]  }
 0xb53   : > { %v6168_v38 = vpop.f32.mrf.mxu0 }
 0xb54   : > { %v6169_v51 = vadd.f32 %v6168_v38, %v6128_v49  ;;  %v13314_v38 = vld [vmem:[#allocation12 + $0x104] ss:$8 sps:$4 sm:$0xff]   ;;  %v13321_v49 = vld [vmem:[#allocation12 + $0xe0] ss:$8 sps:$4 sm:$0xff]  }
 0xb55   : > { %v6170_v39 = vpop.f32.mrf.mxu0 }
 0xb56   : > { %v6171_v53 = vadd.f32 %v6170_v39, %v6130_v50  ;;  %v13309_v39 = vld [vmem:[#allocation12] ss:$8 sps:$4 sm:$0xff]   ;;  %v13329_v50 = vld [vmem:[#allocation12 + $0xd4] ss:$8 sps:$4 sm:$0xff]  }
 0xb57   : > { %v6172_v40 = vpop.f32.mrf.mxu0 }
 0xb58   : > { %v13312_v40 = vld [vmem:[#allocation12 + $0x100] ss:$8 sps:$4 sm:$0xff]  }
 0xb59   : > { %v6173_v42 = vpop.f32.mrf.mxu0 }
 0xb5a   : > { %v13317_v42 = vld [vmem:[#allocation12 + $0xf4] ss:$8 sps:$4 sm:$0xff]  }
 0xb8b   : > { %v6209_v45 = vpop.f32.mrf.mxu1 }
 0xb8c   : > { %v6210_v54 = vadd.f32 %v6209_v45, %v6169_v51  ;;  %v13318_v45 = vld [vmem:[#allocation12 + $0x1f0] ss:$8 sps:$4 sm:$0xff]   ;;  %v13332_v51 = vld [vmem:[#allocation12 + $0x1d4] ss:$8 sps:$4 sm:$0xff]  }
 0xb8d   : > { %v6211_v48 = vpop.f32.mrf.mxu1 }
 0xb8e   : > { %v6212_v56 = vadd.f32 %v6211_v48, %v6171_v53  ;;  %v13326_v48 = vld [vmem:[#allocation12 + $0x1e4] ss:$8 sps:$4 sm:$0xff]   ;;  %v13330_v53 = vld [vmem:[#allocation12 + $0x1d0] ss:$8 sps:$4 sm:$0xff]  }
 0xb8f   : > { %v6213_v47 = vpop.f32.mrf.mxu1 }
 0xb90   : > { %v13324_v47 = vld [vmem:[#allocation12 + $0x1e0] ss:$8 sps:$4 sm:$0xff]  }
 0xb91   : > { %v6214_v52 = vpop.f32.mrf.mxu1 }
 0xb92   : > { %v13327_v52 = vld [vmem:[#allocation12 + $0xd0] ss:$8 sps:$4 sm:$0xff]  }
 0xb93   : > { %v6250_v55 = vpop.f32.mrf.mxu0 }
 0xb94   : > { %v6251_v57 = vadd.f32 %v6250_v55, %v6210_v54  ;;  %v13335_v54 = vld [vmem:[#allocation12 + $0xc4] ss:$8 sps:$4 sm:$0xff]  }
 0xb95   : > { %v6252_v59 = vpop.f32.mrf.mxu0  ;;  %v13338_v55 = vld [vmem:[#allocation12 + $0x1c4] ss:$8 sps:$4 sm:$0xff]  }
 0xb96   : > { %v6257_v60 = vmax.f32 %v6251_v57, 0.0  ;;  %v6253_v61 = vadd.f32 %v6252_v59, %v6212_v56  ;;  %v13333_v56 = vld [vmem:[#allocation12 + $0xc0] ss:$8 sps:$4 sm:$0xff]   ;;  %v13341_v59 = vld [vmem:[#allocation12 + $0xb4] ss:$8 sps:$4 sm:$0xff]  }
 0xb97   : > { %v6254_v62 = vpop.f32.mrf.mxu0  ;;  %v13336_v57 = vld [vmem:[#allocation12 + $0x1c0] ss:$8 sps:$4 sm:$0xff]  }
 0xb98   : > { %v6259_v63 = vpack.c.bf16 %v6257_v60, %v6257_v60  ;;  %v6258_v0 = vmax.f32 %v6253_v61, 0.0  ;;  %v13344_v60 = vld [vmem:[#allocation12 + $0x1b4] ss:$8 sps:$4 sm:$0xff]   ;;  %v13339_v61 = vld [vmem:[#allocation12 + $0xb0] ss:$8 sps:$4 sm:$0xff]  }
 0xb99   : > { %v6255_v1 = vpop.f32.mrf.mxu0  ;;  %v13342_v62 = vld [vmem:[#allocation12 + $0x1b0] ss:$8 sps:$4 sm:$0xff]  }
 0xb9a   : > { %v6260_v2 = vpack.c.bf16 %v6258_v0, %v6258_v0  ;;  %v6266_v3 = vsel %vm2527_vm3, %v6259_v63, 0  ;;  %v13347_v63 = vld [vmem:[#allocation12 + $0xa4] ss:$8 sps:$4 sm:$0xff]   ;;  %v13345_v1 = vld [vmem:[#allocation12 + $0xa0] ss:$8 sps:$4 sm:$0xff]  }
 0xb9b   : > { %v13350_v0 = vld [vmem:[#allocation12 + $0x1a4] ss:$8 sps:$4 sm:$0xff]  }
 0xb9c   : > { %11611 = vmatprep.subr.msk.bf16.mxu1 %vm2527_vm3, %v6260_v2  ;;  %11614 = vmatprep.subr.msk.bf16.mxu0 %vm2527_vm3, %v6260_v2 }
 0xb9d   : > { %6286 = vmatpush1.bf16.msra.mxu1 %v6266_v3  ;;  %6332 = vmatpush1.bf16.msra.mxu0 %v6266_v3 }
 0xb9e   : > { %11617 = vmatprep.subr.msk.bf16.mxu1 %vm2527_vm3, %v6260_v2  ;;  %11620 = vmatprep.subr.msk.bf16.mxu0 %vm2527_vm3, %v6260_v2  ;;  %v13348_v2 = vld [vmem:[#allocation12 + $0x1a0] ss:$8 sps:$4 sm:$0xff]  }
 0xba0   : > { %11612 = vmatmul.mubr.msk.bf16.vlgmr.msra.gmra.mxu1 %vm2523_vm4, %v6261_v4  ;;  %11615 = vmatmul.mubr.msk.bf16.vlgmr.msra.gmra.mxu0 %vm2523_vm4, %v11613_v5  ;;  %v13356_v4 = vld [vmem:[#allocation12 + $0x194] ss:$8 sps:$4 sm:$0xff]   ;;  %v13351_v5 = vld [vmem:[#allocation12 + $0x90] ss:$8 sps:$4 sm:$0xff]  }
 0xba1   : > { %6378 = vmatpush1.bf16.msra.mxu1 %v6266_v3  ;;  %6424 = vmatpush1.bf16.msra.mxu0 %v6266_v3  ;;  %v13353_v3 = vld [vmem:[#allocation12 + $0x94] ss:$8 sps:$4 sm:$0xff]  }
 0xba2   : > { %6395 = vmatprep.mubr.bf16.mxu1 %v14274_v58  ;;  %6441 = vmatprep.mubr.bf16.mxu0 %v14274_v58 }
 0xba3   : > { %7238 = vmatprep.subr.bf16.mxu1 %v13269_v6  ;;  %7279 = vmatprep.subr.bf16.mxu0 %v13272_v7  ;;  %v13354_v6 = vld [vmem:[#allocation12 + $0x190] ss:$8 sps:$4 sm:$0xff]   ;;  %v13359_v7 = vld [vmem:[#allocation12 + $0x84] ss:$8 sps:$4 sm:$0xff]  }
 0xba8   : > { %11618 = vmatmul.mubr.msk.bf16.vlgmr.msra.gmra.mxu1 %vm2523_vm4, %v11616_v8  ;;  %11621 = vmatmul.mubr.msk.bf16.vlgmr.msra.gmra.mxu0 %vm2523_vm4, %v11619_v9  ;;  %v13362_v8 = vld [vmem:[#allocation12 + $0x184] ss:$8 sps:$4 sm:$0xff]   ;;  %v13357_v9 = vld [vmem:[#allocation12 + $0x80] ss:$8 sps:$4 sm:$0xff]  }
 0xba9   : > { %7239 = vmatpush1.bf16.msra.mxu1 %v13267_v10  ;;  %7280 = vmatpush1.bf16.msra.mxu0 %v13270_v11  ;;  %v13360_v10 = vld [vmem:[#allocation12 + $0x180] ss:$8 sps:$4 sm:$0xff]   ;;  %v13365_v11 = vld [vmem:[#allocation12 + $0x274] ss:$8 sps:$4 sm:$0xff]  }
 0xbaa   : > { %7240 = vmatprep.subr.bf16.mxu1 %v13275_v12  ;;  %7281 = vmatprep.subr.bf16.mxu0 %v13278_v13  ;;  %v13368_v12 = vld [vmem:[#allocation12 + $0x374] ss:$8 sps:$4 sm:$0xff]  }
 0xbad   : > { %7241 = vmatpush1.bf16.msra.mxu1 %v13273_v14  ;;  %7282 = vmatpush1.bf16.msra.mxu0 %v13276_v15 }
 0xbae   : > { %7242 = vmatprep.subr.bf16.mxu1 %v13281_v16  ;;  %7283 = vmatprep.subr.bf16.mxu0 %v13284_v17 }
 0xbb1   : > { %7243 = vmatpush1.bf16.msra.mxu1 %v13279_v18  ;;  %7284 = vmatpush1.bf16.msra.mxu0 %v13282_v19 }
 0xbb2   : > { %7244 = vmatprep.subr.bf16.mxu1 %v13287_v20  ;;  %7285 = vmatprep.subr.bf16.mxu0 %v13290_v21  ;;  %v13363_v20 = vld [vmem:[#allocation12 + $0x270] ss:$8 sps:$4 sm:$0xff]  }
 0xbb3   : > { %v13366_v21 = vld [vmem:[#allocation12 + $0x370] ss:$8 sps:$4 sm:$0xff]  }
 0xbb5   : > { %7245 = vmatpush1.bf16.msra.mxu1 %v13285_v22  ;;  %7286 = vmatpush1.bf16.msra.mxu0 %v13288_v23 }
 0xbb6   : > { %7246 = vmatprep.subr.bf16.mxu1 %v13293_v24  ;;  %7287 = vmatprep.subr.bf16.mxu0 %v13296_v25  ;;  %v13371_v25 = vld [vmem:[#allocation12 + $0x264] ss:$8 sps:$4 sm:$0xff]  }
 0xbb9   : > { %7247 = vmatpush1.bf16.msra.mxu1 %v13291_v26  ;;  %7288 = vmatpush1.bf16.msra.mxu0 %v13294_v27  ;;  %v13374_v26 = vld [vmem:[#allocation12 + $0x364] ss:$8 sps:$4 sm:$0xff]  }
 0xbba   : > { %7248 = vmatprep.subr.bf16.mxu1 %v13299_v28  ;;  %7289 = vmatprep.subr.bf16.mxu0 %v13302_v29  ;;  %v13369_v29 = vld [vmem:[#allocation12 + $0x260] ss:$8 sps:$4 sm:$0xff]  }
 0xbbd   : > { %7249 = vmatpush1.bf16.msra.mxu1 %v13297_v30  ;;  %7290 = vmatpush1.bf16.msra.mxu0 %v13300_v31  ;;  %v13372_v30 = vld [vmem:[#allocation12 + $0x360] ss:$8 sps:$4 sm:$0xff]   ;;  %v13377_v31 = vld [vmem:[#allocation12 + $0x254] ss:$8 sps:$4 sm:$0xff]  }
 0xbbe   : > { %7250 = vmatprep.subr.bf16.mxu1 %v13305_v33  ;;  %7291 = vmatprep.subr.bf16.mxu0 %v13308_v34  ;;  %v13380_v33 = vld [vmem:[#allocation12 + $0x354] ss:$8 sps:$4 sm:$0xff]  }
 0xbc1   : > { %7251 = vmatpush1.bf16.msra.mxu1 %v13303_v35  ;;  %7292 = vmatpush1.bf16.msra.mxu0 %v13306_v37 }
 0xbc2   : > { %7252 = vmatprep.subr.bf16.mxu1 %v13311_v32  ;;  %7293 = vmatprep.subr.bf16.mxu0 %v13314_v38  ;;  %v13375_v38 = vld [vmem:[#allocation12 + $0x250] ss:$8 sps:$4 sm:$0xff]  }
 0xbc5   : > { %7253 = vmatpush1.bf16.msra.mxu1 %v13309_v39  ;;  %7294 = vmatpush1.bf16.msra.mxu0 %v13312_v40  ;;  %v13378_v39 = vld [vmem:[#allocation12 + $0x350] ss:$8 sps:$4 sm:$0xff]  }
 0xbc6   : > { %7254 = vmatprep.subr.bf16.mxu1 %v13317_v42  ;;  %7295 = vmatprep.subr.bf16.mxu0 %v13320_v43  ;;  %v13383_v43 = vld [vmem:[#allocation12 + $0x244] ss:$8 sps:$4 sm:$0xff]  }
 0xbc9   : > { %7255 = vmatpush2.bf16.msra.mxu1 %v13315_v44  ;;  %7296 = vmatpush2.bf16.msra.mxu0 %v13318_v45  ;;  %v13386_v44 = vld [vmem:[#allocation12 + $0x344] ss:$8 sps:$4 sm:$0xff]  }
 0xbca   : > { %7256 = vmatprep.subr.bf16.mxu1 %v13323_v46  ;;  %7297 = vmatprep.subr.bf16.mxu0 %v13326_v48 }
 0xbcd   : > { %7257 = vmatpush2.bf16.msra.mxu1 %v13321_v49  ;;  %7298 = vmatpush2.bf16.msra.mxu0 %v13324_v47  ;;  %v13381_v47 = vld [vmem:[#allocation12 + $0x240] ss:$8 sps:$4 sm:$0xff]  }
 0xbce   : > { %7258 = vmatprep.subr.bf16.mxu1 %v13329_v50  ;;  %7299 = vmatprep.subr.bf16.mxu0 %v13332_v51  ;;  %v13384_v50 = vld [vmem:[#allocation12 + $0x340] ss:$8 sps:$4 sm:$0xff]   ;;  %v13389_v51 = vld [vmem:[#allocation12 + $0x234] ss:$8 sps:$4 sm:$0xff]  }
 0xbd1   : > { %7259 = vmatpush2.bf16.msra.mxu1 %v13327_v52  ;;  %7300 = vmatpush2.bf16.msra.mxu0 %v13330_v53  ;;  %v13392_v52 = vld [vmem:[#allocation12 + $0x334] ss:$8 sps:$4 sm:$0xff]   ;;  %v13387_v53 = vld [vmem:[#allocation12 + $0x230] ss:$8 sps:$4 sm:$0xff]  }
 0xbd2   : > { %7260 = vmatprep.subr.bf16.mxu1 %v13335_v54  ;;  %7301 = vmatprep.subr.bf16.mxu0 %v13338_v55  ;;  %v13390_v54 = vld [vmem:[#allocation12 + $0x330] ss:$8 sps:$4 sm:$0xff]   ;;  %v13395_v55 = vld [vmem:[#allocation12 + $0x224] ss:$8 sps:$4 sm:$0xff]  }
 0xbd5   : > { %7261 = vmatpush2.bf16.msra.mxu1 %v13333_v56  ;;  %7302 = vmatpush2.bf16.msra.mxu0 %v13336_v57  ;;  %v13398_v56 = vld [vmem:[#allocation12 + $0x324] ss:$8 sps:$4 sm:$0xff]   ;;  %v13393_v57 = vld [vmem:[#allocation12 + $0x220] ss:$8 sps:$4 sm:$0xff]  }
 0xbd6   : > { %7262 = vmatprep.subr.bf16.mxu1 %v13341_v59  ;;  %7303 = vmatprep.subr.bf16.mxu0 %v13344_v60  ;;  %v13396_v59 = vld [vmem:[#allocation12 + $0x320] ss:$8 sps:$4 sm:$0xff]   ;;  %v13401_v60 = vld [vmem:[#allocation12 + $0x214] ss:$8 sps:$4 sm:$0xff]  }
 0xbd9   : > { %7263 = vmatpush2.bf16.msra.mxu1 %v13339_v61  ;;  %7304 = vmatpush2.bf16.msra.mxu0 %v13342_v62  ;;  %v13404_v61 = vld [vmem:[#allocation12 + $0x314] ss:$8 sps:$4 sm:$0xff]   ;;  %v13399_v62 = vld [vmem:[#allocation12 + $0x210] ss:$8 sps:$4 sm:$0xff]  }
 0xbda   : > { %7264 = vmatprep.subr.bf16.mxu1 %v13347_v63  ;;  %7305 = vmatprep.subr.bf16.mxu0 %v13350_v0  ;;  %v13402_v63 = vld [vmem:[#allocation12 + $0x310] ss:$8 sps:$4 sm:$0xff]   ;;  %v13407_v0 = vld [vmem:[#allocation12 + $0x204] ss:$8 sps:$4 sm:$0xff]  }
 0xbdd   : > { %7265 = vmatpush2.bf16.msra.mxu1 %v13345_v1  ;;  %7306 = vmatpush2.bf16.msra.mxu0 %v13348_v2  ;;  %v13410_v1 = vld [vmem:[#allocation12 + $0x304] ss:$8 sps:$4 sm:$0xff]   ;;  %v13405_v2 = vld [vmem:[#allocation12 + $0x200] ss:$8 sps:$4 sm:$0xff]  }
 0xbde   : > { %7266 = vmatprep.subr.bf16.mxu1 %v13353_v3  ;;  %7307 = vmatprep.subr.bf16.mxu0 %v13356_v4  ;;  %v13408_v3 = vld [vmem:[#allocation12 + $0x300] ss:$8 sps:$4 sm:$0xff]   ;;  %v13413_v4 = vld [vmem:[#allocation12 + $0x2f4] ss:$8 sps:$4 sm:$0xff]  }
 0xbe1   : > { %7267 = vmatpush2.bf16.msra.mxu1 %v13351_v5  ;;  %7308 = vmatpush2.bf16.msra.mxu0 %v13354_v6  ;;  %v13416_v5 = vld [vmem:[#allocation12 + $0x3f4] ss:$8 sps:$4 sm:$0xff]   ;;  %v13411_v6 = vld [vmem:[#allocation12 + $0x2f0] ss:$8 sps:$4 sm:$0xff]  }
 0xbe2   : > { %7268 = vmatprep.subr.bf16.mxu1 %v13359_v7  ;;  %7309 = vmatprep.subr.bf16.mxu0 %v13362_v8  ;;  %v13414_v7 = vld [vmem:[#allocation12 + $0x3f0] ss:$8 sps:$4 sm:$0xff]   ;;  %v13419_v8 = vld [vmem:[#allocation12 + $0x2e4] ss:$8 sps:$4 sm:$0xff]  }
 0xbe5   : > { %7269 = vmatpush2.bf16.msra.mxu1 %v13357_v9  ;;  %7310 = vmatpush2.bf16.msra.mxu0 %v13360_v10  ;;  %v13422_v9 = vld [vmem:[#allocation12 + $0x3e4] ss:$8 sps:$4 sm:$0xff]   ;;  %v13417_v10 = vld [vmem:[#allocation12 + $0x2e0] ss:$8 sps:$4 sm:$0xff]  }
 0xbe6   : > { %7320 = vmatprep.subr.bf16.mxu1 %v13365_v11  ;;  %7361 = vmatprep.subr.bf16.mxu0 %v13368_v12  ;;  %v13420_v11 = vld [vmem:[#allocation12 + $0x3e0] ss:$8 sps:$4 sm:$0xff]   ;;  %v13425_v12 = vld [vmem:[#allocation12 + $0x2d4] ss:$8 sps:$4 sm:$0xff]  }
 0xc60   : > { %v6305_v13 = vpop.f32.mrf.mxu1  ;;  %v6351_v14 = vpop.f32.mrf.mxu0 }
 0xc61   : > { %v6452_v15 = vpack.c.bf16 %v6351_v14, %v6351_v14  ;;  %v6450_v22 = vpack.c.bf16 %v6305_v13, %v6305_v13  ;;  %v13428_v13 = vld [vmem:[#allocation12 + $0x3d4] ss:$8 sps:$4 sm:$0xff]   ;;  %v13423_v14 = vld [vmem:[#allocation12 + $0x2d0] ss:$8 sps:$4 sm:$0xff]  }
 0xc62   : > { %v6307_v16 = vpop.f32.mrf.mxu1  ;;  %v6353_v17 = vpop.f32.mrf.mxu0 }
 0xc63   : > { %v6451_v18 = vpack.c.bf16 %v6307_v16, %v6307_v16  ;;  %v6453_v19 = vpack.c.bf16 %v6353_v17, %v6353_v17  ;;  %v13431_v16 = vld [vmem:[#allocation12 + $0x2c4] ss:$8 sps:$4 sm:$0xff]  }
 0xc64   : > { %v6309_v23 = vpop.f32.mrf.mxu1  ;;  %v6355_v24 = vpop.f32.mrf.mxu0  ;;  %v13434_v17 = vld [vmem:[#allocation12 + $0x3c4] ss:$8 sps:$4 sm:$0xff]  }
 0xc65   : > { %7270 = vmatprep.mubr.bf16.mxu1 %v6451_v18  ;;  %7311 = vmatprep.mubr.bf16.mxu0 %v6453_v19  ;;  %v13429_v18 = vld [vmem:[#allocation12 + $0x2c0] ss:$8 sps:$4 sm:$0xff]   ;;  %v13438_v23 = vld [vmem:[#allocation12 + $0x3b0] ss:$8 sps:$4 sm:$0xff]   ;;  %v13443_v24 = vld [vmem:[#allocation12 + $0x2a4] ss:$8 sps:$4 sm:$0xff]  }
 0xc66   : > { %v6310_v27 = vpop.f32.mrf.mxu1  ;;  %v6356_v28 = vpop.f32.mrf.mxu0  ;;  %7271 = vmatmul.mubr.bf16.vlgmr.msra.gmra.mxu1 %v6450_v22  ;;  %7312 = vmatmul.mubr.bf16.vlgmr.msra.gmra.mxu0 %v6452_v15  ;;  %v13426_v15 = vld [vmem:[#allocation12 + $0x3d0] ss:$8 sps:$4 sm:$0xff]   ;;  %v13432_v19 = vld [vmem:[#allocation12 + $0x3c0] ss:$8 sps:$4 sm:$0xff]  }
 0xc67   : > { %7321 = vmatpush1.bf16.msra.mxu1 %v13363_v20  ;;  %7362 = vmatpush1.bf16.msra.mxu0 %v13366_v21  ;;  %v13437_v20 = vld [vmem:[#allocation12 + $0x2b4] ss:$8 sps:$4 sm:$0xff]   ;;  %v13435_v22 = vld [vmem:[#allocation12 + $0x2b0] ss:$8 sps:$4 sm:$0xff]   ;;  %v13444_v27 = vld [vmem:[#allocation12 + $0x3a0] ss:$8 sps:$4 sm:$0xff]  }
 0xc68   : > { %7322 = vmatprep.subr.bf16.mxu1 %v13371_v25  ;;  %7363 = vmatprep.subr.bf16.mxu0 %v13374_v26  ;;  %v14719_v34 = vpop.f32.mrf.mxu1  ;;  %v14721_v35 = vpop.f32.mrf.mxu0  ;;  %v13440_v21 = vld [vmem:[#allocation12 + $0x3b4] ss:$8 sps:$4 sm:$0xff]   ;;  %v13446_v25 = vld [vmem:[#allocation12 + $0x3a4] ss:$8 sps:$4 sm:$0xff]   ;;  %v13441_v26 = vld [vmem:[#allocation12 + $0x2a0] ss:$8 sps:$4 sm:$0xff]  }
 0xc69   : > { %v13449_v28 = vld [vmem:[#allocation12 + $0x294] ss:$8 sps:$4 sm:$0xff]  }
 0xc6a   : > { %v6399_v37 = vpop.f32.mrf.mxu1  ;;  %v6445_v32 = vpop.f32.mrf.mxu0 }
 0xc6b   : > { %7323 = vmatpush1.bf16.msra.mxu1 %v13369_v29  ;;  %7364 = vmatpush1.bf16.msra.mxu0 %v13372_v30  ;;  %v6455_v40 = vpack.c.bf16 %v6399_v37, %v6399_v37  ;;  %v6457_v42 = vpack.c.bf16 %v6445_v32, %v6445_v32  ;;  %v13452_v29 = vld [vmem:[#allocation12 + $0x394] ss:$8 sps:$4 sm:$0xff]   ;;  %v13447_v30 = vld [vmem:[#allocation12 + $0x290] ss:$8 sps:$4 sm:$0xff]   ;;  %v13458_v37 = vld [vmem:[#allocation12 + $0x384] ss:$8 sps:$4 sm:$0xff]  }
 0xc6c   : > { %7324 = vmatprep.subr.bf16.mxu1 %v13377_v31  ;;  %7365 = vmatprep.subr.bf16.mxu0 %v13380_v33  ;;  %v6401_v45 = vpop.f32.mrf.mxu1  ;;  %v6447_v46 = vpop.f32.mrf.mxu0  ;;  %v13450_v31 = vld [vmem:[#allocation12 + $0x390] ss:$8 sps:$4 sm:$0xff]   ;;  %v13455_v33 = vld [vmem:[#allocation12 + $0x284] ss:$8 sps:$4 sm:$0xff]   ;;  %v13453_v32 = vld [vmem:[#allocation12 + $0x280] ss:$8 sps:$4 sm:$0xff]  }
 0xc6d   : > { %7352 = vmatprep.mubr.bf16.mxu1 %v6455_v40  ;;  %7393 = vmatprep.mubr.bf16.mxu0 %v6457_v42  ;;  %v6454_v40 = vpack.c.bf16 %v14719_v34, %v14719_v34 }
 0xc6e   : > { %v6402_v48 = vpop.f32.mrf.mxu1  ;;  %v6448_v49 = vpop.f32.mrf.mxu0 }
 0xc6f   : > { %7325 = vmatpush1.bf16.msra.mxu1 %v13375_v38  ;;  %7366 = vmatpush1.bf16.msra.mxu0 %v13378_v39  ;;  %v13456_v38 = vld [vmem:[#allocation12 + $0x380] ss:$8 sps:$4 sm:$0xff]   ;;  %v6456_v39 = vpack.c.bf16 %v14721_v35, %v14721_v35 }
 0xc70   : > { %7326 = vmatprep.subr.bf16.mxu1 %v13383_v43  ;;  %7367 = vmatprep.subr.bf16.mxu0 %v13386_v44 }
 0xc73   : > { %7327 = vmatpush1.bf16.msra.mxu1 %v13381_v47  ;;  %7368 = vmatpush1.bf16.msra.mxu0 %v13384_v50  ;;  %v6586_v47 = vld [vmem:[%s14876_s16] sm:$0x3] }
 0xc74   : > { %7328 = vmatprep.subr.bf16.mxu1 %v13389_v51  ;;  %7369 = vmatprep.subr.bf16.mxu0 %v13392_v52  ;;  %v6591_v50 = vrot.slane %v6586_v47, %v14610_v41  ;;  %v6595_v51 = vrot.slane %v6586_v47, %v14608_v36  ;;  %v13512_v47 = vld [vmem:[#allocation13 + $0x1f4] ss:$8 sps:$4 sm:$0xff]  }
 0xc77   : > { %7329 = vmatpush1.bf16.msra.mxu1 %v13387_v53  ;;  %7370 = vmatpush1.bf16.msra.mxu0 %v13390_v54 }
 0xc78   : > { %7330 = vmatprep.subr.bf16.mxu1 %v13395_v55  ;;  %7371 = vmatprep.subr.bf16.mxu0 %v13398_v56 }
 0xc7b   : > { %7331 = vmatpush1.bf16.msra.mxu1 %v13393_v57  ;;  %7372 = vmatpush1.bf16.msra.mxu0 %v13396_v59 }
 0xc7c   : > { %7332 = vmatprep.subr.bf16.mxu1 %v13401_v60  ;;  %7373 = vmatprep.subr.bf16.mxu0 %v13404_v61 }
 0xc7f   : > { %7333 = vmatpush1.bf16.msra.mxu1 %v13399_v62  ;;  %7374 = vmatpush1.bf16.msra.mxu0 %v13402_v63 }
 0xc80   : > { %7334 = vmatprep.subr.bf16.mxu1 %v13407_v0  ;;  %7375 = vmatprep.subr.bf16.mxu0 %v13410_v1 }
 0xc83   : > { %7335 = vmatpush1.bf16.msra.mxu1 %v13405_v2  ;;  %7376 = vmatpush1.bf16.msra.mxu0 %v13408_v3 }
 0xc84   : > { %7336 = vmatprep.subr.bf16.mxu1 %v13413_v4  ;;  %7377 = vmatprep.subr.bf16.mxu0 %v13416_v5 }
 0xc87   : > { %7337 = vmatpush2.bf16.msra.mxu1 %v13411_v6  ;;  %7378 = vmatpush2.bf16.msra.mxu0 %v13414_v7 }
 0xc88   : > { %7338 = vmatprep.subr.bf16.mxu1 %v13419_v8  ;;  %7379 = vmatprep.subr.bf16.mxu0 %v13422_v9  ;;  %v7406_v9 = vld [vmem:[%s14877_s7] sm:$0xf] }
 0xc8b   : > { %7339 = vmatpush2.bf16.msra.mxu1 %v13417_v10  ;;  %7380 = vmatpush2.bf16.msra.mxu0 %v13420_v11  ;;  %v11752_v10 = vld [vmem:[%s14877_s7 + $0x4] sm:$0xf]  ;;  %v13461_v11 = vld [vmem:[#allocation13 + $0x74] ss:$8 sps:$4 sm:$0xff]  }
 0xc8c   : > { %7340 = vmatprep.subr.bf16.mxu1 %v13425_v12  ;;  %7381 = vmatprep.subr.bf16.mxu0 %v13428_v13  ;;  %v13464_v12 = vld [vmem:[#allocation13 + $0x174] ss:$8 sps:$4 sm:$0xff]   ;;  %v11755_v13 = vld [vmem:[%s14877_s7 + $0x8] sm:$0xf] }
 0xc8f   : > { %7341 = vmatpush2.bf16.msra.mxu1 %v13423_v14  ;;  %7382 = vmatpush2.bf16.msra.mxu0 %v13426_v15  ;;  %v11758_v14 = vld [vmem:[%s14877_s7 + $0xc] sm:$0xf]  ;;  %v13459_v15 = vld [vmem:[#allocation13 + $0x70] ss:$8 sps:$4 sm:$0xff]  }
 0xc90   : > { %7342 = vmatprep.subr.bf16.mxu1 %v13431_v16  ;;  %7383 = vmatprep.subr.bf16.mxu0 %v13434_v17  ;;  %v13462_v16 = vld [vmem:[#allocation13 + $0x170] ss:$8 sps:$4 sm:$0xff]   ;;  %v13467_v17 = vld [vmem:[#allocation13 + $0x64] ss:$8 sps:$4 sm:$0xff]  }
 0xc93   : > { %7343 = vmatpush2.bf16.msra.mxu1 %v13429_v18  ;;  %7384 = vmatpush2.bf16.msra.mxu0 %v13432_v19  ;;  %v13470_v18 = vld [vmem:[#allocation13 + $0x164] ss:$8 sps:$4 sm:$0xff]   ;;  %v13465_v19 = vld [vmem:[#allocation13 + $0x60] ss:$8 sps:$4 sm:$0xff]  }
 0xc94   : > { %7344 = vmatprep.subr.bf16.mxu1 %v13437_v20  ;;  %7385 = vmatprep.subr.bf16.mxu0 %v13440_v21  ;;  %v13468_v20 = vld [vmem:[#allocation13 + $0x160] ss:$8 sps:$4 sm:$0xff]   ;;  %v13473_v21 = vld [vmem:[#allocation13 + $0x54] ss:$8 sps:$4 sm:$0xff]  }
 0xc97   : > { %7345 = vmatpush2.bf16.msra.mxu1 %v13435_v22  ;;  %7386 = vmatpush2.bf16.msra.mxu0 %v13438_v23  ;;  %v13476_v22 = vld [vmem:[#allocation13 + $0x154] ss:$8 sps:$4 sm:$0xff]   ;;  %v13471_v23 = vld [vmem:[#allocation13 + $0x50] ss:$8 sps:$4 sm:$0xff]  }
 0xc98   : > { %7346 = vmatprep.subr.bf16.mxu1 %v13443_v24  ;;  %7387 = vmatprep.subr.bf16.mxu0 %v13446_v25  ;;  %v13474_v24 = vld [vmem:[#allocation13 + $0x150] ss:$8 sps:$4 sm:$0xff]   ;;  %v13479_v25 = vld [vmem:[#allocation13 + $0x44] ss:$8 sps:$4 sm:$0xff]  }
 0xc9b   : > { %7347 = vmatpush2.bf16.msra.mxu1 %v13441_v26  ;;  %7388 = vmatpush2.bf16.msra.mxu0 %v13444_v27  ;;  %v13482_v26 = vld [vmem:[#allocation13 + $0x144] ss:$8 sps:$4 sm:$0xff]   ;;  %v13477_v27 = vld [vmem:[#allocation13 + $0x40] ss:$8 sps:$4 sm:$0xff]  }
 0xc9c   : > { %7348 = vmatprep.subr.bf16.mxu1 %v13449_v28  ;;  %7389 = vmatprep.subr.bf16.mxu0 %v13452_v29  ;;  %v13480_v28 = vld [vmem:[#allocation13 + $0x140] ss:$8 sps:$4 sm:$0xff]   ;;  %v13485_v29 = vld [vmem:[#allocation13 + $0x34] ss:$8 sps:$4 sm:$0xff]  }
 0xc9f   : > { %7349 = vmatpush2.bf16.msra.mxu1 %v13447_v30  ;;  %7390 = vmatpush2.bf16.msra.mxu0 %v13450_v31  ;;  %v13488_v30 = vld [vmem:[#allocation13 + $0x134] ss:$8 sps:$4 sm:$0xff]   ;;  %v13483_v31 = vld [vmem:[#allocation13 + $0x30] ss:$8 sps:$4 sm:$0xff]  }
 0xca0   : > { %7350 = vmatprep.subr.bf16.mxu1 %v13455_v33  ;;  %7391 = vmatprep.subr.bf16.mxu0 %v13458_v37  ;;  %v13486_v33 = vld [vmem:[#allocation13 + $0x130] ss:$8 sps:$4 sm:$0xff]   ;;  %v13491_v37 = vld [vmem:[#allocation13 + $0x24] ss:$8 sps:$4 sm:$0xff]  }
 0xca3   : > { %7351 = vmatpush2.bf16.msra.mxu1 %v13453_v32  ;;  %7392 = vmatpush2.bf16.msra.mxu0 %v13456_v38  ;;  %v13494_v32 = vld [vmem:[#allocation13 + $0x124] ss:$8 sps:$4 sm:$0xff]   ;;  %v13489_v38 = vld [vmem:[#allocation13 + $0x20] ss:$8 sps:$4 sm:$0xff]  }
 0xca6   : > { %7353 = vmatmul.mubr.bf16.vlgmr.msra.gmra.mxu1 %v6454_v40  ;;  %7394 = vmatmul.mubr.bf16.vlgmr.msra.gmra.mxu0 %v6456_v39  ;;  %v13492_v39 = vld [vmem:[#allocation13 + $0x120] ss:$8 sps:$4 sm:$0xff]   ;;  %v13497_v40 = vld [vmem:[#allocation13 + $0x14] ss:$8 sps:$4 sm:$0xff]  }
 0xca7   : > { %7448 = vmatprep.mubr.bf16.mxu1 %v14274_v58  ;;  %7494 = vmatprep.mubr.bf16.mxu0 %v14274_v58 }
 0xd26   : > { %v7272_v42 = vpop.f32.mrf.mxu1  ;;  %v7313_v43 = vpop.f32.mrf.mxu0 }
 0xd27   : > { %v7273_v34 = vadd.f32 %v7272_v42, %v6591_v50  ;;  %v13500_v42 = vld [vmem:[#allocation13 + $0x114] ss:$8 sps:$4 sm:$0xff]   ;;  %v13507_v50 = vld [vmem:[#allocation13 + $0xf0] ss:$8 sps:$4 sm:$0xff]  }
 0xd28   : > { %v7274_v44 = vpop.f32.mrf.mxu1  ;;  %v7315_v45 = vpop.f32.mrf.mxu0 }
 0xd29   : > { %v7275_v52 = vadd.f32 %v7274_v44, %v6595_v51  ;;  %v7314_v53 = vadd.f32 %v7313_v43, %v7273_v34  ;;  %v13495_v43 = vld [vmem:[#allocation13 + $0x10] ss:$8 sps:$4 sm:$0xff]   ;;  %v13515_v34 = vld [vmem:[#allocation13 + $0xe4] ss:$8 sps:$4 sm:$0xff]  }
 0xd2a   : > { %v7276_v46 = vpop.f32.mrf.mxu1  ;;  %v7317_v48 = vpop.f32.mrf.mxu0  ;;  %v13498_v44 = vld [vmem:[#allocation13 + $0x110] ss:$8 sps:$4 sm:$0xff]  }
 0xd2b   : > { %v7316_v56 = vadd.f32 %v7315_v45, %v7275_v52  ;;  %v13503_v45 = vld [vmem:[#allocation13 + $0x4] ss:$8 sps:$4 sm:$0xff]   ;;  %v13501_v48 = vld [vmem:[#allocation13] ss:$8 sps:$4 sm:$0xff]   ;;  %v13510_v51 = vld [vmem:[#allocation13 + $0x1f0] ss:$8 sps:$4 sm:$0xff]  }
 0xd2c   : > { %v7277_v49 = vpop.f32.mrf.mxu1  ;;  %v7318_v35 = vpop.f32.mrf.mxu0  ;;  %v13506_v46 = vld [vmem:[#allocation13 + $0x104] ss:$8 sps:$4 sm:$0xff]  }
 0xd2d   : > { %v13504_v49 = vld [vmem:[#allocation13 + $0x100] ss:$8 sps:$4 sm:$0xff]   ;;  %v13509_v35 = vld [vmem:[#allocation13 + $0xf4] ss:$8 sps:$4 sm:$0xff]   ;;  %v13518_v52 = vld [vmem:[#allocation13 + $0x1e4] ss:$8 sps:$4 sm:$0xff]  }
 0xd66   : > { %v7354_v54 = vpop.f32.mrf.mxu1  ;;  %v7395_v55 = vpop.f32.mrf.mxu0 }
 0xd67   : > { %v7355_v57 = vadd.f32 %v7354_v54, %v7314_v53  ;;  %v13513_v53 = vld [vmem:[#allocation13 + $0xe0] ss:$8 sps:$4 sm:$0xff]  }
 0xd68   : > { %v7356_v59 = vpop.f32.mrf.mxu1  ;;  %v7397_v60 = vpop.f32.mrf.mxu0  ;;  %v13516_v54 = vld [vmem:[#allocation13 + $0x1e0] ss:$8 sps:$4 sm:$0xff]  }
 0xd69   : > { %v7396_v61 = vadd.f32 %v7395_v55, %v7355_v57  ;;  %v7357_v62 = vadd.f32 %v7356_v59, %v7316_v56  ;;  %v13521_v55 = vld [vmem:[#allocation13 + $0xd4] ss:$8 sps:$4 sm:$0xff]   ;;  %v13519_v57 = vld [vmem:[#allocation13 + $0xd0] ss:$8 sps:$4 sm:$0xff]  }
 0xd6a   : > { %v7358_v63 = vpop.f32.mrf.mxu1  ;;  %v7399_v0 = vpop.f32.mrf.mxu0  ;;  %v13524_v56 = vld [vmem:[#allocation13 + $0x1d4] ss:$8 sps:$4 sm:$0xff]   ;;  %v13522_v59 = vld [vmem:[#allocation13 + $0x1d0] ss:$8 sps:$4 sm:$0xff]  }
 0xd6b   : > { %v7402_v1 = vmax.f32 %v7396_v61, 0.0  ;;  %v7398_v2 = vadd.f32 %v7397_v60, %v7357_v62  ;;  %v13527_v60 = vld [vmem:[#allocation13 + $0xc4] ss:$8 sps:$4 sm:$0xff]   ;;  %v13525_v62 = vld [vmem:[#allocation13 + $0xc0] ss:$8 sps:$4 sm:$0xff]  }
 0xd6c   : > { %v7359_v3 = vpop.f32.mrf.mxu1  ;;  %v7400_v4 = vpop.f32.mrf.mxu0  ;;  %v13530_v61 = vld [vmem:[#allocation13 + $0x1c4] ss:$8 sps:$4 sm:$0xff]   ;;  %v13528_v63 = vld [vmem:[#allocation13 + $0x1c0] ss:$8 sps:$4 sm:$0xff]   ;;  %v13533_v0 = vld [vmem:[#allocation13 + $0xb4] ss:$8 sps:$4 sm:$0xff]  }
 0xd6d   : > { %v7404_v5 = vpack.c.bf16 %v7402_v1, %v7402_v1  ;;  %v7403_v6 = vmax.f32 %v7398_v2, 0.0  ;;  %v13536_v1 = vld [vmem:[#allocation13 + $0x1b4] ss:$8 sps:$4 sm:$0xff]   ;;  %v13531_v2 = vld [vmem:[#allocation13 + $0xb0] ss:$8 sps:$4 sm:$0xff]  }
 0xd6e   : > { %v13534_v3 = vld [vmem:[#allocation13 + $0x1b0] ss:$8 sps:$4 sm:$0xff]   ;;  %v13539_v4 = vld [vmem:[#allocation13 + $0xa4] ss:$8 sps:$4 sm:$0xff]  }
 0xd6f   : > { %v7405_v7 = vpack.c.bf16 %v7403_v6, %v7403_v6  ;;  %v7411_v8 = vsel %vm2527_vm3, %v7404_v5, 0  ;;  %v13542_v5 = vld [vmem:[#allocation13 + $0x1a4] ss:$8 sps:$4 sm:$0xff]   ;;  %v13537_v6 = vld [vmem:[#allocation13 + $0xa0] ss:$8 sps:$4 sm:$0xff]  }
 0xd71   : > { %11750 = vmatprep.subr.msk.bf16.mxu1 %vm2527_vm3, %v7405_v7  ;;  %11753 = vmatprep.subr.msk.bf16.mxu0 %vm2527_vm3, %v7405_v7 }
 0xd72   : > { %7431 = vmatpush1.bf16.msra.mxu1 %v7411_v8  ;;  %7477 = vmatpush1.bf16.msra.mxu0 %v7411_v8 }
 0xd73   : > { %11756 = vmatprep.subr.msk.bf16.mxu1 %vm2527_vm3, %v7405_v7  ;;  %11759 = vmatprep.subr.msk.bf16.mxu0 %vm2527_vm3, %v7405_v7  ;;  %v13540_v7 = vld [vmem:[#allocation13 + $0x1a0] ss:$8 sps:$4 sm:$0xff]  }
 0xd75   : > { %11751 = vmatmul.mubr.msk.bf16.vlgmr.msra.gmra.mxu1 %vm2523_vm4, %v7406_v9  ;;  %11754 = vmatmul.mubr.msk.bf16.vlgmr.msra.gmra.mxu0 %vm2523_vm4, %v11752_v10  ;;  %v13548_v9 = vld [vmem:[#allocation13 + $0x194] ss:$8 sps:$4 sm:$0xff]   ;;  %v13543_v10 = vld [vmem:[#allocation13 + $0x90] ss:$8 sps:$4 sm:$0xff]  }
 0xd76   : > { %7523 = vmatpush1.bf16.msra.mxu1 %v7411_v8  ;;  %7569 = vmatpush1.bf16.msra.mxu0 %v7411_v8  ;;  %v13545_v8 = vld [vmem:[#allocation13 + $0x94] ss:$8 sps:$4 sm:$0xff]  }
 0xd77   : > { %7540 = vmatprep.mubr.bf16.mxu1 %v14274_v58  ;;  %7586 = vmatprep.mubr.bf16.mxu0 %v14274_v58 }
 0xd78   : > { %8383 = vmatprep.subr.bf16.mxu1 %v13461_v11  ;;  %8424 = vmatprep.subr.bf16.mxu0 %v13464_v12  ;;  %v13546_v11 = vld [vmem:[#allocation13 + $0x190] ss:$8 sps:$4 sm:$0xff]   ;;  %v13551_v12 = vld [vmem:[#allocation13 + $0x84] ss:$8 sps:$4 sm:$0xff]  }
 0xd7d   : > { %11757 = vmatmul.mubr.msk.bf16.vlgmr.msra.gmra.mxu1 %vm2523_vm4, %v11755_v13  ;;  %11760 = vmatmul.mubr.msk.bf16.vlgmr.msra.gmra.mxu0 %vm2523_vm4, %v11758_v14  ;;  %v13554_v13 = vld [vmem:[#allocation13 + $0x184] ss:$8 sps:$4 sm:$0xff]   ;;  %v13549_v14 = vld [vmem:[#allocation13 + $0x80] ss:$8 sps:$4 sm:$0xff]  }
 0xd7e   : > { %8384 = vmatpush1.bf16.msra.mxu1 %v13459_v15  ;;  %8425 = vmatpush1.bf16.msra.mxu0 %v13462_v16  ;;  %v13552_v15 = vld [vmem:[#allocation13 + $0x180] ss:$8 sps:$4 sm:$0xff]   ;;  %v13557_v16 = vld [vmem:[#allocation13 + $0x274] ss:$8 sps:$4 sm:$0xff]  }
 0xd7f   : > { %8385 = vmatprep.subr.bf16.mxu1 %v13467_v17  ;;  %8426 = vmatprep.subr.bf16.mxu0 %v13470_v18  ;;  %v13560_v17 = vld [vmem:[#allocation13 + $0x374] ss:$8 sps:$4 sm:$0xff]  }
 0xd82   : > { %8386 = vmatpush1.bf16.msra.mxu1 %v13465_v19  ;;  %8427 = vmatpush1.bf16.msra.mxu0 %v13468_v20 }
 0xd83   : > { %8387 = vmatprep.subr.bf16.mxu1 %v13473_v21  ;;  %8428 = vmatprep.subr.bf16.mxu0 %v13476_v22 }
 0xd86   : > { %8388 = vmatpush1.bf16.msra.mxu1 %v13471_v23  ;;  %8429 = vmatpush1.bf16.msra.mxu0 %v13474_v24 }
 0xd87   : > { %8389 = vmatprep.subr.bf16.mxu1 %v13479_v25  ;;  %8430 = vmatprep.subr.bf16.mxu0 %v13482_v26  ;;  %v13555_v25 = vld [vmem:[#allocation13 + $0x270] ss:$8 sps:$4 sm:$0xff]  }
 0xd88   : > { %v13558_v26 = vld [vmem:[#allocation13 + $0x370] ss:$8 sps:$4 sm:$0xff]  }
 0xd8a   : > { %8390 = vmatpush1.bf16.msra.mxu1 %v13477_v27  ;;  %8431 = vmatpush1.bf16.msra.mxu0 %v13480_v28 }
 0xd8b   : > { %8391 = vmatprep.subr.bf16.mxu1 %v13485_v29  ;;  %8432 = vmatprep.subr.bf16.mxu0 %v13488_v30  ;;  %v13563_v30 = vld [vmem:[#allocation13 + $0x264] ss:$8 sps:$4 sm:$0xff]  }
 0xd8e   : > { %8392 = vmatpush1.bf16.msra.mxu1 %v13483_v31  ;;  %8433 = vmatpush1.bf16.msra.mxu0 %v13486_v33  ;;  %v13566_v31 = vld [vmem:[#allocation13 + $0x364] ss:$8 sps:$4 sm:$0xff]  }
 0xd8f   : > { %8393 = vmatprep.subr.bf16.mxu1 %v13491_v37  ;;  %8434 = vmatprep.subr.bf16.mxu0 %v13494_v32  ;;  %v13561_v32 = vld [vmem:[#allocation13 + $0x260] ss:$8 sps:$4 sm:$0xff]  }
 0xd92   : > { %8394 = vmatpush1.bf16.msra.mxu1 %v13489_v38  ;;  %8435 = vmatpush1.bf16.msra.mxu0 %v13492_v39  ;;  %v13564_v38 = vld [vmem:[#allocation13 + $0x360] ss:$8 sps:$4 sm:$0xff]   ;;  %v13569_v39 = vld [vmem:[#allocation13 + $0x254] ss:$8 sps:$4 sm:$0xff]  }
 0xd93   : > { %8395 = vmatprep.subr.bf16.mxu1 %v13497_v40  ;;  %8436 = vmatprep.subr.bf16.mxu0 %v13500_v42  ;;  %v13572_v40 = vld [vmem:[#allocation13 + $0x354] ss:$8 sps:$4 sm:$0xff]  }
 0xd96   : > { %8396 = vmatpush1.bf16.msra.mxu1 %v13495_v43  ;;  %8437 = vmatpush1.bf16.msra.mxu0 %v13498_v44 }
 0xd97   : > { %8397 = vmatprep.subr.bf16.mxu1 %v13503_v45  ;;  %8438 = vmatprep.subr.bf16.mxu0 %v13506_v46  ;;  %v13567_v46 = vld [vmem:[#allocation13 + $0x250] ss:$8 sps:$4 sm:$0xff]  }
 0xd9a   : > { %8398 = vmatpush1.bf16.msra.mxu1 %v13501_v48  ;;  %8439 = vmatpush1.bf16.msra.mxu0 %v13504_v49  ;;  %v13570_v48 = vld [vmem:[#allocation13 + $0x350] ss:$8 sps:$4 sm:$0xff]  }
 0xd9b   : > { %8399 = vmatprep.subr.bf16.mxu1 %v13509_v35  ;;  %8440 = vmatprep.subr.bf16.mxu0 %v13512_v47  ;;  %v13575_v47 = vld [vmem:[#allocation13 + $0x244] ss:$8 sps:$4 sm:$0xff]  }
 0xd9e   : > { %8400 = vmatpush2.bf16.msra.mxu1 %v13507_v50  ;;  %8441 = vmatpush2.bf16.msra.mxu0 %v13510_v51  ;;  %v13578_v50 = vld [vmem:[#allocation13 + $0x344] ss:$8 sps:$4 sm:$0xff]  }
 0xd9f   : > { %8401 = vmatprep.subr.bf16.mxu1 %v13515_v34  ;;  %8442 = vmatprep.subr.bf16.mxu0 %v13518_v52 }
 0xda2   : > { %8402 = vmatpush2.bf16.msra.mxu1 %v13513_v53  ;;  %8443 = vmatpush2.bf16.msra.mxu0 %v13516_v54  ;;  %v13573_v54 = vld [vmem:[#allocation13 + $0x240] ss:$8 sps:$4 sm:$0xff]  }
 0xda3   : > { %8403 = vmatprep.subr.bf16.mxu1 %v13521_v55  ;;  %8444 = vmatprep.subr.bf16.mxu0 %v13524_v56  ;;  %v13576_v55 = vld [vmem:[#allocation13 + $0x340] ss:$8 sps:$4 sm:$0xff]   ;;  %v13581_v56 = vld [vmem:[#allocation13 + $0x234] ss:$8 sps:$4 sm:$0xff]  }
 0xda6   : > { %8404 = vmatpush2.bf16.msra.mxu1 %v13519_v57  ;;  %8445 = vmatpush2.bf16.msra.mxu0 %v13522_v59  ;;  %v13584_v57 = vld [vmem:[#allocation13 + $0x334] ss:$8 sps:$4 sm:$0xff]   ;;  %v13579_v59 = vld [vmem:[#allocation13 + $0x230] ss:$8 sps:$4 sm:$0xff]  }
 0xda7   : > { %8405 = vmatprep.subr.bf16.mxu1 %v13527_v60  ;;  %8446 = vmatprep.subr.bf16.mxu0 %v13530_v61  ;;  %v13582_v60 = vld [vmem:[#allocation13 + $0x330] ss:$8 sps:$4 sm:$0xff]   ;;  %v13587_v61 = vld [vmem:[#allocation13 + $0x224] ss:$8 sps:$4 sm:$0xff]  }
 0xdaa   : > { %8406 = vmatpush2.bf16.msra.mxu1 %v13525_v62  ;;  %8447 = vmatpush2.bf16.msra.mxu0 %v13528_v63  ;;  %v13590_v62 = vld [vmem:[#allocation13 + $0x324] ss:$8 sps:$4 sm:$0xff]   ;;  %v13585_v63 = vld [vmem:[#allocation13 + $0x220] ss:$8 sps:$4 sm:$0xff]  }
 0xdab   : > { %8407 = vmatprep.subr.bf16.mxu1 %v13533_v0  ;;  %8448 = vmatprep.subr.bf16.mxu0 %v13536_v1  ;;  %v13588_v0 = vld [vmem:[#allocation13 + $0x320] ss:$8 sps:$4 sm:$0xff]   ;;  %v13593_v1 = vld [vmem:[#allocation13 + $0x214] ss:$8 sps:$4 sm:$0xff]  }
 0xdae   : > { %8408 = vmatpush2.bf16.msra.mxu1 %v13531_v2  ;;  %8449 = vmatpush2.bf16.msra.mxu0 %v13534_v3  ;;  %v13596_v2 = vld [vmem:[#allocation13 + $0x314] ss:$8 sps:$4 sm:$0xff]   ;;  %v13591_v3 = vld [vmem:[#allocation13 + $0x210] ss:$8 sps:$4 sm:$0xff]  }
 0xdaf   : > { %8409 = vmatprep.subr.bf16.mxu1 %v13539_v4  ;;  %8450 = vmatprep.subr.bf16.mxu0 %v13542_v5  ;;  %v13594_v4 = vld [vmem:[#allocation13 + $0x310] ss:$8 sps:$4 sm:$0xff]   ;;  %v13599_v5 = vld [vmem:[#allocation13 + $0x204] ss:$8 sps:$4 sm:$0xff]  }
 0xdb2   : > { %8410 = vmatpush2.bf16.msra.mxu1 %v13537_v6  ;;  %8451 = vmatpush2.bf16.msra.mxu0 %v13540_v7  ;;  %v13602_v6 = vld [vmem:[#allocation13 + $0x304] ss:$8 sps:$4 sm:$0xff]   ;;  %v13597_v7 = vld [vmem:[#allocation13 + $0x200] ss:$8 sps:$4 sm:$0xff]  }
 0xdb3   : > { %8411 = vmatprep.subr.bf16.mxu1 %v13545_v8  ;;  %8452 = vmatprep.subr.bf16.mxu0 %v13548_v9  ;;  %v13600_v8 = vld [vmem:[#allocation13 + $0x300] ss:$8 sps:$4 sm:$0xff]   ;;  %v13605_v9 = vld [vmem:[#allocation13 + $0x2f4] ss:$8 sps:$4 sm:$0xff]  }
 0xdb6   : > { %8412 = vmatpush2.bf16.msra.mxu1 %v13543_v10  ;;  %8453 = vmatpush2.bf16.msra.mxu0 %v13546_v11  ;;  %v13608_v10 = vld [vmem:[#allocation13 + $0x3f4] ss:$8 sps:$4 sm:$0xff]   ;;  %v13603_v11 = vld [vmem:[#allocation13 + $0x2f0] ss:$8 sps:$4 sm:$0xff]  }
 0xdb7   : > { %8413 = vmatprep.subr.bf16.mxu1 %v13551_v12  ;;  %8454 = vmatprep.subr.bf16.mxu0 %v13554_v13  ;;  %v13606_v12 = vld [vmem:[#allocation13 + $0x3f0] ss:$8 sps:$4 sm:$0xff]   ;;  %v13611_v13 = vld [vmem:[#allocation13 + $0x2e4] ss:$8 sps:$4 sm:$0xff]  }
 0xdba   : > { %8414 = vmatpush2.bf16.msra.mxu1 %v13549_v14  ;;  %8455 = vmatpush2.bf16.msra.mxu0 %v13552_v15  ;;  %v13614_v14 = vld [vmem:[#allocation13 + $0x3e4] ss:$8 sps:$4 sm:$0xff]   ;;  %v13609_v15 = vld [vmem:[#allocation13 + $0x2e0] ss:$8 sps:$4 sm:$0xff]  }
 0xdbb   : > { %8465 = vmatprep.subr.bf16.mxu1 %v13557_v16  ;;  %8506 = vmatprep.subr.bf16.mxu0 %v13560_v17  ;;  %v13612_v16 = vld [vmem:[#allocation13 + $0x3e0] ss:$8 sps:$4 sm:$0xff]   ;;  %v13617_v17 = vld [vmem:[#allocation13 + $0x2d4] ss:$8 sps:$4 sm:$0xff]  }
 0xe35   : > { %v7450_v18 = vpop.f32.mrf.mxu1  ;;  %v7496_v19 = vpop.f32.mrf.mxu0 }
 0xe36   : > { %v7597_v20 = vpack.c.bf16 %v7496_v19, %v7496_v19  ;;  %v7595_v27 = vpack.c.bf16 %v7450_v18, %v7450_v18  ;;  %v13620_v18 = vld [vmem:[#allocation13 + $0x3d4] ss:$8 sps:$4 sm:$0xff]   ;;  %v13615_v19 = vld [vmem:[#allocation13 + $0x2d0] ss:$8 sps:$4 sm:$0xff]  }
 0xe37   : > { %v7452_v21 = vpop.f32.mrf.mxu1  ;;  %v7498_v22 = vpop.f32.mrf.mxu0 }
 0xe38   : > { %v7596_v23 = vpack.c.bf16 %v7452_v21, %v7452_v21  ;;  %v7598_v24 = vpack.c.bf16 %v7498_v22, %v7498_v22  ;;  %v13623_v21 = vld [vmem:[#allocation13 + $0x2c4] ss:$8 sps:$4 sm:$0xff]  }
 0xe39   : > { %v7454_v28 = vpop.f32.mrf.mxu1  ;;  %v7500_v29 = vpop.f32.mrf.mxu0  ;;  %v13626_v22 = vld [vmem:[#allocation13 + $0x3c4] ss:$8 sps:$4 sm:$0xff]  }
 0xe3a   : > { %8415 = vmatprep.mubr.bf16.mxu1 %v7596_v23  ;;  %8456 = vmatprep.mubr.bf16.mxu0 %v7598_v24  ;;  %v13621_v23 = vld [vmem:[#allocation13 + $0x2c0] ss:$8 sps:$4 sm:$0xff]   ;;  %v13630_v28 = vld [vmem:[#allocation13 + $0x3b0] ss:$8 sps:$4 sm:$0xff]   ;;  %v13635_v29 = vld [vmem:[#allocation13 + $0x2a4] ss:$8 sps:$4 sm:$0xff]  }
 0xe3b   : > { %v7455_v33 = vpop.f32.mrf.mxu1  ;;  %v7501_v37 = vpop.f32.mrf.mxu0  ;;  %8416 = vmatmul.mubr.bf16.vlgmr.msra.gmra.mxu1 %v7595_v27  ;;  %8457 = vmatmul.mubr.bf16.vlgmr.msra.gmra.mxu0 %v7597_v20  ;;  %v13618_v20 = vld [vmem:[#allocation13 + $0x3d0] ss:$8 sps:$4 sm:$0xff]   ;;  %v13624_v24 = vld [vmem:[#allocation13 + $0x3c0] ss:$8 sps:$4 sm:$0xff]  }
 0xe3c   : > { %8466 = vmatpush1.bf16.msra.mxu1 %v13555_v25  ;;  %8507 = vmatpush1.bf16.msra.mxu0 %v13558_v26  ;;  %v13629_v25 = vld [vmem:[#allocation13 + $0x2b4] ss:$8 sps:$4 sm:$0xff]   ;;  %v13627_v27 = vld [vmem:[#allocation13 + $0x2b0] ss:$8 sps:$4 sm:$0xff]   ;;  %v13636_v33 = vld [vmem:[#allocation13 + $0x3a0] ss:$8 sps:$4 sm:$0xff]  }
 0xe3d   : > { %8467 = vmatprep.subr.bf16.mxu1 %v13563_v30  ;;  %8508 = vmatprep.subr.bf16.mxu0 %v13566_v31  ;;  %v14747_v42 = vpop.f32.mrf.mxu1  ;;  %v14749_v43 = vpop.f32.mrf.mxu0  ;;  %v13632_v26 = vld [vmem:[#allocation13 + $0x3b4] ss:$8 sps:$4 sm:$0xff]   ;;  %v13638_v30 = vld [vmem:[#allocation13 + $0x3a4] ss:$8 sps:$4 sm:$0xff]   ;;  %v13633_v31 = vld [vmem:[#allocation13 + $0x2a0] ss:$8 sps:$4 sm:$0xff]  }
 0xe3e   : > { %v13641_v37 = vld [vmem:[#allocation13 + $0x294] ss:$8 sps:$4 sm:$0xff]  }
 0xe3f   : > { %v7544_v44 = vpop.f32.mrf.mxu1  ;;  %v7590_v45 = vpop.f32.mrf.mxu0 }
 0xe40   : > { %8468 = vmatpush1.bf16.msra.mxu1 %v13561_v32  ;;  %8509 = vmatpush1.bf16.msra.mxu0 %v13564_v38  ;;  %v7600_v49 = vpack.c.bf16 %v7544_v44, %v7544_v44  ;;  %v7602_v35 = vpack.c.bf16 %v7590_v45, %v7590_v45  ;;  %v13644_v32 = vld [vmem:[#allocation13 + $0x394] ss:$8 sps:$4 sm:$0xff]   ;;  %v13639_v38 = vld [vmem:[#allocation13 + $0x290] ss:$8 sps:$4 sm:$0xff]   ;;  %v13650_v44 = vld [vmem:[#allocation13 + $0x384] ss:$8 sps:$4 sm:$0xff]  }
 0xe41   : > { %8469 = vmatprep.subr.bf16.mxu1 %v13569_v39  ;;  %8510 = vmatprep.subr.bf16.mxu0 %v13572_v40  ;;  %v7546_v51 = vpop.f32.mrf.mxu1  ;;  %v7592_v34 = vpop.f32.mrf.mxu0  ;;  %v13642_v39 = vld [vmem:[#allocation13 + $0x390] ss:$8 sps:$4 sm:$0xff]   ;;  %v13647_v40 = vld [vmem:[#allocation13 + $0x284] ss:$8 sps:$4 sm:$0xff]   ;;  %v13645_v45 = vld [vmem:[#allocation13 + $0x280] ss:$8 sps:$4 sm:$0xff]  }
 0xe42   : > { %8497 = vmatprep.mubr.bf16.mxu1 %v7600_v49  ;;  %8538 = vmatprep.mubr.bf16.mxu0 %v7602_v35  ;;  %v7599_v49 = vpack.c.bf16 %v14747_v42, %v14747_v42 }
 0xe43   : > { %v7547_v52 = vpop.f32.mrf.mxu1  ;;  %v7593_v53 = vpop.f32.mrf.mxu0 }
 0xe44   : > { %8470 = vmatpush1.bf16.msra.mxu1 %v13567_v46  ;;  %8511 = vmatpush1.bf16.msra.mxu0 %v13570_v48  ;;  %v13648_v46 = vld [vmem:[#allocation13 + $0x380] ss:$8 sps:$4 sm:$0xff]   ;;  %v7601_v48 = vpack.c.bf16 %v14749_v43, %v14749_v43 }
 0xe45   : > { %8471 = vmatprep.subr.bf16.mxu1 %v13575_v47  ;;  %8512 = vmatprep.subr.bf16.mxu0 %v13578_v50 }
 0xe48   : > { %8472 = vmatpush1.bf16.msra.mxu1 %v13573_v54  ;;  %8513 = vmatpush1.bf16.msra.mxu0 %v13576_v55  ;;  %v7731_v54 = vld [vmem:[%s14878_s1] sm:$0x3] }
 0xe49   : > { %8473 = vmatprep.subr.bf16.mxu1 %v13581_v56  ;;  %8514 = vmatprep.subr.bf16.mxu0 %v13584_v57  ;;  %v7736_v55 = vrot.slane %v7731_v54, %v14610_v41  ;;  %v7740_v56 = vrot.slane %v7731_v54, %v14608_v36  ;;  %v13708_v54 = vld [vmem:[#allocation15 + $0x1f4] ss:$8 sps:$4 sm:$0xff]  }
 0xe4c   : > { %8474 = vmatpush1.bf16.msra.mxu1 %v13579_v59  ;;  %8515 = vmatpush1.bf16.msra.mxu0 %v13582_v60 }
 0xe4d   : > { %8475 = vmatprep.subr.bf16.mxu1 %v13587_v61  ;;  %8516 = vmatprep.subr.bf16.mxu0 %v13590_v62 }
 0xe50   : > { %8476 = vmatpush1.bf16.msra.mxu1 %v13585_v63  ;;  %8517 = vmatpush1.bf16.msra.mxu0 %v13588_v0 }
 0xe51   : > { %8477 = vmatprep.subr.bf16.mxu1 %v13593_v1  ;;  %8518 = vmatprep.subr.bf16.mxu0 %v13596_v2 }
 0xe54   : > { %8478 = vmatpush1.bf16.msra.mxu1 %v13591_v3  ;;  %8519 = vmatpush1.bf16.msra.mxu0 %v13594_v4 }
 0xe55   : > { %8479 = vmatprep.subr.bf16.mxu1 %v13599_v5  ;;  %8520 = vmatprep.subr.bf16.mxu0 %v13602_v6 }
 0xe58   : > { %8480 = vmatpush1.bf16.msra.mxu1 %v13597_v7  ;;  %8521 = vmatpush1.bf16.msra.mxu0 %v13600_v8 }
 0xe59   : > { %8481 = vmatprep.subr.bf16.mxu1 %v13605_v9  ;;  %8522 = vmatprep.subr.bf16.mxu0 %v13608_v10 }
 0xe5c   : > { %8482 = vmatpush2.bf16.msra.mxu1 %v13603_v11  ;;  %8523 = vmatpush2.bf16.msra.mxu0 %v13606_v12 }
 0xe5d   : > { %8483 = vmatprep.subr.bf16.mxu1 %v13611_v13  ;;  %8524 = vmatprep.subr.bf16.mxu0 %v13614_v14  ;;  %v13651_v14 = vld [vmem:[%s14879_s4] sm:$0xff]  }
 0xe60   : > { %8484 = vmatpush2.bf16.msra.mxu1 %v13609_v15  ;;  %8525 = vmatpush2.bf16.msra.mxu0 %v13612_v16  ;;  %v13652_v15 = vld [vmem:[%s14879_s4 + $0x8] sm:$0xff]   ;;  %v13657_v16 = vld [vmem:[#allocation15 + $0x74] ss:$8 sps:$4 sm:$0xff]  }
 0xe61   : > { %8485 = vmatprep.subr.bf16.mxu1 %v13617_v17  ;;  %8526 = vmatprep.subr.bf16.mxu0 %v13620_v18  ;;  %v13660_v17 = vld [vmem:[#allocation15 + $0x174] ss:$8 sps:$4 sm:$0xff]  }
 0xe62   : > { %v13653_v18 = vld [vmem:[%s14879_s4 + $0x10] sm:$0xff]  }
 0xe64   : > { %8486 = vmatpush2.bf16.msra.mxu1 %v13615_v19  ;;  %8527 = vmatpush2.bf16.msra.mxu0 %v13618_v20  ;;  %v13654_v19 = vld [vmem:[%s14879_s4 + $0x18] sm:$0xff]  }
 0xe65   : > { %8487 = vmatprep.subr.bf16.mxu1 %v13623_v21  ;;  %8528 = vmatprep.subr.bf16.mxu0 %v13626_v22  ;;  %v13655_v20 = vld [vmem:[#allocation15 + $0x70] ss:$8 sps:$4 sm:$0xff]   ;;  %v13663_v22 = vld [vmem:[#allocation15 + $0x64] ss:$8 sps:$4 sm:$0xff]  }
 0xe66   : > { %v13658_v21 = vld [vmem:[#allocation15 + $0x170] ss:$8 sps:$4 sm:$0xff]  }
 0xe68   : > { %8488 = vmatpush2.bf16.msra.mxu1 %v13621_v23  ;;  %8529 = vmatpush2.bf16.msra.mxu0 %v13624_v24  ;;  %v13666_v23 = vld [vmem:[#allocation15 + $0x164] ss:$8 sps:$4 sm:$0xff]   ;;  %v13661_v24 = vld [vmem:[#allocation15 + $0x60] ss:$8 sps:$4 sm:$0xff]  }
 0xe69   : > { %8489 = vmatprep.subr.bf16.mxu1 %v13629_v25  ;;  %8530 = vmatprep.subr.bf16.mxu0 %v13632_v26  ;;  %v13664_v25 = vld [vmem:[#allocation15 + $0x160] ss:$8 sps:$4 sm:$0xff]   ;;  %v13669_v26 = vld [vmem:[#allocation15 + $0x54] ss:$8 sps:$4 sm:$0xff]  }
 0xe6c   : > { %8490 = vmatpush2.bf16.msra.mxu1 %v13627_v27  ;;  %8531 = vmatpush2.bf16.msra.mxu0 %v13630_v28  ;;  %v13672_v27 = vld [vmem:[#allocation15 + $0x154] ss:$8 sps:$4 sm:$0xff]   ;;  %v13667_v28 = vld [vmem:[#allocation15 + $0x50] ss:$8 sps:$4 sm:$0xff]  }
 0xe6d   : > { %8491 = vmatprep.subr.bf16.mxu1 %v13635_v29  ;;  %8532 = vmatprep.subr.bf16.mxu0 %v13638_v30  ;;  %v13670_v29 = vld [vmem:[#allocation15 + $0x150] ss:$8 sps:$4 sm:$0xff]   ;;  %v13675_v30 = vld [vmem:[#allocation15 + $0x44] ss:$8 sps:$4 sm:$0xff]  }
 0xe70   : > { %8492 = vmatpush2.bf16.msra.mxu1 %v13633_v31  ;;  %8533 = vmatpush2.bf16.msra.mxu0 %v13636_v33  ;;  %v13678_v31 = vld [vmem:[#allocation15 + $0x144] ss:$8 sps:$4 sm:$0xff]   ;;  %v13673_v33 = vld [vmem:[#allocation15 + $0x40] ss:$8 sps:$4 sm:$0xff]  }
 0xe71   : > { %8493 = vmatprep.subr.bf16.mxu1 %v13641_v37  ;;  %8534 = vmatprep.subr.bf16.mxu0 %v13644_v32  ;;  %v13676_v37 = vld [vmem:[#allocation15 + $0x140] ss:$8 sps:$4 sm:$0xff]   ;;  %v13681_v32 = vld [vmem:[#allocation15 + $0x34] ss:$8 sps:$4 sm:$0xff]  }
 0xe74   : > { %8494 = vmatpush2.bf16.msra.mxu1 %v13639_v38  ;;  %8535 = vmatpush2.bf16.msra.mxu0 %v13642_v39  ;;  %v13684_v38 = vld [vmem:[#allocation15 + $0x134] ss:$8 sps:$4 sm:$0xff]   ;;  %v13679_v39 = vld [vmem:[#allocation15 + $0x30] ss:$8 sps:$4 sm:$0xff]  }
 0xe75   : > { %8495 = vmatprep.subr.bf16.mxu1 %v13647_v40  ;;  %8536 = vmatprep.subr.bf16.mxu0 %v13650_v44  ;;  %v13682_v40 = vld [vmem:[#allocation15 + $0x130] ss:$8 sps:$4 sm:$0xff]   ;;  %v13687_v44 = vld [vmem:[#allocation15 + $0x24] ss:$8 sps:$4 sm:$0xff]  }
 0xe78   : > { %8496 = vmatpush2.bf16.msra.mxu1 %v13645_v45  ;;  %8537 = vmatpush2.bf16.msra.mxu0 %v13648_v46  ;;  %v13690_v45 = vld [vmem:[#allocation15 + $0x124] ss:$8 sps:$4 sm:$0xff]   ;;  %v13685_v46 = vld [vmem:[#allocation15 + $0x20] ss:$8 sps:$4 sm:$0xff]  }
 0xe7b   : > { %8498 = vmatmul.mubr.bf16.vlgmr.msra.gmra.mxu1 %v7599_v49  ;;  %8539 = vmatmul.mubr.bf16.vlgmr.msra.gmra.mxu0 %v7601_v48  ;;  %v13688_v48 = vld [vmem:[#allocation15 + $0x120] ss:$8 sps:$4 sm:$0xff]   ;;  %v13693_v49 = vld [vmem:[#allocation15 + $0x14] ss:$8 sps:$4 sm:$0xff]  }
 0xe7c   : > { %8599 = vmatprep.mubr.bf16.mxu1 %v14274_v58  ;;  %8653 = vmatprep.mubr.bf16.mxu0 %v14274_v58 }
 0xefb   : > { %v8417_v35 = vpop.f32.mrf.mxu1  ;;  %v8458_v47 = vpop.f32.mrf.mxu0 }
 0xefc   : > { %v8418_v42 = vadd.f32 %v8417_v35, %v7736_v55  ;;  %v13696_v35 = vld [vmem:[#allocation15 + $0x114] ss:$8 sps:$4 sm:$0xff]   ;;  %v13703_v55 = vld [vmem:[#allocation15 + $0xf0] ss:$8 sps:$4 sm:$0xff]  }
 0xefd   : > { %v8419_v50 = vpop.f32.mrf.mxu1  ;;  %v8460_v51 = vpop.f32.mrf.mxu0 }
 0xefe   : > { %v8420_v57 = vadd.f32 %v8419_v50, %v7740_v56  ;;  %v8459_v59 = vadd.f32 %v8458_v47, %v8418_v42  ;;  %v13691_v47 = vld [vmem:[#allocation15 + $0x10] ss:$8 sps:$4 sm:$0xff]   ;;  %v13711_v42 = vld [vmem:[#allocation15 + $0xe4] ss:$8 sps:$4 sm:$0xff]  }
 0xeff   : > { %v8421_v34 = vpop.f32.mrf.mxu1  ;;  %v8462_v52 = vpop.f32.mrf.mxu0  ;;  %v13694_v50 = vld [vmem:[#allocation15 + $0x110] ss:$8 sps:$4 sm:$0xff]  }
 0xf00   : > { %v8461_v62 = vadd.f32 %v8460_v51, %v8420_v57  ;;  %v13699_v51 = vld [vmem:[#allocation15 + $0x4] ss:$8 sps:$4 sm:$0xff]   ;;  %v13697_v52 = vld [vmem:[#allocation15] ss:$8 sps:$4 sm:$0xff]   ;;  %v13706_v56 = vld [vmem:[#allocation15 + $0x1f0] ss:$8 sps:$4 sm:$0xff]  }
 0xf01   : > { %v8422_v53 = vpop.f32.mrf.mxu1  ;;  %v8463_v43 = vpop.f32.mrf.mxu0  ;;  %v13702_v34 = vld [vmem:[#allocation15 + $0x104] ss:$8 sps:$4 sm:$0xff]  }
 0xf02   : > { %v13700_v53 = vld [vmem:[#allocation15 + $0x100] ss:$8 sps:$4 sm:$0xff]   ;;  %v13705_v43 = vld [vmem:[#allocation15 + $0xf4] ss:$8 sps:$4 sm:$0xff]   ;;  %v13714_v57 = vld [vmem:[#allocation15 + $0x1e4] ss:$8 sps:$4 sm:$0xff]  }
 0xf3b   : > { %v8499_v60 = vpop.f32.mrf.mxu1  ;;  %v8540_v61 = vpop.f32.mrf.mxu0 }
 0xf3c   : > { %v8500_v63 = vadd.f32 %v8499_v60, %v8459_v59  ;;  %v13709_v59 = vld [vmem:[#allocation15 + $0xe0] ss:$8 sps:$4 sm:$0xff]  }
 0xf3d   : > { %v8501_v0 = vpop.f32.mrf.mxu1  ;;  %v8542_v1 = vpop.f32.mrf.mxu0  ;;  %v13712_v60 = vld [vmem:[#allocation15 + $0x1e0] ss:$8 sps:$4 sm:$0xff]  }
 0xf3e   : > { %v8541_v2 = vadd.f32 %v8540_v61, %v8500_v63  ;;  %v8502_v3 = vadd.f32 %v8501_v0, %v8461_v62  ;;  %v13717_v61 = vld [vmem:[#allocation15 + $0xd4] ss:$8 sps:$4 sm:$0xff]   ;;  %v13715_v63 = vld [vmem:[#allocation15 + $0xd0] ss:$8 sps:$4 sm:$0xff]  }
 0xf3f   : > { %v8503_v4 = vpop.f32.mrf.mxu1  ;;  %v8544_v5 = vpop.f32.mrf.mxu0  ;;  %v13720_v62 = vld [vmem:[#allocation15 + $0x1d4] ss:$8 sps:$4 sm:$0xff]   ;;  %v13718_v0 = vld [vmem:[#allocation15 + $0x1d0] ss:$8 sps:$4 sm:$0xff]  }
 0xf40   : > { %v8547_v6 = vmax.f32 %v8541_v2, 0.0  ;;  %v8543_v7 = vadd.f32 %v8542_v1, %v8502_v3  ;;  %v13723_v1 = vld [vmem:[#allocation15 + $0xc4] ss:$8 sps:$4 sm:$0xff]   ;;  %v13721_v3 = vld [vmem:[#allocation15 + $0xc0] ss:$8 sps:$4 sm:$0xff]  }
 0xf41   : > { %v8504_v8 = vpop.f32.mrf.mxu1  ;;  %v8545_v9 = vpop.f32.mrf.mxu0  ;;  %v13726_v2 = vld [vmem:[#allocation15 + $0x1c4] ss:$8 sps:$4 sm:$0xff]   ;;  %v13724_v4 = vld [vmem:[#allocation15 + $0x1c0] ss:$8 sps:$4 sm:$0xff]   ;;  %v13729_v5 = vld [vmem:[#allocation15 + $0xb4] ss:$8 sps:$4 sm:$0xff]  }
 0xf42   : > { %v8549_v10 = vpack.c.bf16 %v8547_v6, %v8547_v6  ;;  %v8548_v11 = vmax.f32 %v8543_v7, 0.0  ;;  %v13732_v6 = vld [vmem:[#allocation15 + $0x1b4] ss:$8 sps:$4 sm:$0xff]   ;;  %v13727_v7 = vld [vmem:[#allocation15 + $0xb0] ss:$8 sps:$4 sm:$0xff]  }
 0xf43   : > { %v13730_v8 = vld [vmem:[#allocation15 + $0x1b0] ss:$8 sps:$4 sm:$0xff]   ;;  %v13735_v9 = vld [vmem:[#allocation15 + $0xa4] ss:$8 sps:$4 sm:$0xff]  }
 0xf44   : > { %v8550_v12 = vpack.c.bf16 %v8548_v11, %v8548_v11  ;;  %v8562_v13 = vsel %vm2527_vm3, %v8549_v10, 0  ;;  %v13738_v10 = vld [vmem:[#allocation15 + $0x1a4] ss:$8 sps:$4 sm:$0xff]   ;;  %v13733_v11 = vld [vmem:[#allocation15 + $0xa0] ss:$8 sps:$4 sm:$0xff]  }
 0xf46   : > { %11890 = vmatprep.subr.msk.bf16.mxu1 %vm2527_vm3, %v8550_v12  ;;  %11895 = vmatprep.subr.msk.bf16.mxu0 %vm2527_vm3, %v8550_v12 }
 0xf47   : > { %8582 = vmatpush1.bf16.msra.mxu1 %v8562_v13  ;;  %8636 = vmatpush1.bf16.msra.mxu0 %v8562_v13 }
 0xf48   : > { %11900 = vmatprep.subr.msk.bf16.mxu1 %vm2527_vm3, %v8550_v12  ;;  %11905 = vmatprep.subr.msk.bf16.mxu0 %vm2527_vm3, %v8550_v12  ;;  %v13736_v12 = vld [vmem:[#allocation15 + $0x1a0] ss:$8 sps:$4 sm:$0xff]  }
 0xf4a   : > { %11891 = vmatmul.mubr.msk.bf16.vlgmr.msra.gmra.mxu1 %vm2523_vm4, %v13651_v14  ;;  %11896 = vmatmul.mubr.msk.bf16.vlgmr.msra.gmra.mxu0 %vm2523_vm4, %v13652_v15  ;;  %v13744_v14 = vld [vmem:[#allocation15 + $0x194] ss:$8 sps:$4 sm:$0xff]   ;;  %v13739_v15 = vld [vmem:[#allocation15 + $0x90] ss:$8 sps:$4 sm:$0xff]  }
 0xf4b   : > { %8690 = vmatpush1.bf16.msra.mxu1 %v8562_v13  ;;  %8744 = vmatpush1.bf16.msra.mxu0 %v8562_v13  ;;  %v13741_v13 = vld [vmem:[#allocation15 + $0x94] ss:$8 sps:$4 sm:$0xff]  }
 0xf4c   : > { %8707 = vmatprep.mubr.bf16.mxu1 %v14274_v58  ;;  %8761 = vmatprep.mubr.bf16.mxu0 %v14274_v58 }
 0xf4d   : > { %9560 = vmatprep.subr.bf16.mxu1 %v13657_v16  ;;  %9603 = vmatprep.subr.bf16.mxu0 %v13660_v17  ;;  %v13742_v16 = vld [vmem:[#allocation15 + $0x190] ss:$8 sps:$4 sm:$0xff]   ;;  %v13747_v17 = vld [vmem:[#allocation15 + $0x84] ss:$8 sps:$4 sm:$0xff]  }
 0xf52   : > { %11901 = vmatmul.mubr.msk.bf16.vlgmr.msra.gmra.mxu1 %vm2523_vm4, %v13653_v18  ;;  %11906 = vmatmul.mubr.msk.bf16.vlgmr.msra.gmra.mxu0 %vm2523_vm4, %v13654_v19  ;;  %v13750_v18 = vld [vmem:[#allocation15 + $0x184] ss:$8 sps:$4 sm:$0xff]   ;;  %v13745_v19 = vld [vmem:[#allocation15 + $0x80] ss:$8 sps:$4 sm:$0xff]  }
 0xf53   : > { %9561 = vmatpush1.bf16.msra.mxu1 %v13655_v20  ;;  %9604 = vmatpush1.bf16.msra.mxu0 %v13658_v21  ;;  %v13748_v20 = vld [vmem:[#allocation15 + $0x180] ss:$8 sps:$4 sm:$0xff]   ;;  %v13753_v21 = vld [vmem:[#allocation15 + $0x274] ss:$8 sps:$4 sm:$0xff]  }
 0xf54   : > { %9562 = vmatprep.subr.bf16.mxu1 %v13663_v22  ;;  %9605 = vmatprep.subr.bf16.mxu0 %v13666_v23  ;;  %v13756_v22 = vld [vmem:[#allocation15 + $0x374] ss:$8 sps:$4 sm:$0xff]  }
 0xf57   : > { %9563 = vmatpush1.bf16.msra.mxu1 %v13661_v24  ;;  %9606 = vmatpush1.bf16.msra.mxu0 %v13664_v25 }
 0xf58   : > { %9564 = vmatprep.subr.bf16.mxu1 %v13669_v26  ;;  %9607 = vmatprep.subr.bf16.mxu0 %v13672_v27 }
 0xf5b   : > { %9565 = vmatpush1.bf16.msra.mxu1 %v13667_v28  ;;  %9608 = vmatpush1.bf16.msra.mxu0 %v13670_v29 }
 0xf5c   : > { %9566 = vmatprep.subr.bf16.mxu1 %v13675_v30  ;;  %9609 = vmatprep.subr.bf16.mxu0 %v13678_v31 }
 0xf5f   : > { %9567 = vmatpush1.bf16.msra.mxu1 %v13673_v33  ;;  %9610 = vmatpush1.bf16.msra.mxu0 %v13676_v37  ;;  %v13751_v37 = vld [vmem:[#allocation15 + $0x270] ss:$8 sps:$4 sm:$0xff]  }
 0xf60   : > { %9568 = vmatprep.subr.bf16.mxu1 %v13681_v32  ;;  %9611 = vmatprep.subr.bf16.mxu0 %v13684_v38  ;;  %v13754_v32 = vld [vmem:[#allocation15 + $0x370] ss:$8 sps:$4 sm:$0xff]  }
 0xf63   : > { %9569 = vmatpush1.bf16.msra.mxu1 %v13679_v39  ;;  %9612 = vmatpush1.bf16.msra.mxu0 %v13682_v40  ;;  %v13759_v40 = vld [vmem:[#allocation15 + $0x264] ss:$8 sps:$4 sm:$0xff]  }
 0xf64   : > { %9570 = vmatprep.subr.bf16.mxu1 %v13687_v44  ;;  %9613 = vmatprep.subr.bf16.mxu0 %v13690_v45  ;;  %v13762_v44 = vld [vmem:[#allocation15 + $0x364] ss:$8 sps:$4 sm:$0xff]  }
 0xf67   : > { %9571 = vmatpush1.bf16.msra.mxu1 %v13685_v46  ;;  %9614 = vmatpush1.bf16.msra.mxu0 %v13688_v48 }
 0xf68   : > { %9572 = vmatprep.subr.bf16.mxu1 %v13693_v49  ;;  %9615 = vmatprep.subr.bf16.mxu0 %v13696_v35  ;;  %v13757_v35 = vld [vmem:[#allocation15 + $0x260] ss:$8 sps:$4 sm:$0xff]  }
 0xf6b   : > { %9573 = vmatpush1.bf16.msra.mxu1 %v13691_v47  ;;  %9616 = vmatpush1.bf16.msra.mxu0 %v13694_v50  ;;  %v13760_v47 = vld [vmem:[#allocation15 + $0x360] ss:$8 sps:$4 sm:$0xff]   ;;  %v13765_v50 = vld [vmem:[#allocation15 + $0x254] ss:$8 sps:$4 sm:$0xff]  }
 0xf6c   : > { %9574 = vmatprep.subr.bf16.mxu1 %v13699_v51  ;;  %9617 = vmatprep.subr.bf16.mxu0 %v13702_v34  ;;  %v13768_v51 = vld [vmem:[#allocation15 + $0x354] ss:$8 sps:$4 sm:$0xff]  }
 0xf6f   : > { %9575 = vmatpush1.bf16.msra.mxu1 %v13697_v52  ;;  %9618 = vmatpush1.bf16.msra.mxu0 %v13700_v53 }
 0xf70   : > { %9576 = vmatprep.subr.bf16.mxu1 %v13705_v43  ;;  %9619 = vmatprep.subr.bf16.mxu0 %v13708_v54  ;;  %v13763_v54 = vld [vmem:[#allocation15 + $0x250] ss:$8 sps:$4 sm:$0xff]  }
 0xf73   : > { %9577 = vmatpush2.bf16.msra.mxu1 %v13703_v55  ;;  %9620 = vmatpush2.bf16.msra.mxu0 %v13706_v56  ;;  %v13766_v55 = vld [vmem:[#allocation15 + $0x350] ss:$8 sps:$4 sm:$0xff]  }
 0xf74   : > { %9578 = vmatprep.subr.bf16.mxu1 %v13711_v42  ;;  %9621 = vmatprep.subr.bf16.mxu0 %v13714_v57  ;;  %v13771_v57 = vld [vmem:[#allocation15 + $0x244] ss:$8 sps:$4 sm:$0xff]  }
 0xf77   : > { %9579 = vmatpush2.bf16.msra.mxu1 %v13709_v59  ;;  %9622 = vmatpush2.bf16.msra.mxu0 %v13712_v60  ;;  %v13774_v59 = vld [vmem:[#allocation15 + $0x344] ss:$8 sps:$4 sm:$0xff]   ;;  %v13769_v60 = vld [vmem:[#allocation15 + $0x240] ss:$8 sps:$4 sm:$0xff]  }
 0xf78   : > { %9580 = vmatprep.subr.bf16.mxu1 %v13717_v61  ;;  %9623 = vmatprep.subr.bf16.mxu0 %v13720_v62  ;;  %v13772_v61 = vld [vmem:[#allocation15 + $0x340] ss:$8 sps:$4 sm:$0xff]   ;;  %v13777_v62 = vld [vmem:[#allocation15 + $0x234] ss:$8 sps:$4 sm:$0xff]  }
 0xf7b   : > { %9581 = vmatpush2.bf16.msra.mxu1 %v13715_v63  ;;  %9624 = vmatpush2.bf16.msra.mxu0 %v13718_v0  ;;  %v13780_v63 = vld [vmem:[#allocation15 + $0x334] ss:$8 sps:$4 sm:$0xff]   ;;  %v13775_v0 = vld [vmem:[#allocation15 + $0x230] ss:$8 sps:$4 sm:$0xff]  }
 0xf7c   : > { %9582 = vmatprep.subr.bf16.mxu1 %v13723_v1  ;;  %9625 = vmatprep.subr.bf16.mxu0 %v13726_v2  ;;  %v13778_v1 = vld [vmem:[#allocation15 + $0x330] ss:$8 sps:$4 sm:$0xff]   ;;  %v13783_v2 = vld [vmem:[#allocation15 + $0x224] ss:$8 sps:$4 sm:$0xff]  }
 0xf7f   : > { %9583 = vmatpush2.bf16.msra.mxu1 %v13721_v3  ;;  %9626 = vmatpush2.bf16.msra.mxu0 %v13724_v4  ;;  %v13786_v3 = vld [vmem:[#allocation15 + $0x324] ss:$8 sps:$4 sm:$0xff]   ;;  %v13781_v4 = vld [vmem:[#allocation15 + $0x220] ss:$8 sps:$4 sm:$0xff]  }
 0xf80   : > { %9584 = vmatprep.subr.bf16.mxu1 %v13729_v5  ;;  %9627 = vmatprep.subr.bf16.mxu0 %v13732_v6  ;;  %v13784_v5 = vld [vmem:[#allocation15 + $0x320] ss:$8 sps:$4 sm:$0xff]   ;;  %v13789_v6 = vld [vmem:[#allocation15 + $0x214] ss:$8 sps:$4 sm:$0xff]  }
 0xf83   : > { %9585 = vmatpush2.bf16.msra.mxu1 %v13727_v7  ;;  %9628 = vmatpush2.bf16.msra.mxu0 %v13730_v8  ;;  %v13792_v7 = vld [vmem:[#allocation15 + $0x314] ss:$8 sps:$4 sm:$0xff]   ;;  %v13787_v8 = vld [vmem:[#allocation15 + $0x210] ss:$8 sps:$4 sm:$0xff]  }
 0xf84   : > { %9586 = vmatprep.subr.bf16.mxu1 %v13735_v9  ;;  %9629 = vmatprep.subr.bf16.mxu0 %v13738_v10  ;;  %v13790_v9 = vld [vmem:[#allocation15 + $0x310] ss:$8 sps:$4 sm:$0xff]   ;;  %v13795_v10 = vld [vmem:[#allocation15 + $0x204] ss:$8 sps:$4 sm:$0xff]  }
 0xf87   : > { %9587 = vmatpush2.bf16.msra.mxu1 %v13733_v11  ;;  %9630 = vmatpush2.bf16.msra.mxu0 %v13736_v12  ;;  %v13798_v11 = vld [vmem:[#allocation15 + $0x304] ss:$8 sps:$4 sm:$0xff]   ;;  %v13793_v12 = vld [vmem:[#allocation15 + $0x200] ss:$8 sps:$4 sm:$0xff]  }
 0xf88   : > { %9588 = vmatprep.subr.bf16.mxu1 %v13741_v13  ;;  %9631 = vmatprep.subr.bf16.mxu0 %v13744_v14  ;;  %v13796_v13 = vld [vmem:[#allocation15 + $0x300] ss:$8 sps:$4 sm:$0xff]   ;;  %v13801_v14 = vld [vmem:[#allocation15 + $0x2f4] ss:$8 sps:$4 sm:$0xff]  }
 0xf8b   : > { %9589 = vmatpush2.bf16.msra.mxu1 %v13739_v15  ;;  %9632 = vmatpush2.bf16.msra.mxu0 %v13742_v16  ;;  %v13804_v15 = vld [vmem:[#allocation15 + $0x3f4] ss:$8 sps:$4 sm:$0xff]   ;;  %v13799_v16 = vld [vmem:[#allocation15 + $0x2f0] ss:$8 sps:$4 sm:$0xff]  }
 0xf8c   : > { %9590 = vmatprep.subr.bf16.mxu1 %v13747_v17  ;;  %9633 = vmatprep.subr.bf16.mxu0 %v13750_v18  ;;  %v13802_v17 = vld [vmem:[#allocation15 + $0x3f0] ss:$8 sps:$4 sm:$0xff]   ;;  %v13807_v18 = vld [vmem:[#allocation15 + $0x2e4] ss:$8 sps:$4 sm:$0xff]  }
 0xf8f   : > { %9591 = vmatpush2.bf16.msra.mxu1 %v13745_v19  ;;  %9634 = vmatpush2.bf16.msra.mxu0 %v13748_v20  ;;  %v13810_v19 = vld [vmem:[#allocation15 + $0x3e4] ss:$8 sps:$4 sm:$0xff]   ;;  %v13805_v20 = vld [vmem:[#allocation15 + $0x2e0] ss:$8 sps:$4 sm:$0xff]  }
 0xf90   : > { %9646 = vmatprep.subr.bf16.mxu1 %v13753_v21  ;;  %9689 = vmatprep.subr.bf16.mxu0 %v13756_v22  ;;  %v13808_v21 = vld [vmem:[#allocation15 + $0x3e0] ss:$8 sps:$4 sm:$0xff]   ;;  %v13813_v22 = vld [vmem:[#allocation15 + $0x2d4] ss:$8 sps:$4 sm:$0xff]  }
0x100a   : > { %v8601_v23 = vpop.f32.mrf.mxu1  ;;  %v8655_v24 = vpop.f32.mrf.mxu0 }
0x100c   : > { %v8603_v25 = vpop.f32.mrf.mxu1  ;;  %v8657_v26 = vpop.f32.mrf.mxu0 }
0x100e   : > { %v8605_v27 = vpop.f32.mrf.mxu1  ;;  %v8659_v28 = vpop.f32.mrf.mxu0 }
0x100f   : > { %v8772_v38 = vpack.c.bf16 %v8605_v27, %v8601_v23  ;;  %v8774_v39 = vpack.c.bf16 %v8659_v28, %v8655_v24  ;;  %v13816_v23 = vld [vmem:[#allocation15 + $0x3d4] ss:$8 sps:$4 sm:$0xff]   ;;  %v13811_v24 = vld [vmem:[#allocation15 + $0x2d0] ss:$8 sps:$4 sm:$0xff]   ;;  %v13822_v27 = vld [vmem:[#allocation15 + $0x3c4] ss:$8 sps:$4 sm:$0xff]  }
0x1010   : > { %v8607_v29 = vpop.f32.mrf.mxu1  ;;  %v8661_v30 = vpop.f32.mrf.mxu0  ;;  %v13817_v28 = vld [vmem:[#allocation15 + $0x2c0] ss:$8 sps:$4 sm:$0xff]  }
0x1011   : > { %v8773_v31 = vpack.c.bf16 %v8607_v29, %v8603_v25  ;;  %v8775_v33 = vpack.c.bf16 %v8661_v30, %v8657_v26  ;;  %v13814_v25 = vld [vmem:[#allocation15 + $0x3d0] ss:$8 sps:$4 sm:$0xff]   ;;  %v13819_v26 = vld [vmem:[#allocation15 + $0x2c4] ss:$8 sps:$4 sm:$0xff]   ;;  %v13820_v29 = vld [vmem:[#allocation15 + $0x3c0] ss:$8 sps:$4 sm:$0xff]  }
0x1012   : > { %v14775_v45 = vpop.f32.mrf.mxu1  ;;  %v14777_v46 = vpop.f32.mrf.mxu0  ;;  %v13825_v30 = vld [vmem:[#allocation15 + $0x2b4] ss:$8 sps:$4 sm:$0xff]  }
0x1013   : > { %9592 = vmatprep.mubr.bf16.mxu1 %v8773_v31  ;;  %9635 = vmatprep.mubr.bf16.mxu0 %v8775_v33  ;;  %v13828_v31 = vld [vmem:[#allocation15 + $0x3b4] ss:$8 sps:$4 sm:$0xff]   ;;  %v13823_v33 = vld [vmem:[#allocation15 + $0x2b0] ss:$8 sps:$4 sm:$0xff]  }
0x1014   : > { %9593 = vmatmul.mubr.bf16.vlgmr.msra.gmra.mxu1 %v8772_v38  ;;  %9636 = vmatmul.mubr.bf16.vlgmr.msra.gmra.mxu0 %v8774_v39  ;;  %v8711_v48 = vpop.f32.mrf.mxu1  ;;  %v8765_v49 = vpop.f32.mrf.mxu0  ;;  %v13834_v38 = vld [vmem:[#allocation15 + $0x3a4] ss:$8 sps:$4 sm:$0xff]   ;;  %v13829_v39 = vld [vmem:[#allocation15 + $0x2a0] ss:$8 sps:$4 sm:$0xff]  }
0x1015   : > { %9647 = vmatpush1.bf16.msra.mxu1 %v13751_v37  ;;  %9690 = vmatpush1.bf16.msra.mxu0 %v13754_v32  ;;  %v13826_v37 = vld [vmem:[#allocation15 + $0x3b0] ss:$8 sps:$4 sm:$0xff]   ;;  %v13831_v32 = vld [vmem:[#allocation15 + $0x2a4] ss:$8 sps:$4 sm:$0xff]  }
0x1016   : > { %9648 = vmatprep.subr.bf16.mxu1 %v13759_v40  ;;  %9691 = vmatprep.subr.bf16.mxu0 %v13762_v44  ;;  %v14779_v34 = vpop.f32.mrf.mxu1  ;;  %v14781_v52 = vpop.f32.mrf.mxu0  ;;  %v13832_v40 = vld [vmem:[#allocation15 + $0x3a0] ss:$8 sps:$4 sm:$0xff]   ;;  %v13837_v44 = vld [vmem:[#allocation15 + $0x294] ss:$8 sps:$4 sm:$0xff]  }
0x1018   : > { %v8715_v53 = vpop.f32.mrf.mxu1  ;;  %v8769_v43 = vpop.f32.mrf.mxu0 }
0x1019   : > { %9649 = vmatpush1.bf16.msra.mxu1 %v13757_v35  ;;  %9692 = vmatpush1.bf16.msra.mxu0 %v13760_v47  ;;  %v8777_v56 = vpack.c.bf16 %v8715_v53, %v8711_v48  ;;  %v8779_v42 = vpack.c.bf16 %v8769_v43, %v8765_v49  ;;  %v13840_v48 = vld [vmem:[#allocation15 + $0x394] ss:$8 sps:$4 sm:$0xff]   ;;  %v13835_v49 = vld [vmem:[#allocation15 + $0x290] ss:$8 sps:$4 sm:$0xff]   ;;  %v13843_v47 = vld [vmem:[#allocation15 + $0x284] ss:$8 sps:$4 sm:$0xff]   ;;  %v8776_v43 = vpack.c.bf16 %v14779_v34, %v14775_v45 }
0x101a   : > { %9650 = vmatprep.subr.bf16.mxu1 %v13765_v50  ;;  %9693 = vmatprep.subr.bf16.mxu0 %v13768_v51  ;;  %v13838_v35 = vld [vmem:[#allocation15 + $0x390] ss:$8 sps:$4 sm:$0xff]   ;;  %v13846_v50 = vld [vmem:[#allocation15 + $0x384] ss:$8 sps:$4 sm:$0xff]   ;;  %v13841_v51 = vld [vmem:[#allocation15 + $0x280] ss:$8 sps:$4 sm:$0xff]  }
0x101b   : > { %9678 = vmatprep.mubr.bf16.mxu1 %v8777_v56  ;;  %9721 = vmatprep.mubr.bf16.mxu0 %v8779_v42  ;;  %v13844_v53 = vld [vmem:[#allocation15 + $0x380] ss:$8 sps:$4 sm:$0xff]  }
0x101d   : > { %9651 = vmatpush1.bf16.msra.mxu1 %v13763_v54  ;;  %9694 = vmatpush1.bf16.msra.mxu0 %v13766_v55  ;;  %v8778_v54 = vpack.c.bf16 %v14781_v52, %v14777_v46 }
0x101e   : > { %9652 = vmatprep.subr.bf16.mxu1 %v13771_v57  ;;  %9695 = vmatprep.subr.bf16.mxu0 %v13774_v59  ;;  %v8908_v59 = vld [vmem:[%s14880_s11] sm:$0x3] }
0x1021   : > { %9653 = vmatpush1.bf16.msra.mxu1 %v13769_v60  ;;  %9696 = vmatpush1.bf16.msra.mxu0 %v13772_v61  ;;  %v8917_v60 = vrot.slane %v8908_v59, %v14608_v36  ;;  %v8913_v61 = vrot.slane %v8908_v59, %v14610_v41  ;;  %v13874_v59 = vld [vmem:[#allocation16 + $0x98] sm:$0xff]  }
0x1022   : > { %9654 = vmatprep.subr.bf16.mxu1 %v13777_v62  ;;  %9697 = vmatprep.subr.bf16.mxu0 %v13780_v63 }
0x1025   : > { %9655 = vmatpush1.bf16.msra.mxu1 %v13775_v0  ;;  %9698 = vmatpush1.bf16.msra.mxu0 %v13778_v1 }
0x1026   : > { %9656 = vmatprep.subr.bf16.mxu1 %v13783_v2  ;;  %9699 = vmatprep.subr.bf16.mxu0 %v13786_v3 }
0x1029   : > { %9657 = vmatpush1.bf16.msra.mxu1 %v13781_v4  ;;  %9700 = vmatpush1.bf16.msra.mxu0 %v13784_v5 }
0x102a   : > { %9658 = vmatprep.subr.bf16.mxu1 %v13789_v6  ;;  %9701 = vmatprep.subr.bf16.mxu0 %v13792_v7 }
0x102d   : > { %9659 = vmatpush1.bf16.msra.mxu1 %v13787_v8  ;;  %9702 = vmatpush1.bf16.msra.mxu0 %v13790_v9 }
0x102e   : > { %9660 = vmatprep.subr.bf16.mxu1 %v13795_v10  ;;  %9703 = vmatprep.subr.bf16.mxu0 %v13798_v11 }
0x1031   : > { %9661 = vmatpush1.bf16.msra.mxu1 %v13793_v12  ;;  %9704 = vmatpush1.bf16.msra.mxu0 %v13796_v13 }
0x1032   : > { %9662 = vmatprep.subr.bf16.mxu1 %v13801_v14  ;;  %9705 = vmatprep.subr.bf16.mxu0 %v13804_v15 }
0x1035   : > { %9663 = vmatpush2.bf16.msra.mxu1 %v13799_v16  ;;  %9706 = vmatpush2.bf16.msra.mxu0 %v13802_v17 }
0x1036   : > { %9664 = vmatprep.subr.bf16.mxu1 %v13807_v18  ;;  %9707 = vmatprep.subr.bf16.mxu0 %v13810_v19 }
0x1039   : > { %9665 = vmatpush2.bf16.msra.mxu1 %v13805_v20  ;;  %9708 = vmatpush2.bf16.msra.mxu0 %v13808_v21 }
0x103a   : > { %9666 = vmatprep.subr.bf16.mxu1 %v13813_v22  ;;  %9709 = vmatprep.subr.bf16.mxu0 %v13816_v23 }
0x103d   : > { %9667 = vmatpush2.bf16.msra.mxu1 %v13811_v24  ;;  %9710 = vmatpush2.bf16.msra.mxu0 %v13814_v25 }
0x103e   : > { %9668 = vmatprep.subr.bf16.mxu1 %v13819_v26  ;;  %9711 = vmatprep.subr.bf16.mxu0 %v13822_v27  ;;  %v13847_v26 = vld [vmem:[%s14423_s19] sm:$0xff]   ;;  %v13848_v27 = vld [vmem:[%s14423_s19 + $0x10] sm:$0xff]  }
0x1041   : > { %9669 = vmatpush2.bf16.msra.mxu1 %v13817_v28  ;;  %9712 = vmatpush2.bf16.msra.mxu0 %v13820_v29  ;;  %v13855_v28 = vld [vmem:[#allocation16 + $0x78] sm:$0xff]  }
0x1042   : > { %9670 = vmatprep.subr.bf16.mxu1 %v13825_v30  ;;  %9713 = vmatprep.subr.bf16.mxu0 %v13828_v31  ;;  %v13856_v29 = vld [vmem:[#allocation16 + $0xf8] sm:$0xff]   ;;  %v13849_v30 = vld [vmem:[%s14423_s19 + $0x8] sm:$0xff]  }
0x1043   : > { %v13850_v31 = vld [vmem:[%s14423_s19 + $0x18] sm:$0xff]  }
0x1045   : > { %9671 = vmatpush2.bf16.msra.mxu1 %v13823_v33  ;;  %9714 = vmatpush2.bf16.msra.mxu0 %v13826_v37  ;;  %v13851_v33 = vld [vmem:[%s14423_s19 + $0x20] sm:$0xff]   ;;  %v13852_v37 = vld [vmem:[%s14423_s19 + $0x30] sm:$0xff]  }
0x1046   : > { %9672 = vmatprep.subr.bf16.mxu1 %v13831_v32  ;;  %9715 = vmatprep.subr.bf16.mxu0 %v13834_v38  ;;  %v13857_v32 = vld [vmem:[#allocation16 + $0x38] sm:$0xff]  }
0x1047   : > { %v13858_v38 = vld [vmem:[#allocation16 + $0xb8] sm:$0xff]  }
0x1049   : > { %9673 = vmatpush2.bf16.msra.mxu1 %v13829_v39  ;;  %9716 = vmatpush2.bf16.msra.mxu0 %v13832_v40  ;;  %v13859_v39 = vld [vmem:[#allocation16 + $0x70] sm:$0xff]  }
0x104a   : > { %9674 = vmatprep.subr.bf16.mxu1 %v13837_v44  ;;  %9717 = vmatprep.subr.bf16.mxu0 %v13840_v48  ;;  %v13860_v40 = vld [vmem:[#allocation16 + $0xf0] sm:$0xff]  }
0x104b   : > { %v13861_v44 = vld [vmem:[#allocation16 + $0x30] sm:$0xff]  }
0x104c   : > { %v13862_v48 = vld [vmem:[#allocation16 + $0xb0] sm:$0xff]  }
0x104d   : > { %9675 = vmatpush2.bf16.msra.mxu1 %v13835_v49  ;;  %9718 = vmatpush2.bf16.msra.mxu0 %v13838_v35  ;;  %v13863_v49 = vld [vmem:[#allocation16 + $0x68] sm:$0xff]  }
0x104e   : > { %9676 = vmatprep.subr.bf16.mxu1 %v13843_v47  ;;  %9719 = vmatprep.subr.bf16.mxu0 %v13846_v50  ;;  %v13864_v35 = vld [vmem:[#allocation16 + $0xe8] sm:$0xff]   ;;  %v13854_v50 = vld [vmem:[%s14423_s19 + $0x38] sm:$0xff]  }
0x104f   : > { %v13853_v47 = vld [vmem:[%s14423_s19 + $0x28] sm:$0xff]  }
0x1051   : > { %9677 = vmatpush2.bf16.msra.mxu1 %v13841_v51  ;;  %9720 = vmatpush2.bf16.msra.mxu0 %v13844_v53  ;;  %v13865_v51 = vld [vmem:[#allocation16 + $0x28] sm:$0xff]  }
0x1052   : > { %v13866_v53 = vld [vmem:[#allocation16 + $0xa8] sm:$0xff]  }
0x1054   : > { %9679 = vmatmul.mubr.bf16.vlgmr.msra.gmra.mxu1 %v8776_v43  ;;  %9722 = vmatmul.mubr.bf16.vlgmr.msra.gmra.mxu0 %v8778_v54  ;;  %v13867_v43 = vld [vmem:[#allocation16 + $0x60] sm:$0xff]  }
0x1055   : > { %9790 = vmatprep.mubr.bf16.mxu1 %v14274_v58  ;;  %9864 = vmatprep.mubr.bf16.mxu0 %v14274_v58  ;;  %v13868_v54 = vld [vmem:[#allocation16 + $0xe0] sm:$0xff]  }
0x10d4   : > { %v9594_v55 = vpop.f32.mrf.mxu1  ;;  %v9637_v56 = vpop.f32.mrf.mxu0 }
0x10d5   : > { %v9595_v63 = vadd.f32 %v9594_v55, %v8913_v61  ;;  %v13870_v55 = vld [vmem:[#allocation16 + $0xa0] sm:$0xff]  }
0x10d6   : > { %v9596_v42 = vpop.f32.mrf.mxu1  ;;  %v9639_v57 = vpop.f32.mrf.mxu0 }
0x10d7   : > { %v9597_v34 = vadd.f32 %v9596_v42, %v8917_v60  ;;  %v9638_v5 = vadd.f32 %v9637_v56, %v9595_v63  ;;  %v13871_v56 = vld [vmem:[#allocation16 + $0x58] sm:$0xff]   ;;  %v13880_v63 = vld [vmem:[#allocation16 + $0xc8] sm:$0xff]  }
0x10d8   : > { %v9598_v62 = vpop.f32.mrf.mxu1  ;;  %v9641_v45 = vpop.f32.mrf.mxu0  ;;  %v13872_v42 = vld [vmem:[#allocation16 + $0xd8] sm:$0xff]  }
0x10d9   : > { %v9599_v0 = vadd.f32 %v9598_v62, %v8913_v61  ;;  %v9640_v3 = vadd.f32 %v9639_v57, %v9597_v34  ;;  %v13873_v57 = vld [vmem:[#allocation16 + $0x18] sm:$0xff]   ;;  %v13876_v61 = vld [vmem:[#allocation16 + $0xd0] sm:$0xff]   ;;  %v13879_v34 = vld [vmem:[#allocation16 + $0x48] sm:$0xff]  }
0x10da   : > { %v9600_v46 = vpop.f32.mrf.mxu1  ;;  %v9643_v52 = vpop.f32.mrf.mxu0  ;;  %v13877_v62 = vld [vmem:[#allocation16 + $0x10] sm:$0xff]  }
0x10db   : > { %v9601_v4 = vadd.f32 %v9600_v46, %v8917_v60  ;;  %v9642_v8 = vadd.f32 %v9641_v45, %v9599_v0  ;;  %v13875_v60 = vld [vmem:[#allocation16 + $0x50] sm:$0xff]   ;;  %v13881_v46 = vld [vmem:[#allocation16 + $0x8] sm:$0xff]   ;;  %v13883_v0 = vld [vmem:[#allocation16 + $0x40] sm:$0xff]  }
0x10dc   : > { %v13878_v45 = vld [vmem:[#allocation16 + $0x90] sm:$0xff]  }
0x10dd   : > { %v9644_v41 = vadd.f32 %v9643_v52, %v9601_v4  ;;  %v13882_v52 = vld [vmem:[#allocation16 + $0x88] sm:$0xff]   ;;  %v13887_v4 = vld [vmem:[#allocation16 + $0x178] sm:$0xff]  }
0x1114   : > { %v9680_v1 = vpop.f32.mrf.mxu1  ;;  %v9723_v2 = vpop.f32.mrf.mxu0 }
0x1115   : > { %v9681_v10 = vadd.f32 %v9680_v1, %v9638_v5  ;;  %v13884_v1 = vld [vmem:[#allocation16 + $0xc0] sm:$0xff]   ;;  %v13888_v5 = vld [vmem:[#allocation16 + $0x1f8] sm:$0xff]  }
0x1116   : > { %v9682_v6 = vpop.f32.mrf.mxu1  ;;  %v9725_v7 = vpop.f32.mrf.mxu0 }
0x1117   : > { %v9683_v9 = vadd.f32 %v9682_v6, %v9640_v3  ;;  %v9724_v17 = vadd.f32 %v9723_v2, %v9681_v10  ;;  %v13885_v2 = vld [vmem:[#allocation16] sm:$0xff]  }
0x1118   : > { %v9684_v36 = vpop.f32.mrf.mxu1  ;;  %v9727_v11 = vpop.f32.mrf.mxu0  ;;  %v13886_v3 = vld [vmem:[#allocation16 + $0x80] sm:$0xff]  }
0x1119   : > { %v9685_v12 = vadd.f32 %v9684_v36, %v9642_v8  ;;  %v9726_v14 = vadd.f32 %v9725_v7, %v9683_v9  ;;  %v9732_v23 = vmax.f32 %v9724_v17, 0.0 }
0x111a   : > { %v9686_v13 = vpop.f32.mrf.mxu1  ;;  %v9729_v18 = vpop.f32.mrf.mxu0 }
0x111b   : > { %v9728_v15 = vadd.f32 %v9727_v11, %v9685_v12  ;;  %v9687_v16 = vadd.f32 %v9686_v13, %v9644_v41  ;;  %v9733_v21 = vmax.f32 %v9726_v14, 0.0  ;;  %v13889_v14 = vld [vmem:[#allocation16 + $0x138] sm:$0xff]  }
0x111d   : > { %v9730_v19 = vadd.f32 %v9729_v18, %v9687_v16  ;;  %v9734_v20 = vmax.f32 %v9728_v15, 0.0  ;;  %v13890_v15 = vld [vmem:[#allocation16 + $0x1b8] sm:$0xff]   ;;  %v13891_v18 = vld [vmem:[#allocation16 + $0x170] sm:$0xff]  }
0x111f   : > { %v9735_v22 = vmax.f32 %v9730_v19, 0.0  ;;  %v9736_v25 = vpack.c.bf16 %v9734_v20, %v9732_v23  ;;  %v13892_v19 = vld [vmem:[#allocation16 + $0x1f0] sm:$0xff]  }
0x1121   : > { %v9737_v24 = vpack.c.bf16 %v9735_v22, %v9733_v21 }
0x1123   : > { %9772 = vmatprep.subr.bf16.mxu1 %v9737_v24  ;;  %9846 = vmatprep.subr.bf16.mxu0 %v9737_v24 }
0x1124   : > { %9773 = vmatpush1.bf16.msra.mxu1 %v9736_v25  ;;  %9847 = vmatpush1.bf16.msra.mxu0 %v9736_v25 }
0x1125   : > { %9920 = vmatprep.subr.bf16.mxu1 %v9737_v24  ;;  %9994 = vmatprep.subr.bf16.mxu0 %v9737_v24  ;;  %v13893_v24 = vld [vmem:[#allocation16 + $0x130] sm:$0xff]  }
0x1127   : > { %12037 = vmatmul.mubr.msk.bf16.vlgmr.msra.gmra.mxu1 %vm1664_vm2, %v13847_v26  ;;  %12045 = vmatmul.mubr.msk.bf16.vlgmr.msra.gmra.mxu0 %vm1664_vm2, %v13848_v27  ;;  %v13895_v26 = vld [vmem:[#allocation16 + $0x168] sm:$0xff]  }
0x1128   : > { %9921 = vmatpush1.bf16.msra.mxu1 %v9736_v25  ;;  %9995 = vmatpush1.bf16.msra.mxu0 %v9736_v25  ;;  %v13894_v25 = vld [vmem:[#allocation16 + $0x1b0] sm:$0xff]   ;;  %v13896_v27 = vld [vmem:[#allocation16 + $0x1e8] sm:$0xff]  }
0x1129   : > { %9800 = vmatprep.mubr.bf16.mxu1 %v14274_v58  ;;  %9874 = vmatprep.mubr.bf16.mxu0 %v14274_v58 }
0x112a   : > { %12141 = vmatprep.subr.bf16.mxu1 %v13855_v28  ;;  %12169 = vmatprep.subr.bf16.mxu0 %v13856_v29 }
0x112f   : > { %12038 = vmatmul.mubr.msk.bf16.gmra.mxu1 %vm1664_vm2, %v13849_v30  ;;  %12046 = vmatmul.mubr.msk.bf16.gmra.mxu0 %vm1664_vm2, %v13850_v31 }
0x1130   : > { %9938 = vmatprep.mubr.bf16.mxu1 %v14274_v58  ;;  %10012 = vmatprep.mubr.bf16.mxu0 %v14274_v58 }
0x1137   : > { %12053 = vmatmul.mubr.msk.bf16.vlgmr.msra.gmra.mxu1 %vm1664_vm2, %v13851_v33  ;;  %12061 = vmatmul.mubr.msk.bf16.vlgmr.msra.gmra.mxu0 %vm1664_vm2, %v13852_v37 }
0x1138   : > { %9948 = vmatprep.mubr.bf16.mxu1 %v14274_v58  ;;  %10022 = vmatprep.mubr.bf16.mxu0 %v14274_v58  ;;  %v13869_v58 = vld [vmem:[#allocation16 + $0x20] sm:$0xff]  }
0x1139   : > { %12142 = vmatpush3.bf16.msra.mxu1 %v13857_v32  ;;  %12170 = vmatpush3.bf16.msra.mxu0 %v13858_v38  ;;  %v13897_v32 = vld [vmem:[#allocation16 + $0x128] sm:$0xff]  }
0x113a   : > { %12143 = vmatprep.subr.bf16.mxu1 %v13859_v39  ;;  %12171 = vmatprep.subr.bf16.mxu0 %v13860_v40  ;;  %v13898_v38 = vld [vmem:[#allocation16 + $0x1a8] sm:$0xff]  }
0x113d   : > { %12144 = vmatpush3.bf16.msra.mxu1 %v13861_v44  ;;  %12172 = vmatpush3.bf16.msra.mxu0 %v13862_v48  ;;  %v13899_v44 = vld [vmem:[#allocation16 + $0x160] sm:$0xff]  }
0x113e   : > { %12145 = vmatprep.subr.bf16.mxu1 %v13863_v49  ;;  %12173 = vmatprep.subr.bf16.mxu0 %v13864_v35  ;;  %v13900_v48 = vld [vmem:[#allocation16 + $0x1e0] sm:$0xff]  }
0x113f   : > { %12054 = vmatmul.mubr.msk.bf16.gmra.mxu1 %vm1664_vm2, %v13853_v47  ;;  %12062 = vmatmul.mubr.msk.bf16.gmra.mxu0 %vm1664_vm2, %v13854_v50 }
0x1141   : > { %12146 = vmatpush3.bf16.msra.mxu1 %v13865_v51  ;;  %12174 = vmatpush3.bf16.msra.mxu0 %v13866_v53  ;;  %v13901_v51 = vld [vmem:[#allocation16 + $0x120] sm:$0xff]  }
0x1142   : > { %12147 = vmatprep.subr.bf16.mxu1 %v13867_v43  ;;  %12175 = vmatprep.subr.bf16.mxu0 %v13868_v54  ;;  %v13902_v53 = vld [vmem:[#allocation16 + $0x1a0] sm:$0xff]   ;;  %v13903_v43 = vld [vmem:[#allocation16 + $0x158] sm:$0xff]  }
0x1143   : > { %v13904_v54 = vld [vmem:[#allocation16 + $0x1d8] sm:$0xff]  }
0x1145   : > { %12148 = vmatpush3.bf16.msra.mxu1 %v13869_v58  ;;  %12176 = vmatpush3.bf16.msra.mxu0 %v13870_v55 }
0x1146   : > { %12149 = vmatprep.subr.bf16.mxu1 %v13871_v56  ;;  %12177 = vmatprep.subr.bf16.mxu0 %v13872_v42 }
0x1149   : > { %12150 = vmatpush3.bf16.msra.mxu1 %v13873_v57  ;;  %12178 = vmatpush3.bf16.msra.mxu0 %v13874_v59  ;;  %v13905_v57 = vld [vmem:[#allocation16 + $0x118] sm:$0xff]  }
0x114a   : > { %12151 = vmatprep.subr.bf16.mxu1 %v13875_v60  ;;  %12179 = vmatprep.subr.bf16.mxu0 %v13876_v61  ;;  %v13906_v59 = vld [vmem:[#allocation16 + $0x198] sm:$0xff]  }
0x114d   : > { %12152 = vmatpush3.bf16.msra.mxu1 %v13877_v62  ;;  %12180 = vmatpush3.bf16.msra.mxu0 %v13878_v45  ;;  %v13907_v62 = vld [vmem:[#allocation16 + $0x150] sm:$0xff]  }
0x114e   : > { %12153 = vmatprep.subr.bf16.mxu1 %v13879_v34  ;;  %12181 = vmatprep.subr.bf16.mxu0 %v13880_v63  ;;  %v13908_v45 = vld [vmem:[#allocation16 + $0x1d0] sm:$0xff]  }
0x1151   : > { %12154 = vmatpush3.bf16.msra.mxu1 %v13881_v46  ;;  %12182 = vmatpush3.bf16.msra.mxu0 %v13882_v52  ;;  %v13909_v46 = vld [vmem:[#allocation16 + $0x110] sm:$0xff]  }
0x1152   : > { %12155 = vmatprep.subr.bf16.mxu1 %v13883_v0  ;;  %12183 = vmatprep.subr.bf16.mxu0 %v13884_v1  ;;  %v13910_v52 = vld [vmem:[#allocation16 + $0x190] sm:$0xff]   ;;  %v13911_v0 = vld [vmem:[#allocation16 + $0x148] sm:$0xff]  }
0x1153   : > { %v13912_v1 = vld [vmem:[#allocation16 + $0x1c8] sm:$0xff]  }
0x1155   : > { %12156 = vmatpush3.bf16.msra.mxu1 %v13885_v2  ;;  %12184 = vmatpush3.bf16.msra.mxu0 %v13886_v3 }
0x1156   : > { %12197 = vmatprep.subr.bf16.mxu1 %v13887_v4  ;;  %12225 = vmatprep.subr.bf16.mxu0 %v13888_v5  ;;  %v13913_v4 = vld [vmem:[#allocation16 + $0x108] sm:$0xff]  }
0x1157   : > { %v13914_v5 = vld [vmem:[#allocation16 + $0x188] sm:$0xff]  }
0x11e7   : > { %v9792_v6 = vpop.f32.mrf.mxu1  ;;  %v9866_v7 = vpop.f32.mrf.mxu0 }
0x11e9   : > { %v9794_v8 = vpop.f32.mrf.mxu1  ;;  %v9868_v9 = vpop.f32.mrf.mxu0 }
0x11eb   : > { %v9796_v10 = vpop.f32.mrf.mxu1  ;;  %v9870_v36 = vpop.f32.mrf.mxu0 }
0x11ec   : > { %v10033_v16 = vpack.c.bf16 %v9796_v10, %v9792_v6  ;;  %v10035_v17 = vpack.c.bf16 %v9870_v36, %v9866_v7  ;;  %v13915_v6 = vld [vmem:[#allocation16 + $0x140] sm:$0xff]  }
0x11ed   : > { %v9798_v11 = vpop.f32.mrf.mxu1  ;;  %v9872_v41 = vpop.f32.mrf.mxu0  ;;  %v13916_v7 = vld [vmem:[#allocation16 + $0x1c0] sm:$0xff]  }
0x11ee   : > { %v10034_v12 = vpack.c.bf16 %v9798_v11, %v9794_v8  ;;  %v10036_v13 = vpack.c.bf16 %v9872_v41, %v9868_v9  ;;  %v13917_v10 = vld [vmem:[#allocation16 + $0x100] sm:$0xff]  }
0x11ef   : > { %v9802_v20 = vpop.f32.mrf.mxu1  ;;  %v9876_v21 = vpop.f32.mrf.mxu0  ;;  %v13918_v36 = vld [vmem:[#allocation16 + $0x180] sm:$0xff]  }
0x11f0   : > { %10600 = vmatprep.mubr.bf16.mxu1 %v10034_v12  ;;  %10649 = vmatprep.mubr.bf16.mxu0 %v10036_v13 }
0x11f1   : > { %10601 = vmatmul.mubr.bf16.vlgmr.msra.gmra.mxu1 %v10033_v16  ;;  %10650 = vmatmul.mubr.bf16.vlgmr.msra.gmra.mxu0 %v10035_v17  ;;  %v9804_v22 = vpop.f32.mrf.mxu1  ;;  %v9878_v23 = vpop.f32.mrf.mxu0 }
0x11f2   : > { %12198 = vmatpush3.bf16.msra.mxu1 %v13889_v14  ;;  %12226 = vmatpush3.bf16.msra.mxu0 %v13890_v15 }
0x11f3   : > { %12199 = vmatprep.subr.bf16.mxu1 %v13891_v18  ;;  %12227 = vmatprep.subr.bf16.mxu0 %v13892_v19  ;;  %v9806_v28 = vpop.f32.mrf.mxu1  ;;  %v9880_v29 = vpop.f32.mrf.mxu0 }
0x11f4   : > { %v10041_v30 = vpack.c.bf16 %v9806_v28, %v9802_v20  ;;  %v10043_v33 = vpack.c.bf16 %v9880_v29, %v9876_v21 }
0x11f5   : > { %v9808_v31 = vpop.f32.mrf.mxu1  ;;  %v9882_v37 = vpop.f32.mrf.mxu0 }
0x11f6   : > { %12200 = vmatpush3.bf16.msra.mxu1 %v13893_v24  ;;  %12228 = vmatpush3.bf16.msra.mxu0 %v13894_v25  ;;  %v10042_v39 = vpack.c.bf16 %v9808_v31, %v9804_v22  ;;  %v10044_v40 = vpack.c.bf16 %v9882_v37, %v9878_v23  ;;  %v12063_v37 = vld [vmem:[%s14433_s3] ss:$0 sm:$0xff] }
0x11f7   : > { %12201 = vmatprep.subr.bf16.mxu1 %v13895_v26  ;;  %12229 = vmatprep.subr.bf16.mxu0 %v13896_v27  ;;  %v14814_v49 = vpop.f32.mrf.mxu1  ;;  %v14816_v35 = vpop.f32.mrf.mxu0 }
0x11f8   : > { %10608 = vmatprep.mubr.bf16.mxu1 %v10042_v39  ;;  %10657 = vmatprep.mubr.bf16.mxu0 %v10044_v40 }
0x11f9   : > { %10609 = vmatmul.mubr.bf16.gmra.mxu1 %v10041_v30  ;;  %10658 = vmatmul.mubr.bf16.gmra.mxu0 %v10043_v33  ;;  %v9942_v47 = vpop.f32.mrf.mxu1  ;;  %v10016_v50 = vpop.f32.mrf.mxu0 }
0x11fa   : > { %12202 = vmatpush3.bf16.msra.mxu1 %v13897_v32  ;;  %12230 = vmatpush3.bf16.msra.mxu0 %v13898_v38 }
0x11fb   : > { %12203 = vmatprep.subr.bf16.mxu1 %v13899_v44  ;;  %12231 = vmatprep.subr.bf16.mxu0 %v13900_v48  ;;  %v9944_v58 = vpop.f32.mrf.mxu1  ;;  %v10018_v55 = vpop.f32.mrf.mxu0 }
0x11fc   : > { %v10037_v14 = vpack.c.bf16 %v9944_v58, %v14814_v49  ;;  %v10039_v15 = vpack.c.bf16 %v10018_v55, %v14816_v35 }
0x11fd   : > { %v9946_v56 = vpop.f32.mrf.mxu1  ;;  %v10020_v42 = vpop.f32.mrf.mxu0 }
0x11fe   : > { %12204 = vmatpush3.bf16.msra.mxu1 %v13901_v51  ;;  %12232 = vmatpush3.bf16.msra.mxu0 %v13902_v53  ;;  %v10038_v60 = vpack.c.bf16 %v9946_v56, %v9942_v47  ;;  %v10040_v61 = vpack.c.bf16 %v10020_v42, %v10016_v50 }
0x11ff   : > { %12205 = vmatprep.subr.bf16.mxu1 %v13903_v43  ;;  %12233 = vmatprep.subr.bf16.mxu0 %v13904_v54  ;;  %v9950_v34 = vpop.f32.mrf.mxu1  ;;  %v10024_v63 = vpop.f32.mrf.mxu0 }
0x1200   : > { %10698 = vmatprep.mubr.bf16.mxu1 %v10038_v60  ;;  %10747 = vmatprep.mubr.bf16.mxu0 %v10040_v61 }
0x1201   : > { %v9952_v2 = vpop.f32.mrf.mxu1  ;;  %v10026_v3 = vpop.f32.mrf.mxu0 }
0x1202   : > { %12206 = vmatpush3.bf16.msra.mxu1 %v13905_v57  ;;  %12234 = vmatpush3.bf16.msra.mxu0 %v13906_v59 }
0x1203   : > { %12207 = vmatprep.subr.bf16.mxu1 %v13907_v62  ;;  %12235 = vmatprep.subr.bf16.mxu0 %v13908_v45  ;;  %v9954_v8 = vpop.f32.mrf.mxu1  ;;  %v10028_v9 = vpop.f32.mrf.mxu0 }
0x1204   : > { %v10045_v16 = vpack.c.bf16 %v9954_v8, %v9950_v34  ;;  %v10047_v17 = vpack.c.bf16 %v10028_v9, %v10024_v63 }
0x1205   : > { %v9956_v11 = vpop.f32.mrf.mxu1  ;;  %v10030_v41 = vpop.f32.mrf.mxu0 }
0x1206   : > { %12208 = vmatpush3.bf16.msra.mxu1 %v13909_v46  ;;  %12236 = vmatpush3.bf16.msra.mxu0 %v13910_v52  ;;  %v10046_v12 = vpack.c.bf16 %v9956_v11, %v9952_v2  ;;  %v10048_v13 = vpack.c.bf16 %v10030_v41, %v10026_v3 }
0x1207   : > { %12209 = vmatprep.subr.bf16.mxu1 %v13911_v0  ;;  %12237 = vmatprep.subr.bf16.mxu0 %v13912_v1 }
0x120a   : > { %12210 = vmatpush3.bf16.msra.mxu1 %v13913_v4  ;;  %12238 = vmatpush3.bf16.msra.mxu0 %v13914_v5 }
0x120b   : > { %12211 = vmatprep.subr.bf16.mxu1 %v13915_v6  ;;  %12239 = vmatprep.subr.bf16.mxu0 %v13916_v7 }
0x120e   : > { %12212 = vmatpush3.bf16.msra.mxu1 %v13917_v10  ;;  %12240 = vmatpush3.bf16.msra.mxu0 %v13918_v36 }
0x1211   : > { %10699 = vmatmul.mubr.bf16.vlgmr.msra.gmra.mxu1 %v10037_v14  ;;  %10748 = vmatmul.mubr.bf16.vlgmr.msra.gmra.mxu0 %v10039_v15 }
0x1212   : > { %10706 = vmatprep.mubr.bf16.mxu1 %v10046_v12  ;;  %10755 = vmatprep.mubr.bf16.mxu0 %v10048_v13 }
0x1219   : > { %10707 = vmatmul.mubr.bf16.gmra.mxu1 %v10045_v16  ;;  %10756 = vmatmul.mubr.bf16.gmra.mxu0 %v10047_v17 }
0x12b1   : > { %v12157_v18 = vpop.f32.mrf.mxu1  ;;  %v12185_v19 = vpop.f32.mrf.mxu0 }
0x12b3   : > { %v12158_v20 = vpop.f32.mrf.mxu1  ;;  %v12186_v21 = vpop.f32.mrf.mxu0 }
0x12b4   : > { %v12159_v33 = vadd.f32 %v12158_v20, %v12157_v18  ;;  %v12187_v49 = vadd.f32 %v12186_v21, %v12185_v19 }
0x12b5   : > { %v12160_v22 = vpop.f32.mrf.mxu1  ;;  %v12188_v23 = vpop.f32.mrf.mxu0 }
0x12b6   : > { %v10603_v39 = vadd.f32 %v12159_v33, %v12063_v37 }
0x12b7   : > { %v12161_v24 = vpop.f32.mrf.mxu1  ;;  %v12189_v25 = vpop.f32.mrf.mxu0 }
0x12b8   : > { %v12162_v40 = vadd.f32 %v12161_v24, %v12160_v22  ;;  %v10652_v51 = vadd.f32 %v12187_v49, %v10603_v39  ;;  %v12190_v55 = vadd.f32 %v12189_v25, %v12188_v23 }
0x12b9   : > { %v12163_v26 = vpop.f32.mrf.mxu1  ;;  %v12191_v27 = vpop.f32.mrf.mxu0 }
0x12ba   : > { %v10606_v53 = vadd.f32 %v12162_v40, %v12063_v37 }
0x12bb   : > { %v12164_v28 = vpop.f32.mrf.mxu1  ;;  %v12192_v29 = vpop.f32.mrf.mxu0 }
0x12bc   : > { %v12165_v35 = vadd.f32 %v12164_v28, %v12163_v26  ;;  %v12193_v59 = vadd.f32 %v12192_v29, %v12191_v27  ;;  %v10655_v62 = vadd.f32 %v12190_v55, %v10606_v53 }
0x12bd   : > { %v12166_v30 = vpop.f32.mrf.mxu1  ;;  %v12194_v31 = vpop.f32.mrf.mxu0 }
0x12be   : > { %v10611_v57 = vadd.f32 %v12165_v35, %v12063_v37 }
0x12bf   : > { %v12167_v32 = vpop.f32.mrf.mxu1  ;;  %v12195_v38 = vpop.f32.mrf.mxu0 }
0x12c0   : > { %v12168_v45 = vadd.f32 %v12167_v32, %v12166_v30  ;;  %v10660_v3 = vadd.f32 %v12193_v59, %v10611_v57  ;;  %v12196_v4 = vadd.f32 %v12195_v38, %v12194_v31 }
0x12c2   : > { %v10614_v7 = vadd.f32 %v12168_v45, %v12063_v37 }
0x12c4   : > { %v10663_v16 = vadd.f32 %v12196_v4, %v10614_v7 }
0x12d1   : > { %v12213_v44 = vpop.f32.mrf.mxu1  ;;  %v12241_v48 = vpop.f32.mrf.mxu0 }
0x12d3   : > { %v12214_v47 = vpop.f32.mrf.mxu1  ;;  %v12242_v50 = vpop.f32.mrf.mxu0 }
0x12d4   : > { %v12215_v43 = vadd.f32 %v12214_v47, %v12213_v44  ;;  %v12243_v42 = vadd.f32 %v12242_v50, %v12241_v48 }
0x12d5   : > { %v12216_v54 = vpop.f32.mrf.mxu1  ;;  %v12244_v58 = vpop.f32.mrf.mxu0 }
0x12d6   : > { %v10701_v56 = vadd.f32 %v12215_v43, %v10652_v51 }
0x12d7   : > { %v12217_v60 = vpop.f32.mrf.mxu1  ;;  %v12245_v61 = vpop.f32.mrf.mxu0 }
0x12d8   : > { %v10750_v34 = vadd.f32 %v12243_v42, %v10701_v56  ;;  %v12218_v63 = vadd.f32 %v12217_v60, %v12216_v54  ;;  %v12246_v2 = vadd.f32 %v12245_v61, %v12244_v58 }
0x12d9   : > { %v12219_v46 = vpop.f32.mrf.mxu1  ;;  %v12247_v52 = vpop.f32.mrf.mxu0 }
0x12da   : > { %v10764_v0 = vsub.f32 0.0, %v10750_v34  ;;  %v10704_v1 = vadd.f32 %v12218_v63, %v10655_v62 }
0x12db   : > { %v12220_v5 = vpop.f32.mrf.mxu1  ;;  %v12248_v6 = vpop.f32.mrf.mxu0 }
0x12dc   : > { %v10768_v8 = vmul.f32 1.442695, %v10764_v0  ;;  %v10753_v9 = vadd.f32 %v12246_v2, %v10704_v1  ;;  %v12221_v10 = vadd.f32 %v12220_v5, %v12219_v46  ;;  %v12249_v13 = vadd.f32 %v12248_v6, %v12247_v52 }
0x12dd   : > { %v12222_v36 = vpop.f32.mrf.mxu1  ;;  %v12250_v11 = vpop.f32.mrf.mxu0 }
0x12de   : > { %13919 = vpow2.f32 %v10768_v8  ;;  %v10765_v41 = vsub.f32 0.0, %v10753_v9  ;;  %v10709_v12 = vadd.f32 %v12221_v10, %v10660_v3 }
0x12df   : > { %v12223_v14 = vpop.f32.mrf.mxu1  ;;  %v12251_v15 = vpop.f32.mrf.mxu0 }
0x12e0   : > { %v10770_v17 = vmul.f32 1.442695, %v10765_v41  ;;  %v10758_v18 = vadd.f32 %v12249_v13, %v10709_v12  ;;  %v12224_v19 = vadd.f32 %v12223_v14, %v12222_v36  ;;  %v12252_v22 = vadd.f32 %v12251_v15, %v12250_v11 }
0x12e2   : > { %13921 = vpow2.f32 %v10770_v17  ;;  %v10766_v20 = vsub.f32 0.0, %v10758_v18  ;;  %v10712_v21 = vadd.f32 %v12224_v19, %v10663_v16 }
0x12e4   : > { %v10772_v23 = vmul.f32 1.442695, %v10766_v20  ;;  %v10761_v24 = vadd.f32 %v12252_v22, %v10712_v21 }
0x12e6   : > { %13923 = vpow2.f32 %v10772_v23  ;;  %v10767_v25 = vsub.f32 0.0, %v10761_v24 }
0x12e8   : > { %v10774_v26 = vmul.f32 1.442695, %v10767_v25 }
0x12ea   : > { %13925 = vpow2.f32 %v10774_v26 }
0x12eb   : > { %v13920_v27 = vpop.eup %13919 }
0x12ec   : > { %v10776_v28 = vadd.f32 1.0, %v13920_v27 }
0x12ee   : > { %13927 = vrcp.f32 %v10776_v28 }
0x12ef   : > { %v13922_v29 = vpop.eup %13921 }
0x12f0   : > { %v10777_v30 = vadd.f32 1.0, %v13922_v29 }
0x12f2   : > { %13929 = vrcp.f32 %v10777_v30 }
0x12f3   : > { %v13924_v31 = vpop.eup %13923 }
0x12f4   : > { %v10778_v33 = vadd.f32 1.0, %v13924_v31 }
0x12f6   : > { %13931 = vrcp.f32 %v10778_v33 }
0x12f7   : > { %v13926_v37 = vpop.eup %13925 }
0x12f8   : > { %v10779_v32 = vadd.f32 1.0, %v13926_v37 }
0x12fa   : > { %13933 = vrcp.f32 %v10779_v32 }
0x12fb   : > { %v13928_v38 = vpop.eup %13927 }
0x12fc   : > { %10784 = vst [vmem:[%s1104_s26] sm:$0xff] %v13928_v38 }
0x12ff   : > { %v13930_v39 = vpop.eup %13929 }
0x1300   : > { %10785 = vst [vmem:[%s1104_s26 + $0x8] sm:$0xff] %v13930_v39 }
0x1303   : > { %v13932_v40 = vpop.eup %13931 }
0x1304   : > { %10786 = vst [vmem:[%s1104_s26 + $0x10] sm:$0xff] %v13932_v40 }
0x1307   : > { %v13934_v44 = vpop.eup %13933 }
0x1308   : > { %10787 = vst [vmem:[%s1104_s26 + $0x18] sm:$0xff] %v13934_v44 }
0x1309 PF: > { %s79_s22 = sadd.s32 1, %s14225_s22  }
0x130a   : > { %p76_p13 = scmp.ge.s32.totalorder %s79_s22, 4  }
0x130c   :  { %78 = sbr.rel (!%p76_p13) target bundleno = 55 (0x37), region = 271 }
0x1311   :  { %10809 = vsyncpa [#allocation3], 1 }
0x1312   :  { %10811 = vsyncpa [#allocation3 + $0x1], 1 }
0x1313   :  { %10812 = vsyncpa [#allocation5], 1 }
0x1314   :  { %10813 = vsyncpa [#allocation8], 1 }
0x1315   :  { %10814 = vsyncpa [#allocation11], 1 }
0x1316   :  { %10815 = vsyncpa [#allocation14], 1 }
0x1317   :  { %10816 = vsyncpa [#allocation17], 1 }

</bundles_post_ra>
